<compile_context>
chip_gen: v5e
topology: v5e:2x2
jax: 0.10.0
libtpu: 0.0.40
codegen_flags: <defaults>
</compile_context>

<pallas_src>
import functools

import jax
import jax.numpy as jnp
from jax.experimental import pallas as pl
from jax.experimental.pallas import tpu as pltpu

# ---------------- small synthetic config ----------------
VOCAB = 64
HIDDEN = 32
NUM_HEADS = 2
HEAD_DIM = HIDDEN // NUM_HEADS
INTERMEDIATE = 64
NUM_LAYERS = 2
MAX_POS = 64
PATTERN = 5          # module-level global `PATTERN` in lstm_bert.py
LN_EPS = 1e-12

# ---------------- packed-slab layouts (shared by host packing and kernel) ----------------
# matrix slab: every (HIDDEN, .) weight, each zero-padded to a 128-lane block
_MAT_ORDER = (["lstm_wih", "lstm_whh", "cell_wih", "cell_whh"]
              + [f"{n}{l}" for l in range(NUM_LAYERS) for n in ("wqkv", "wo", "wi")]
              + ["cls_dense_w", "decoder_w"])
MAT_COL = {n: 128 * i for i, n in enumerate(_MAT_ORDER)}

# vector slab: every bias / LN vector as one zero-padded 128-lane row
_VEC_ORDER = (["type_emb", "emb_ln_g", "emb_ln_b", "lstm_b", "cell_b"]
              + [f"{n}{l}" for l in range(NUM_LAYERS)
                 for n in ("bqkv", "bo", "ln1g", "ln1b", "bi", "bd", "ln2g", "ln2b")]
              + ["cls_dense_b", "cls_ln_g", "cls_ln_b", "decoder_b"])
VEC_ROW = {n: i for i, n in enumerate(_VEC_ORDER)}


# ---------------- in-kernel helpers (pure value math) ----------------

def _layernorm(x, g, b, eps=LN_EPS):
    mu = jnp.mean(x, axis=-1, keepdims=True)
    var = jnp.mean(jnp.square(x - mu), axis=-1, keepdims=True)
    return (x - mu) * jax.lax.rsqrt(var + eps) * g + b


def _erf(z):
    # Abramowitz & Stegun 7.1.26 rational approximation (|err| < 1.5e-7),
    # built only from exp/mul/add/where so it lowers cleanly to VPU + EUP.
    a = jnp.abs(z)
    t = 1.0 / (1.0 + 0.3275911 * a)
    poly = t * (0.254829592 + t * (-0.284496736 + t * (1.421413741
               + t * (-1.453152027 + t * 1.061405429))))
    e = 1.0 - poly * jnp.exp(-a * a)
    return jnp.where(z >= 0.0, e, -e)


def _gelu(x):
    # exact (erf-based) GELU, matching HF BERT's "gelu" activation
    return 0.5 * x * (1.0 + _erf(x * 0.7071067811865476))


# ---------------- the single fused kernel ----------------

def _fused_forward_kernel(tok_ref, tab_ref, mat_ref, wd_ref, vec_ref,
                          o_ref, fp_ref, *, batch, seq):
    B, S, H, I, V = batch, seq, HIDDEN, INTERMEDIATE, VOCAB
    T = S + PATTERN
    f32 = jnp.float32

    def mat(name, width):                     # static lane window of the matrix slab
        c = MAT_COL[name]
        return mat_ref[:, c:c + width]

    def vec(name, width):                     # static (1, width) row of the vector slab
        r = VEC_ROW[name]
        return vec_ref[r:r + 1, 0:width]

    # ---- BertEmbeddings: fused word+position one-hot matmul (K = 128), + type(0), LN ----
    tab = tab_ref[...]                                           # (VOCAB+MAX_POS, H)
    iota = jax.lax.broadcasted_iota(jnp.int32, (B * S, V + MAX_POS), 1)
    type0 = vec("type_emb", H)
    eg, eb = vec("emb_ln_g", H), vec("emb_ln_b", H)

    def embed(id_col, pos_col):
        hot = ((iota == id_col) | (iota == (pos_col + V))).astype(f32)
        e = jnp.dot(hot, tab, preferred_element_type=f32) + type0
        return _layernorm(e, eg, eb)

    emb_bm = embed(tok_ref[:, 0:1], tok_ref[:, 1:2])   # rows (b, t): used for the splice
    emb_tm = embed(tok_ref[:, 2:3], tok_ref[:, 3:4])   # rows (t, b): recurrence input

    # ---- nn.LSTM, batched over B, fully unrolled (S static) ----
    lstm_wih, lstm_whh = mat("lstm_wih", 4 * H), mat("lstm_whh", 4 * H)
    cell_wih, cell_whh = mat("cell_wih", 4 * H), mat("cell_whh", 4 * H)
    lstm_b, cell_b = vec("lstm_b", 4 * H), vec("cell_b", 4 * H)

    # hidden->hidden weights pre-split per gate (i, f, g, o) OFF the recurrence chain,
    # so no step ever lane-slices an MXU result on the serial path.
    whh = [lstm_whh[:, k * H:(k + 1) * H] for k in range(4)]
    whc = [cell_whh[:, k * H:(k + 1) * H] for k in range(4)]

    def lstm_step(g_in, h, c, w):
        # g_in: (B, 4H) hoisted input projection (independent of h/c -> slices off-chain)
        i_g = jax.nn.sigmoid(g_in[:, 0 * H:1 * H] + jnp.dot(h, w[0], preferred_element_type=f32))
        f_g = jax.nn.sigmoid(g_in[:, 1 * H:2 * H] + jnp.dot(h, w[1], preferred_element_type=f32))
        g_g = jnp.tanh(g_in[:, 2 * H:3 * H] + jnp.dot(h, w[2], preferred_element_type=f32))
        o_g = jax.nn.sigmoid(g_in[:, 3 * H:4 * H] + jnp.dot(h, w[3], preferred_element_type=f32))
        c_new = f_g * c + i_g * g_g
        return o_g * jnp.tanh(c_new), c_new

    # input projection for all timesteps in ONE matmul, hoisted off the serial chain
    gx = jnp.dot(emb_tm, lstm_wih, preferred_element_type=f32) + lstm_b      # (S*B, 4H)

    h = jnp.zeros((B, H), f32)
    c = jnp.zeros((B, H), f32)
    hs = []
    for t in range(S):                        # one (B,H) state update per step
        h, c = lstm_step(gx[t * B:(t + 1) * B, :], h, c, whh)
        hs.append(h)

    # ---- 5 nn.LSTMCell steps on state[-6:-1]; input projections hoisted off the chain ----
    gxc = [jnp.dot(hs[S - 6 + i], cell_wih, preferred_element_type=f32) + cell_b
           for i in range(PATTERN)]
    hx, cx = h, c                             # (h_n, c_n) from the LSTM
    cell_hs = []
    for i in range(PATTERN):
        hx, cx = lstm_step(gxc[i], hx, cx, whc)
        cell_hs.append(hx)

    # ---- splice: final_p = [emb t0..t5 | 5 cell outputs | emb t6..tS-1] per batch ----
    # (row scatter -> one small VMEM scratch; written once, read once per batch)
    for b in range(B):
        fp_ref[b * T:b * T + 1 + PATTERN, :] = emb_bm[b * S:b * S + 1 + PATTERN, :]
        if S > 1 + PATTERN:
            fp_ref[b * T + 1 + 2 * PATTERN:(b + 1) * T, :] = \
                emb_bm[b * S + 1 + PATTERN:(b + 1) * S, :]
    for i in range(PATTERN):
        for b in range(B):
            row = b * T + 1 + PATTERN + i
            fp_ref[row:row + 1, :] = cell_hs[i][b:b + 1, :]

    # ---- BertEncoder (attention_mask is all zeros -> additive no-op) ----
    # per-batch (T, H) activations stay in vregs; weights loaded once per layer.
    xs = [fp_ref[b * T:(b + 1) * T, :] for b in range(B)]

    for l in range(NUM_LAYERS):
        wqkv, wo = mat(f"wqkv{l}", 3 * H), mat(f"wo{l}", H)
        wi, wd = mat(f"wi{l}", I), wd_ref[l]
        bqkv, bo = vec(f"bqkv{l}", 3 * H), vec(f"bo{l}", H)
        ln1g, ln1b = vec(f"ln1g{l}", H), vec(f"ln1b{l}", H)
        bi, bd = vec(f"bi{l}", I), vec(f"bd{l}", H)
        ln2g, ln2b = vec(f"ln2g{l}", H), vec(f"ln2b{l}", H)

        for b in range(B):
            x = xs[b]                                                    # (T, H)
            # q columns of wqkv/bqkv were pre-scaled by 1/sqrt(head_dim) host-side
            qkv = jnp.dot(x, wqkv, preferred_element_type=f32) + bqkv    # (T, 3H)
            attn = jnp.zeros((T, H), f32)
            for hd in range(NUM_HEADS):
                c0 = hd * HEAD_DIM
                q = qkv[:, 0 * H + c0:0 * H + c0 + HEAD_DIM]
                k = qkv[:, 1 * H + c0:1 * H + c0 + HEAD_DIM]
                v = qkv[:, 2 * H + c0:2 * H + c0 + HEAD_DIM]
                s = jax.lax.dot_general(q, k, (((1,), (1,)), ((), ())),
                                        preferred_element_type=f32)      # (T, T)
                e = jnp.exp(s - jnp.max(s, axis=-1, keepdims=True))
                p = e * pl.reciprocal(jnp.sum(e, axis=-1, keepdims=True), approx=True)
                ctx = jnp.dot(p, v, preferred_element_type=f32)          # (T, hd)
                # head merge folded into the output projection; chained +dot accumulation
                attn = attn + jnp.dot(ctx, wo[c0:c0 + HEAD_DIM, :],
                                      preferred_element_type=f32)
            x1 = _layernorm(attn + bo + x, ln1g, ln1b)
            inter = _gelu(jnp.dot(x1, wi, preferred_element_type=f32) + bi)
            ff = jnp.dot(inter, wd, preferred_element_type=f32) + bd
            xs[b] = _layernorm(ff + x1, ln2g, ln2b)

    # ---- MLM cls head: dense + gelu + LN + decoder (padded to 128 lanes -> dense store) ----
    clsw, clsb = mat("cls_dense_w", H), vec("cls_dense_b", H)
    clng, clnb = vec("cls_ln_g", H), vec("cls_ln_b", H)
    decw, decb = mat("decoder_w", 128), vec("decoder_b", 128)   # zero-padded beyond VOCAB
    for b in range(B):
        hc = _gelu(jnp.dot(xs[b], clsw, preferred_element_type=f32) + clsb)
        hc = _layernorm(hc, clng, clnb)
        o_ref[b * T:(b + 1) * T, :] = (jnp.dot(hc, decw, preferred_element_type=f32) + decb)


# ---------------- parameters (synthetic, deterministic, kernel-ready layouts) ----------------

def init_params(key):
    keys = iter(jax.random.split(key, 64))

    def w(shape, scale=0.02):
        return scale * jax.random.normal(next(keys), shape, jnp.float32)

    def ones(*s):
        return jnp.ones(s, jnp.float32)

    def zeros(*s):
        return jnp.zeros(s, jnp.float32)

    L, H, I, V = NUM_LAYERS, HIDDEN, INTERMEDIATE, VOCAB
    return {
        "word_emb": w((V, H)),
        "pos_emb": w((MAX_POS, H)),
        "type_emb": w((2, H)),
        "emb_ln_g": ones(1, H), "emb_ln_b": zeros(1, H),
        # nn.LSTM(H,H,1,batch_first): weights pre-transposed to (H,4H), gate order
        # i,f,g,o; bias = bias_ih + bias_hh combined.
        "lstm_w_ih": w((H, 4 * H), 0.1), "lstm_w_hh": w((H, 4 * H), 0.1),
        "lstm_b": w((1, 4 * H), 0.1),
        # nn.LSTMCell(H,H), same layout
        "cell_w_ih": w((H, 4 * H), 0.1), "cell_w_hh": w((H, 4 * H), 0.1),
        "cell_b": w((1, 4 * H), 0.1),
        # encoder layers stacked over the layer dim; q/k/v fused into one (H,3H) weight
        "wqkv": w((L, H, 3 * H)), "bqkv": zeros(L, 1, 3 * H),
        "wo": w((L, H, H)),       "bo": zeros(L, 1, H),
        "ln1_g": ones(L, 1, H),   "ln1_b": zeros(L, 1, H),
        "wi": w((L, H, I)),       "bi": zeros(L, 1, I),
        "wd": w((L, I, H)),       "bd": zeros(L, 1, H),
        "ln2_g": ones(L, 1, H),   "ln2_b": zeros(L, 1, H),
        # cls = BertLMPredictionHead: dense + gelu + LayerNorm + decoder
        "cls_dense_w": w((H, H)), "cls_dense_b": zeros(1, H),
        "cls_ln_g": ones(1, H),   "cls_ln_b": zeros(1, H),
        "decoder_w": w((H, V)),   "decoder_b": zeros(1, V),
    }


# ---------------- host-side packing into a few contiguous slabs ----------------

def _pack_params(p):
    H, L = HIDDEN, NUM_LAYERS
    scale = 1.0 / (HEAD_DIM ** 0.5)
    # fold the attention scale into the q columns of the fused qkv weight / bias
    wqkv = p["wqkv"].at[:, :, :H].multiply(scale)
    bqkv = p["bqkv"].at[:, :, :H].multiply(scale)

    emb_tables = jnp.concatenate([p["word_emb"], p["pos_emb"]], axis=0)  # (V+MAX_POS, H)

    mats = {"lstm_wih": p["lstm_w_ih"], "lstm_whh": p["lstm_w_hh"],
            "cell_wih": p["cell_w_ih"], "cell_whh": p["cell_w_hh"],
            "cls_dense_w": p["cls_dense_w"], "decoder_w": p["decoder_w"]}
    vecs = {"type_emb": p["type_emb"][0:1], "emb_ln_g": p["emb_ln_g"],
            "emb_ln_b": p["emb_ln_b"], "lstm_b": p["lstm_b"], "cell_b": p["cell_b"],
            "cls_dense_b": p["cls_dense_b"], "cls_ln_g": p["cls_ln_g"],
            "cls_ln_b": p["cls_ln_b"], "decoder_b": p["decoder_b"]}
    for l in range(L):
        mats[f"wqkv{l}"], mats[f"wo{l}"], mats[f"wi{l}"] = wqkv[l], p["wo"][l], p["wi"][l]
        vecs[f"bqkv{l}"], vecs[f"bo{l}"] = bqkv[l], p["bo"][l]
        vecs[f"ln1g{l}"], vecs[f"ln1b{l}"] = p["ln1_g"][l], p["ln1_b"][l]
        vecs[f"bi{l}"], vecs[f"bd{l}"] = p["bi"][l], p["bd"][l]
        vecs[f"ln2g{l}"], vecs[f"ln2b{l}"] = p["ln2_g"][l], p["ln2_b"][l]

    def lane_pad(m):
        m = jnp.asarray(m, jnp.float32)
        return jnp.pad(m, ((0, 0), (0, 128 - m.shape[-1])))

    mat_slab = jnp.concatenate([lane_pad(mats[n]) for n in _MAT_ORDER], axis=1)
    vec_slab = jnp.concatenate(
        [lane_pad(jnp.asarray(vecs[n], jnp.float32).reshape(1, -1)) for n in _VEC_ORDER],
        axis=0)
    return {"emb_tables": emb_tables, "mat_slab": mat_slab,
            "wd": p["wd"], "vec_slab": vec_slab}


# ---------------- wrapper ----------------

def forward(params, input_ids, position_ids):
    # NOTE: `position_ids` is accepted but unused — the reference forward calls
    # self.embeddings(input_ids), which uses the default 0..S-1 position ids.
    del position_ids
    B, S = input_ids.shape
    assert 1 + PATTERN <= S <= MAX_POS, "splice / state[-6:-1] require 6 <= S <= MAX_POS"
    T = S + PATTERN

    packed = _pack_params(params)

    # token-index array: [id batch-major, pos batch-major, id time-major, pos time-major]
    pos = jnp.arange(S, dtype=jnp.int32)
    ids_bm = input_ids.astype(jnp.int32).reshape(B * S)        # row = b*S + t
    pos_bm = jnp.tile(pos, B)
    ids_tm = input_ids.astype(jnp.int32).T.reshape(B * S)      # row = t*B + b
    pos_tm = jnp.repeat(pos, B)
    tok = jnp.stack([ids_bm, pos_bm, ids_tm, pos_tm], axis=1)  # (B*S, 4) int32

    kernel = functools.partial(_fused_forward_kernel, batch=B, seq=S)
    vmem = pltpu.MemorySpace.VMEM
    out = pl.pallas_call(
        kernel,
        out_shape=jax.ShapeDtypeStruct((B * T, 128), jnp.float32),   # lane-dense output
        in_specs=[pl.BlockSpec(memory_space=vmem)] * 5,
        out_specs=pl.BlockSpec(memory_space=vmem),
        scratch_shapes=[pltpu.VMEM((B * T, HIDDEN), jnp.float32)],   # splice assembly
    )(tok, packed["emb_tables"], packed["mat_slab"], packed["wd"], packed["vec_slab"])
    return out[:, :VOCAB].reshape(B, T, VOCAB)


if __name__ == "__main__":
    key = jax.random.PRNGKey(0)
    pkey, ikey = jax.random.split(key)
    params = init_params(pkey)

    B, S = 2, 8
    input_ids = jax.random.randint(ikey, (B, S), 0, VOCAB, dtype=jnp.int32)
    position_ids = jnp.broadcast_to(jnp.arange(S, dtype=jnp.int32), (B, S))

    logits = jax.jit(forward)(params, input_ids, position_ids)
    jax.block_until_ready(logits)
    assert logits.shape == (B, S + PATTERN, VOCAB), logits.shape
    print("KERNEL_OK")
</pallas_src>

<mosaic_0001>
module attributes {stable_mosaic.version = 11 : i64} {
  func.func @_fused_forward_kernel(%arg0: memref<16x4xi32, #tpu.memory_space<vmem>>, %arg1: memref<128x32xf32, #tpu.memory_space<vmem>>, %arg2: memref<32x1536xf32, #tpu.memory_space<vmem>>, %arg3: memref<2x64x32xf32, #tpu.memory_space<vmem>>, %arg4: memref<25x128xf32, #tpu.memory_space<vmem>>, %arg5: memref<26x128xf32, #tpu.memory_space<vmem>>, %arg6: memref<26x32xf32, #tpu.memory_space<vmem>>) attributes {dimension_semantics = [], scalar_prefetch = 0 : i64, scratch_operands = 1 : i64, tpu.core_type = #tpu.core_type<tc>} {
    %c0 = arith.constant 0 : index
    %c0_0 = arith.constant 0 : index
    %0 = vector.load %arg1[%c0, %c0_0] : memref<128x32xf32, #tpu.memory_space<vmem>>, vector<128x32xf32>
    %1 = tpu.iota {dimensions = array<i32: 1>} : vector<16x128xi32>
    %c0_1 = arith.constant 0 : index
    %c0_2 = arith.constant 0 : index
    %2 = vector.load %arg4[%c0_1, %c0_2] : memref<25x128xf32, #tpu.memory_space<vmem>>, vector<1x32xf32>
    %c1 = arith.constant 1 : index
    %c0_3 = arith.constant 0 : index
    %3 = vector.load %arg4[%c1, %c0_3] : memref<25x128xf32, #tpu.memory_space<vmem>>, vector<1x32xf32>
    %c2 = arith.constant 2 : index
    %c0_4 = arith.constant 0 : index
    %4 = vector.load %arg4[%c2, %c0_4] : memref<25x128xf32, #tpu.memory_space<vmem>>, vector<1x32xf32>
    %c0_5 = arith.constant 0 : index
    %c0_6 = arith.constant 0 : index
    %5 = vector.load %arg0[%c0_5, %c0_6] : memref<16x4xi32, #tpu.memory_space<vmem>>, vector<16x1xi32>
    %c0_7 = arith.constant 0 : index
    %c1_8 = arith.constant 1 : index
    %6 = vector.load %arg0[%c0_7, %c1_8] : memref<16x4xi32, #tpu.memory_space<vmem>>, vector<16x1xi32>
    %7 = vector.broadcast %5 : vector<16x1xi32> to vector<16x128xi32>
    %8 = arith.cmpi eq, %1, %7 : vector<16x128xi32>
    %c64_i32 = arith.constant 64 : i32
    %9 = vector.broadcast %c64_i32 : i32 to vector<16x1xi32>
    %10 = arith.addi %6, %9 : vector<16x1xi32>
    %11 = vector.broadcast %10 : vector<16x1xi32> to vector<16x128xi32>
    %12 = arith.cmpi eq, %1, %11 : vector<16x128xi32>
    %13 = arith.ori %8, %12 : vector<16x128xi1>
    %14 = arith.extui %13 : vector<16x128xi1> to vector<16x128xi32>
    %15 = arith.sitofp %14 : vector<16x128xi32> to vector<16x128xf32>
    %cst = arith.constant dense<0.000000e+00> : vector<16x32xf32>
    %16 = tpu.matmul %15, %0, %cst {dimension_numbers = #tpu.dot_dimension_numbers<[1], [0], [0], [1], [0, 0, 1, 1], [], []>} : vector<16x128xf32>, vector<128x32xf32>, vector<16x32xf32> -> vector<16x32xf32>
    %17 = vector.broadcast %2 : vector<1x32xf32> to vector<16x32xf32>
    %18 = arith.addf %16, %17 : vector<16x32xf32>
    %cst_9 = arith.constant dense<0.000000e+00> : vector<16xf32>
    %19 = vector.multi_reduction <add>, %18, %cst_9 [1] : vector<16x32xf32> to vector<16xf32>
    %20 = vector.shape_cast %19 : vector<16xf32> to vector<16x1xf32>
    %cst_10 = arith.constant 3.200000e+01 : f32
    %21 = vector.broadcast %cst_10 : f32 to vector<16x1xf32>
    %22 = arith.divf %20, %21 : vector<16x1xf32>
    %23 = vector.broadcast %22 : vector<16x1xf32> to vector<16x32xf32>
    %24 = arith.subf %18, %23 : vector<16x32xf32>
    %25 = arith.mulf %24, %24 : vector<16x32xf32>
    %cst_11 = arith.constant dense<0.000000e+00> : vector<16xf32>
    %26 = vector.multi_reduction <add>, %25, %cst_11 [1] : vector<16x32xf32> to vector<16xf32>
    %27 = vector.shape_cast %26 : vector<16xf32> to vector<16x1xf32>
    %cst_12 = arith.constant 3.200000e+01 : f32
    %28 = vector.broadcast %cst_12 : f32 to vector<16x1xf32>
    %29 = arith.divf %27, %28 : vector<16x1xf32>
    %30 = vector.broadcast %22 : vector<16x1xf32> to vector<16x32xf32>
    %31 = arith.subf %18, %30 : vector<16x32xf32>
    %cst_13 = arith.constant 9.99999996E-13 : f32
    %32 = vector.broadcast %cst_13 : f32 to vector<16x1xf32>
    %33 = arith.addf %29, %32 : vector<16x1xf32>
    %34 = math.rsqrt %33 : vector<16x1xf32>
    %35 = vector.broadcast %34 : vector<16x1xf32> to vector<16x32xf32>
    %36 = arith.mulf %31, %35 : vector<16x32xf32>
    %37 = vector.broadcast %3 : vector<1x32xf32> to vector<16x32xf32>
    %38 = arith.mulf %36, %37 : vector<16x32xf32>
    %39 = vector.broadcast %4 : vector<1x32xf32> to vector<16x32xf32>
    %40 = arith.addf %38, %39 : vector<16x32xf32>
    %c0_14 = arith.constant 0 : index
    %c2_15 = arith.constant 2 : index
    %41 = vector.load %arg0[%c0_14, %c2_15] : memref<16x4xi32, #tpu.memory_space<vmem>>, vector<16x1xi32>
    %c0_16 = arith.constant 0 : index
    %c3 = arith.constant 3 : index
    %42 = vector.load %arg0[%c0_16, %c3] : memref<16x4xi32, #tpu.memory_space<vmem>>, vector<16x1xi32>
    %43 = vector.broadcast %41 : vector<16x1xi32> to vector<16x128xi32>
    %44 = arith.cmpi eq, %1, %43 : vector<16x128xi32>
    %c64_i32_17 = arith.constant 64 : i32
    %45 = vector.broadcast %c64_i32_17 : i32 to vector<16x1xi32>
    %46 = arith.addi %42, %45 : vector<16x1xi32>
    %47 = vector.broadcast %46 : vector<16x1xi32> to vector<16x128xi32>
    %48 = arith.cmpi eq, %1, %47 : vector<16x128xi32>
    %49 = arith.ori %44, %48 : vector<16x128xi1>
    %50 = arith.extui %49 : vector<16x128xi1> to vector<16x128xi32>
    %51 = arith.sitofp %50 : vector<16x128xi32> to vector<16x128xf32>
    %cst_18 = arith.constant dense<0.000000e+00> : vector<16x32xf32>
    %52 = tpu.matmul %51, %0, %cst_18 {dimension_numbers = #tpu.dot_dimension_numbers<[1], [0], [0], [1], [0, 0, 1, 1], [], []>} : vector<16x128xf32>, vector<128x32xf32>, vector<16x32xf32> -> vector<16x32xf32>
    %53 = vector.broadcast %2 : vector<1x32xf32> to vector<16x32xf32>
    %54 = arith.addf %52, %53 : vector<16x32xf32>
    %cst_19 = arith.constant dense<0.000000e+00> : vector<16xf32>
    %55 = vector.multi_reduction <add>, %54, %cst_19 [1] : vector<16x32xf32> to vector<16xf32>
    %56 = vector.shape_cast %55 : vector<16xf32> to vector<16x1xf32>
    %cst_20 = arith.constant 3.200000e+01 : f32
    %57 = vector.broadcast %cst_20 : f32 to vector<16x1xf32>
    %58 = arith.divf %56, %57 : vector<16x1xf32>
    %59 = vector.broadcast %58 : vector<16x1xf32> to vector<16x32xf32>
    %60 = arith.subf %54, %59 : vector<16x32xf32>
    %61 = arith.mulf %60, %60 : vector<16x32xf32>
    %cst_21 = arith.constant dense<0.000000e+00> : vector<16xf32>
    %62 = vector.multi_reduction <add>, %61, %cst_21 [1] : vector<16x32xf32> to vector<16xf32>
    %63 = vector.shape_cast %62 : vector<16xf32> to vector<16x1xf32>
    %cst_22 = arith.constant 3.200000e+01 : f32
    %64 = vector.broadcast %cst_22 : f32 to vector<16x1xf32>
    %65 = arith.divf %63, %64 : vector<16x1xf32>
    %66 = vector.broadcast %58 : vector<16x1xf32> to vector<16x32xf32>
    %67 = arith.subf %54, %66 : vector<16x32xf32>
    %cst_23 = arith.constant 9.99999996E-13 : f32
    %68 = vector.broadcast %cst_23 : f32 to vector<16x1xf32>
    %69 = arith.addf %65, %68 : vector<16x1xf32>
    %70 = math.rsqrt %69 : vector<16x1xf32>
    %71 = vector.broadcast %70 : vector<16x1xf32> to vector<16x32xf32>
    %72 = arith.mulf %67, %71 : vector<16x32xf32>
    %73 = vector.broadcast %3 : vector<1x32xf32> to vector<16x32xf32>
    %74 = arith.mulf %72, %73 : vector<16x32xf32>
    %75 = vector.broadcast %4 : vector<1x32xf32> to vector<16x32xf32>
    %76 = arith.addf %74, %75 : vector<16x32xf32>
    %c0_24 = arith.constant 0 : index
    %c0_25 = arith.constant 0 : index
    %77 = vector.load %arg2[%c0_24, %c0_25] : memref<32x1536xf32, #tpu.memory_space<vmem>>, vector<32x128xf32>
    %c0_26 = arith.constant 0 : index
    %c128 = arith.constant 128 : index
    %78 = vector.load %arg2[%c0_26, %c128] : memref<32x1536xf32, #tpu.memory_space<vmem>>, vector<32x128xf32>
    %c0_27 = arith.constant 0 : index
    %c256 = arith.constant 256 : index
    %79 = vector.load %arg2[%c0_27, %c256] : memref<32x1536xf32, #tpu.memory_space<vmem>>, vector<32x128xf32>
    %c0_28 = arith.constant 0 : index
    %c384 = arith.constant 384 : index
    %80 = vector.load %arg2[%c0_28, %c384] : memref<32x1536xf32, #tpu.memory_space<vmem>>, vector<32x128xf32>
    %c3_29 = arith.constant 3 : index
    %c0_30 = arith.constant 0 : index
    %81 = vector.load %arg4[%c3_29, %c0_30] : memref<25x128xf32, #tpu.memory_space<vmem>>, vector<1x128xf32>
    %c4 = arith.constant 4 : index
    %c0_31 = arith.constant 0 : index
    %82 = vector.load %arg4[%c4, %c0_31] : memref<25x128xf32, #tpu.memory_space<vmem>>, vector<1x128xf32>
    %83 = vector.extract_strided_slice %78 {offsets = [0, 0], sizes = [32, 32], strides = [1, 1]} : vector<32x128xf32> to vector<32x32xf32>
    %84 = vector.extract_strided_slice %78 {offsets = [0, 32], sizes = [32, 32], strides = [1, 1]} : vector<32x128xf32> to vector<32x32xf32>
    %85 = vector.extract_strided_slice %78 {offsets = [0, 64], sizes = [32, 32], strides = [1, 1]} : vector<32x128xf32> to vector<32x32xf32>
    %86 = vector.extract_strided_slice %78 {offsets = [0, 96], sizes = [32, 32], strides = [1, 1]} : vector<32x128xf32> to vector<32x32xf32>
    %87 = vector.extract_strided_slice %80 {offsets = [0, 0], sizes = [32, 32], strides = [1, 1]} : vector<32x128xf32> to vector<32x32xf32>
    %88 = vector.extract_strided_slice %80 {offsets = [0, 32], sizes = [32, 32], strides = [1, 1]} : vector<32x128xf32> to vector<32x32xf32>
    %89 = vector.extract_strided_slice %80 {offsets = [0, 64], sizes = [32, 32], strides = [1, 1]} : vector<32x128xf32> to vector<32x32xf32>
    %90 = vector.extract_strided_slice %80 {offsets = [0, 96], sizes = [32, 32], strides = [1, 1]} : vector<32x128xf32> to vector<32x32xf32>
    %cst_32 = arith.constant dense<0.000000e+00> : vector<16x128xf32>
    %91 = tpu.matmul %76, %77, %cst_32 {dimension_numbers = #tpu.dot_dimension_numbers<[1], [0], [0], [1], [0, 0, 1, 1], [], []>} : vector<16x32xf32>, vector<32x128xf32>, vector<16x128xf32> -> vector<16x128xf32>
    %92 = vector.broadcast %81 : vector<1x128xf32> to vector<16x128xf32>
    %93 = arith.addf %91, %92 : vector<16x128xf32>
    %cst_33 = arith.constant 0.000000e+00 : f32
    %94 = vector.broadcast %cst_33 : f32 to vector<2x32xf32>
    %cst_34 = arith.constant 0.000000e+00 : f32
    %95 = vector.broadcast %cst_34 : f32 to vector<2x32xf32>
    %96 = vector.extract_strided_slice %93 {offsets = [0, 0], sizes = [2, 128], strides = [1, 1]} : vector<16x128xf32> to vector<2x128xf32>
    %97 = vector.extract_strided_slice %96 {offsets = [0, 0], sizes = [2, 32], strides = [1, 1]} : vector<2x128xf32> to vector<2x32xf32>
    %cst_35 = arith.constant dense<0.000000e+00> : vector<2x32xf32>
    %98 = tpu.matmul %94, %83, %cst_35 {dimension_numbers = #tpu.dot_dimension_numbers<[1], [0], [0], [1], [0, 0, 1, 1], [], []>} : vector<2x32xf32>, vector<32x32xf32>, vector<2x32xf32> -> vector<2x32xf32>
    %99 = arith.addf %97, %98 : vector<2x32xf32>
    %100 = arith.negf %99 : vector<2x32xf32>
    %101 = math.exp %100 : vector<2x32xf32>
    %cst_36 = arith.constant 1.000000e+00 : f32
    %102 = vector.broadcast %cst_36 : f32 to vector<2x32xf32>
    %103 = arith.addf %102, %101 : vector<2x32xf32>
    %104 = arith.divf %102, %103 : vector<2x32xf32>
    %105 = vector.extract_strided_slice %96 {offsets = [0, 32], sizes = [2, 32], strides = [1, 1]} : vector<2x128xf32> to vector<2x32xf32>
    %cst_37 = arith.constant dense<0.000000e+00> : vector<2x32xf32>
    %106 = tpu.matmul %94, %84, %cst_37 {dimension_numbers = #tpu.dot_dimension_numbers<[1], [0], [0], [1], [0, 0, 1, 1], [], []>} : vector<2x32xf32>, vector<32x32xf32>, vector<2x32xf32> -> vector<2x32xf32>
    %107 = arith.addf %105, %106 : vector<2x32xf32>
    %108 = arith.negf %107 : vector<2x32xf32>
    %109 = math.exp %108 : vector<2x32xf32>
    %cst_38 = arith.constant 1.000000e+00 : f32
    %110 = vector.broadcast %cst_38 : f32 to vector<2x32xf32>
    %111 = arith.addf %110, %109 : vector<2x32xf32>
    %112 = arith.divf %110, %111 : vector<2x32xf32>
    %113 = vector.extract_strided_slice %96 {offsets = [0, 64], sizes = [2, 32], strides = [1, 1]} : vector<2x128xf32> to vector<2x32xf32>
    %cst_39 = arith.constant dense<0.000000e+00> : vector<2x32xf32>
    %114 = tpu.matmul %94, %85, %cst_39 {dimension_numbers = #tpu.dot_dimension_numbers<[1], [0], [0], [1], [0, 0, 1, 1], [], []>} : vector<2x32xf32>, vector<32x32xf32>, vector<2x32xf32> -> vector<2x32xf32>
    %115 = arith.addf %113, %114 : vector<2x32xf32>
    %116 = math.tanh %115 : vector<2x32xf32>
    %117 = vector.extract_strided_slice %96 {offsets = [0, 96], sizes = [2, 32], strides = [1, 1]} : vector<2x128xf32> to vector<2x32xf32>
    %cst_40 = arith.constant dense<0.000000e+00> : vector<2x32xf32>
    %118 = tpu.matmul %94, %86, %cst_40 {dimension_numbers = #tpu.dot_dimension_numbers<[1], [0], [0], [1], [0, 0, 1, 1], [], []>} : vector<2x32xf32>, vector<32x32xf32>, vector<2x32xf32> -> vector<2x32xf32>
    %119 = arith.addf %117, %118 : vector<2x32xf32>
    %120 = arith.negf %119 : vector<2x32xf32>
    %121 = math.exp %120 : vector<2x32xf32>
    %cst_41 = arith.constant 1.000000e+00 : f32
    %122 = vector.broadcast %cst_41 : f32 to vector<2x32xf32>
    %123 = arith.addf %122, %121 : vector<2x32xf32>
    %124 = arith.divf %122, %123 : vector<2x32xf32>
    %125 = arith.mulf %112, %95 : vector<2x32xf32>
    %126 = arith.mulf %104, %116 : vector<2x32xf32>
    %127 = arith.addf %125, %126 : vector<2x32xf32>
    %128 = math.tanh %127 : vector<2x32xf32>
    %129 = arith.mulf %124, %128 : vector<2x32xf32>
    %130 = vector.extract_strided_slice %93 {offsets = [2, 0], sizes = [2, 128], strides = [1, 1]} : vector<16x128xf32> to vector<2x128xf32>
    %131 = vector.extract_strided_slice %130 {offsets = [0, 0], sizes = [2, 32], strides = [1, 1]} : vector<2x128xf32> to vector<2x32xf32>
    %cst_42 = arith.constant dense<0.000000e+00> : vector<2x32xf32>
    %132 = tpu.matmul %129, %83, %cst_42 {dimension_numbers = #tpu.dot_dimension_numbers<[1], [0], [0], [1], [0, 0, 1, 1], [], []>} : vector<2x32xf32>, vector<32x32xf32>, vector<2x32xf32> -> vector<2x32xf32>
    %133 = arith.addf %131, %132 : vector<2x32xf32>
    %134 = arith.negf %133 : vector<2x32xf32>
    %135 = math.exp %134 : vector<2x32xf32>
    %cst_43 = arith.constant 1.000000e+00 : f32
    %136 = vector.broadcast %cst_43 : f32 to vector<2x32xf32>
    %137 = arith.addf %136, %135 : vector<2x32xf32>
    %138 = arith.divf %136, %137 : vector<2x32xf32>
    %139 = vector.extract_strided_slice %130 {offsets = [0, 32], sizes = [2, 32], strides = [1, 1]} : vector<2x128xf32> to vector<2x32xf32>
    %cst_44 = arith.constant dense<0.000000e+00> : vector<2x32xf32>
    %140 = tpu.matmul %129, %84, %cst_44 {dimension_numbers = #tpu.dot_dimension_numbers<[1], [0], [0], [1], [0, 0, 1, 1], [], []>} : vector<2x32xf32>, vector<32x32xf32>, vector<2x32xf32> -> vector<2x32xf32>
    %141 = arith.addf %139, %140 : vector<2x32xf32>
    %142 = arith.negf %141 : vector<2x32xf32>
    %143 = math.exp %142 : vector<2x32xf32>
    %cst_45 = arith.constant 1.000000e+00 : f32
    %144 = vector.broadcast %cst_45 : f32 to vector<2x32xf32>
    %145 = arith.addf %144, %143 : vector<2x32xf32>
    %146 = arith.divf %144, %145 : vector<2x32xf32>
    %147 = vector.extract_strided_slice %130 {offsets = [0, 64], sizes = [2, 32], strides = [1, 1]} : vector<2x128xf32> to vector<2x32xf32>
    %cst_46 = arith.constant dense<0.000000e+00> : vector<2x32xf32>
    %148 = tpu.matmul %129, %85, %cst_46 {dimension_numbers = #tpu.dot_dimension_numbers<[1], [0], [0], [1], [0, 0, 1, 1], [], []>} : vector<2x32xf32>, vector<32x32xf32>, vector<2x32xf32> -> vector<2x32xf32>
    %149 = arith.addf %147, %148 : vector<2x32xf32>
    %150 = math.tanh %149 : vector<2x32xf32>
    %151 = vector.extract_strided_slice %130 {offsets = [0, 96], sizes = [2, 32], strides = [1, 1]} : vector<2x128xf32> to vector<2x32xf32>
    %cst_47 = arith.constant dense<0.000000e+00> : vector<2x32xf32>
    %152 = tpu.matmul %129, %86, %cst_47 {dimension_numbers = #tpu.dot_dimension_numbers<[1], [0], [0], [1], [0, 0, 1, 1], [], []>} : vector<2x32xf32>, vector<32x32xf32>, vector<2x32xf32> -> vector<2x32xf32>
    %153 = arith.addf %151, %152 : vector<2x32xf32>
    %154 = arith.negf %153 : vector<2x32xf32>
    %155 = math.exp %154 : vector<2x32xf32>
    %cst_48 = arith.constant 1.000000e+00 : f32
    %156 = vector.broadcast %cst_48 : f32 to vector<2x32xf32>
    %157 = arith.addf %156, %155 : vector<2x32xf32>
    %158 = arith.divf %156, %157 : vector<2x32xf32>
    %159 = arith.mulf %146, %127 : vector<2x32xf32>
    %160 = arith.mulf %138, %150 : vector<2x32xf32>
    %161 = arith.addf %159, %160 : vector<2x32xf32>
    %162 = math.tanh %161 : vector<2x32xf32>
    %163 = arith.mulf %158, %162 : vector<2x32xf32>
    %164 = vector.extract_strided_slice %93 {offsets = [4, 0], sizes = [2, 128], strides = [1, 1]} : vector<16x128xf32> to vector<2x128xf32>
    %165 = vector.extract_strided_slice %164 {offsets = [0, 0], sizes = [2, 32], strides = [1, 1]} : vector<2x128xf32> to vector<2x32xf32>
    %cst_49 = arith.constant dense<0.000000e+00> : vector<2x32xf32>
    %166 = tpu.matmul %163, %83, %cst_49 {dimension_numbers = #tpu.dot_dimension_numbers<[1], [0], [0], [1], [0, 0, 1, 1], [], []>} : vector<2x32xf32>, vector<32x32xf32>, vector<2x32xf32> -> vector<2x32xf32>
    %167 = arith.addf %165, %166 : vector<2x32xf32>
    %168 = arith.negf %167 : vector<2x32xf32>
    %169 = math.exp %168 : vector<2x32xf32>
    %cst_50 = arith.constant 1.000000e+00 : f32
    %170 = vector.broadcast %cst_50 : f32 to vector<2x32xf32>
    %171 = arith.addf %170, %169 : vector<2x32xf32>
    %172 = arith.divf %170, %171 : vector<2x32xf32>
    %173 = vector.extract_strided_slice %164 {offsets = [0, 32], sizes = [2, 32], strides = [1, 1]} : vector<2x128xf32> to vector<2x32xf32>
    %cst_51 = arith.constant dense<0.000000e+00> : vector<2x32xf32>
    %174 = tpu.matmul %163, %84, %cst_51 {dimension_numbers = #tpu.dot_dimension_numbers<[1], [0], [0], [1], [0, 0, 1, 1], [], []>} : vector<2x32xf32>, vector<32x32xf32>, vector<2x32xf32> -> vector<2x32xf32>
    %175 = arith.addf %173, %174 : vector<2x32xf32>
    %176 = arith.negf %175 : vector<2x32xf32>
    %177 = math.exp %176 : vector<2x32xf32>
    %cst_52 = arith.constant 1.000000e+00 : f32
    %178 = vector.broadcast %cst_52 : f32 to vector<2x32xf32>
    %179 = arith.addf %178, %177 : vector<2x32xf32>
    %180 = arith.divf %178, %179 : vector<2x32xf32>
    %181 = vector.extract_strided_slice %164 {offsets = [0, 64], sizes = [2, 32], strides = [1, 1]} : vector<2x128xf32> to vector<2x32xf32>
    %cst_53 = arith.constant dense<0.000000e+00> : vector<2x32xf32>
    %182 = tpu.matmul %163, %85, %cst_53 {dimension_numbers = #tpu.dot_dimension_numbers<[1], [0], [0], [1], [0, 0, 1, 1], [], []>} : vector<2x32xf32>, vector<32x32xf32>, vector<2x32xf32> -> vector<2x32xf32>
    %183 = arith.addf %181, %182 : vector<2x32xf32>
    %184 = math.tanh %183 : vector<2x32xf32>
    %185 = vector.extract_strided_slice %164 {offsets = [0, 96], sizes = [2, 32], strides = [1, 1]} : vector<2x128xf32> to vector<2x32xf32>
    %cst_54 = arith.constant dense<0.000000e+00> : vector<2x32xf32>
    %186 = tpu.matmul %163, %86, %cst_54 {dimension_numbers = #tpu.dot_dimension_numbers<[1], [0], [0], [1], [0, 0, 1, 1], [], []>} : vector<2x32xf32>, vector<32x32xf32>, vector<2x32xf32> -> vector<2x32xf32>
    %187 = arith.addf %185, %186 : vector<2x32xf32>
    %188 = arith.negf %187 : vector<2x32xf32>
    %189 = math.exp %188 : vector<2x32xf32>
    %cst_55 = arith.constant 1.000000e+00 : f32
    %190 = vector.broadcast %cst_55 : f32 to vector<2x32xf32>
    %191 = arith.addf %190, %189 : vector<2x32xf32>
    %192 = arith.divf %190, %191 : vector<2x32xf32>
    %193 = arith.mulf %180, %161 : vector<2x32xf32>
    %194 = arith.mulf %172, %184 : vector<2x32xf32>
    %195 = arith.addf %193, %194 : vector<2x32xf32>
    %196 = math.tanh %195 : vector<2x32xf32>
    %197 = arith.mulf %192, %196 : vector<2x32xf32>
    %198 = vector.extract_strided_slice %93 {offsets = [6, 0], sizes = [2, 128], strides = [1, 1]} : vector<16x128xf32> to vector<2x128xf32>
    %199 = vector.extract_strided_slice %198 {offsets = [0, 0], sizes = [2, 32], strides = [1, 1]} : vector<2x128xf32> to vector<2x32xf32>
    %cst_56 = arith.constant dense<0.000000e+00> : vector<2x32xf32>
    %200 = tpu.matmul %197, %83, %cst_56 {dimension_numbers = #tpu.dot_dimension_numbers<[1], [0], [0], [1], [0, 0, 1, 1], [], []>} : vector<2x32xf32>, vector<32x32xf32>, vector<2x32xf32> -> vector<2x32xf32>
    %201 = arith.addf %199, %200 : vector<2x32xf32>
    %202 = arith.negf %201 : vector<2x32xf32>
    %203 = math.exp %202 : vector<2x32xf32>
    %cst_57 = arith.constant 1.000000e+00 : f32
    %204 = vector.broadcast %cst_57 : f32 to vector<2x32xf32>
    %205 = arith.addf %204, %203 : vector<2x32xf32>
    %206 = arith.divf %204, %205 : vector<2x32xf32>
    %207 = vector.extract_strided_slice %198 {offsets = [0, 32], sizes = [2, 32], strides = [1, 1]} : vector<2x128xf32> to vector<2x32xf32>
    %cst_58 = arith.constant dense<0.000000e+00> : vector<2x32xf32>
    %208 = tpu.matmul %197, %84, %cst_58 {dimension_numbers = #tpu.dot_dimension_numbers<[1], [0], [0], [1], [0, 0, 1, 1], [], []>} : vector<2x32xf32>, vector<32x32xf32>, vector<2x32xf32> -> vector<2x32xf32>
    %209 = arith.addf %207, %208 : vector<2x32xf32>
    %210 = arith.negf %209 : vector<2x32xf32>
    %211 = math.exp %210 : vector<2x32xf32>
    %cst_59 = arith.constant 1.000000e+00 : f32
    %212 = vector.broadcast %cst_59 : f32 to vector<2x32xf32>
    %213 = arith.addf %212, %211 : vector<2x32xf32>
    %214 = arith.divf %212, %213 : vector<2x32xf32>
    %215 = vector.extract_strided_slice %198 {offsets = [0, 64], sizes = [2, 32], strides = [1, 1]} : vector<2x128xf32> to vector<2x32xf32>
    %cst_60 = arith.constant dense<0.000000e+00> : vector<2x32xf32>
    %216 = tpu.matmul %197, %85, %cst_60 {dimension_numbers = #tpu.dot_dimension_numbers<[1], [0], [0], [1], [0, 0, 1, 1], [], []>} : vector<2x32xf32>, vector<32x32xf32>, vector<2x32xf32> -> vector<2x32xf32>
    %217 = arith.addf %215, %216 : vector<2x32xf32>
    %218 = math.tanh %217 : vector<2x32xf32>
    %219 = vector.extract_strided_slice %198 {offsets = [0, 96], sizes = [2, 32], strides = [1, 1]} : vector<2x128xf32> to vector<2x32xf32>
    %cst_61 = arith.constant dense<0.000000e+00> : vector<2x32xf32>
    %220 = tpu.matmul %197, %86, %cst_61 {dimension_numbers = #tpu.dot_dimension_numbers<[1], [0], [0], [1], [0, 0, 1, 1], [], []>} : vector<2x32xf32>, vector<32x32xf32>, vector<2x32xf32> -> vector<2x32xf32>
    %221 = arith.addf %219, %220 : vector<2x32xf32>
    %222 = arith.negf %221 : vector<2x32xf32>
    %223 = math.exp %222 : vector<2x32xf32>
    %cst_62 = arith.constant 1.000000e+00 : f32
    %224 = vector.broadcast %cst_62 : f32 to vector<2x32xf32>
    %225 = arith.addf %224, %223 : vector<2x32xf32>
    %226 = arith.divf %224, %225 : vector<2x32xf32>
    %227 = arith.mulf %214, %195 : vector<2x32xf32>
    %228 = arith.mulf %206, %218 : vector<2x32xf32>
    %229 = arith.addf %227, %228 : vector<2x32xf32>
    %230 = math.tanh %229 : vector<2x32xf32>
    %231 = arith.mulf %226, %230 : vector<2x32xf32>
    %232 = vector.extract_strided_slice %93 {offsets = [8, 0], sizes = [2, 128], strides = [1, 1]} : vector<16x128xf32> to vector<2x128xf32>
    %233 = vector.extract_strided_slice %232 {offsets = [0, 0], sizes = [2, 32], strides = [1, 1]} : vector<2x128xf32> to vector<2x32xf32>
    %cst_63 = arith.constant dense<0.000000e+00> : vector<2x32xf32>
    %234 = tpu.matmul %231, %83, %cst_63 {dimension_numbers = #tpu.dot_dimension_numbers<[1], [0], [0], [1], [0, 0, 1, 1], [], []>} : vector<2x32xf32>, vector<32x32xf32>, vector<2x32xf32> -> vector<2x32xf32>
    %235 = arith.addf %233, %234 : vector<2x32xf32>
    %236 = arith.negf %235 : vector<2x32xf32>
    %237 = math.exp %236 : vector<2x32xf32>
    %cst_64 = arith.constant 1.000000e+00 : f32
    %238 = vector.broadcast %cst_64 : f32 to vector<2x32xf32>
    %239 = arith.addf %238, %237 : vector<2x32xf32>
    %240 = arith.divf %238, %239 : vector<2x32xf32>
    %241 = vector.extract_strided_slice %232 {offsets = [0, 32], sizes = [2, 32], strides = [1, 1]} : vector<2x128xf32> to vector<2x32xf32>
    %cst_65 = arith.constant dense<0.000000e+00> : vector<2x32xf32>
    %242 = tpu.matmul %231, %84, %cst_65 {dimension_numbers = #tpu.dot_dimension_numbers<[1], [0], [0], [1], [0, 0, 1, 1], [], []>} : vector<2x32xf32>, vector<32x32xf32>, vector<2x32xf32> -> vector<2x32xf32>
    %243 = arith.addf %241, %242 : vector<2x32xf32>
    %244 = arith.negf %243 : vector<2x32xf32>
    %245 = math.exp %244 : vector<2x32xf32>
    %cst_66 = arith.constant 1.000000e+00 : f32
    %246 = vector.broadcast %cst_66 : f32 to vector<2x32xf32>
    %247 = arith.addf %246, %245 : vector<2x32xf32>
    %248 = arith.divf %246, %247 : vector<2x32xf32>
    %249 = vector.extract_strided_slice %232 {offsets = [0, 64], sizes = [2, 32], strides = [1, 1]} : vector<2x128xf32> to vector<2x32xf32>
    %cst_67 = arith.constant dense<0.000000e+00> : vector<2x32xf32>
    %250 = tpu.matmul %231, %85, %cst_67 {dimension_numbers = #tpu.dot_dimension_numbers<[1], [0], [0], [1], [0, 0, 1, 1], [], []>} : vector<2x32xf32>, vector<32x32xf32>, vector<2x32xf32> -> vector<2x32xf32>
    %251 = arith.addf %249, %250 : vector<2x32xf32>
    %252 = math.tanh %251 : vector<2x32xf32>
    %253 = vector.extract_strided_slice %232 {offsets = [0, 96], sizes = [2, 32], strides = [1, 1]} : vector<2x128xf32> to vector<2x32xf32>
    %cst_68 = arith.constant dense<0.000000e+00> : vector<2x32xf32>
    %254 = tpu.matmul %231, %86, %cst_68 {dimension_numbers = #tpu.dot_dimension_numbers<[1], [0], [0], [1], [0, 0, 1, 1], [], []>} : vector<2x32xf32>, vector<32x32xf32>, vector<2x32xf32> -> vector<2x32xf32>
    %255 = arith.addf %253, %254 : vector<2x32xf32>
    %256 = arith.negf %255 : vector<2x32xf32>
    %257 = math.exp %256 : vector<2x32xf32>
    %cst_69 = arith.constant 1.000000e+00 : f32
    %258 = vector.broadcast %cst_69 : f32 to vector<2x32xf32>
    %259 = arith.addf %258, %257 : vector<2x32xf32>
    %260 = arith.divf %258, %259 : vector<2x32xf32>
    %261 = arith.mulf %248, %229 : vector<2x32xf32>
    %262 = arith.mulf %240, %252 : vector<2x32xf32>
    %263 = arith.addf %261, %262 : vector<2x32xf32>
    %264 = math.tanh %263 : vector<2x32xf32>
    %265 = arith.mulf %260, %264 : vector<2x32xf32>
    %266 = vector.extract_strided_slice %93 {offsets = [10, 0], sizes = [2, 128], strides = [1, 1]} : vector<16x128xf32> to vector<2x128xf32>
    %267 = vector.extract_strided_slice %266 {offsets = [0, 0], sizes = [2, 32], strides = [1, 1]} : vector<2x128xf32> to vector<2x32xf32>
    %cst_70 = arith.constant dense<0.000000e+00> : vector<2x32xf32>
    %268 = tpu.matmul %265, %83, %cst_70 {dimension_numbers = #tpu.dot_dimension_numbers<[1], [0], [0], [1], [0, 0, 1, 1], [], []>} : vector<2x32xf32>, vector<32x32xf32>, vector<2x32xf32> -> vector<2x32xf32>
    %269 = arith.addf %267, %268 : vector<2x32xf32>
    %270 = arith.negf %269 : vector<2x32xf32>
    %271 = math.exp %270 : vector<2x32xf32>
    %cst_71 = arith.constant 1.000000e+00 : f32
    %272 = vector.broadcast %cst_71 : f32 to vector<2x32xf32>
    %273 = arith.addf %272, %271 : vector<2x32xf32>
    %274 = arith.divf %272, %273 : vector<2x32xf32>
    %275 = vector.extract_strided_slice %266 {offsets = [0, 32], sizes = [2, 32], strides = [1, 1]} : vector<2x128xf32> to vector<2x32xf32>
    %cst_72 = arith.constant dense<0.000000e+00> : vector<2x32xf32>
    %276 = tpu.matmul %265, %84, %cst_72 {dimension_numbers = #tpu.dot_dimension_numbers<[1], [0], [0], [1], [0, 0, 1, 1], [], []>} : vector<2x32xf32>, vector<32x32xf32>, vector<2x32xf32> -> vector<2x32xf32>
    %277 = arith.addf %275, %276 : vector<2x32xf32>
    %278 = arith.negf %277 : vector<2x32xf32>
    %279 = math.exp %278 : vector<2x32xf32>
    %cst_73 = arith.constant 1.000000e+00 : f32
    %280 = vector.broadcast %cst_73 : f32 to vector<2x32xf32>
    %281 = arith.addf %280, %279 : vector<2x32xf32>
    %282 = arith.divf %280, %281 : vector<2x32xf32>
    %283 = vector.extract_strided_slice %266 {offsets = [0, 64], sizes = [2, 32], strides = [1, 1]} : vector<2x128xf32> to vector<2x32xf32>
    %cst_74 = arith.constant dense<0.000000e+00> : vector<2x32xf32>
    %284 = tpu.matmul %265, %85, %cst_74 {dimension_numbers = #tpu.dot_dimension_numbers<[1], [0], [0], [1], [0, 0, 1, 1], [], []>} : vector<2x32xf32>, vector<32x32xf32>, vector<2x32xf32> -> vector<2x32xf32>
    %285 = arith.addf %283, %284 : vector<2x32xf32>
    %286 = math.tanh %285 : vector<2x32xf32>
    %287 = vector.extract_strided_slice %266 {offsets = [0, 96], sizes = [2, 32], strides = [1, 1]} : vector<2x128xf32> to vector<2x32xf32>
    %cst_75 = arith.constant dense<0.000000e+00> : vector<2x32xf32>
    %288 = tpu.matmul %265, %86, %cst_75 {dimension_numbers = #tpu.dot_dimension_numbers<[1], [0], [0], [1], [0, 0, 1, 1], [], []>} : vector<2x32xf32>, vector<32x32xf32>, vector<2x32xf32> -> vector<2x32xf32>
    %289 = arith.addf %287, %288 : vector<2x32xf32>
    %290 = arith.negf %289 : vector<2x32xf32>
    %291 = math.exp %290 : vector<2x32xf32>
    %cst_76 = arith.constant 1.000000e+00 : f32
    %292 = vector.broadcast %cst_76 : f32 to vector<2x32xf32>
    %293 = arith.addf %292, %291 : vector<2x32xf32>
    %294 = arith.divf %292, %293 : vector<2x32xf32>
    %295 = arith.mulf %282, %263 : vector<2x32xf32>
    %296 = arith.mulf %274, %286 : vector<2x32xf32>
    %297 = arith.addf %295, %296 : vector<2x32xf32>
    %298 = math.tanh %297 : vector<2x32xf32>
    %299 = arith.mulf %294, %298 : vector<2x32xf32>
    %300 = vector.extract_strided_slice %93 {offsets = [12, 0], sizes = [2, 128], strides = [1, 1]} : vector<16x128xf32> to vector<2x128xf32>
    %301 = vector.extract_strided_slice %300 {offsets = [0, 0], sizes = [2, 32], strides = [1, 1]} : vector<2x128xf32> to vector<2x32xf32>
    %cst_77 = arith.constant dense<0.000000e+00> : vector<2x32xf32>
    %302 = tpu.matmul %299, %83, %cst_77 {dimension_numbers = #tpu.dot_dimension_numbers<[1], [0], [0], [1], [0, 0, 1, 1], [], []>} : vector<2x32xf32>, vector<32x32xf32>, vector<2x32xf32> -> vector<2x32xf32>
    %303 = arith.addf %301, %302 : vector<2x32xf32>
    %304 = arith.negf %303 : vector<2x32xf32>
    %305 = math.exp %304 : vector<2x32xf32>
    %cst_78 = arith.constant 1.000000e+00 : f32
    %306 = vector.broadcast %cst_78 : f32 to vector<2x32xf32>
    %307 = arith.addf %306, %305 : vector<2x32xf32>
    %308 = arith.divf %306, %307 : vector<2x32xf32>
    %309 = vector.extract_strided_slice %300 {offsets = [0, 32], sizes = [2, 32], strides = [1, 1]} : vector<2x128xf32> to vector<2x32xf32>
    %cst_79 = arith.constant dense<0.000000e+00> : vector<2x32xf32>
    %310 = tpu.matmul %299, %84, %cst_79 {dimension_numbers = #tpu.dot_dimension_numbers<[1], [0], [0], [1], [0, 0, 1, 1], [], []>} : vector<2x32xf32>, vector<32x32xf32>, vector<2x32xf32> -> vector<2x32xf32>
    %311 = arith.addf %309, %310 : vector<2x32xf32>
    %312 = arith.negf %311 : vector<2x32xf32>
    %313 = math.exp %312 : vector<2x32xf32>
    %cst_80 = arith.constant 1.000000e+00 : f32
    %314 = vector.broadcast %cst_80 : f32 to vector<2x32xf32>
    %315 = arith.addf %314, %313 : vector<2x32xf32>
    %316 = arith.divf %314, %315 : vector<2x32xf32>
    %317 = vector.extract_strided_slice %300 {offsets = [0, 64], sizes = [2, 32], strides = [1, 1]} : vector<2x128xf32> to vector<2x32xf32>
    %cst_81 = arith.constant dense<0.000000e+00> : vector<2x32xf32>
    %318 = tpu.matmul %299, %85, %cst_81 {dimension_numbers = #tpu.dot_dimension_numbers<[1], [0], [0], [1], [0, 0, 1, 1], [], []>} : vector<2x32xf32>, vector<32x32xf32>, vector<2x32xf32> -> vector<2x32xf32>
    %319 = arith.addf %317, %318 : vector<2x32xf32>
    %320 = math.tanh %319 : vector<2x32xf32>
    %321 = vector.extract_strided_slice %300 {offsets = [0, 96], sizes = [2, 32], strides = [1, 1]} : vector<2x128xf32> to vector<2x32xf32>
    %cst_82 = arith.constant dense<0.000000e+00> : vector<2x32xf32>
    %322 = tpu.matmul %299, %86, %cst_82 {dimension_numbers = #tpu.dot_dimension_numbers<[1], [0], [0], [1], [0, 0, 1, 1], [], []>} : vector<2x32xf32>, vector<32x32xf32>, vector<2x32xf32> -> vector<2x32xf32>
    %323 = arith.addf %321, %322 : vector<2x32xf32>
    %324 = arith.negf %323 : vector<2x32xf32>
    %325 = math.exp %324 : vector<2x32xf32>
    %cst_83 = arith.constant 1.000000e+00 : f32
    %326 = vector.broadcast %cst_83 : f32 to vector<2x32xf32>
    %327 = arith.addf %326, %325 : vector<2x32xf32>
    %328 = arith.divf %326, %327 : vector<2x32xf32>
    %329 = arith.mulf %316, %297 : vector<2x32xf32>
    %330 = arith.mulf %308, %320 : vector<2x32xf32>
    %331 = arith.addf %329, %330 : vector<2x32xf32>
    %332 = math.tanh %331 : vector<2x32xf32>
    %333 = arith.mulf %328, %332 : vector<2x32xf32>
    %334 = vector.extract_strided_slice %93 {offsets = [14, 0], sizes = [2, 128], strides = [1, 1]} : vector<16x128xf32> to vector<2x128xf32>
    %335 = vector.extract_strided_slice %334 {offsets = [0, 0], sizes = [2, 32], strides = [1, 1]} : vector<2x128xf32> to vector<2x32xf32>
    %cst_84 = arith.constant dense<0.000000e+00> : vector<2x32xf32>
    %336 = tpu.matmul %333, %83, %cst_84 {dimension_numbers = #tpu.dot_dimension_numbers<[1], [0], [0], [1], [0, 0, 1, 1], [], []>} : vector<2x32xf32>, vector<32x32xf32>, vector<2x32xf32> -> vector<2x32xf32>
    %337 = arith.addf %335, %336 : vector<2x32xf32>
    %338 = arith.negf %337 : vector<2x32xf32>
    %339 = math.exp %338 : vector<2x32xf32>
    %cst_85 = arith.constant 1.000000e+00 : f32
    %340 = vector.broadcast %cst_85 : f32 to vector<2x32xf32>
    %341 = arith.addf %340, %339 : vector<2x32xf32>
    %342 = arith.divf %340, %341 : vector<2x32xf32>
    %343 = vector.extract_strided_slice %334 {offsets = [0, 32], sizes = [2, 32], strides = [1, 1]} : vector<2x128xf32> to vector<2x32xf32>
    %cst_86 = arith.constant dense<0.000000e+00> : vector<2x32xf32>
    %344 = tpu.matmul %333, %84, %cst_86 {dimension_numbers = #tpu.dot_dimension_numbers<[1], [0], [0], [1], [0, 0, 1, 1], [], []>} : vector<2x32xf32>, vector<32x32xf32>, vector<2x32xf32> -> vector<2x32xf32>
    %345 = arith.addf %343, %344 : vector<2x32xf32>
    %346 = arith.negf %345 : vector<2x32xf32>
    %347 = math.exp %346 : vector<2x32xf32>
    %cst_87 = arith.constant 1.000000e+00 : f32
    %348 = vector.broadcast %cst_87 : f32 to vector<2x32xf32>
    %349 = arith.addf %348, %347 : vector<2x32xf32>
    %350 = arith.divf %348, %349 : vector<2x32xf32>
    %351 = vector.extract_strided_slice %334 {offsets = [0, 64], sizes = [2, 32], strides = [1, 1]} : vector<2x128xf32> to vector<2x32xf32>
    %cst_88 = arith.constant dense<0.000000e+00> : vector<2x32xf32>
    %352 = tpu.matmul %333, %85, %cst_88 {dimension_numbers = #tpu.dot_dimension_numbers<[1], [0], [0], [1], [0, 0, 1, 1], [], []>} : vector<2x32xf32>, vector<32x32xf32>, vector<2x32xf32> -> vector<2x32xf32>
    %353 = arith.addf %351, %352 : vector<2x32xf32>
    %354 = math.tanh %353 : vector<2x32xf32>
    %355 = vector.extract_strided_slice %334 {offsets = [0, 96], sizes = [2, 32], strides = [1, 1]} : vector<2x128xf32> to vector<2x32xf32>
    %cst_89 = arith.constant dense<0.000000e+00> : vector<2x32xf32>
    %356 = tpu.matmul %333, %86, %cst_89 {dimension_numbers = #tpu.dot_dimension_numbers<[1], [0], [0], [1], [0, 0, 1, 1], [], []>} : vector<2x32xf32>, vector<32x32xf32>, vector<2x32xf32> -> vector<2x32xf32>
    %357 = arith.addf %355, %356 : vector<2x32xf32>
    %358 = arith.negf %357 : vector<2x32xf32>
    %359 = math.exp %358 : vector<2x32xf32>
    %cst_90 = arith.constant 1.000000e+00 : f32
    %360 = vector.broadcast %cst_90 : f32 to vector<2x32xf32>
    %361 = arith.addf %360, %359 : vector<2x32xf32>
    %362 = arith.divf %360, %361 : vector<2x32xf32>
    %363 = arith.mulf %350, %331 : vector<2x32xf32>
    %364 = arith.mulf %342, %354 : vector<2x32xf32>
    %365 = arith.addf %363, %364 : vector<2x32xf32>
    %366 = math.tanh %365 : vector<2x32xf32>
    %367 = arith.mulf %362, %366 : vector<2x32xf32>
    %cst_91 = arith.constant dense<0.000000e+00> : vector<2x128xf32>
    %368 = tpu.matmul %197, %79, %cst_91 {dimension_numbers = #tpu.dot_dimension_numbers<[1], [0], [0], [1], [0, 0, 1, 1], [], []>} : vector<2x32xf32>, vector<32x128xf32>, vector<2x128xf32> -> vector<2x128xf32>
    %369 = vector.broadcast %82 : vector<1x128xf32> to vector<2x128xf32>
    %370 = arith.addf %368, %369 : vector<2x128xf32>
    %cst_92 = arith.constant dense<0.000000e+00> : vector<2x128xf32>
    %371 = tpu.matmul %231, %79, %cst_92 {dimension_numbers = #tpu.dot_dimension_numbers<[1], [0], [0], [1], [0, 0, 1, 1], [], []>} : vector<2x32xf32>, vector<32x128xf32>, vector<2x128xf32> -> vector<2x128xf32>
    %372 = vector.broadcast %82 : vector<1x128xf32> to vector<2x128xf32>
    %373 = arith.addf %371, %372 : vector<2x128xf32>
    %cst_93 = arith.constant dense<0.000000e+00> : vector<2x128xf32>
    %374 = tpu.matmul %265, %79, %cst_93 {dimension_numbers = #tpu.dot_dimension_numbers<[1], [0], [0], [1], [0, 0, 1, 1], [], []>} : vector<2x32xf32>, vector<32x128xf32>, vector<2x128xf32> -> vector<2x128xf32>
    %375 = vector.broadcast %82 : vector<1x128xf32> to vector<2x128xf32>
    %376 = arith.addf %374, %375 : vector<2x128xf32>
    %cst_94 = arith.constant dense<0.000000e+00> : vector<2x128xf32>
    %377 = tpu.matmul %299, %79, %cst_94 {dimension_numbers = #tpu.dot_dimension_numbers<[1], [0], [0], [1], [0, 0, 1, 1], [], []>} : vector<2x32xf32>, vector<32x128xf32>, vector<2x128xf32> -> vector<2x128xf32>
    %378 = vector.broadcast %82 : vector<1x128xf32> to vector<2x128xf32>
    %379 = arith.addf %377, %378 : vector<2x128xf32>
    %cst_95 = arith.constant dense<0.000000e+00> : vector<2x128xf32>
    %380 = tpu.matmul %333, %79, %cst_95 {dimension_numbers = #tpu.dot_dimension_numbers<[1], [0], [0], [1], [0, 0, 1, 1], [], []>} : vector<2x32xf32>, vector<32x128xf32>, vector<2x128xf32> -> vector<2x128xf32>
    %381 = vector.broadcast %82 : vector<1x128xf32> to vector<2x128xf32>
    %382 = arith.addf %380, %381 : vector<2x128xf32>
    %383 = vector.extract_strided_slice %370 {offsets = [0, 0], sizes = [2, 32], strides = [1, 1]} : vector<2x128xf32> to vector<2x32xf32>
    %cst_96 = arith.constant dense<0.000000e+00> : vector<2x32xf32>
    %384 = tpu.matmul %367, %87, %cst_96 {dimension_numbers = #tpu.dot_dimension_numbers<[1], [0], [0], [1], [0, 0, 1, 1], [], []>} : vector<2x32xf32>, vector<32x32xf32>, vector<2x32xf32> -> vector<2x32xf32>
    %385 = arith.addf %383, %384 : vector<2x32xf32>
    %386 = arith.negf %385 : vector<2x32xf32>
    %387 = math.exp %386 : vector<2x32xf32>
    %cst_97 = arith.constant 1.000000e+00 : f32
    %388 = vector.broadcast %cst_97 : f32 to vector<2x32xf32>
    %389 = arith.addf %388, %387 : vector<2x32xf32>
    %390 = arith.divf %388, %389 : vector<2x32xf32>
    %391 = vector.extract_strided_slice %370 {offsets = [0, 32], sizes = [2, 32], strides = [1, 1]} : vector<2x128xf32> to vector<2x32xf32>
    %cst_98 = arith.constant dense<0.000000e+00> : vector<2x32xf32>
    %392 = tpu.matmul %367, %88, %cst_98 {dimension_numbers = #tpu.dot_dimension_numbers<[1], [0], [0], [1], [0, 0, 1, 1], [], []>} : vector<2x32xf32>, vector<32x32xf32>, vector<2x32xf32> -> vector<2x32xf32>
    %393 = arith.addf %391, %392 : vector<2x32xf32>
    %394 = arith.negf %393 : vector<2x32xf32>
    %395 = math.exp %394 : vector<2x32xf32>
    %cst_99 = arith.constant 1.000000e+00 : f32
    %396 = vector.broadcast %cst_99 : f32 to vector<2x32xf32>
    %397 = arith.addf %396, %395 : vector<2x32xf32>
    %398 = arith.divf %396, %397 : vector<2x32xf32>
    %399 = vector.extract_strided_slice %370 {offsets = [0, 64], sizes = [2, 32], strides = [1, 1]} : vector<2x128xf32> to vector<2x32xf32>
    %cst_100 = arith.constant dense<0.000000e+00> : vector<2x32xf32>
    %400 = tpu.matmul %367, %89, %cst_100 {dimension_numbers = #tpu.dot_dimension_numbers<[1], [0], [0], [1], [0, 0, 1, 1], [], []>} : vector<2x32xf32>, vector<32x32xf32>, vector<2x32xf32> -> vector<2x32xf32>
    %401 = arith.addf %399, %400 : vector<2x32xf32>
    %402 = math.tanh %401 : vector<2x32xf32>
    %403 = vector.extract_strided_slice %370 {offsets = [0, 96], sizes = [2, 32], strides = [1, 1]} : vector<2x128xf32> to vector<2x32xf32>
    %cst_101 = arith.constant dense<0.000000e+00> : vector<2x32xf32>
    %404 = tpu.matmul %367, %90, %cst_101 {dimension_numbers = #tpu.dot_dimension_numbers<[1], [0], [0], [1], [0, 0, 1, 1], [], []>} : vector<2x32xf32>, vector<32x32xf32>, vector<2x32xf32> -> vector<2x32xf32>
    %405 = arith.addf %403, %404 : vector<2x32xf32>
    %406 = arith.negf %405 : vector<2x32xf32>
    %407 = math.exp %406 : vector<2x32xf32>
    %cst_102 = arith.constant 1.000000e+00 : f32
    %408 = vector.broadcast %cst_102 : f32 to vector<2x32xf32>
    %409 = arith.addf %408, %407 : vector<2x32xf32>
    %410 = arith.divf %408, %409 : vector<2x32xf32>
    %411 = arith.mulf %398, %365 : vector<2x32xf32>
    %412 = arith.mulf %390, %402 : vector<2x32xf32>
    %413 = arith.addf %411, %412 : vector<2x32xf32>
    %414 = math.tanh %413 : vector<2x32xf32>
    %415 = arith.mulf %410, %414 : vector<2x32xf32>
    %416 = vector.extract_strided_slice %373 {offsets = [0, 0], sizes = [2, 32], strides = [1, 1]} : vector<2x128xf32> to vector<2x32xf32>
    %cst_103 = arith.constant dense<0.000000e+00> : vector<2x32xf32>
    %417 = tpu.matmul %415, %87, %cst_103 {dimension_numbers = #tpu.dot_dimension_numbers<[1], [0], [0], [1], [0, 0, 1, 1], [], []>} : vector<2x32xf32>, vector<32x32xf32>, vector<2x32xf32> -> vector<2x32xf32>
    %418 = arith.addf %416, %417 : vector<2x32xf32>
    %419 = arith.negf %418 : vector<2x32xf32>
    %420 = math.exp %419 : vector<2x32xf32>
    %cst_104 = arith.constant 1.000000e+00 : f32
    %421 = vector.broadcast %cst_104 : f32 to vector<2x32xf32>
    %422 = arith.addf %421, %420 : vector<2x32xf32>
    %423 = arith.divf %421, %422 : vector<2x32xf32>
    %424 = vector.extract_strided_slice %373 {offsets = [0, 32], sizes = [2, 32], strides = [1, 1]} : vector<2x128xf32> to vector<2x32xf32>
    %cst_105 = arith.constant dense<0.000000e+00> : vector<2x32xf32>
    %425 = tpu.matmul %415, %88, %cst_105 {dimension_numbers = #tpu.dot_dimension_numbers<[1], [0], [0], [1], [0, 0, 1, 1], [], []>} : vector<2x32xf32>, vector<32x32xf32>, vector<2x32xf32> -> vector<2x32xf32>
    %426 = arith.addf %424, %425 : vector<2x32xf32>
    %427 = arith.negf %426 : vector<2x32xf32>
    %428 = math.exp %427 : vector<2x32xf32>
    %cst_106 = arith.constant 1.000000e+00 : f32
    %429 = vector.broadcast %cst_106 : f32 to vector<2x32xf32>
    %430 = arith.addf %429, %428 : vector<2x32xf32>
    %431 = arith.divf %429, %430 : vector<2x32xf32>
    %432 = vector.extract_strided_slice %373 {offsets = [0, 64], sizes = [2, 32], strides = [1, 1]} : vector<2x128xf32> to vector<2x32xf32>
    %cst_107 = arith.constant dense<0.000000e+00> : vector<2x32xf32>
    %433 = tpu.matmul %415, %89, %cst_107 {dimension_numbers = #tpu.dot_dimension_numbers<[1], [0], [0], [1], [0, 0, 1, 1], [], []>} : vector<2x32xf32>, vector<32x32xf32>, vector<2x32xf32> -> vector<2x32xf32>
    %434 = arith.addf %432, %433 : vector<2x32xf32>
    %435 = math.tanh %434 : vector<2x32xf32>
    %436 = vector.extract_strided_slice %373 {offsets = [0, 96], sizes = [2, 32], strides = [1, 1]} : vector<2x128xf32> to vector<2x32xf32>
    %cst_108 = arith.constant dense<0.000000e+00> : vector<2x32xf32>
    %437 = tpu.matmul %415, %90, %cst_108 {dimension_numbers = #tpu.dot_dimension_numbers<[1], [0], [0], [1], [0, 0, 1, 1], [], []>} : vector<2x32xf32>, vector<32x32xf32>, vector<2x32xf32> -> vector<2x32xf32>
    %438 = arith.addf %436, %437 : vector<2x32xf32>
    %439 = arith.negf %438 : vector<2x32xf32>
    %440 = math.exp %439 : vector<2x32xf32>
    %cst_109 = arith.constant 1.000000e+00 : f32
    %441 = vector.broadcast %cst_109 : f32 to vector<2x32xf32>
    %442 = arith.addf %441, %440 : vector<2x32xf32>
    %443 = arith.divf %441, %442 : vector<2x32xf32>
    %444 = arith.mulf %431, %413 : vector<2x32xf32>
    %445 = arith.mulf %423, %435 : vector<2x32xf32>
    %446 = arith.addf %444, %445 : vector<2x32xf32>
    %447 = math.tanh %446 : vector<2x32xf32>
    %448 = arith.mulf %443, %447 : vector<2x32xf32>
    %449 = vector.extract_strided_slice %376 {offsets = [0, 0], sizes = [2, 32], strides = [1, 1]} : vector<2x128xf32> to vector<2x32xf32>
    %cst_110 = arith.constant dense<0.000000e+00> : vector<2x32xf32>
    %450 = tpu.matmul %448, %87, %cst_110 {dimension_numbers = #tpu.dot_dimension_numbers<[1], [0], [0], [1], [0, 0, 1, 1], [], []>} : vector<2x32xf32>, vector<32x32xf32>, vector<2x32xf32> -> vector<2x32xf32>
    %451 = arith.addf %449, %450 : vector<2x32xf32>
    %452 = arith.negf %451 : vector<2x32xf32>
    %453 = math.exp %452 : vector<2x32xf32>
    %cst_111 = arith.constant 1.000000e+00 : f32
    %454 = vector.broadcast %cst_111 : f32 to vector<2x32xf32>
    %455 = arith.addf %454, %453 : vector<2x32xf32>
    %456 = arith.divf %454, %455 : vector<2x32xf32>
    %457 = vector.extract_strided_slice %376 {offsets = [0, 32], sizes = [2, 32], strides = [1, 1]} : vector<2x128xf32> to vector<2x32xf32>
    %cst_112 = arith.constant dense<0.000000e+00> : vector<2x32xf32>
    %458 = tpu.matmul %448, %88, %cst_112 {dimension_numbers = #tpu.dot_dimension_numbers<[1], [0], [0], [1], [0, 0, 1, 1], [], []>} : vector<2x32xf32>, vector<32x32xf32>, vector<2x32xf32> -> vector<2x32xf32>
    %459 = arith.addf %457, %458 : vector<2x32xf32>
    %460 = arith.negf %459 : vector<2x32xf32>
    %461 = math.exp %460 : vector<2x32xf32>
    %cst_113 = arith.constant 1.000000e+00 : f32
    %462 = vector.broadcast %cst_113 : f32 to vector<2x32xf32>
    %463 = arith.addf %462, %461 : vector<2x32xf32>
    %464 = arith.divf %462, %463 : vector<2x32xf32>
    %465 = vector.extract_strided_slice %376 {offsets = [0, 64], sizes = [2, 32], strides = [1, 1]} : vector<2x128xf32> to vector<2x32xf32>
    %cst_114 = arith.constant dense<0.000000e+00> : vector<2x32xf32>
    %466 = tpu.matmul %448, %89, %cst_114 {dimension_numbers = #tpu.dot_dimension_numbers<[1], [0], [0], [1], [0, 0, 1, 1], [], []>} : vector<2x32xf32>, vector<32x32xf32>, vector<2x32xf32> -> vector<2x32xf32>
    %467 = arith.addf %465, %466 : vector<2x32xf32>
    %468 = math.tanh %467 : vector<2x32xf32>
    %469 = vector.extract_strided_slice %376 {offsets = [0, 96], sizes = [2, 32], strides = [1, 1]} : vector<2x128xf32> to vector<2x32xf32>
    %cst_115 = arith.constant dense<0.000000e+00> : vector<2x32xf32>
    %470 = tpu.matmul %448, %90, %cst_115 {dimension_numbers = #tpu.dot_dimension_numbers<[1], [0], [0], [1], [0, 0, 1, 1], [], []>} : vector<2x32xf32>, vector<32x32xf32>, vector<2x32xf32> -> vector<2x32xf32>
    %471 = arith.addf %469, %470 : vector<2x32xf32>
    %472 = arith.negf %471 : vector<2x32xf32>
    %473 = math.exp %472 : vector<2x32xf32>
    %cst_116 = arith.constant 1.000000e+00 : f32
    %474 = vector.broadcast %cst_116 : f32 to vector<2x32xf32>
    %475 = arith.addf %474, %473 : vector<2x32xf32>
    %476 = arith.divf %474, %475 : vector<2x32xf32>
    %477 = arith.mulf %464, %446 : vector<2x32xf32>
    %478 = arith.mulf %456, %468 : vector<2x32xf32>
    %479 = arith.addf %477, %478 : vector<2x32xf32>
    %480 = math.tanh %479 : vector<2x32xf32>
    %481 = arith.mulf %476, %480 : vector<2x32xf32>
    %482 = vector.extract_strided_slice %379 {offsets = [0, 0], sizes = [2, 32], strides = [1, 1]} : vector<2x128xf32> to vector<2x32xf32>
    %cst_117 = arith.constant dense<0.000000e+00> : vector<2x32xf32>
    %483 = tpu.matmul %481, %87, %cst_117 {dimension_numbers = #tpu.dot_dimension_numbers<[1], [0], [0], [1], [0, 0, 1, 1], [], []>} : vector<2x32xf32>, vector<32x32xf32>, vector<2x32xf32> -> vector<2x32xf32>
    %484 = arith.addf %482, %483 : vector<2x32xf32>
    %485 = arith.negf %484 : vector<2x32xf32>
    %486 = math.exp %485 : vector<2x32xf32>
    %cst_118 = arith.constant 1.000000e+00 : f32
    %487 = vector.broadcast %cst_118 : f32 to vector<2x32xf32>
    %488 = arith.addf %487, %486 : vector<2x32xf32>
    %489 = arith.divf %487, %488 : vector<2x32xf32>
    %490 = vector.extract_strided_slice %379 {offsets = [0, 32], sizes = [2, 32], strides = [1, 1]} : vector<2x128xf32> to vector<2x32xf32>
    %cst_119 = arith.constant dense<0.000000e+00> : vector<2x32xf32>
    %491 = tpu.matmul %481, %88, %cst_119 {dimension_numbers = #tpu.dot_dimension_numbers<[1], [0], [0], [1], [0, 0, 1, 1], [], []>} : vector<2x32xf32>, vector<32x32xf32>, vector<2x32xf32> -> vector<2x32xf32>
    %492 = arith.addf %490, %491 : vector<2x32xf32>
    %493 = arith.negf %492 : vector<2x32xf32>
    %494 = math.exp %493 : vector<2x32xf32>
    %cst_120 = arith.constant 1.000000e+00 : f32
    %495 = vector.broadcast %cst_120 : f32 to vector<2x32xf32>
    %496 = arith.addf %495, %494 : vector<2x32xf32>
    %497 = arith.divf %495, %496 : vector<2x32xf32>
    %498 = vector.extract_strided_slice %379 {offsets = [0, 64], sizes = [2, 32], strides = [1, 1]} : vector<2x128xf32> to vector<2x32xf32>
    %cst_121 = arith.constant dense<0.000000e+00> : vector<2x32xf32>
    %499 = tpu.matmul %481, %89, %cst_121 {dimension_numbers = #tpu.dot_dimension_numbers<[1], [0], [0], [1], [0, 0, 1, 1], [], []>} : vector<2x32xf32>, vector<32x32xf32>, vector<2x32xf32> -> vector<2x32xf32>
    %500 = arith.addf %498, %499 : vector<2x32xf32>
    %501 = math.tanh %500 : vector<2x32xf32>
    %502 = vector.extract_strided_slice %379 {offsets = [0, 96], sizes = [2, 32], strides = [1, 1]} : vector<2x128xf32> to vector<2x32xf32>
    %cst_122 = arith.constant dense<0.000000e+00> : vector<2x32xf32>
    %503 = tpu.matmul %481, %90, %cst_122 {dimension_numbers = #tpu.dot_dimension_numbers<[1], [0], [0], [1], [0, 0, 1, 1], [], []>} : vector<2x32xf32>, vector<32x32xf32>, vector<2x32xf32> -> vector<2x32xf32>
    %504 = arith.addf %502, %503 : vector<2x32xf32>
    %505 = arith.negf %504 : vector<2x32xf32>
    %506 = math.exp %505 : vector<2x32xf32>
    %cst_123 = arith.constant 1.000000e+00 : f32
    %507 = vector.broadcast %cst_123 : f32 to vector<2x32xf32>
    %508 = arith.addf %507, %506 : vector<2x32xf32>
    %509 = arith.divf %507, %508 : vector<2x32xf32>
    %510 = arith.mulf %497, %479 : vector<2x32xf32>
    %511 = arith.mulf %489, %501 : vector<2x32xf32>
    %512 = arith.addf %510, %511 : vector<2x32xf32>
    %513 = math.tanh %512 : vector<2x32xf32>
    %514 = arith.mulf %509, %513 : vector<2x32xf32>
    %515 = vector.extract_strided_slice %382 {offsets = [0, 0], sizes = [2, 32], strides = [1, 1]} : vector<2x128xf32> to vector<2x32xf32>
    %cst_124 = arith.constant dense<0.000000e+00> : vector<2x32xf32>
    %516 = tpu.matmul %514, %87, %cst_124 {dimension_numbers = #tpu.dot_dimension_numbers<[1], [0], [0], [1], [0, 0, 1, 1], [], []>} : vector<2x32xf32>, vector<32x32xf32>, vector<2x32xf32> -> vector<2x32xf32>
    %517 = arith.addf %515, %516 : vector<2x32xf32>
    %518 = arith.negf %517 : vector<2x32xf32>
    %519 = math.exp %518 : vector<2x32xf32>
    %cst_125 = arith.constant 1.000000e+00 : f32
    %520 = vector.broadcast %cst_125 : f32 to vector<2x32xf32>
    %521 = arith.addf %520, %519 : vector<2x32xf32>
    %522 = arith.divf %520, %521 : vector<2x32xf32>
    %523 = vector.extract_strided_slice %382 {offsets = [0, 32], sizes = [2, 32], strides = [1, 1]} : vector<2x128xf32> to vector<2x32xf32>
    %cst_126 = arith.constant dense<0.000000e+00> : vector<2x32xf32>
    %524 = tpu.matmul %514, %88, %cst_126 {dimension_numbers = #tpu.dot_dimension_numbers<[1], [0], [0], [1], [0, 0, 1, 1], [], []>} : vector<2x32xf32>, vector<32x32xf32>, vector<2x32xf32> -> vector<2x32xf32>
    %525 = arith.addf %523, %524 : vector<2x32xf32>
    %526 = arith.negf %525 : vector<2x32xf32>
    %527 = math.exp %526 : vector<2x32xf32>
    %cst_127 = arith.constant 1.000000e+00 : f32
    %528 = vector.broadcast %cst_127 : f32 to vector<2x32xf32>
    %529 = arith.addf %528, %527 : vector<2x32xf32>
    %530 = arith.divf %528, %529 : vector<2x32xf32>
    %531 = vector.extract_strided_slice %382 {offsets = [0, 64], sizes = [2, 32], strides = [1, 1]} : vector<2x128xf32> to vector<2x32xf32>
    %cst_128 = arith.constant dense<0.000000e+00> : vector<2x32xf32>
    %532 = tpu.matmul %514, %89, %cst_128 {dimension_numbers = #tpu.dot_dimension_numbers<[1], [0], [0], [1], [0, 0, 1, 1], [], []>} : vector<2x32xf32>, vector<32x32xf32>, vector<2x32xf32> -> vector<2x32xf32>
    %533 = arith.addf %531, %532 : vector<2x32xf32>
    %534 = math.tanh %533 : vector<2x32xf32>
    %535 = vector.extract_strided_slice %382 {offsets = [0, 96], sizes = [2, 32], strides = [1, 1]} : vector<2x128xf32> to vector<2x32xf32>
    %cst_129 = arith.constant dense<0.000000e+00> : vector<2x32xf32>
    %536 = tpu.matmul %514, %90, %cst_129 {dimension_numbers = #tpu.dot_dimension_numbers<[1], [0], [0], [1], [0, 0, 1, 1], [], []>} : vector<2x32xf32>, vector<32x32xf32>, vector<2x32xf32> -> vector<2x32xf32>
    %537 = arith.addf %535, %536 : vector<2x32xf32>
    %538 = arith.negf %537 : vector<2x32xf32>
    %539 = math.exp %538 : vector<2x32xf32>
    %cst_130 = arith.constant 1.000000e+00 : f32
    %540 = vector.broadcast %cst_130 : f32 to vector<2x32xf32>
    %541 = arith.addf %540, %539 : vector<2x32xf32>
    %542 = arith.divf %540, %541 : vector<2x32xf32>
    %543 = arith.mulf %530, %512 : vector<2x32xf32>
    %544 = arith.mulf %522, %534 : vector<2x32xf32>
    %545 = arith.addf %543, %544 : vector<2x32xf32>
    %546 = math.tanh %545 : vector<2x32xf32>
    %547 = arith.mulf %542, %546 : vector<2x32xf32>
    %548 = vector.extract_strided_slice %40 {offsets = [0, 0], sizes = [6, 32], strides = [1, 1]} : vector<16x32xf32> to vector<6x32xf32>
    %c0_131 = arith.constant 0 : index
    %c0_132 = arith.constant 0 : index
    %549 = vector.load %arg6[%c0_131, %c0_132] : memref<26x32xf32, #tpu.memory_space<vmem>>, vector<6x32xf32>
    tpu.vector_store %arg6[%c0_131, %c0_132], %548 {strides = array<i32>} : memref<26x32xf32, #tpu.memory_space<vmem>>, vector<6x32xf32>,
    %550 = vector.extract_strided_slice %40 {offsets = [6, 0], sizes = [2, 32], strides = [1, 1]} : vector<16x32xf32> to vector<2x32xf32>
    %c11 = arith.constant 11 : index
    %c0_133 = arith.constant 0 : index
    %551 = vector.load %arg6[%c11, %c0_133] : memref<26x32xf32, #tpu.memory_space<vmem>>, vector<2x32xf32>
    tpu.vector_store %arg6[%c11, %c0_133], %550 {strides = array<i32>} : memref<26x32xf32, #tpu.memory_space<vmem>>, vector<2x32xf32>,
    %552 = vector.extract_strided_slice %40 {offsets = [8, 0], sizes = [6, 32], strides = [1, 1]} : vector<16x32xf32> to vector<6x32xf32>
    %c13 = arith.constant 13 : index
    %c0_134 = arith.constant 0 : index
    %553 = vector.load %arg6[%c13, %c0_134] : memref<26x32xf32, #tpu.memory_space<vmem>>, vector<6x32xf32>
    tpu.vector_store %arg6[%c13, %c0_134], %552 {strides = array<i32>} : memref<26x32xf32, #tpu.memory_space<vmem>>, vector<6x32xf32>,
    %554 = vector.extract_strided_slice %40 {offsets = [14, 0], sizes = [2, 32], strides = [1, 1]} : vector<16x32xf32> to vector<2x32xf32>
    %c24 = arith.constant 24 : index
    %c0_135 = arith.constant 0 : index
    %555 = vector.load %arg6[%c24, %c0_135] : memref<26x32xf32, #tpu.memory_space<vmem>>, vector<2x32xf32>
    tpu.vector_store %arg6[%c24, %c0_135], %554 {strides = array<i32>} : memref<26x32xf32, #tpu.memory_space<vmem>>, vector<2x32xf32>,
    %556 = vector.extract_strided_slice %415 {offsets = [0, 0], sizes = [1, 32], strides = [1, 1]} : vector<2x32xf32> to vector<1x32xf32>
    %c6 = arith.constant 6 : index
    %c0_136 = arith.constant 0 : index
    %557 = vector.load %arg6[%c6, %c0_136] : memref<26x32xf32, #tpu.memory_space<vmem>>, vector<1x32xf32>
    tpu.vector_store %arg6[%c6, %c0_136], %556 {strides = array<i32>} : memref<26x32xf32, #tpu.memory_space<vmem>>, vector<1x32xf32>,
    %558 = vector.extract_strided_slice %415 {offsets = [1, 0], sizes = [1, 32], strides = [1, 1]} : vector<2x32xf32> to vector<1x32xf32>
    %c19 = arith.constant 19 : index
    %c0_137 = arith.constant 0 : index
    %559 = vector.load %arg6[%c19, %c0_137] : memref<26x32xf32, #tpu.memory_space<vmem>>, vector<1x32xf32>
    tpu.vector_store %arg6[%c19, %c0_137], %558 {strides = array<i32>} : memref<26x32xf32, #tpu.memory_space<vmem>>, vector<1x32xf32>,
    %560 = vector.extract_strided_slice %448 {offsets = [0, 0], sizes = [1, 32], strides = [1, 1]} : vector<2x32xf32> to vector<1x32xf32>
    %c7 = arith.constant 7 : index
    %c0_138 = arith.constant 0 : index
    %561 = vector.load %arg6[%c7, %c0_138] : memref<26x32xf32, #tpu.memory_space<vmem>>, vector<1x32xf32>
    tpu.vector_store %arg6[%c7, %c0_138], %560 {strides = array<i32>} : memref<26x32xf32, #tpu.memory_space<vmem>>, vector<1x32xf32>,
    %562 = vector.extract_strided_slice %448 {offsets = [1, 0], sizes = [1, 32], strides = [1, 1]} : vector<2x32xf32> to vector<1x32xf32>
    %c20 = arith.constant 20 : index
    %c0_139 = arith.constant 0 : index
    %563 = vector.load %arg6[%c20, %c0_139] : memref<26x32xf32, #tpu.memory_space<vmem>>, vector<1x32xf32>
    tpu.vector_store %arg6[%c20, %c0_139], %562 {strides = array<i32>} : memref<26x32xf32, #tpu.memory_space<vmem>>, vector<1x32xf32>,
    %564 = vector.extract_strided_slice %481 {offsets = [0, 0], sizes = [1, 32], strides = [1, 1]} : vector<2x32xf32> to vector<1x32xf32>
    %c8 = arith.constant 8 : index
    %c0_140 = arith.constant 0 : index
    %565 = vector.load %arg6[%c8, %c0_140] : memref<26x32xf32, #tpu.memory_space<vmem>>, vector<1x32xf32>
    tpu.vector_store %arg6[%c8, %c0_140], %564 {strides = array<i32>} : memref<26x32xf32, #tpu.memory_space<vmem>>, vector<1x32xf32>,
    %566 = vector.extract_strided_slice %481 {offsets = [1, 0], sizes = [1, 32], strides = [1, 1]} : vector<2x32xf32> to vector<1x32xf32>
    %c21 = arith.constant 21 : index
    %c0_141 = arith.constant 0 : index
    %567 = vector.load %arg6[%c21, %c0_141] : memref<26x32xf32, #tpu.memory_space<vmem>>, vector<1x32xf32>
    tpu.vector_store %arg6[%c21, %c0_141], %566 {strides = array<i32>} : memref<26x32xf32, #tpu.memory_space<vmem>>, vector<1x32xf32>,
    %568 = vector.extract_strided_slice %514 {offsets = [0, 0], sizes = [1, 32], strides = [1, 1]} : vector<2x32xf32> to vector<1x32xf32>
    %c9 = arith.constant 9 : index
    %c0_142 = arith.constant 0 : index
    %569 = vector.load %arg6[%c9, %c0_142] : memref<26x32xf32, #tpu.memory_space<vmem>>, vector<1x32xf32>
    tpu.vector_store %arg6[%c9, %c0_142], %568 {strides = array<i32>} : memref<26x32xf32, #tpu.memory_space<vmem>>, vector<1x32xf32>,
    %570 = vector.extract_strided_slice %514 {offsets = [1, 0], sizes = [1, 32], strides = [1, 1]} : vector<2x32xf32> to vector<1x32xf32>
    %c22 = arith.constant 22 : index
    %c0_143 = arith.constant 0 : index
    %571 = vector.load %arg6[%c22, %c0_143] : memref<26x32xf32, #tpu.memory_space<vmem>>, vector<1x32xf32>
    tpu.vector_store %arg6[%c22, %c0_143], %570 {strides = array<i32>} : memref<26x32xf32, #tpu.memory_space<vmem>>, vector<1x32xf32>,
    %572 = vector.extract_strided_slice %547 {offsets = [0, 0], sizes = [1, 32], strides = [1, 1]} : vector<2x32xf32> to vector<1x32xf32>
    %c10 = arith.constant 10 : index
    %c0_144 = arith.constant 0 : index
    %573 = vector.load %arg6[%c10, %c0_144] : memref<26x32xf32, #tpu.memory_space<vmem>>, vector<1x32xf32>
    tpu.vector_store %arg6[%c10, %c0_144], %572 {strides = array<i32>} : memref<26x32xf32, #tpu.memory_space<vmem>>, vector<1x32xf32>,
    %574 = vector.extract_strided_slice %547 {offsets = [1, 0], sizes = [1, 32], strides = [1, 1]} : vector<2x32xf32> to vector<1x32xf32>
    %c23 = arith.constant 23 : index
    %c0_145 = arith.constant 0 : index
    %575 = vector.load %arg6[%c23, %c0_145] : memref<26x32xf32, #tpu.memory_space<vmem>>, vector<1x32xf32>
    tpu.vector_store %arg6[%c23, %c0_145], %574 {strides = array<i32>} : memref<26x32xf32, #tpu.memory_space<vmem>>, vector<1x32xf32>,
    %c0_146 = arith.constant 0 : index
    %c0_147 = arith.constant 0 : index
    %576 = vector.load %arg6[%c0_146, %c0_147] : memref<26x32xf32, #tpu.memory_space<vmem>>, vector<13x32xf32>
    %c13_148 = arith.constant 13 : index
    %c0_149 = arith.constant 0 : index
    %577 = vector.load %arg6[%c13_148, %c0_149] : memref<26x32xf32, #tpu.memory_space<vmem>>, vector<13x32xf32>
    %c0_150 = arith.constant 0 : index
    %c512 = arith.constant 512 : index
    %578 = vector.load %arg2[%c0_150, %c512] : memref<32x1536xf32, #tpu.memory_space<vmem>>, vector<32x96xf32>
    %c0_151 = arith.constant 0 : index
    %c640 = arith.constant 640 : index
    %579 = vector.load %arg2[%c0_151, %c640] : memref<32x1536xf32, #tpu.memory_space<vmem>>, vector<32x32xf32>
    %c0_152 = arith.constant 0 : index
    %c768 = arith.constant 768 : index
    %580 = vector.load %arg2[%c0_152, %c768] : memref<32x1536xf32, #tpu.memory_space<vmem>>, vector<32x64xf32>
    %c0_153 = arith.constant 0 : index
    %c0_154 = arith.constant 0 : index
    %c0_155 = arith.constant 0 : index
    %581 = vector.load %arg3[%c0_153, %c0_154, %c0_155] : memref<2x64x32xf32, #tpu.memory_space<vmem>>, vector<1x64x32xf32>
    %582 = vector.shape_cast %581 : vector<1x64x32xf32> to vector<64x32xf32>
    %c5 = arith.constant 5 : index
    %c0_156 = arith.constant 0 : index
    %583 = vector.load %arg4[%c5, %c0_156] : memref<25x128xf32, #tpu.memory_space<vmem>>, vector<1x96xf32>
    %c6_157 = arith.constant 6 : index
    %c0_158 = arith.constant 0 : index
    %584 = vector.load %arg4[%c6_157, %c0_158] : memref<25x128xf32, #tpu.memory_space<vmem>>, vector<1x32xf32>
    %c7_159 = arith.constant 7 : index
    %c0_160 = arith.constant 0 : index
    %585 = vector.load %arg4[%c7_159, %c0_160] : memref<25x128xf32, #tpu.memory_space<vmem>>, vector<1x32xf32>
    %c8_161 = arith.constant 8 : index
    %c0_162 = arith.constant 0 : index
    %586 = vector.load %arg4[%c8_161, %c0_162] : memref<25x128xf32, #tpu.memory_space<vmem>>, vector<1x32xf32>
    %c9_163 = arith.constant 9 : index
    %c0_164 = arith.constant 0 : index
    %587 = vector.load %arg4[%c9_163, %c0_164] : memref<25x128xf32, #tpu.memory_space<vmem>>, vector<1x64xf32>
    %c10_165 = arith.constant 10 : index
    %c0_166 = arith.constant 0 : index
    %588 = vector.load %arg4[%c10_165, %c0_166] : memref<25x128xf32, #tpu.memory_space<vmem>>, vector<1x32xf32>
    %c11_167 = arith.constant 11 : index
    %c0_168 = arith.constant 0 : index
    %589 = vector.load %arg4[%c11_167, %c0_168] : memref<25x128xf32, #tpu.memory_space<vmem>>, vector<1x32xf32>
    %c12 = arith.constant 12 : index
    %c0_169 = arith.constant 0 : index
    %590 = vector.load %arg4[%c12, %c0_169] : memref<25x128xf32, #tpu.memory_space<vmem>>, vector<1x32xf32>
    %cst_170 = arith.constant dense<0.000000e+00> : vector<13x96xf32>
    %591 = tpu.matmul %576, %578, %cst_170 {dimension_numbers = #tpu.dot_dimension_numbers<[1], [0], [0], [1], [0, 0, 1, 1], [], []>} : vector<13x32xf32>, vector<32x96xf32>, vector<13x96xf32> -> vector<13x96xf32>
    %592 = vector.broadcast %583 : vector<1x96xf32> to vector<13x96xf32>
    %593 = arith.addf %591, %592 : vector<13x96xf32>
    %cst_171 = arith.constant 0.000000e+00 : f32
    %594 = vector.broadcast %cst_171 : f32 to vector<13x32xf32>
    %595 = vector.extract_strided_slice %593 {offsets = [0, 0], sizes = [13, 16], strides = [1, 1]} : vector<13x96xf32> to vector<13x16xf32>
    %596 = vector.extract_strided_slice %593 {offsets = [0, 32], sizes = [13, 16], strides = [1, 1]} : vector<13x96xf32> to vector<13x16xf32>
    %597 = vector.extract_strided_slice %593 {offsets = [0, 64], sizes = [13, 16], strides = [1, 1]} : vector<13x96xf32> to vector<13x16xf32>
    %cst_172 = arith.constant dense<0.000000e+00> : vector<13x13xf32>
    %598 = tpu.matmul %595, %596, %cst_172 {dimension_numbers = #tpu.dot_dimension_numbers<[1], [1], [0], [0], [0, 0, 1, 0], [], []>} : vector<13x16xf32>, vector<13x16xf32>, vector<13x13xf32> -> vector<13x13xf32>
    %cst_173 = arith.constant dense<0xFF800000> : vector<13xf32>
    %599 = vector.multi_reduction <maximumf>, %598, %cst_173 [1] : vector<13x13xf32> to vector<13xf32>
    %600 = vector.shape_cast %599 : vector<13xf32> to vector<13x1xf32>
    %601 = vector.broadcast %600 : vector<13x1xf32> to vector<13x13xf32>
    %602 = arith.subf %598, %601 : vector<13x13xf32>
    %603 = math.exp %602 : vector<13x13xf32>
    %cst_174 = arith.constant dense<0.000000e+00> : vector<13xf32>
    %604 = vector.multi_reduction <add>, %603, %cst_174 [1] : vector<13x13xf32> to vector<13xf32>
    %605 = vector.shape_cast %604 : vector<13xf32> to vector<13x1xf32>
    %606 = tpu.reciprocal %605 {approx = true} : vector<13x1xf32> -> vector<13x1xf32>
    %607 = vector.broadcast %606 : vector<13x1xf32> to vector<13x13xf32>
    %608 = arith.mulf %603, %607 : vector<13x13xf32>
    %cst_175 = arith.constant dense<0.000000e+00> : vector<13x16xf32>
    %609 = tpu.matmul %608, %597, %cst_175 {dimension_numbers = #tpu.dot_dimension_numbers<[1], [0], [0], [1], [0, 0, 1, 1], [], []>} : vector<13x13xf32>, vector<13x16xf32>, vector<13x16xf32> -> vector<13x16xf32>
    %610 = vector.extract_strided_slice %579 {offsets = [0, 0], sizes = [16, 32], strides = [1, 1]} : vector<32x32xf32> to vector<16x32xf32>
    %cst_176 = arith.constant dense<0.000000e+00> : vector<13x32xf32>
    %611 = tpu.matmul %609, %610, %cst_176 {dimension_numbers = #tpu.dot_dimension_numbers<[1], [0], [0], [1], [0, 0, 1, 1], [], []>} : vector<13x16xf32>, vector<16x32xf32>, vector<13x32xf32> -> vector<13x32xf32>
    %612 = arith.addf %594, %611 : vector<13x32xf32>
    %613 = vector.extract_strided_slice %593 {offsets = [0, 16], sizes = [13, 16], strides = [1, 1]} : vector<13x96xf32> to vector<13x16xf32>
    %614 = vector.extract_strided_slice %593 {offsets = [0, 48], sizes = [13, 16], strides = [1, 1]} : vector<13x96xf32> to vector<13x16xf32>
    %615 = vector.extract_strided_slice %593 {offsets = [0, 80], sizes = [13, 16], strides = [1, 1]} : vector<13x96xf32> to vector<13x16xf32>
    %cst_177 = arith.constant dense<0.000000e+00> : vector<13x13xf32>
    %616 = tpu.matmul %613, %614, %cst_177 {dimension_numbers = #tpu.dot_dimension_numbers<[1], [1], [0], [0], [0, 0, 1, 0], [], []>} : vector<13x16xf32>, vector<13x16xf32>, vector<13x13xf32> -> vector<13x13xf32>
    %cst_178 = arith.constant dense<0xFF800000> : vector<13xf32>
    %617 = vector.multi_reduction <maximumf>, %616, %cst_178 [1] : vector<13x13xf32> to vector<13xf32>
    %618 = vector.shape_cast %617 : vector<13xf32> to vector<13x1xf32>
    %619 = vector.broadcast %618 : vector<13x1xf32> to vector<13x13xf32>
    %620 = arith.subf %616, %619 : vector<13x13xf32>
    %621 = math.exp %620 : vector<13x13xf32>
    %cst_179 = arith.constant dense<0.000000e+00> : vector<13xf32>
    %622 = vector.multi_reduction <add>, %621, %cst_179 [1] : vector<13x13xf32> to vector<13xf32>
    %623 = vector.shape_cast %622 : vector<13xf32> to vector<13x1xf32>
    %624 = tpu.reciprocal %623 {approx = true} : vector<13x1xf32> -> vector<13x1xf32>
    %625 = vector.broadcast %624 : vector<13x1xf32> to vector<13x13xf32>
    %626 = arith.mulf %621, %625 : vector<13x13xf32>
    %cst_180 = arith.constant dense<0.000000e+00> : vector<13x16xf32>
    %627 = tpu.matmul %626, %615, %cst_180 {dimension_numbers = #tpu.dot_dimension_numbers<[1], [0], [0], [1], [0, 0, 1, 1], [], []>} : vector<13x13xf32>, vector<13x16xf32>, vector<13x16xf32> -> vector<13x16xf32>
    %628 = vector.extract_strided_slice %579 {offsets = [16, 0], sizes = [16, 32], strides = [1, 1]} : vector<32x32xf32> to vector<16x32xf32>
    %cst_181 = arith.constant dense<0.000000e+00> : vector<13x32xf32>
    %629 = tpu.matmul %627, %628, %cst_181 {dimension_numbers = #tpu.dot_dimension_numbers<[1], [0], [0], [1], [0, 0, 1, 1], [], []>} : vector<13x16xf32>, vector<16x32xf32>, vector<13x32xf32> -> vector<13x32xf32>
    %630 = arith.addf %612, %629 : vector<13x32xf32>
    %631 = vector.broadcast %584 : vector<1x32xf32> to vector<13x32xf32>
    %632 = arith.addf %630, %631 : vector<13x32xf32>
    %633 = arith.addf %632, %576 : vector<13x32xf32>
    %cst_182 = arith.constant dense<0.000000e+00> : vector<13xf32>
    %634 = vector.multi_reduction <add>, %633, %cst_182 [1] : vector<13x32xf32> to vector<13xf32>
    %635 = vector.shape_cast %634 : vector<13xf32> to vector<13x1xf32>
    %cst_183 = arith.constant 3.200000e+01 : f32
    %636 = vector.broadcast %cst_183 : f32 to vector<13x1xf32>
    %637 = arith.divf %635, %636 : vector<13x1xf32>
    %638 = vector.broadcast %637 : vector<13x1xf32> to vector<13x32xf32>
    %639 = arith.subf %633, %638 : vector<13x32xf32>
    %640 = arith.mulf %639, %639 : vector<13x32xf32>
    %cst_184 = arith.constant dense<0.000000e+00> : vector<13xf32>
    %641 = vector.multi_reduction <add>, %640, %cst_184 [1] : vector<13x32xf32> to vector<13xf32>
    %642 = vector.shape_cast %641 : vector<13xf32> to vector<13x1xf32>
    %cst_185 = arith.constant 3.200000e+01 : f32
    %643 = vector.broadcast %cst_185 : f32 to vector<13x1xf32>
    %644 = arith.divf %642, %643 : vector<13x1xf32>
    %645 = vector.broadcast %637 : vector<13x1xf32> to vector<13x32xf32>
    %646 = arith.subf %633, %645 : vector<13x32xf32>
    %cst_186 = arith.constant 9.99999996E-13 : f32
    %647 = vector.broadcast %cst_186 : f32 to vector<13x1xf32>
    %648 = arith.addf %644, %647 : vector<13x1xf32>
    %649 = math.rsqrt %648 : vector<13x1xf32>
    %650 = vector.broadcast %649 : vector<13x1xf32> to vector<13x32xf32>
    %651 = arith.mulf %646, %650 : vector<13x32xf32>
    %652 = vector.broadcast %585 : vector<1x32xf32> to vector<13x32xf32>
    %653 = arith.mulf %651, %652 : vector<13x32xf32>
    %654 = vector.broadcast %586 : vector<1x32xf32> to vector<13x32xf32>
    %655 = arith.addf %653, %654 : vector<13x32xf32>
    %cst_187 = arith.constant dense<0.000000e+00> : vector<13x64xf32>
    %656 = tpu.matmul %655, %580, %cst_187 {dimension_numbers = #tpu.dot_dimension_numbers<[1], [0], [0], [1], [0, 0, 1, 1], [], []>} : vector<13x32xf32>, vector<32x64xf32>, vector<13x64xf32> -> vector<13x64xf32>
    %657 = vector.broadcast %587 : vector<1x64xf32> to vector<13x64xf32>
    %658 = arith.addf %656, %657 : vector<13x64xf32>
    %cst_188 = arith.constant 5.000000e-01 : f32
    %659 = vector.broadcast %cst_188 : f32 to vector<13x64xf32>
    %660 = arith.mulf %659, %658 : vector<13x64xf32>
    %cst_189 = arith.constant 0.707106769 : f32
    %661 = vector.broadcast %cst_189 : f32 to vector<13x64xf32>
    %662 = arith.mulf %658, %661 : vector<13x64xf32>
    %663 = math.absf %662 : vector<13x64xf32>
    %cst_190 = arith.constant 0.327591091 : f32
    %664 = vector.broadcast %cst_190 : f32 to vector<13x64xf32>
    %665 = arith.mulf %664, %663 : vector<13x64xf32>
    %cst_191 = arith.constant 1.000000e+00 : f32
    %666 = vector.broadcast %cst_191 : f32 to vector<13x64xf32>
    %667 = arith.addf %666, %665 : vector<13x64xf32>
    %cst_192 = arith.constant 1.000000e+00 : f32
    %668 = vector.broadcast %cst_192 : f32 to vector<13x64xf32>
    %669 = arith.divf %668, %667 : vector<13x64xf32>
    %cst_193 = arith.constant 1.06140542 : f32
    %670 = vector.broadcast %cst_193 : f32 to vector<13x64xf32>
    %671 = arith.mulf %669, %670 : vector<13x64xf32>
    %cst_194 = arith.constant -1.45315206 : f32
    %672 = vector.broadcast %cst_194 : f32 to vector<13x64xf32>
    %673 = arith.addf %672, %671 : vector<13x64xf32>
    %674 = arith.mulf %669, %673 : vector<13x64xf32>
    %cst_195 = arith.constant 1.42141378 : f32
    %675 = vector.broadcast %cst_195 : f32 to vector<13x64xf32>
    %676 = arith.addf %675, %674 : vector<13x64xf32>
    %677 = arith.mulf %669, %676 : vector<13x64xf32>
    %cst_196 = arith.constant -0.284496725 : f32
    %678 = vector.broadcast %cst_196 : f32 to vector<13x64xf32>
    %679 = arith.addf %678, %677 : vector<13x64xf32>
    %680 = arith.mulf %669, %679 : vector<13x64xf32>
    %cst_197 = arith.constant 0.254829586 : f32
    %681 = vector.broadcast %cst_197 : f32 to vector<13x64xf32>
    %682 = arith.addf %681, %680 : vector<13x64xf32>
    %683 = arith.mulf %669, %682 : vector<13x64xf32>
    %cst_198 = arith.constant 0.000000e+00 : f32
    %684 = vector.broadcast %cst_198 : f32 to vector<13x64xf32>
    %685 = arith.subf %684, %663 : vector<13x64xf32>
    %686 = arith.mulf %685, %663 : vector<13x64xf32>
    %687 = math.exp %686 : vector<13x64xf32>
    %688 = arith.mulf %683, %687 : vector<13x64xf32>
    %cst_199 = arith.constant 1.000000e+00 : f32
    %689 = vector.broadcast %cst_199 : f32 to vector<13x64xf32>
    %690 = arith.subf %689, %688 : vector<13x64xf32>
    %cst_200 = arith.constant 0.000000e+00 : f32
    %691 = vector.broadcast %cst_200 : f32 to vector<13x64xf32>
    %692 = arith.cmpf oge, %662, %691 : vector<13x64xf32>
    %cst_201 = arith.constant 0.000000e+00 : f32
    %693 = vector.broadcast %cst_201 : f32 to vector<13x64xf32>
    %694 = arith.subf %693, %690 : vector<13x64xf32>
    %695 = arith.select %692, %690, %694 : vector<13x64xi1>, vector<13x64xf32>
    %cst_202 = arith.constant 1.000000e+00 : f32
    %696 = vector.broadcast %cst_202 : f32 to vector<13x64xf32>
    %697 = arith.addf %696, %695 : vector<13x64xf32>
    %698 = arith.mulf %660, %697 : vector<13x64xf32>
    %cst_203 = arith.constant dense<0.000000e+00> : vector<13x32xf32>
    %699 = tpu.matmul %698, %582, %cst_203 {dimension_numbers = #tpu.dot_dimension_numbers<[1], [0], [0], [1], [0, 0, 1, 1], [], []>} : vector<13x64xf32>, vector<64x32xf32>, vector<13x32xf32> -> vector<13x32xf32>
    %700 = vector.broadcast %588 : vector<1x32xf32> to vector<13x32xf32>
    %701 = arith.addf %699, %700 : vector<13x32xf32>
    %702 = arith.addf %701, %655 : vector<13x32xf32>
    %cst_204 = arith.constant dense<0.000000e+00> : vector<13xf32>
    %703 = vector.multi_reduction <add>, %702, %cst_204 [1] : vector<13x32xf32> to vector<13xf32>
    %704 = vector.shape_cast %703 : vector<13xf32> to vector<13x1xf32>
    %cst_205 = arith.constant 3.200000e+01 : f32
    %705 = vector.broadcast %cst_205 : f32 to vector<13x1xf32>
    %706 = arith.divf %704, %705 : vector<13x1xf32>
    %707 = vector.broadcast %706 : vector<13x1xf32> to vector<13x32xf32>
    %708 = arith.subf %702, %707 : vector<13x32xf32>
    %709 = arith.mulf %708, %708 : vector<13x32xf32>
    %cst_206 = arith.constant dense<0.000000e+00> : vector<13xf32>
    %710 = vector.multi_reduction <add>, %709, %cst_206 [1] : vector<13x32xf32> to vector<13xf32>
    %711 = vector.shape_cast %710 : vector<13xf32> to vector<13x1xf32>
    %cst_207 = arith.constant 3.200000e+01 : f32
    %712 = vector.broadcast %cst_207 : f32 to vector<13x1xf32>
    %713 = arith.divf %711, %712 : vector<13x1xf32>
    %714 = vector.broadcast %706 : vector<13x1xf32> to vector<13x32xf32>
    %715 = arith.subf %702, %714 : vector<13x32xf32>
    %cst_208 = arith.constant 9.99999996E-13 : f32
    %716 = vector.broadcast %cst_208 : f32 to vector<13x1xf32>
    %717 = arith.addf %713, %716 : vector<13x1xf32>
    %718 = math.rsqrt %717 : vector<13x1xf32>
    %719 = vector.broadcast %718 : vector<13x1xf32> to vector<13x32xf32>
    %720 = arith.mulf %715, %719 : vector<13x32xf32>
    %721 = vector.broadcast %589 : vector<1x32xf32> to vector<13x32xf32>
    %722 = arith.mulf %720, %721 : vector<13x32xf32>
    %723 = vector.broadcast %590 : vector<1x32xf32> to vector<13x32xf32>
    %724 = arith.addf %722, %723 : vector<13x32xf32>
    %cst_209 = arith.constant dense<0.000000e+00> : vector<13x96xf32>
    %725 = tpu.matmul %577, %578, %cst_209 {dimension_numbers = #tpu.dot_dimension_numbers<[1], [0], [0], [1], [0, 0, 1, 1], [], []>} : vector<13x32xf32>, vector<32x96xf32>, vector<13x96xf32> -> vector<13x96xf32>
    %726 = vector.broadcast %583 : vector<1x96xf32> to vector<13x96xf32>
    %727 = arith.addf %725, %726 : vector<13x96xf32>
    %cst_210 = arith.constant 0.000000e+00 : f32
    %728 = vector.broadcast %cst_210 : f32 to vector<13x32xf32>
    %729 = vector.extract_strided_slice %727 {offsets = [0, 0], sizes = [13, 16], strides = [1, 1]} : vector<13x96xf32> to vector<13x16xf32>
    %730 = vector.extract_strided_slice %727 {offsets = [0, 32], sizes = [13, 16], strides = [1, 1]} : vector<13x96xf32> to vector<13x16xf32>
    %731 = vector.extract_strided_slice %727 {offsets = [0, 64], sizes = [13, 16], strides = [1, 1]} : vector<13x96xf32> to vector<13x16xf32>
    %cst_211 = arith.constant dense<0.000000e+00> : vector<13x13xf32>
    %732 = tpu.matmul %729, %730, %cst_211 {dimension_numbers = #tpu.dot_dimension_numbers<[1], [1], [0], [0], [0, 0, 1, 0], [], []>} : vector<13x16xf32>, vector<13x16xf32>, vector<13x13xf32> -> vector<13x13xf32>
    %cst_212 = arith.constant dense<0xFF800000> : vector<13xf32>
    %733 = vector.multi_reduction <maximumf>, %732, %cst_212 [1] : vector<13x13xf32> to vector<13xf32>
    %734 = vector.shape_cast %733 : vector<13xf32> to vector<13x1xf32>
    %735 = vector.broadcast %734 : vector<13x1xf32> to vector<13x13xf32>
    %736 = arith.subf %732, %735 : vector<13x13xf32>
    %737 = math.exp %736 : vector<13x13xf32>
    %cst_213 = arith.constant dense<0.000000e+00> : vector<13xf32>
    %738 = vector.multi_reduction <add>, %737, %cst_213 [1] : vector<13x13xf32> to vector<13xf32>
    %739 = vector.shape_cast %738 : vector<13xf32> to vector<13x1xf32>
    %740 = tpu.reciprocal %739 {approx = true} : vector<13x1xf32> -> vector<13x1xf32>
    %741 = vector.broadcast %740 : vector<13x1xf32> to vector<13x13xf32>
    %742 = arith.mulf %737, %741 : vector<13x13xf32>
    %cst_214 = arith.constant dense<0.000000e+00> : vector<13x16xf32>
    %743 = tpu.matmul %742, %731, %cst_214 {dimension_numbers = #tpu.dot_dimension_numbers<[1], [0], [0], [1], [0, 0, 1, 1], [], []>} : vector<13x13xf32>, vector<13x16xf32>, vector<13x16xf32> -> vector<13x16xf32>
    %744 = vector.extract_strided_slice %579 {offsets = [0, 0], sizes = [16, 32], strides = [1, 1]} : vector<32x32xf32> to vector<16x32xf32>
    %cst_215 = arith.constant dense<0.000000e+00> : vector<13x32xf32>
    %745 = tpu.matmul %743, %744, %cst_215 {dimension_numbers = #tpu.dot_dimension_numbers<[1], [0], [0], [1], [0, 0, 1, 1], [], []>} : vector<13x16xf32>, vector<16x32xf32>, vector<13x32xf32> -> vector<13x32xf32>
    %746 = arith.addf %728, %745 : vector<13x32xf32>
    %747 = vector.extract_strided_slice %727 {offsets = [0, 16], sizes = [13, 16], strides = [1, 1]} : vector<13x96xf32> to vector<13x16xf32>
    %748 = vector.extract_strided_slice %727 {offsets = [0, 48], sizes = [13, 16], strides = [1, 1]} : vector<13x96xf32> to vector<13x16xf32>
    %749 = vector.extract_strided_slice %727 {offsets = [0, 80], sizes = [13, 16], strides = [1, 1]} : vector<13x96xf32> to vector<13x16xf32>
    %cst_216 = arith.constant dense<0.000000e+00> : vector<13x13xf32>
    %750 = tpu.matmul %747, %748, %cst_216 {dimension_numbers = #tpu.dot_dimension_numbers<[1], [1], [0], [0], [0, 0, 1, 0], [], []>} : vector<13x16xf32>, vector<13x16xf32>, vector<13x13xf32> -> vector<13x13xf32>
    %cst_217 = arith.constant dense<0xFF800000> : vector<13xf32>
    %751 = vector.multi_reduction <maximumf>, %750, %cst_217 [1] : vector<13x13xf32> to vector<13xf32>
    %752 = vector.shape_cast %751 : vector<13xf32> to vector<13x1xf32>
    %753 = vector.broadcast %752 : vector<13x1xf32> to vector<13x13xf32>
    %754 = arith.subf %750, %753 : vector<13x13xf32>
    %755 = math.exp %754 : vector<13x13xf32>
    %cst_218 = arith.constant dense<0.000000e+00> : vector<13xf32>
    %756 = vector.multi_reduction <add>, %755, %cst_218 [1] : vector<13x13xf32> to vector<13xf32>
    %757 = vector.shape_cast %756 : vector<13xf32> to vector<13x1xf32>
    %758 = tpu.reciprocal %757 {approx = true} : vector<13x1xf32> -> vector<13x1xf32>
    %759 = vector.broadcast %758 : vector<13x1xf32> to vector<13x13xf32>
    %760 = arith.mulf %755, %759 : vector<13x13xf32>
    %cst_219 = arith.constant dense<0.000000e+00> : vector<13x16xf32>
    %761 = tpu.matmul %760, %749, %cst_219 {dimension_numbers = #tpu.dot_dimension_numbers<[1], [0], [0], [1], [0, 0, 1, 1], [], []>} : vector<13x13xf32>, vector<13x16xf32>, vector<13x16xf32> -> vector<13x16xf32>
    %762 = vector.extract_strided_slice %579 {offsets = [16, 0], sizes = [16, 32], strides = [1, 1]} : vector<32x32xf32> to vector<16x32xf32>
    %cst_220 = arith.constant dense<0.000000e+00> : vector<13x32xf32>
    %763 = tpu.matmul %761, %762, %cst_220 {dimension_numbers = #tpu.dot_dimension_numbers<[1], [0], [0], [1], [0, 0, 1, 1], [], []>} : vector<13x16xf32>, vector<16x32xf32>, vector<13x32xf32> -> vector<13x32xf32>
    %764 = arith.addf %746, %763 : vector<13x32xf32>
    %765 = vector.broadcast %584 : vector<1x32xf32> to vector<13x32xf32>
    %766 = arith.addf %764, %765 : vector<13x32xf32>
    %767 = arith.addf %766, %577 : vector<13x32xf32>
    %cst_221 = arith.constant dense<0.000000e+00> : vector<13xf32>
    %768 = vector.multi_reduction <add>, %767, %cst_221 [1] : vector<13x32xf32> to vector<13xf32>
    %769 = vector.shape_cast %768 : vector<13xf32> to vector<13x1xf32>
    %cst_222 = arith.constant 3.200000e+01 : f32
    %770 = vector.broadcast %cst_222 : f32 to vector<13x1xf32>
    %771 = arith.divf %769, %770 : vector<13x1xf32>
    %772 = vector.broadcast %771 : vector<13x1xf32> to vector<13x32xf32>
    %773 = arith.subf %767, %772 : vector<13x32xf32>
    %774 = arith.mulf %773, %773 : vector<13x32xf32>
    %cst_223 = arith.constant dense<0.000000e+00> : vector<13xf32>
    %775 = vector.multi_reduction <add>, %774, %cst_223 [1] : vector<13x32xf32> to vector<13xf32>
    %776 = vector.shape_cast %775 : vector<13xf32> to vector<13x1xf32>
    %cst_224 = arith.constant 3.200000e+01 : f32
    %777 = vector.broadcast %cst_224 : f32 to vector<13x1xf32>
    %778 = arith.divf %776, %777 : vector<13x1xf32>
    %779 = vector.broadcast %771 : vector<13x1xf32> to vector<13x32xf32>
    %780 = arith.subf %767, %779 : vector<13x32xf32>
    %cst_225 = arith.constant 9.99999996E-13 : f32
    %781 = vector.broadcast %cst_225 : f32 to vector<13x1xf32>
    %782 = arith.addf %778, %781 : vector<13x1xf32>
    %783 = math.rsqrt %782 : vector<13x1xf32>
    %784 = vector.broadcast %783 : vector<13x1xf32> to vector<13x32xf32>
    %785 = arith.mulf %780, %784 : vector<13x32xf32>
    %786 = vector.broadcast %585 : vector<1x32xf32> to vector<13x32xf32>
    %787 = arith.mulf %785, %786 : vector<13x32xf32>
    %788 = vector.broadcast %586 : vector<1x32xf32> to vector<13x32xf32>
    %789 = arith.addf %787, %788 : vector<13x32xf32>
    %cst_226 = arith.constant dense<0.000000e+00> : vector<13x64xf32>
    %790 = tpu.matmul %789, %580, %cst_226 {dimension_numbers = #tpu.dot_dimension_numbers<[1], [0], [0], [1], [0, 0, 1, 1], [], []>} : vector<13x32xf32>, vector<32x64xf32>, vector<13x64xf32> -> vector<13x64xf32>
    %791 = vector.broadcast %587 : vector<1x64xf32> to vector<13x64xf32>
    %792 = arith.addf %790, %791 : vector<13x64xf32>
    %cst_227 = arith.constant 5.000000e-01 : f32
    %793 = vector.broadcast %cst_227 : f32 to vector<13x64xf32>
    %794 = arith.mulf %793, %792 : vector<13x64xf32>
    %cst_228 = arith.constant 0.707106769 : f32
    %795 = vector.broadcast %cst_228 : f32 to vector<13x64xf32>
    %796 = arith.mulf %792, %795 : vector<13x64xf32>
    %797 = math.absf %796 : vector<13x64xf32>
    %cst_229 = arith.constant 0.327591091 : f32
    %798 = vector.broadcast %cst_229 : f32 to vector<13x64xf32>
    %799 = arith.mulf %798, %797 : vector<13x64xf32>
    %cst_230 = arith.constant 1.000000e+00 : f32
    %800 = vector.broadcast %cst_230 : f32 to vector<13x64xf32>
    %801 = arith.addf %800, %799 : vector<13x64xf32>
    %cst_231 = arith.constant 1.000000e+00 : f32
    %802 = vector.broadcast %cst_231 : f32 to vector<13x64xf32>
    %803 = arith.divf %802, %801 : vector<13x64xf32>
    %cst_232 = arith.constant 1.06140542 : f32
    %804 = vector.broadcast %cst_232 : f32 to vector<13x64xf32>
    %805 = arith.mulf %803, %804 : vector<13x64xf32>
    %cst_233 = arith.constant -1.45315206 : f32
    %806 = vector.broadcast %cst_233 : f32 to vector<13x64xf32>
    %807 = arith.addf %806, %805 : vector<13x64xf32>
    %808 = arith.mulf %803, %807 : vector<13x64xf32>
    %cst_234 = arith.constant 1.42141378 : f32
    %809 = vector.broadcast %cst_234 : f32 to vector<13x64xf32>
    %810 = arith.addf %809, %808 : vector<13x64xf32>
    %811 = arith.mulf %803, %810 : vector<13x64xf32>
    %cst_235 = arith.constant -0.284496725 : f32
    %812 = vector.broadcast %cst_235 : f32 to vector<13x64xf32>
    %813 = arith.addf %812, %811 : vector<13x64xf32>
    %814 = arith.mulf %803, %813 : vector<13x64xf32>
    %cst_236 = arith.constant 0.254829586 : f32
    %815 = vector.broadcast %cst_236 : f32 to vector<13x64xf32>
    %816 = arith.addf %815, %814 : vector<13x64xf32>
    %817 = arith.mulf %803, %816 : vector<13x64xf32>
    %cst_237 = arith.constant 0.000000e+00 : f32
    %818 = vector.broadcast %cst_237 : f32 to vector<13x64xf32>
    %819 = arith.subf %818, %797 : vector<13x64xf32>
    %820 = arith.mulf %819, %797 : vector<13x64xf32>
    %821 = math.exp %820 : vector<13x64xf32>
    %822 = arith.mulf %817, %821 : vector<13x64xf32>
    %cst_238 = arith.constant 1.000000e+00 : f32
    %823 = vector.broadcast %cst_238 : f32 to vector<13x64xf32>
    %824 = arith.subf %823, %822 : vector<13x64xf32>
    %cst_239 = arith.constant 0.000000e+00 : f32
    %825 = vector.broadcast %cst_239 : f32 to vector<13x64xf32>
    %826 = arith.cmpf oge, %796, %825 : vector<13x64xf32>
    %cst_240 = arith.constant 0.000000e+00 : f32
    %827 = vector.broadcast %cst_240 : f32 to vector<13x64xf32>
    %828 = arith.subf %827, %824 : vector<13x64xf32>
    %829 = arith.select %826, %824, %828 : vector<13x64xi1>, vector<13x64xf32>
    %cst_241 = arith.constant 1.000000e+00 : f32
    %830 = vector.broadcast %cst_241 : f32 to vector<13x64xf32>
    %831 = arith.addf %830, %829 : vector<13x64xf32>
    %832 = arith.mulf %794, %831 : vector<13x64xf32>
    %cst_242 = arith.constant dense<0.000000e+00> : vector<13x32xf32>
    %833 = tpu.matmul %832, %582, %cst_242 {dimension_numbers = #tpu.dot_dimension_numbers<[1], [0], [0], [1], [0, 0, 1, 1], [], []>} : vector<13x64xf32>, vector<64x32xf32>, vector<13x32xf32> -> vector<13x32xf32>
    %834 = vector.broadcast %588 : vector<1x32xf32> to vector<13x32xf32>
    %835 = arith.addf %833, %834 : vector<13x32xf32>
    %836 = arith.addf %835, %789 : vector<13x32xf32>
    %cst_243 = arith.constant dense<0.000000e+00> : vector<13xf32>
    %837 = vector.multi_reduction <add>, %836, %cst_243 [1] : vector<13x32xf32> to vector<13xf32>
    %838 = vector.shape_cast %837 : vector<13xf32> to vector<13x1xf32>
    %cst_244 = arith.constant 3.200000e+01 : f32
    %839 = vector.broadcast %cst_244 : f32 to vector<13x1xf32>
    %840 = arith.divf %838, %839 : vector<13x1xf32>
    %841 = vector.broadcast %840 : vector<13x1xf32> to vector<13x32xf32>
    %842 = arith.subf %836, %841 : vector<13x32xf32>
    %843 = arith.mulf %842, %842 : vector<13x32xf32>
    %cst_245 = arith.constant dense<0.000000e+00> : vector<13xf32>
    %844 = vector.multi_reduction <add>, %843, %cst_245 [1] : vector<13x32xf32> to vector<13xf32>
    %845 = vector.shape_cast %844 : vector<13xf32> to vector<13x1xf32>
    %cst_246 = arith.constant 3.200000e+01 : f32
    %846 = vector.broadcast %cst_246 : f32 to vector<13x1xf32>
    %847 = arith.divf %845, %846 : vector<13x1xf32>
    %848 = vector.broadcast %840 : vector<13x1xf32> to vector<13x32xf32>
    %849 = arith.subf %836, %848 : vector<13x32xf32>
    %cst_247 = arith.constant 9.99999996E-13 : f32
    %850 = vector.broadcast %cst_247 : f32 to vector<13x1xf32>
    %851 = arith.addf %847, %850 : vector<13x1xf32>
    %852 = math.rsqrt %851 : vector<13x1xf32>
    %853 = vector.broadcast %852 : vector<13x1xf32> to vector<13x32xf32>
    %854 = arith.mulf %849, %853 : vector<13x32xf32>
    %855 = vector.broadcast %589 : vector<1x32xf32> to vector<13x32xf32>
    %856 = arith.mulf %854, %855 : vector<13x32xf32>
    %857 = vector.broadcast %590 : vector<1x32xf32> to vector<13x32xf32>
    %858 = arith.addf %856, %857 : vector<13x32xf32>
    %c0_248 = arith.constant 0 : index
    %c896 = arith.constant 896 : index
    %859 = vector.load %arg2[%c0_248, %c896] : memref<32x1536xf32, #tpu.memory_space<vmem>>, vector<32x96xf32>
    %c0_249 = arith.constant 0 : index
    %c1024 = arith.constant 1024 : index
    %860 = vector.load %arg2[%c0_249, %c1024] : memref<32x1536xf32, #tpu.memory_space<vmem>>, vector<32x32xf32>
    %c0_250 = arith.constant 0 : index
    %c1152 = arith.constant 1152 : index
    %861 = vector.load %arg2[%c0_250, %c1152] : memref<32x1536xf32, #tpu.memory_space<vmem>>, vector<32x64xf32>
    %c1_251 = arith.constant 1 : index
    %c0_252 = arith.constant 0 : index
    %c0_253 = arith.constant 0 : index
    %862 = vector.load %arg3[%c1_251, %c0_252, %c0_253] : memref<2x64x32xf32, #tpu.memory_space<vmem>>, vector<1x64x32xf32>
    %863 = vector.shape_cast %862 : vector<1x64x32xf32> to vector<64x32xf32>
    %c13_254 = arith.constant 13 : index
    %c0_255 = arith.constant 0 : index
    %864 = vector.load %arg4[%c13_254, %c0_255] : memref<25x128xf32, #tpu.memory_space<vmem>>, vector<1x96xf32>
    %c14 = arith.constant 14 : index
    %c0_256 = arith.constant 0 : index
    %865 = vector.load %arg4[%c14, %c0_256] : memref<25x128xf32, #tpu.memory_space<vmem>>, vector<1x32xf32>
    %c15 = arith.constant 15 : index
    %c0_257 = arith.constant 0 : index
    %866 = vector.load %arg4[%c15, %c0_257] : memref<25x128xf32, #tpu.memory_space<vmem>>, vector<1x32xf32>
    %c16 = arith.constant 16 : index
    %c0_258 = arith.constant 0 : index
    %867 = vector.load %arg4[%c16, %c0_258] : memref<25x128xf32, #tpu.memory_space<vmem>>, vector<1x32xf32>
    %c17 = arith.constant 17 : index
    %c0_259 = arith.constant 0 : index
    %868 = vector.load %arg4[%c17, %c0_259] : memref<25x128xf32, #tpu.memory_space<vmem>>, vector<1x64xf32>
    %c18 = arith.constant 18 : index
    %c0_260 = arith.constant 0 : index
    %869 = vector.load %arg4[%c18, %c0_260] : memref<25x128xf32, #tpu.memory_space<vmem>>, vector<1x32xf32>
    %c19_261 = arith.constant 19 : index
    %c0_262 = arith.constant 0 : index
    %870 = vector.load %arg4[%c19_261, %c0_262] : memref<25x128xf32, #tpu.memory_space<vmem>>, vector<1x32xf32>
    %c20_263 = arith.constant 20 : index
    %c0_264 = arith.constant 0 : index
    %871 = vector.load %arg4[%c20_263, %c0_264] : memref<25x128xf32, #tpu.memory_space<vmem>>, vector<1x32xf32>
    %cst_265 = arith.constant dense<0.000000e+00> : vector<13x96xf32>
    %872 = tpu.matmul %724, %859, %cst_265 {dimension_numbers = #tpu.dot_dimension_numbers<[1], [0], [0], [1], [0, 0, 1, 1], [], []>} : vector<13x32xf32>, vector<32x96xf32>, vector<13x96xf32> -> vector<13x96xf32>
    %873 = vector.broadcast %864 : vector<1x96xf32> to vector<13x96xf32>
    %874 = arith.addf %872, %873 : vector<13x96xf32>
    %cst_266 = arith.constant 0.000000e+00 : f32
    %875 = vector.broadcast %cst_266 : f32 to vector<13x32xf32>
    %876 = vector.extract_strided_slice %874 {offsets = [0, 0], sizes = [13, 16], strides = [1, 1]} : vector<13x96xf32> to vector<13x16xf32>
    %877 = vector.extract_strided_slice %874 {offsets = [0, 32], sizes = [13, 16], strides = [1, 1]} : vector<13x96xf32> to vector<13x16xf32>
    %878 = vector.extract_strided_slice %874 {offsets = [0, 64], sizes = [13, 16], strides = [1, 1]} : vector<13x96xf32> to vector<13x16xf32>
    %cst_267 = arith.constant dense<0.000000e+00> : vector<13x13xf32>
    %879 = tpu.matmul %876, %877, %cst_267 {dimension_numbers = #tpu.dot_dimension_numbers<[1], [1], [0], [0], [0, 0, 1, 0], [], []>} : vector<13x16xf32>, vector<13x16xf32>, vector<13x13xf32> -> vector<13x13xf32>
    %cst_268 = arith.constant dense<0xFF800000> : vector<13xf32>
    %880 = vector.multi_reduction <maximumf>, %879, %cst_268 [1] : vector<13x13xf32> to vector<13xf32>
    %881 = vector.shape_cast %880 : vector<13xf32> to vector<13x1xf32>
    %882 = vector.broadcast %881 : vector<13x1xf32> to vector<13x13xf32>
    %883 = arith.subf %879, %882 : vector<13x13xf32>
    %884 = math.exp %883 : vector<13x13xf32>
    %cst_269 = arith.constant dense<0.000000e+00> : vector<13xf32>
    %885 = vector.multi_reduction <add>, %884, %cst_269 [1] : vector<13x13xf32> to vector<13xf32>
    %886 = vector.shape_cast %885 : vector<13xf32> to vector<13x1xf32>
    %887 = tpu.reciprocal %886 {approx = true} : vector<13x1xf32> -> vector<13x1xf32>
    %888 = vector.broadcast %887 : vector<13x1xf32> to vector<13x13xf32>
    %889 = arith.mulf %884, %888 : vector<13x13xf32>
    %cst_270 = arith.constant dense<0.000000e+00> : vector<13x16xf32>
    %890 = tpu.matmul %889, %878, %cst_270 {dimension_numbers = #tpu.dot_dimension_numbers<[1], [0], [0], [1], [0, 0, 1, 1], [], []>} : vector<13x13xf32>, vector<13x16xf32>, vector<13x16xf32> -> vector<13x16xf32>
    %891 = vector.extract_strided_slice %860 {offsets = [0, 0], sizes = [16, 32], strides = [1, 1]} : vector<32x32xf32> to vector<16x32xf32>
    %cst_271 = arith.constant dense<0.000000e+00> : vector<13x32xf32>
    %892 = tpu.matmul %890, %891, %cst_271 {dimension_numbers = #tpu.dot_dimension_numbers<[1], [0], [0], [1], [0, 0, 1, 1], [], []>} : vector<13x16xf32>, vector<16x32xf32>, vector<13x32xf32> -> vector<13x32xf32>
    %893 = arith.addf %875, %892 : vector<13x32xf32>
    %894 = vector.extract_strided_slice %874 {offsets = [0, 16], sizes = [13, 16], strides = [1, 1]} : vector<13x96xf32> to vector<13x16xf32>
    %895 = vector.extract_strided_slice %874 {offsets = [0, 48], sizes = [13, 16], strides = [1, 1]} : vector<13x96xf32> to vector<13x16xf32>
    %896 = vector.extract_strided_slice %874 {offsets = [0, 80], sizes = [13, 16], strides = [1, 1]} : vector<13x96xf32> to vector<13x16xf32>
    %cst_272 = arith.constant dense<0.000000e+00> : vector<13x13xf32>
    %897 = tpu.matmul %894, %895, %cst_272 {dimension_numbers = #tpu.dot_dimension_numbers<[1], [1], [0], [0], [0, 0, 1, 0], [], []>} : vector<13x16xf32>, vector<13x16xf32>, vector<13x13xf32> -> vector<13x13xf32>
    %cst_273 = arith.constant dense<0xFF800000> : vector<13xf32>
    %898 = vector.multi_reduction <maximumf>, %897, %cst_273 [1] : vector<13x13xf32> to vector<13xf32>
    %899 = vector.shape_cast %898 : vector<13xf32> to vector<13x1xf32>
    %900 = vector.broadcast %899 : vector<13x1xf32> to vector<13x13xf32>
    %901 = arith.subf %897, %900 : vector<13x13xf32>
    %902 = math.exp %901 : vector<13x13xf32>
    %cst_274 = arith.constant dense<0.000000e+00> : vector<13xf32>
    %903 = vector.multi_reduction <add>, %902, %cst_274 [1] : vector<13x13xf32> to vector<13xf32>
    %904 = vector.shape_cast %903 : vector<13xf32> to vector<13x1xf32>
    %905 = tpu.reciprocal %904 {approx = true} : vector<13x1xf32> -> vector<13x1xf32>
    %906 = vector.broadcast %905 : vector<13x1xf32> to vector<13x13xf32>
    %907 = arith.mulf %902, %906 : vector<13x13xf32>
    %cst_275 = arith.constant dense<0.000000e+00> : vector<13x16xf32>
    %908 = tpu.matmul %907, %896, %cst_275 {dimension_numbers = #tpu.dot_dimension_numbers<[1], [0], [0], [1], [0, 0, 1, 1], [], []>} : vector<13x13xf32>, vector<13x16xf32>, vector<13x16xf32> -> vector<13x16xf32>
    %909 = vector.extract_strided_slice %860 {offsets = [16, 0], sizes = [16, 32], strides = [1, 1]} : vector<32x32xf32> to vector<16x32xf32>
    %cst_276 = arith.constant dense<0.000000e+00> : vector<13x32xf32>
    %910 = tpu.matmul %908, %909, %cst_276 {dimension_numbers = #tpu.dot_dimension_numbers<[1], [0], [0], [1], [0, 0, 1, 1], [], []>} : vector<13x16xf32>, vector<16x32xf32>, vector<13x32xf32> -> vector<13x32xf32>
    %911 = arith.addf %893, %910 : vector<13x32xf32>
    %912 = vector.broadcast %865 : vector<1x32xf32> to vector<13x32xf32>
    %913 = arith.addf %911, %912 : vector<13x32xf32>
    %914 = arith.addf %913, %724 : vector<13x32xf32>
    %cst_277 = arith.constant dense<0.000000e+00> : vector<13xf32>
    %915 = vector.multi_reduction <add>, %914, %cst_277 [1] : vector<13x32xf32> to vector<13xf32>
    %916 = vector.shape_cast %915 : vector<13xf32> to vector<13x1xf32>
    %cst_278 = arith.constant 3.200000e+01 : f32
    %917 = vector.broadcast %cst_278 : f32 to vector<13x1xf32>
    %918 = arith.divf %916, %917 : vector<13x1xf32>
    %919 = vector.broadcast %918 : vector<13x1xf32> to vector<13x32xf32>
    %920 = arith.subf %914, %919 : vector<13x32xf32>
    %921 = arith.mulf %920, %920 : vector<13x32xf32>
    %cst_279 = arith.constant dense<0.000000e+00> : vector<13xf32>
    %922 = vector.multi_reduction <add>, %921, %cst_279 [1] : vector<13x32xf32> to vector<13xf32>
    %923 = vector.shape_cast %922 : vector<13xf32> to vector<13x1xf32>
    %cst_280 = arith.constant 3.200000e+01 : f32
    %924 = vector.broadcast %cst_280 : f32 to vector<13x1xf32>
    %925 = arith.divf %923, %924 : vector<13x1xf32>
    %926 = vector.broadcast %918 : vector<13x1xf32> to vector<13x32xf32>
    %927 = arith.subf %914, %926 : vector<13x32xf32>
    %cst_281 = arith.constant 9.99999996E-13 : f32
    %928 = vector.broadcast %cst_281 : f32 to vector<13x1xf32>
    %929 = arith.addf %925, %928 : vector<13x1xf32>
    %930 = math.rsqrt %929 : vector<13x1xf32>
    %931 = vector.broadcast %930 : vector<13x1xf32> to vector<13x32xf32>
    %932 = arith.mulf %927, %931 : vector<13x32xf32>
    %933 = vector.broadcast %866 : vector<1x32xf32> to vector<13x32xf32>
    %934 = arith.mulf %932, %933 : vector<13x32xf32>
    %935 = vector.broadcast %867 : vector<1x32xf32> to vector<13x32xf32>
    %936 = arith.addf %934, %935 : vector<13x32xf32>
    %cst_282 = arith.constant dense<0.000000e+00> : vector<13x64xf32>
    %937 = tpu.matmul %936, %861, %cst_282 {dimension_numbers = #tpu.dot_dimension_numbers<[1], [0], [0], [1], [0, 0, 1, 1], [], []>} : vector<13x32xf32>, vector<32x64xf32>, vector<13x64xf32> -> vector<13x64xf32>
    %938 = vector.broadcast %868 : vector<1x64xf32> to vector<13x64xf32>
    %939 = arith.addf %937, %938 : vector<13x64xf32>
    %cst_283 = arith.constant 5.000000e-01 : f32
    %940 = vector.broadcast %cst_283 : f32 to vector<13x64xf32>
    %941 = arith.mulf %940, %939 : vector<13x64xf32>
    %cst_284 = arith.constant 0.707106769 : f32
    %942 = vector.broadcast %cst_284 : f32 to vector<13x64xf32>
    %943 = arith.mulf %939, %942 : vector<13x64xf32>
    %944 = math.absf %943 : vector<13x64xf32>
    %cst_285 = arith.constant 0.327591091 : f32
    %945 = vector.broadcast %cst_285 : f32 to vector<13x64xf32>
    %946 = arith.mulf %945, %944 : vector<13x64xf32>
    %cst_286 = arith.constant 1.000000e+00 : f32
    %947 = vector.broadcast %cst_286 : f32 to vector<13x64xf32>
    %948 = arith.addf %947, %946 : vector<13x64xf32>
    %cst_287 = arith.constant 1.000000e+00 : f32
    %949 = vector.broadcast %cst_287 : f32 to vector<13x64xf32>
    %950 = arith.divf %949, %948 : vector<13x64xf32>
    %cst_288 = arith.constant 1.06140542 : f32
    %951 = vector.broadcast %cst_288 : f32 to vector<13x64xf32>
    %952 = arith.mulf %950, %951 : vector<13x64xf32>
    %cst_289 = arith.constant -1.45315206 : f32
    %953 = vector.broadcast %cst_289 : f32 to vector<13x64xf32>
    %954 = arith.addf %953, %952 : vector<13x64xf32>
    %955 = arith.mulf %950, %954 : vector<13x64xf32>
    %cst_290 = arith.constant 1.42141378 : f32
    %956 = vector.broadcast %cst_290 : f32 to vector<13x64xf32>
    %957 = arith.addf %956, %955 : vector<13x64xf32>
    %958 = arith.mulf %950, %957 : vector<13x64xf32>
    %cst_291 = arith.constant -0.284496725 : f32
    %959 = vector.broadcast %cst_291 : f32 to vector<13x64xf32>
    %960 = arith.addf %959, %958 : vector<13x64xf32>
    %961 = arith.mulf %950, %960 : vector<13x64xf32>
    %cst_292 = arith.constant 0.254829586 : f32
    %962 = vector.broadcast %cst_292 : f32 to vector<13x64xf32>
    %963 = arith.addf %962, %961 : vector<13x64xf32>
    %964 = arith.mulf %950, %963 : vector<13x64xf32>
    %cst_293 = arith.constant 0.000000e+00 : f32
    %965 = vector.broadcast %cst_293 : f32 to vector<13x64xf32>
    %966 = arith.subf %965, %944 : vector<13x64xf32>
    %967 = arith.mulf %966, %944 : vector<13x64xf32>
    %968 = math.exp %967 : vector<13x64xf32>
    %969 = arith.mulf %964, %968 : vector<13x64xf32>
    %cst_294 = arith.constant 1.000000e+00 : f32
    %970 = vector.broadcast %cst_294 : f32 to vector<13x64xf32>
    %971 = arith.subf %970, %969 : vector<13x64xf32>
    %cst_295 = arith.constant 0.000000e+00 : f32
    %972 = vector.broadcast %cst_295 : f32 to vector<13x64xf32>
    %973 = arith.cmpf oge, %943, %972 : vector<13x64xf32>
    %cst_296 = arith.constant 0.000000e+00 : f32
    %974 = vector.broadcast %cst_296 : f32 to vector<13x64xf32>
    %975 = arith.subf %974, %971 : vector<13x64xf32>
    %976 = arith.select %973, %971, %975 : vector<13x64xi1>, vector<13x64xf32>
    %cst_297 = arith.constant 1.000000e+00 : f32
    %977 = vector.broadcast %cst_297 : f32 to vector<13x64xf32>
    %978 = arith.addf %977, %976 : vector<13x64xf32>
    %979 = arith.mulf %941, %978 : vector<13x64xf32>
    %cst_298 = arith.constant dense<0.000000e+00> : vector<13x32xf32>
    %980 = tpu.matmul %979, %863, %cst_298 {dimension_numbers = #tpu.dot_dimension_numbers<[1], [0], [0], [1], [0, 0, 1, 1], [], []>} : vector<13x64xf32>, vector<64x32xf32>, vector<13x32xf32> -> vector<13x32xf32>
    %981 = vector.broadcast %869 : vector<1x32xf32> to vector<13x32xf32>
    %982 = arith.addf %980, %981 : vector<13x32xf32>
    %983 = arith.addf %982, %936 : vector<13x32xf32>
    %cst_299 = arith.constant dense<0.000000e+00> : vector<13xf32>
    %984 = vector.multi_reduction <add>, %983, %cst_299 [1] : vector<13x32xf32> to vector<13xf32>
    %985 = vector.shape_cast %984 : vector<13xf32> to vector<13x1xf32>
    %cst_300 = arith.constant 3.200000e+01 : f32
    %986 = vector.broadcast %cst_300 : f32 to vector<13x1xf32>
    %987 = arith.divf %985, %986 : vector<13x1xf32>
    %988 = vector.broadcast %987 : vector<13x1xf32> to vector<13x32xf32>
    %989 = arith.subf %983, %988 : vector<13x32xf32>
    %990 = arith.mulf %989, %989 : vector<13x32xf32>
    %cst_301 = arith.constant dense<0.000000e+00> : vector<13xf32>
    %991 = vector.multi_reduction <add>, %990, %cst_301 [1] : vector<13x32xf32> to vector<13xf32>
    %992 = vector.shape_cast %991 : vector<13xf32> to vector<13x1xf32>
    %cst_302 = arith.constant 3.200000e+01 : f32
    %993 = vector.broadcast %cst_302 : f32 to vector<13x1xf32>
    %994 = arith.divf %992, %993 : vector<13x1xf32>
    %995 = vector.broadcast %987 : vector<13x1xf32> to vector<13x32xf32>
    %996 = arith.subf %983, %995 : vector<13x32xf32>
    %cst_303 = arith.constant 9.99999996E-13 : f32
    %997 = vector.broadcast %cst_303 : f32 to vector<13x1xf32>
    %998 = arith.addf %994, %997 : vector<13x1xf32>
    %999 = math.rsqrt %998 : vector<13x1xf32>
    %1000 = vector.broadcast %999 : vector<13x1xf32> to vector<13x32xf32>
    %1001 = arith.mulf %996, %1000 : vector<13x32xf32>
    %1002 = vector.broadcast %870 : vector<1x32xf32> to vector<13x32xf32>
    %1003 = arith.mulf %1001, %1002 : vector<13x32xf32>
    %1004 = vector.broadcast %871 : vector<1x32xf32> to vector<13x32xf32>
    %1005 = arith.addf %1003, %1004 : vector<13x32xf32>
    %cst_304 = arith.constant dense<0.000000e+00> : vector<13x96xf32>
    %1006 = tpu.matmul %858, %859, %cst_304 {dimension_numbers = #tpu.dot_dimension_numbers<[1], [0], [0], [1], [0, 0, 1, 1], [], []>} : vector<13x32xf32>, vector<32x96xf32>, vector<13x96xf32> -> vector<13x96xf32>
    %1007 = vector.broadcast %864 : vector<1x96xf32> to vector<13x96xf32>
    %1008 = arith.addf %1006, %1007 : vector<13x96xf32>
    %cst_305 = arith.constant 0.000000e+00 : f32
    %1009 = vector.broadcast %cst_305 : f32 to vector<13x32xf32>
    %1010 = vector.extract_strided_slice %1008 {offsets = [0, 0], sizes = [13, 16], strides = [1, 1]} : vector<13x96xf32> to vector<13x16xf32>
    %1011 = vector.extract_strided_slice %1008 {offsets = [0, 32], sizes = [13, 16], strides = [1, 1]} : vector<13x96xf32> to vector<13x16xf32>
    %1012 = vector.extract_strided_slice %1008 {offsets = [0, 64], sizes = [13, 16], strides = [1, 1]} : vector<13x96xf32> to vector<13x16xf32>
    %cst_306 = arith.constant dense<0.000000e+00> : vector<13x13xf32>
    %1013 = tpu.matmul %1010, %1011, %cst_306 {dimension_numbers = #tpu.dot_dimension_numbers<[1], [1], [0], [0], [0, 0, 1, 0], [], []>} : vector<13x16xf32>, vector<13x16xf32>, vector<13x13xf32> -> vector<13x13xf32>
    %cst_307 = arith.constant dense<0xFF800000> : vector<13xf32>
    %1014 = vector.multi_reduction <maximumf>, %1013, %cst_307 [1] : vector<13x13xf32> to vector<13xf32>
    %1015 = vector.shape_cast %1014 : vector<13xf32> to vector<13x1xf32>
    %1016 = vector.broadcast %1015 : vector<13x1xf32> to vector<13x13xf32>
    %1017 = arith.subf %1013, %1016 : vector<13x13xf32>
    %1018 = math.exp %1017 : vector<13x13xf32>
    %cst_308 = arith.constant dense<0.000000e+00> : vector<13xf32>
    %1019 = vector.multi_reduction <add>, %1018, %cst_308 [1] : vector<13x13xf32> to vector<13xf32>
    %1020 = vector.shape_cast %1019 : vector<13xf32> to vector<13x1xf32>
    %1021 = tpu.reciprocal %1020 {approx = true} : vector<13x1xf32> -> vector<13x1xf32>
    %1022 = vector.broadcast %1021 : vector<13x1xf32> to vector<13x13xf32>
    %1023 = arith.mulf %1018, %1022 : vector<13x13xf32>
    %cst_309 = arith.constant dense<0.000000e+00> : vector<13x16xf32>
    %1024 = tpu.matmul %1023, %1012, %cst_309 {dimension_numbers = #tpu.dot_dimension_numbers<[1], [0], [0], [1], [0, 0, 1, 1], [], []>} : vector<13x13xf32>, vector<13x16xf32>, vector<13x16xf32> -> vector<13x16xf32>
    %1025 = vector.extract_strided_slice %860 {offsets = [0, 0], sizes = [16, 32], strides = [1, 1]} : vector<32x32xf32> to vector<16x32xf32>
    %cst_310 = arith.constant dense<0.000000e+00> : vector<13x32xf32>
    %1026 = tpu.matmul %1024, %1025, %cst_310 {dimension_numbers = #tpu.dot_dimension_numbers<[1], [0], [0], [1], [0, 0, 1, 1], [], []>} : vector<13x16xf32>, vector<16x32xf32>, vector<13x32xf32> -> vector<13x32xf32>
    %1027 = arith.addf %1009, %1026 : vector<13x32xf32>
    %1028 = vector.extract_strided_slice %1008 {offsets = [0, 16], sizes = [13, 16], strides = [1, 1]} : vector<13x96xf32> to vector<13x16xf32>
    %1029 = vector.extract_strided_slice %1008 {offsets = [0, 48], sizes = [13, 16], strides = [1, 1]} : vector<13x96xf32> to vector<13x16xf32>
    %1030 = vector.extract_strided_slice %1008 {offsets = [0, 80], sizes = [13, 16], strides = [1, 1]} : vector<13x96xf32> to vector<13x16xf32>
    %cst_311 = arith.constant dense<0.000000e+00> : vector<13x13xf32>
    %1031 = tpu.matmul %1028, %1029, %cst_311 {dimension_numbers = #tpu.dot_dimension_numbers<[1], [1], [0], [0], [0, 0, 1, 0], [], []>} : vector<13x16xf32>, vector<13x16xf32>, vector<13x13xf32> -> vector<13x13xf32>
    %cst_312 = arith.constant dense<0xFF800000> : vector<13xf32>
    %1032 = vector.multi_reduction <maximumf>, %1031, %cst_312 [1] : vector<13x13xf32> to vector<13xf32>
    %1033 = vector.shape_cast %1032 : vector<13xf32> to vector<13x1xf32>
    %1034 = vector.broadcast %1033 : vector<13x1xf32> to vector<13x13xf32>
    %1035 = arith.subf %1031, %1034 : vector<13x13xf32>
    %1036 = math.exp %1035 : vector<13x13xf32>
    %cst_313 = arith.constant dense<0.000000e+00> : vector<13xf32>
    %1037 = vector.multi_reduction <add>, %1036, %cst_313 [1] : vector<13x13xf32> to vector<13xf32>
    %1038 = vector.shape_cast %1037 : vector<13xf32> to vector<13x1xf32>
    %1039 = tpu.reciprocal %1038 {approx = true} : vector<13x1xf32> -> vector<13x1xf32>
    %1040 = vector.broadcast %1039 : vector<13x1xf32> to vector<13x13xf32>
    %1041 = arith.mulf %1036, %1040 : vector<13x13xf32>
    %cst_314 = arith.constant dense<0.000000e+00> : vector<13x16xf32>
    %1042 = tpu.matmul %1041, %1030, %cst_314 {dimension_numbers = #tpu.dot_dimension_numbers<[1], [0], [0], [1], [0, 0, 1, 1], [], []>} : vector<13x13xf32>, vector<13x16xf32>, vector<13x16xf32> -> vector<13x16xf32>
    %1043 = vector.extract_strided_slice %860 {offsets = [16, 0], sizes = [16, 32], strides = [1, 1]} : vector<32x32xf32> to vector<16x32xf32>
    %cst_315 = arith.constant dense<0.000000e+00> : vector<13x32xf32>
    %1044 = tpu.matmul %1042, %1043, %cst_315 {dimension_numbers = #tpu.dot_dimension_numbers<[1], [0], [0], [1], [0, 0, 1, 1], [], []>} : vector<13x16xf32>, vector<16x32xf32>, vector<13x32xf32> -> vector<13x32xf32>
    %1045 = arith.addf %1027, %1044 : vector<13x32xf32>
    %1046 = vector.broadcast %865 : vector<1x32xf32> to vector<13x32xf32>
    %1047 = arith.addf %1045, %1046 : vector<13x32xf32>
    %1048 = arith.addf %1047, %858 : vector<13x32xf32>
    %cst_316 = arith.constant dense<0.000000e+00> : vector<13xf32>
    %1049 = vector.multi_reduction <add>, %1048, %cst_316 [1] : vector<13x32xf32> to vector<13xf32>
    %1050 = vector.shape_cast %1049 : vector<13xf32> to vector<13x1xf32>
    %cst_317 = arith.constant 3.200000e+01 : f32
    %1051 = vector.broadcast %cst_317 : f32 to vector<13x1xf32>
    %1052 = arith.divf %1050, %1051 : vector<13x1xf32>
    %1053 = vector.broadcast %1052 : vector<13x1xf32> to vector<13x32xf32>
    %1054 = arith.subf %1048, %1053 : vector<13x32xf32>
    %1055 = arith.mulf %1054, %1054 : vector<13x32xf32>
    %cst_318 = arith.constant dense<0.000000e+00> : vector<13xf32>
    %1056 = vector.multi_reduction <add>, %1055, %cst_318 [1] : vector<13x32xf32> to vector<13xf32>
    %1057 = vector.shape_cast %1056 : vector<13xf32> to vector<13x1xf32>
    %cst_319 = arith.constant 3.200000e+01 : f32
    %1058 = vector.broadcast %cst_319 : f32 to vector<13x1xf32>
    %1059 = arith.divf %1057, %1058 : vector<13x1xf32>
    %1060 = vector.broadcast %1052 : vector<13x1xf32> to vector<13x32xf32>
    %1061 = arith.subf %1048, %1060 : vector<13x32xf32>
    %cst_320 = arith.constant 9.99999996E-13 : f32
    %1062 = vector.broadcast %cst_320 : f32 to vector<13x1xf32>
    %1063 = arith.addf %1059, %1062 : vector<13x1xf32>
    %1064 = math.rsqrt %1063 : vector<13x1xf32>
    %1065 = vector.broadcast %1064 : vector<13x1xf32> to vector<13x32xf32>
    %1066 = arith.mulf %1061, %1065 : vector<13x32xf32>
    %1067 = vector.broadcast %866 : vector<1x32xf32> to vector<13x32xf32>
    %1068 = arith.mulf %1066, %1067 : vector<13x32xf32>
    %1069 = vector.broadcast %867 : vector<1x32xf32> to vector<13x32xf32>
    %1070 = arith.addf %1068, %1069 : vector<13x32xf32>
    %cst_321 = arith.constant dense<0.000000e+00> : vector<13x64xf32>
    %1071 = tpu.matmul %1070, %861, %cst_321 {dimension_numbers = #tpu.dot_dimension_numbers<[1], [0], [0], [1], [0, 0, 1, 1], [], []>} : vector<13x32xf32>, vector<32x64xf32>, vector<13x64xf32> -> vector<13x64xf32>
    %1072 = vector.broadcast %868 : vector<1x64xf32> to vector<13x64xf32>
    %1073 = arith.addf %1071, %1072 : vector<13x64xf32>
    %cst_322 = arith.constant 5.000000e-01 : f32
    %1074 = vector.broadcast %cst_322 : f32 to vector<13x64xf32>
    %1075 = arith.mulf %1074, %1073 : vector<13x64xf32>
    %cst_323 = arith.constant 0.707106769 : f32
    %1076 = vector.broadcast %cst_323 : f32 to vector<13x64xf32>
    %1077 = arith.mulf %1073, %1076 : vector<13x64xf32>
    %1078 = math.absf %1077 : vector<13x64xf32>
    %cst_324 = arith.constant 0.327591091 : f32
    %1079 = vector.broadcast %cst_324 : f32 to vector<13x64xf32>
    %1080 = arith.mulf %1079, %1078 : vector<13x64xf32>
    %cst_325 = arith.constant 1.000000e+00 : f32
    %1081 = vector.broadcast %cst_325 : f32 to vector<13x64xf32>
    %1082 = arith.addf %1081, %1080 : vector<13x64xf32>
    %cst_326 = arith.constant 1.000000e+00 : f32
    %1083 = vector.broadcast %cst_326 : f32 to vector<13x64xf32>
    %1084 = arith.divf %1083, %1082 : vector<13x64xf32>
    %cst_327 = arith.constant 1.06140542 : f32
    %1085 = vector.broadcast %cst_327 : f32 to vector<13x64xf32>
    %1086 = arith.mulf %1084, %1085 : vector<13x64xf32>
    %cst_328 = arith.constant -1.45315206 : f32
    %1087 = vector.broadcast %cst_328 : f32 to vector<13x64xf32>
    %1088 = arith.addf %1087, %1086 : vector<13x64xf32>
    %1089 = arith.mulf %1084, %1088 : vector<13x64xf32>
    %cst_329 = arith.constant 1.42141378 : f32
    %1090 = vector.broadcast %cst_329 : f32 to vector<13x64xf32>
    %1091 = arith.addf %1090, %1089 : vector<13x64xf32>
    %1092 = arith.mulf %1084, %1091 : vector<13x64xf32>
    %cst_330 = arith.constant -0.284496725 : f32
    %1093 = vector.broadcast %cst_330 : f32 to vector<13x64xf32>
    %1094 = arith.addf %1093, %1092 : vector<13x64xf32>
    %1095 = arith.mulf %1084, %1094 : vector<13x64xf32>
    %cst_331 = arith.constant 0.254829586 : f32
    %1096 = vector.broadcast %cst_331 : f32 to vector<13x64xf32>
    %1097 = arith.addf %1096, %1095 : vector<13x64xf32>
    %1098 = arith.mulf %1084, %1097 : vector<13x64xf32>
    %cst_332 = arith.constant 0.000000e+00 : f32
    %1099 = vector.broadcast %cst_332 : f32 to vector<13x64xf32>
    %1100 = arith.subf %1099, %1078 : vector<13x64xf32>
    %1101 = arith.mulf %1100, %1078 : vector<13x64xf32>
    %1102 = math.exp %1101 : vector<13x64xf32>
    %1103 = arith.mulf %1098, %1102 : vector<13x64xf32>
    %cst_333 = arith.constant 1.000000e+00 : f32
    %1104 = vector.broadcast %cst_333 : f32 to vector<13x64xf32>
    %1105 = arith.subf %1104, %1103 : vector<13x64xf32>
    %cst_334 = arith.constant 0.000000e+00 : f32
    %1106 = vector.broadcast %cst_334 : f32 to vector<13x64xf32>
    %1107 = arith.cmpf oge, %1077, %1106 : vector<13x64xf32>
    %cst_335 = arith.constant 0.000000e+00 : f32
    %1108 = vector.broadcast %cst_335 : f32 to vector<13x64xf32>
    %1109 = arith.subf %1108, %1105 : vector<13x64xf32>
    %1110 = arith.select %1107, %1105, %1109 : vector<13x64xi1>, vector<13x64xf32>
    %cst_336 = arith.constant 1.000000e+00 : f32
    %1111 = vector.broadcast %cst_336 : f32 to vector<13x64xf32>
    %1112 = arith.addf %1111, %1110 : vector<13x64xf32>
    %1113 = arith.mulf %1075, %1112 : vector<13x64xf32>
    %cst_337 = arith.constant dense<0.000000e+00> : vector<13x32xf32>
    %1114 = tpu.matmul %1113, %863, %cst_337 {dimension_numbers = #tpu.dot_dimension_numbers<[1], [0], [0], [1], [0, 0, 1, 1], [], []>} : vector<13x64xf32>, vector<64x32xf32>, vector<13x32xf32> -> vector<13x32xf32>
    %1115 = vector.broadcast %869 : vector<1x32xf32> to vector<13x32xf32>
    %1116 = arith.addf %1114, %1115 : vector<13x32xf32>
    %1117 = arith.addf %1116, %1070 : vector<13x32xf32>
    %cst_338 = arith.constant dense<0.000000e+00> : vector<13xf32>
    %1118 = vector.multi_reduction <add>, %1117, %cst_338 [1] : vector<13x32xf32> to vector<13xf32>
    %1119 = vector.shape_cast %1118 : vector<13xf32> to vector<13x1xf32>
    %cst_339 = arith.constant 3.200000e+01 : f32
    %1120 = vector.broadcast %cst_339 : f32 to vector<13x1xf32>
    %1121 = arith.divf %1119, %1120 : vector<13x1xf32>
    %1122 = vector.broadcast %1121 : vector<13x1xf32> to vector<13x32xf32>
    %1123 = arith.subf %1117, %1122 : vector<13x32xf32>
    %1124 = arith.mulf %1123, %1123 : vector<13x32xf32>
    %cst_340 = arith.constant dense<0.000000e+00> : vector<13xf32>
    %1125 = vector.multi_reduction <add>, %1124, %cst_340 [1] : vector<13x32xf32> to vector<13xf32>
    %1126 = vector.shape_cast %1125 : vector<13xf32> to vector<13x1xf32>
    %cst_341 = arith.constant 3.200000e+01 : f32
    %1127 = vector.broadcast %cst_341 : f32 to vector<13x1xf32>
    %1128 = arith.divf %1126, %1127 : vector<13x1xf32>
    %1129 = vector.broadcast %1121 : vector<13x1xf32> to vector<13x32xf32>
    %1130 = arith.subf %1117, %1129 : vector<13x32xf32>
    %cst_342 = arith.constant 9.99999996E-13 : f32
    %1131 = vector.broadcast %cst_342 : f32 to vector<13x1xf32>
    %1132 = arith.addf %1128, %1131 : vector<13x1xf32>
    %1133 = math.rsqrt %1132 : vector<13x1xf32>
    %1134 = vector.broadcast %1133 : vector<13x1xf32> to vector<13x32xf32>
    %1135 = arith.mulf %1130, %1134 : vector<13x32xf32>
    %1136 = vector.broadcast %870 : vector<1x32xf32> to vector<13x32xf32>
    %1137 = arith.mulf %1135, %1136 : vector<13x32xf32>
    %1138 = vector.broadcast %871 : vector<1x32xf32> to vector<13x32xf32>
    %1139 = arith.addf %1137, %1138 : vector<13x32xf32>
    %c0_343 = arith.constant 0 : index
    %c1280 = arith.constant 1280 : index
    %1140 = vector.load %arg2[%c0_343, %c1280] : memref<32x1536xf32, #tpu.memory_space<vmem>>, vector<32x32xf32>
    %c21_344 = arith.constant 21 : index
    %c0_345 = arith.constant 0 : index
    %1141 = vector.load %arg4[%c21_344, %c0_345] : memref<25x128xf32, #tpu.memory_space<vmem>>, vector<1x32xf32>
    %c22_346 = arith.constant 22 : index
    %c0_347 = arith.constant 0 : index
    %1142 = vector.load %arg4[%c22_346, %c0_347] : memref<25x128xf32, #tpu.memory_space<vmem>>, vector<1x32xf32>
    %c23_348 = arith.constant 23 : index
    %c0_349 = arith.constant 0 : index
    %1143 = vector.load %arg4[%c23_348, %c0_349] : memref<25x128xf32, #tpu.memory_space<vmem>>, vector<1x32xf32>
    %c0_350 = arith.constant 0 : index
    %c1408 = arith.constant 1408 : index
    %1144 = vector.load %arg2[%c0_350, %c1408] : memref<32x1536xf32, #tpu.memory_space<vmem>>, vector<32x128xf32>
    %c24_351 = arith.constant 24 : index
    %c0_352 = arith.constant 0 : index
    %1145 = vector.load %arg4[%c24_351, %c0_352] : memref<25x128xf32, #tpu.memory_space<vmem>>, vector<1x128xf32>
    %cst_353 = arith.constant dense<0.000000e+00> : vector<13x32xf32>
    %1146 = tpu.matmul %1005, %1140, %cst_353 {dimension_numbers = #tpu.dot_dimension_numbers<[1], [0], [0], [1], [0, 0, 1, 1], [], []>} : vector<13x32xf32>, vector<32x32xf32>, vector<13x32xf32> -> vector<13x32xf32>
    %1147 = vector.broadcast %1141 : vector<1x32xf32> to vector<13x32xf32>
    %1148 = arith.addf %1146, %1147 : vector<13x32xf32>
    %cst_354 = arith.constant 5.000000e-01 : f32
    %1149 = vector.broadcast %cst_354 : f32 to vector<13x32xf32>
    %1150 = arith.mulf %1149, %1148 : vector<13x32xf32>
    %cst_355 = arith.constant 0.707106769 : f32
    %1151 = vector.broadcast %cst_355 : f32 to vector<13x32xf32>
    %1152 = arith.mulf %1148, %1151 : vector<13x32xf32>
    %1153 = math.absf %1152 : vector<13x32xf32>
    %cst_356 = arith.constant 0.327591091 : f32
    %1154 = vector.broadcast %cst_356 : f32 to vector<13x32xf32>
    %1155 = arith.mulf %1154, %1153 : vector<13x32xf32>
    %cst_357 = arith.constant 1.000000e+00 : f32
    %1156 = vector.broadcast %cst_357 : f32 to vector<13x32xf32>
    %1157 = arith.addf %1156, %1155 : vector<13x32xf32>
    %cst_358 = arith.constant 1.000000e+00 : f32
    %1158 = vector.broadcast %cst_358 : f32 to vector<13x32xf32>
    %1159 = arith.divf %1158, %1157 : vector<13x32xf32>
    %cst_359 = arith.constant 1.06140542 : f32
    %1160 = vector.broadcast %cst_359 : f32 to vector<13x32xf32>
    %1161 = arith.mulf %1159, %1160 : vector<13x32xf32>
    %cst_360 = arith.constant -1.45315206 : f32
    %1162 = vector.broadcast %cst_360 : f32 to vector<13x32xf32>
    %1163 = arith.addf %1162, %1161 : vector<13x32xf32>
    %1164 = arith.mulf %1159, %1163 : vector<13x32xf32>
    %cst_361 = arith.constant 1.42141378 : f32
    %1165 = vector.broadcast %cst_361 : f32 to vector<13x32xf32>
    %1166 = arith.addf %1165, %1164 : vector<13x32xf32>
    %1167 = arith.mulf %1159, %1166 : vector<13x32xf32>
    %cst_362 = arith.constant -0.284496725 : f32
    %1168 = vector.broadcast %cst_362 : f32 to vector<13x32xf32>
    %1169 = arith.addf %1168, %1167 : vector<13x32xf32>
    %1170 = arith.mulf %1159, %1169 : vector<13x32xf32>
    %cst_363 = arith.constant 0.254829586 : f32
    %1171 = vector.broadcast %cst_363 : f32 to vector<13x32xf32>
    %1172 = arith.addf %1171, %1170 : vector<13x32xf32>
    %1173 = arith.mulf %1159, %1172 : vector<13x32xf32>
    %cst_364 = arith.constant 0.000000e+00 : f32
    %1174 = vector.broadcast %cst_364 : f32 to vector<13x32xf32>
    %1175 = arith.subf %1174, %1153 : vector<13x32xf32>
    %1176 = arith.mulf %1175, %1153 : vector<13x32xf32>
    %1177 = math.exp %1176 : vector<13x32xf32>
    %1178 = arith.mulf %1173, %1177 : vector<13x32xf32>
    %cst_365 = arith.constant 1.000000e+00 : f32
    %1179 = vector.broadcast %cst_365 : f32 to vector<13x32xf32>
    %1180 = arith.subf %1179, %1178 : vector<13x32xf32>
    %cst_366 = arith.constant 0.000000e+00 : f32
    %1181 = vector.broadcast %cst_366 : f32 to vector<13x32xf32>
    %1182 = arith.cmpf oge, %1152, %1181 : vector<13x32xf32>
    %cst_367 = arith.constant 0.000000e+00 : f32
    %1183 = vector.broadcast %cst_367 : f32 to vector<13x32xf32>
    %1184 = arith.subf %1183, %1180 : vector<13x32xf32>
    %1185 = arith.select %1182, %1180, %1184 : vector<13x32xi1>, vector<13x32xf32>
    %cst_368 = arith.constant 1.000000e+00 : f32
    %1186 = vector.broadcast %cst_368 : f32 to vector<13x32xf32>
    %1187 = arith.addf %1186, %1185 : vector<13x32xf32>
    %1188 = arith.mulf %1150, %1187 : vector<13x32xf32>
    %cst_369 = arith.constant dense<0.000000e+00> : vector<13xf32>
    %1189 = vector.multi_reduction <add>, %1188, %cst_369 [1] : vector<13x32xf32> to vector<13xf32>
    %1190 = vector.shape_cast %1189 : vector<13xf32> to vector<13x1xf32>
    %cst_370 = arith.constant 3.200000e+01 : f32
    %1191 = vector.broadcast %cst_370 : f32 to vector<13x1xf32>
    %1192 = arith.divf %1190, %1191 : vector<13x1xf32>
    %1193 = vector.broadcast %1192 : vector<13x1xf32> to vector<13x32xf32>
    %1194 = arith.subf %1188, %1193 : vector<13x32xf32>
    %1195 = arith.mulf %1194, %1194 : vector<13x32xf32>
    %cst_371 = arith.constant dense<0.000000e+00> : vector<13xf32>
    %1196 = vector.multi_reduction <add>, %1195, %cst_371 [1] : vector<13x32xf32> to vector<13xf32>
    %1197 = vector.shape_cast %1196 : vector<13xf32> to vector<13x1xf32>
    %cst_372 = arith.constant 3.200000e+01 : f32
    %1198 = vector.broadcast %cst_372 : f32 to vector<13x1xf32>
    %1199 = arith.divf %1197, %1198 : vector<13x1xf32>
    %1200 = vector.broadcast %1192 : vector<13x1xf32> to vector<13x32xf32>
    %1201 = arith.subf %1188, %1200 : vector<13x32xf32>
    %cst_373 = arith.constant 9.99999996E-13 : f32
    %1202 = vector.broadcast %cst_373 : f32 to vector<13x1xf32>
    %1203 = arith.addf %1199, %1202 : vector<13x1xf32>
    %1204 = math.rsqrt %1203 : vector<13x1xf32>
    %1205 = vector.broadcast %1204 : vector<13x1xf32> to vector<13x32xf32>
    %1206 = arith.mulf %1201, %1205 : vector<13x32xf32>
    %1207 = vector.broadcast %1142 : vector<1x32xf32> to vector<13x32xf32>
    %1208 = arith.mulf %1206, %1207 : vector<13x32xf32>
    %1209 = vector.broadcast %1143 : vector<1x32xf32> to vector<13x32xf32>
    %1210 = arith.addf %1208, %1209 : vector<13x32xf32>
    %cst_374 = arith.constant dense<0.000000e+00> : vector<13x128xf32>
    %1211 = tpu.matmul %1210, %1144, %cst_374 {dimension_numbers = #tpu.dot_dimension_numbers<[1], [0], [0], [1], [0, 0, 1, 1], [], []>} : vector<13x32xf32>, vector<32x128xf32>, vector<13x128xf32> -> vector<13x128xf32>
    %1212 = vector.broadcast %1145 : vector<1x128xf32> to vector<13x128xf32>
    %1213 = arith.addf %1211, %1212 : vector<13x128xf32>
    %c0_375 = arith.constant 0 : index
    %c0_376 = arith.constant 0 : index
    %1214 = vector.load %arg5[%c0_375, %c0_376] : memref<26x128xf32, #tpu.memory_space<vmem>>, vector<13x128xf32>
    tpu.vector_store %arg5[%c0_375, %c0_376], %1213 {strides = array<i32>} : memref<26x128xf32, #tpu.memory_space<vmem>>, vector<13x128xf32>,
    %cst_377 = arith.constant dense<0.000000e+00> : vector<13x32xf32>
    %1215 = tpu.matmul %1139, %1140, %cst_377 {dimension_numbers = #tpu.dot_dimension_numbers<[1], [0], [0], [1], [0, 0, 1, 1], [], []>} : vector<13x32xf32>, vector<32x32xf32>, vector<13x32xf32> -> vector<13x32xf32>
    %1216 = vector.broadcast %1141 : vector<1x32xf32> to vector<13x32xf32>
    %1217 = arith.addf %1215, %1216 : vector<13x32xf32>
    %cst_378 = arith.constant 5.000000e-01 : f32
    %1218 = vector.broadcast %cst_378 : f32 to vector<13x32xf32>
    %1219 = arith.mulf %1218, %1217 : vector<13x32xf32>
    %cst_379 = arith.constant 0.707106769 : f32
    %1220 = vector.broadcast %cst_379 : f32 to vector<13x32xf32>
    %1221 = arith.mulf %1217, %1220 : vector<13x32xf32>
    %1222 = math.absf %1221 : vector<13x32xf32>
    %cst_380 = arith.constant 0.327591091 : f32
    %1223 = vector.broadcast %cst_380 : f32 to vector<13x32xf32>
    %1224 = arith.mulf %1223, %1222 : vector<13x32xf32>
    %cst_381 = arith.constant 1.000000e+00 : f32
    %1225 = vector.broadcast %cst_381 : f32 to vector<13x32xf32>
    %1226 = arith.addf %1225, %1224 : vector<13x32xf32>
    %cst_382 = arith.constant 1.000000e+00 : f32
    %1227 = vector.broadcast %cst_382 : f32 to vector<13x32xf32>
    %1228 = arith.divf %1227, %1226 : vector<13x32xf32>
    %cst_383 = arith.constant 1.06140542 : f32
    %1229 = vector.broadcast %cst_383 : f32 to vector<13x32xf32>
    %1230 = arith.mulf %1228, %1229 : vector<13x32xf32>
    %cst_384 = arith.constant -1.45315206 : f32
    %1231 = vector.broadcast %cst_384 : f32 to vector<13x32xf32>
    %1232 = arith.addf %1231, %1230 : vector<13x32xf32>
    %1233 = arith.mulf %1228, %1232 : vector<13x32xf32>
    %cst_385 = arith.constant 1.42141378 : f32
    %1234 = vector.broadcast %cst_385 : f32 to vector<13x32xf32>
    %1235 = arith.addf %1234, %1233 : vector<13x32xf32>
    %1236 = arith.mulf %1228, %1235 : vector<13x32xf32>
    %cst_386 = arith.constant -0.284496725 : f32
    %1237 = vector.broadcast %cst_386 : f32 to vector<13x32xf32>
    %1238 = arith.addf %1237, %1236 : vector<13x32xf32>
    %1239 = arith.mulf %1228, %1238 : vector<13x32xf32>
    %cst_387 = arith.constant 0.254829586 : f32
    %1240 = vector.broadcast %cst_387 : f32 to vector<13x32xf32>
    %1241 = arith.addf %1240, %1239 : vector<13x32xf32>
    %1242 = arith.mulf %1228, %1241 : vector<13x32xf32>
    %cst_388 = arith.constant 0.000000e+00 : f32
    %1243 = vector.broadcast %cst_388 : f32 to vector<13x32xf32>
    %1244 = arith.subf %1243, %1222 : vector<13x32xf32>
    %1245 = arith.mulf %1244, %1222 : vector<13x32xf32>
    %1246 = math.exp %1245 : vector<13x32xf32>
    %1247 = arith.mulf %1242, %1246 : vector<13x32xf32>
    %cst_389 = arith.constant 1.000000e+00 : f32
    %1248 = vector.broadcast %cst_389 : f32 to vector<13x32xf32>
    %1249 = arith.subf %1248, %1247 : vector<13x32xf32>
    %cst_390 = arith.constant 0.000000e+00 : f32
    %1250 = vector.broadcast %cst_390 : f32 to vector<13x32xf32>
    %1251 = arith.cmpf oge, %1221, %1250 : vector<13x32xf32>
    %cst_391 = arith.constant 0.000000e+00 : f32
    %1252 = vector.broadcast %cst_391 : f32 to vector<13x32xf32>
    %1253 = arith.subf %1252, %1249 : vector<13x32xf32>
    %1254 = arith.select %1251, %1249, %1253 : vector<13x32xi1>, vector<13x32xf32>
    %cst_392 = arith.constant 1.000000e+00 : f32
    %1255 = vector.broadcast %cst_392 : f32 to vector<13x32xf32>
    %1256 = arith.addf %1255, %1254 : vector<13x32xf32>
    %1257 = arith.mulf %1219, %1256 : vector<13x32xf32>
    %cst_393 = arith.constant dense<0.000000e+00> : vector<13xf32>
    %1258 = vector.multi_reduction <add>, %1257, %cst_393 [1] : vector<13x32xf32> to vector<13xf32>
    %1259 = vector.shape_cast %1258 : vector<13xf32> to vector<13x1xf32>
    %cst_394 = arith.constant 3.200000e+01 : f32
    %1260 = vector.broadcast %cst_394 : f32 to vector<13x1xf32>
    %1261 = arith.divf %1259, %1260 : vector<13x1xf32>
    %1262 = vector.broadcast %1261 : vector<13x1xf32> to vector<13x32xf32>
    %1263 = arith.subf %1257, %1262 : vector<13x32xf32>
    %1264 = arith.mulf %1263, %1263 : vector<13x32xf32>
    %cst_395 = arith.constant dense<0.000000e+00> : vector<13xf32>
    %1265 = vector.multi_reduction <add>, %1264, %cst_395 [1] : vector<13x32xf32> to vector<13xf32>
    %1266 = vector.shape_cast %1265 : vector<13xf32> to vector<13x1xf32>
    %cst_396 = arith.constant 3.200000e+01 : f32
    %1267 = vector.broadcast %cst_396 : f32 to vector<13x1xf32>
    %1268 = arith.divf %1266, %1267 : vector<13x1xf32>
    %1269 = vector.broadcast %1261 : vector<13x1xf32> to vector<13x32xf32>
    %1270 = arith.subf %1257, %1269 : vector<13x32xf32>
    %cst_397 = arith.constant 9.99999996E-13 : f32
    %1271 = vector.broadcast %cst_397 : f32 to vector<13x1xf32>
    %1272 = arith.addf %1268, %1271 : vector<13x1xf32>
    %1273 = math.rsqrt %1272 : vector<13x1xf32>
    %1274 = vector.broadcast %1273 : vector<13x1xf32> to vector<13x32xf32>
    %1275 = arith.mulf %1270, %1274 : vector<13x32xf32>
    %1276 = vector.broadcast %1142 : vector<1x32xf32> to vector<13x32xf32>
    %1277 = arith.mulf %1275, %1276 : vector<13x32xf32>
    %1278 = vector.broadcast %1143 : vector<1x32xf32> to vector<13x32xf32>
    %1279 = arith.addf %1277, %1278 : vector<13x32xf32>
    %cst_398 = arith.constant dense<0.000000e+00> : vector<13x128xf32>
    %1280 = tpu.matmul %1279, %1144, %cst_398 {dimension_numbers = #tpu.dot_dimension_numbers<[1], [0], [0], [1], [0, 0, 1, 1], [], []>} : vector<13x32xf32>, vector<32x128xf32>, vector<13x128xf32> -> vector<13x128xf32>
    %1281 = vector.broadcast %1145 : vector<1x128xf32> to vector<13x128xf32>
    %1282 = arith.addf %1280, %1281 : vector<13x128xf32>
    %c13_399 = arith.constant 13 : index
    %c0_400 = arith.constant 0 : index
    %1283 = vector.load %arg5[%c13_399, %c0_400] : memref<26x128xf32, #tpu.memory_space<vmem>>, vector<13x128xf32>
    tpu.vector_store %arg5[%c13_399, %c0_400], %1282 {strides = array<i32>} : memref<26x128xf32, #tpu.memory_space<vmem>>, vector<13x128xf32>,
    return
  }
}

</mosaic_0001>

<bundles_post_ra>
// kernel: tile.9
= control target key start
LH: loop header
LB: loop body
LE: loop exit
PB: predicated region body
PF: predicated region fallthrough
CT: control target
= control target key end

     0   :  { %vm7_vm0 = vcmask 64512   ;;  %vm13_vm1 = vcmask 130112   ;;  %s39_s0 = inlined_call_operand.vmem [shape: s32[2,8], index: 0, kind: input, shape index: {}]   ;;  %s40_s1 = inlined_call_operand.vmem [shape: s32[16,1], index: 1, kind: output, shape index: {}]  }
   0x1   :  { %v4_v0 = vld [vmem:[%s39_s0] sm:$0x3]  ;;  %s22_s0 = smov 8  }
   0x2   :  { %5 = vst [vmem:[#allocation1] sm:$0x3] %v4_v0 }
   0x9   :  { %v10_v1 = vld [vmem:[#allocation1 + $0x1] sm:$0x1]   ;;  %v6_v2 = vld [vmem:[#allocation1] sm:$0x1]  }
   0xa   :  { %11 = vrot.lane.b32.xlu0 %v10_v1, %s22_s0  ;;  %8 = vst.msk [vmem:[#allocation0] sm:$0x1] %vm7_vm0, %v6_v2  }
  0x7c   :  { %v12_v3 = vpop.permute.xlu0 %11  }
  0x7d   :  { %14 = vst.msk [vmem:[#allocation0] sm:$0x1] %vm13_vm1, %v12_v3  }
  0x84   :  { %v17_v4 = vld [vmem:[#allocation0] sm:$0x1] }
  0x85   :  { %20 = vst [vmem:[%s40_s1] sm:$0x1] %v17_v4 }

// kernel: forward.1
= control target key start
LH: loop header
LB: loop body
LE: loop exit
PB: predicated region body
PF: predicated region fallthrough
CT: control target
= control target key end

     0   :  { %v6102_v0 = vmov 2   ;;  %v6103_v10 = vmov 3   ;;  %v36_v23 = vlaneseq  ;;  %v6104_v27 = vmov 1.0   ;;  %s6105_s30 = smov 64   ;;  %s6106_s10 = smov 96   ;;  %s8039_s0 = inlined_call_operand.vmem [shape: s32[16,4], index: 0, kind: input, shape index: {}]   ;;  %s8040_s1 = inlined_call_operand.vmem [shape: f32[128,32], index: 1, kind: input, shape index: {}]   ;;  %s8041_s4 = inlined_call_operand.vmem [shape: f32[25,128], index: 4, kind: input, shape index: {}]   ;;  %s8042_s2 = inlined_call_operand.vmem [shape: f32[32,1536], index: 2, kind: input, shape index: {}]   ;;  %s8043_s3 = inlined_call_operand.vmem [shape: f32[2,64,32], index: 3, kind: input, shape index: {}]   ;;  %s8044_s5 = inlined_call_operand.vmem [shape: f32[26,128], index: 5, kind: output, shape index: {}]  }
   0x1   :  { %5633 = vset.pattern.permute.xlu1 %v6102_v0  ;;  %5631 = vset.pattern.permute.xlu0 %v6102_v0  ;;  %v6148_v1 = vld [vmem:[%s8039_s0 + $0x8] sm:$0xff]  ;;  %v6153_v2 = vld [vmem:[%s8039_s0] sm:$0xff]  ;;  %v35_v3 = vld [vmem:[%s8040_s1 + $0x78] sm:$0xff]  ;;  %vm91_vm6 = vcmask 261120   ;;  %v6107_v42 = vmov 32.0   ;;  %v6108_v46 = vmov 0.0  }
   0x2   :  { %153 = vperm.xlu1 %5633, %v6148_v1   ;;  %150 = vperm.xlu0 %5631, %v6153_v2   ;;  %v34_v4 = vld [vmem:[%s8040_s1 + $0x70] sm:$0xff]  ;;  %v33_v5 = vld [vmem:[%s8040_s1 + $0x68] sm:$0xff]  ;;  %v32_v6 = vld [vmem:[%s8040_s1 + $0x60] sm:$0xff]  ;;  %v6170_v7 = vadd.s32 64, %v6148_v1  ;;  %v6173_v8 = vadd.s32 64, %v6153_v2  ;;  %v6215_v25 = vand.u32 127, %v36_v23  ;;  %5725 = vrcp.f32 %v6107_v42 }
   0x3   :  { %171 = vmatpush.msra.mxu1 %v35_v3  ;;  %68 = vmatpush.msra.mxu0 %v35_v3  ;;  %v31_v9 = vld [vmem:[%s8040_s1 + $0x58] sm:$0xff]  ;;  %v30_v11 = vld [vmem:[%s8040_s1 + $0x50] sm:$0xff]  ;;  %v29_v12 = vld [vmem:[%s8040_s1 + $0x48] sm:$0xff]  ;;  %s6109_s21 = smov 32   ;;  %s6113_s22 = smov 112  }
   0x4   :  { %v28_v13 = vld [vmem:[%s8040_s1 + $0x40] sm:$0xff]  ;;  %v27_v14 = vld [vmem:[%s8040_s1 + $0x38] sm:$0xff]  ;;  %v26_v15 = vld [vmem:[%s8040_s1 + $0x30] sm:$0xff]  ;;  %s6114_s23 = smov 48  }
   0x5   :  { %172 = vmatpush.msra.mxu1 %v34_v4  ;;  %69 = vmatpush.msra.mxu0 %v34_v4  ;;  %v25_v16 = vld [vmem:[%s8040_s1 + $0x28] sm:$0xff]  ;;  %v24_v17 = vld [vmem:[%s8040_s1 + $0x20] sm:$0xff]  ;;  %v23_v18 = vld [vmem:[%s8040_s1 + $0x18] sm:$0xff] }
   0x6   :  { %v22_v19 = vld [vmem:[%s8040_s1 + $0x10] sm:$0xff]  ;;  %v21_v20 = vld [vmem:[%s8040_s1 + $0x8] sm:$0xff]  ;;  %v20_v21 = vld [vmem:[%s8040_s1] sm:$0xff] }
   0x7   :  { %173 = vmatpush.msra.mxu1 %v33_v5  ;;  %70 = vmatpush.msra.mxu0 %v33_v5  ;;  %v6226_v29 = vld [vmem:[%s8042_s2 + $0xc8] sm:$0xff]  ;;  %v5700_v35 = vld [vmem:[%s8041_s4] ss:$0 sm:$0xff] }
   0x8   :  { %v6231_v30 = vld [vmem:[%s8042_s2 + $0x128] sm:$0xff]  ;;  %v5726_v43 = vpop.eup %5725  ;;  %v245_v5 = vld [vmem:[%s8042_s2 + $0x120] sm:$0xff] }
   0x9   :  { %174 = vmatpush.msra.mxu1 %v32_v6  ;;  %71 = vmatpush.msra.mxu0 %v32_v6  ;;  %v6235_v31 = vpack.i.bf16 %v6226_v29, %v6231_v30  ;;  %v6245_v32 = vld [vmem:[%s8042_s2 + $0x68] sm:$0xff]  ;;  %v99_v44 = vmul.f32 32.0, %v5726_v43  ;;  %vm103_vm7 = vweird.f32 %v5726_v43  ;;  %v244_v6 = vld [vmem:[%s8042_s2 + $0xc0] sm:$0xff] }
   0xa   :  { %5634 = vset.pattern.permute.xlu1 %v6103_v10  ;;  %5632 = vset.pattern.permute.xlu0 %v6103_v10  ;;  %v6252_v33 = vld [vmem:[%s8042_s2 + $0x8] sm:$0xff] }
   0xb   :  { %161 = vperm.xlu1 %5634, %v6170_v7   ;;  %158 = vperm.xlu0 %5632, %v6173_v8   ;;  %v6261_v34 = vpack.i.bf16 %v6252_v33, %v6245_v32  ;;  %v100_v47 = vsub.f32 1.0, %v99_v44  ;;  %v5702_v44 = vld [vmem:[%s8041_s4 + $0x2] ss:$0 sm:$0xff] }
   0xc   :  { %175 = vmatpush.msra.mxu1 %v31_v9  ;;  %72 = vmatpush.msra.mxu0 %v31_v9 }
   0xd   :  { %305 = vmatpush.msra.mxu3 %v6231_v30  ;;  %v101_v48 = vmul.f32 %v5726_v43, %v100_v47  ;;  %279 = vmatpush.msra.mxu2 %v245_v5  ;;  %v6387_v5 = vld [vmem:[%s8041_s4 + $0x3] ss:$0 sm:$0xff] }
   0xe   :  { %176 = vmatpush.msra.mxu1 %v30_v11  ;;  %73 = vmatpush.msra.mxu0 %v30_v11  ;;  %v243_v11 = vld [vmem:[%s8042_s2 + $0x60] sm:$0xff] }
   0xf   :  { %306 = vmatpush.msra.mxu3 %v6226_v29  ;;  %v102_v52 = vadd.f32 %v5726_v43, %v101_v48  ;;  %280 = vmatpush.msra.mxu2 %v244_v6 }
  0x10   :  { %177 = vmatpush.msra.mxu1 %v29_v12  ;;  %74 = vmatpush.msra.mxu0 %v29_v12 }
  0x11   :  { %307 = vmatpush.msra.mxu3 %v6245_v32  ;;  %v6279_v53 = vsel %vm103_vm7, %v5726_v43, %v102_v52  ;;  %281 = vmatpush.msra.mxu2 %v243_v11 }
  0x12   :  { %178 = vmatpush.msra.mxu1 %v28_v13  ;;  %75 = vmatpush.msra.mxu0 %v28_v13  ;;  %v242_v13 = vld [vmem:[%s8042_s2] sm:$0xff] }
  0x13   :  { %5636 = vrot.lane.b32.xlu0 %v6235_v31, %s6105_s30  ;;  %308 = vmatpush.msra.mxu3 %v6252_v33 }
  0x14   :  { %179 = vmatpush.msra.mxu1 %v27_v14  ;;  %76 = vmatpush.msra.mxu0 %v27_v14 }
  0x15   :  { %309 = vmatmul.f32.vlgmr.msra.gmra.mxu3 %v6108_v46  ;;  %282 = vmatpush.msra.mxu2 %v242_v13 }
  0x16   :  { %180 = vmatpush.msra.mxu1 %v26_v15  ;;  %77 = vmatpush.msra.mxu0 %v26_v15 }
  0x18   :  { %181 = vmatpush.msra.mxu1 %v25_v16  ;;  %78 = vmatpush.msra.mxu0 %v25_v16 }
  0x1a   :  { %182 = vmatpush.msra.mxu1 %v24_v17  ;;  %79 = vmatpush.msra.mxu0 %v24_v17 }
  0x1b   :  { %5646 = vrot.lane.b32.xlu0 %v6235_v31, %s6106_s10 }
  0x1c   :  { %183 = vmatpush.msra.mxu1 %v23_v18  ;;  %80 = vmatpush.msra.mxu0 %v23_v18 }
  0x1e   :  { %184 = vmatpush.msra.mxu1 %v22_v19  ;;  %81 = vmatpush.msra.mxu0 %v22_v19 }
  0x20   :  { %185 = vmatpush.msra.mxu1 %v21_v20  ;;  %82 = vmatpush.msra.mxu0 %v21_v20 }
  0x22   :  { %186 = vmatpush.msra.mxu1 %v20_v21  ;;  %83 = vmatpush.msra.mxu0 %v20_v21 }
  0x23   :  { %5651 = vrot.lane.b32.xlu0 %v6261_v34, %s6106_s10 }
  0x24   :  { %707 = vmatpush.msrb.mxu0 %v6231_v30 }
  0x26   :  { %708 = vmatpush.msrb.mxu0 %v6226_v29 }
  0x28   :  { %709 = vmatpush.msrb.mxu0 %v6245_v32 }
  0x2a   :  { %710 = vmatpush.msrb.mxu0 %v6252_v33 }
  0x2b   :  { %5656 = vrot.lane.b32.xlu0 %v6235_v31, %s6109_s21 }
  0x74   :  { %v151_v22 = vpop.permute.xlu0 %150  ;;  %v154_v24 = vpop.permute.xlu1 %153 }
  0x75   :  { %vm155_vm0 = vcmp.eq.s32.totalorder %v6215_v25, %v151_v22  ;;  %vm156_vm3 = vcmp.eq.s32.totalorder %v6215_v25, %v154_v24 }
  0x7d   :  { %v159_v26 = vpop.permute.xlu0 %158  ;;  %v162_v28 = vpop.permute.xlu1 %161 }
  0x7e   :  { %vm163_vm1 = vcmp.eq.s32.totalorder %v6215_v25, %v159_v26  ;;  %vm164_vm4 = vcmp.eq.s32.totalorder %v6215_v25, %v162_v28 }
  0x7f   :  { %vm165_vm2 = vmor %vm155_vm0, %vm163_vm1 }
  0x80   :  { %5410 = vmatmul.msk.f32.vlgmr.msra.gmra.mxu1 %vm165_vm2, %v6104_v27  ;;  %vm166_vm5 = vmor %vm156_vm3, %vm164_vm4 }
  0x85   :  { %v5637_v45 = vpop.permute.xlu0 %5636 }
  0x86   :  { %v6314_v9 = vunpack.i.l.bf16 %v5637_v45  ;;  %v6319_v12 = vunpack.i.h.bf16 %v5637_v45 }
  0x88   :  { %5411 = vmatmul.msk.f32.gmra.mxu1 %vm166_vm5, %v6104_v27  ;;  %417 = vmatpush.msrb.mxu2 %v6314_v9 }
  0x8a   :  { %418 = vmatpush.msrb.mxu2 %v6319_v12 }
  0x8d   :  { %v5647_v49 = vpop.permute.xlu0 %5646 }
  0x8e   :  { %v6271_v50 = vunpack.i.h.bf16 %v5647_v49  ;;  %v6273_v51 = vunpack.i.l.bf16 %v5647_v49 }
  0x90   :  { %361 = vmatpush.msrb.mxu3 %v6273_v51  ;;  %750 = vmatpush.msrb.mxu1 %v6273_v51 }
  0x92   :  { %362 = vmatpush.msrb.mxu3 %v6271_v50  ;;  %751 = vmatpush.msrb.mxu1 %v6271_v50 }
  0x95   :  { %v5652_v55 = vpop.permute.xlu0 %5651 }
  0x96   :  { %v6282_v57 = vunpack.i.h.bf16 %v5652_v55  ;;  %v6284_v58 = vunpack.i.l.bf16 %v5652_v55 }
  0x98   :  { %363 = vmatpush.msrb.mxu3 %v6284_v58  ;;  %752 = vmatpush.msrb.mxu1 %v6284_v58  ;;  %v6327_v17 = vpop.f32.mrf.mxu3 }
  0x9a   :  { %364 = vmatpush.msrb.mxu3 %v6282_v57  ;;  %753 = vmatpush.msrb.mxu1 %v6282_v57 }
  0x9b   :  { %365 = vmatmul.f32.vlgmr.msrb.gmra.mxu3 %v6108_v46 }
  0x9c   :  { %936 = vmatpush.msra.mxu1 %v6273_v51 }
  0x9e   :  { %937 = vmatpush.msra.mxu1 %v6271_v50 }
  0xa0   :  { %938 = vmatpush.msra.mxu1 %v6284_v58 }
  0xa2   :  { %939 = vmatpush.msra.mxu1 %v6282_v57 }
  0xfd   :  { %v188_v36 = vpop.f32.mrf.mxu1 }
  0xfe   :  { %v189_v37 = vadd.f32 %v5700_v35, %v188_v36 }
 0x100   :  { %v194_v38 = vsel %vm91_vm6, %v189_v37, 0.0 }
 0x101   :  { %195 = vadd.xlane.f32.xlu2 %v194_v38 }
 0x105   :  { %v191_v39 = vpop.f32.mrf.mxu1 }
 0x106   :  { %v192_v40 = vadd.f32 %v5700_v35, %v191_v39 }
 0x108   :  { %v197_v41 = vsel %vm91_vm6, %v192_v40, 0.0 }
 0x109   :  { %198 = vadd.xlane.f32.xlu2 %v197_v41  ;;  %v5701_v41 = vld [vmem:[%s8041_s4 + $0x1] ss:$0 sm:$0xff] }
 0x11e   :  { %v366_v24 = vpop.f32.mrf.mxu3 }
 0x174   :  { %v196_v54 = vpop.xlane.xlu2 %195 }
 0x175   :  { %v200_v56 = vmul.f32 %v196_v54, %v6279_v53 }
 0x177   :  { %v6286_v59 = vsub.f32 %v189_v37, %v200_v56 }
 0x179   :  { %v204_v60 = vmul.f32 %v6286_v59, %v6286_v59 }
 0x17b   :  { %v206_v61 = vsel %vm91_vm6, %v204_v60, 0.0 }
 0x17c   :  { %207 = vadd.xlane.f32.xlu1 %v206_v61  ;;  %v199_v62 = vpop.xlane.xlu2 %198 }
 0x17d   :  { %v201_v63 = vmul.f32 %v199_v62, %v6279_v53 }
 0x17f   :  { %v6300_v0 = vsub.f32 %v192_v40, %v201_v63 }
 0x181   :  { %v205_v3 = vmul.f32 %v6300_v0, %v6300_v0 }
 0x183   :  { %v209_v4 = vsel %vm91_vm6, %v205_v3, 0.0 }
 0x184   :  { %210 = vadd.xlane.f32.xlu2 %v209_v4 }
 0x195   :  { %370 = vrot.lane.b32.xlu1 %v366_v24, %s6109_s21 }
 0x19c   :  { %5641 = vrot.lane.b32.xlu2 %v6261_v34, %s6105_s30 }
 0x1a4   :  { %5661 = vrot.lane.b32.xlu2 %v6261_v34, %s6109_s21 }
 0x1ef   :  { %v208_v14 = vpop.xlane.xlu1 %207 }
 0x1f0   :  { %v212_v15 = vmul.f32 %v208_v14, %v6279_v53 }
 0x1f2   :  { %v214_v16 = vadd.f32 1e-12, %v212_v15 }
 0x1f4   :  { %5727 = vrsqrt.f32 %v214_v16  ;;  %vm222_vm9 = vweird.f32 %v214_v16 }
 0x1f7   :  { %v211_v18 = vpop.xlane.xlu2 %210 }
 0x1f8   :  { %v213_v19 = vmul.f32 %v211_v18, %v6279_v53 }
 0x1fa   :  { %v5728_v20 = vpop.eup %5727  ;;  %v215_v21 = vadd.f32 1e-12, %v213_v19 }
 0x1fb   :  { %v217_v22 = vmul.f32 %v5728_v20, %v214_v16  ;;  %vm223_vm8 = vweird.f32 %v5728_v20 }
 0x1fc   :  { %5729 = vrsqrt.f32 %v215_v21  ;;  %vm224_vm10 = vmor %vm222_vm9, %vm223_vm8  ;;  %vm232_vm12 = vweird.f32 %v215_v21 }
 0x1fd   :  { %v218_v23 = vmul.f32 %v5728_v20, %v217_v22 }
 0x1ff   :  { %v219_v26 = vmul.f32 0.5, %v218_v23  ;;  %v5642_v28 = vpop.permute.xlu2 %5641 }
 0x200   :  { %v6331_v35 = vunpack.i.h.bf16 %v5642_v28  ;;  %v6333_v36 = vunpack.i.l.bf16 %v5642_v28 }
 0x201   :  { %v220_v37 = vsub.f32 1.5, %v219_v26 }
 0x202   :  { %v5730_v38 = vpop.eup %5729  ;;  %419 = vmatpush.msrb.mxu2 %v6333_v36 }
 0x203   :  { %v221_v39 = vmul.f32 %v5728_v20, %v220_v37  ;;  %v227_v40 = vmul.f32 %v5730_v38, %v215_v21  ;;  %vm233_vm11 = vweird.f32 %v5730_v38 }
 0x204   :  { %420 = vmatpush.msrb.mxu2 %v6331_v35  ;;  %vm234_vm13 = vmor %vm232_vm12, %vm233_vm11 }
 0x205   :  { %v228_v42 = vmul.f32 %v5730_v38, %v227_v40  ;;  %v225_v43 = vsel %vm224_vm10, %v5728_v20, %v221_v39 }
 0x206   :  { %v236_v45 = vmul.f32 %v225_v43, %v6286_v59  ;;  %v5657_v59 = vpop.permute.xlu0 %5656 }
 0x207   :  { %v229_v47 = vmul.f32 0.5, %v228_v42  ;;  %v6360_v60 = vunpack.i.l.bf16 %v5657_v59  ;;  %v6362_v61 = vunpack.i.h.bf16 %v5657_v59  ;;  %v5662_v62 = vpop.permute.xlu2 %5661  ;;  %v371_v42 = vpop.permute.xlu1 %370 }
 0x208   :  { %v238_v48 = vmul.f32 %v5701_v41, %v236_v45  ;;  %v6365_v63 = vunpack.i.l.bf16 %v5662_v62 }
 0x209   :  { %v230_v49 = vsub.f32 1.5, %v229_v47  ;;  %455 = vmatpush.msra.mxu3 %v6360_v60 }
 0x20a   :  { %v240_v52 = vadd.f32 %v5702_v44, %v238_v48 }
 0x20b   :  { %v231_v54 = vmul.f32 %v5730_v38, %v230_v49  ;;  %456 = vmatpush.msra.mxu3 %v6362_v61 }
 0x20c   :  { %5412 = vmatmul.msk.f32.vlgmr.msra.gmra.mxu2 %vm91_vm6, %v240_v52 }
 0x20d   :  { %v235_v31 = vsel %vm234_vm13, %v5730_v38, %v231_v54  ;;  %521 = vmatpush.msra.mxu2 %v6231_v30  ;;  %457 = vmatpush.msra.mxu3 %v6365_v63 }
 0x20e   :  { %v237_v55 = vmul.f32 %v235_v31, %v6300_v0  ;;  %v6368_v0 = vunpack.i.h.bf16 %v5662_v62 }
 0x20f   :  { %522 = vmatpush.msra.mxu2 %v6226_v29 }
 0x210   :  { %v239_v56 = vmul.f32 %v5701_v41, %v237_v55  ;;  %458 = vmatpush.msra.mxu3 %v6368_v0 }
 0x211   :  { %523 = vmatpush.msra.mxu2 %v6245_v32  ;;  %459 = vmatmul.f32.vlgmr.msra.gmra.mxu3 %v6108_v46 }
 0x212   :  { %v241_v34 = vadd.f32 %v5702_v44, %v239_v56  ;;  %564 = vmatpush.msrb.mxu3 %v6273_v51 }
 0x213   :  { %524 = vmatpush.msra.mxu2 %v6252_v33 }
 0x214   :  { %5413 = vmatmul.msk.f32.gmra.mxu2 %vm91_vm6, %v241_v34  ;;  %565 = vmatpush.msrb.mxu3 %v6271_v50 }
 0x216   :  { %566 = vmatpush.msrb.mxu3 %v6284_v58 }
 0x218   :  { %567 = vmatpush.msrb.mxu3 %v6282_v57 }
 0x21a   :  { %636 = vmatpush.msra.mxu3 %v6360_v60 }
 0x21c   :  { %421 = vmatmul.f32.vlgmr.msrb.gmra.mxu2 %v6108_v46  ;;  %637 = vmatpush.msra.mxu3 %v6362_v61 }
 0x21d   :  { %609 = vmatpush.msrb.mxu2 %v6314_v9 }
 0x21e   :  { %638 = vmatpush.msra.mxu3 %v6365_v63 }
 0x21f   :  { %610 = vmatpush.msrb.mxu2 %v6319_v12 }
 0x220   :  { %639 = vmatpush.msra.mxu3 %v6368_v0 }
 0x221   :  { %611 = vmatpush.msrb.mxu2 %v6333_v36 }
 0x223   :  { %612 = vmatpush.msrb.mxu2 %v6331_v35 }
 0x28f   :  { %v284_v3 = vpop.f32.mrf.mxu2 }
 0x290   :  { %v6390_v6 = vadd.f32 %v6387_v5, %v284_v3 }
 0x292   :  { %v313_v16 = vadd.f32 %v6327_v17, %v6390_v6  ;;  %v373_v43 = vadd.f32 %v371_v42, %v6390_v6 }
 0x294   :  { %v460_v15 = vpop.f32.mrf.mxu3  ;;  %v5414_v18 = vmul.f32 -1.442695, %v313_v16  ;;  %v5415_v44 = vmul.f32 -1.442695, %v373_v43 }
 0x297   :  { %v6381_v4 = vpop.f32.mrf.mxu2 }
 0x29f   :  { %v422_v46 = vpop.f32.mrf.mxu2 }
 0x2a0   :  { %426 = vrot.lane.b32.xlu0 %v422_v46, %s6105_s30 }
 0x312   :  { %v427_v11 = vpop.permute.xlu0 %426 }
 0x313   :  { %v429_v13 = vadd.f32 %v427_v11, %v6390_v6 }
 0x315   :  { %5731 = vtanh.f32 %v429_v13 }
 0x316   :  { %5733 = vpow2.f32 %v5414_v18 }
 0x31b   :  { %v5732_v14 = vpop.eup %5731 }
 0x31c   :  { %489 = vrot.lane.b32.xlu2 %v5732_v14, %s6105_s30  ;;  %v5734_v19 = vpop.eup %5733 }
 0x31d   :  { %v317_v20 = vadd.f32 1.0, %v5734_v19 }
 0x31f   :  { %5735 = vrcp.f32 %v317_v20  ;;  %v329_v28 = vand.u32 2147483648, %v317_v20  ;;  %vm323_vm15 = vweird.f32 %v317_v20  ;;  %v327_v37 = vand.u32 2147483647, %v317_v20 }
 0x320   :  { %5737 = vpow2.f32 %v5415_v44 }
 0x321   :  { %v330_v39 = vor.u32 1.1754944e-38, %v329_v28  ;;  %vm328_vm1 = vcmp.eq.f32.partialorder %v327_v37, 8.507059e+37 }
 0x324   :  { %464 = vrot.lane.b32.xlu2 %v460_v15, %s6106_s10 }
 0x325   :  { %v5736_v21 = vpop.eup %5735 }
 0x326   :  { %v319_v22 = vmul.f32 %v5736_v21, %v317_v20  ;;  %vm324_vm14 = vweird.f32 %v5736_v21  ;;  %v5738_v45 = vpop.eup %5737 }
 0x327   :  { %vm325_vm0 = vmor %vm323_vm15, %vm324_vm14  ;;  %v377_v47 = vadd.f32 1.0, %v5738_v45 }
 0x328   :  { %v320_v23 = vsub.f32 1.0, %v319_v22 }
 0x329   :  { %5739 = vrcp.f32 %v377_v47  ;;  %v389_v55 = vand.u32 2147483648, %v377_v47  ;;  %vm383_vm3 = vweird.f32 %v377_v47  ;;  %v387_v56 = vand.u32 2147483647, %v377_v47 }
 0x32a   :  { %v321_v24 = vmul.f32 %v5736_v21, %v320_v23 }
 0x32b   :  { %v390_v59 = vor.u32 1.1754944e-38, %v389_v55  ;;  %vm388_vm5 = vcmp.eq.f32.partialorder %v387_v56, 8.507059e+37 }
 0x32c   :  { %v322_v26 = vadd.f32 %v5736_v21, %v321_v24 }
 0x32e   :  { %v326_v38 = vsel %vm325_vm0, %v5736_v21, %v322_v26 }
 0x32f   :  { %v331_v40 = vsel %vm328_vm1, %v330_v39, %v326_v38  ;;  %v5740_v48 = vpop.eup %5739 }
 0x330   :  { %v379_v49 = vmul.f32 %v5740_v48, %v377_v47  ;;  %vm384_vm2 = vweird.f32 %v5740_v48 }
 0x331   :  { %vm385_vm4 = vmor %vm383_vm3, %vm384_vm2 }
 0x332   :  { %v380_v52 = vsub.f32 1.0, %v379_v49 }
 0x334   :  { %v381_v54 = vmul.f32 %v5740_v48, %v380_v52 }
 0x336   :  { %v382_v31 = vadd.f32 %v5740_v48, %v381_v54 }
 0x338   :  { %v386_v34 = vsel %vm385_vm4, %v5740_v48, %v382_v31 }
 0x339   :  { %v391_v62 = vsel %vm388_vm5, %v390_v59, %v386_v34 }
 0x33a   :  { %v487_v3 = vmul.f32 0.0, %v391_v62 }
 0x376   :  { %v490_v17 = vpop.permute.xlu2 %489 }
 0x377   :  { %v492_v41 = vmul.f32 %v490_v17, %v331_v40 }
 0x379   :  { %494 = vrot.lane.b32.xlu0 %v492_v41, %s6109_s21 }
 0x37e   :  { %v465_v14 = vpop.permute.xlu2 %464 }
 0x37f   :  { %v467_v15 = vadd.f32 %v465_v14, %v6390_v6 }
 0x381   :  { %v5416_v16 = vmul.f32 -1.442695, %v467_v15 }
 0x3eb   :  { %v495_v46 = vpop.permute.xlu0 %494 }
 0x3ec   :  { %v6399_v11 = vadd.f32 %v495_v46, %v487_v3 }
 0x3ee   :  { %5741 = vtanh.f32 %v6399_v11 }
 0x3ef   :  { %5743 = vpow2.f32 %v5416_v16 }
 0x3f4   :  { %v5742_v13 = vpop.eup %5741 }
 0x3f5   :  { %500 = vrot.lane.b32.xlu0 %v5742_v13, %s6105_s30  ;;  %v5744_v18 = vpop.eup %5743 }
 0x3f6   :  { %v471_v19 = vadd.f32 1.0, %v5744_v18 }
 0x3f8   :  { %5745 = vrcp.f32 %v471_v19  ;;  %v483_v26 = vand.u32 2147483648, %v471_v19  ;;  %vm477_vm8 = vweird.f32 %v471_v19  ;;  %v481_v28 = vand.u32 2147483647, %v471_v19 }
 0x3fa   :  { %v484_v38 = vor.u32 1.1754944e-38, %v483_v26  ;;  %vm482_vm10 = vcmp.eq.f32.partialorder %v481_v28, 8.507059e+37 }
 0x3fe   :  { %v5746_v20 = vpop.eup %5745 }
 0x3ff   :  { %v473_v21 = vmul.f32 %v5746_v20, %v471_v19  ;;  %vm478_vm7 = vweird.f32 %v5746_v20 }
 0x400   :  { %vm479_vm9 = vmor %vm477_vm8, %vm478_vm7 }
 0x401   :  { %v474_v22 = vsub.f32 1.0, %v473_v21 }
 0x403   :  { %v475_v23 = vmul.f32 %v5746_v20, %v474_v22 }
 0x405   :  { %v476_v24 = vadd.f32 %v5746_v20, %v475_v23 }
 0x407   :  { %v480_v37 = vsel %vm479_vm9, %v5746_v20, %v476_v24 }
 0x408   :  { %v485_v40 = vsel %vm482_vm10, %v484_v38, %v480_v37 }
 0x467   :  { %v501_v39 = vpop.permute.xlu0 %500 }
 0x468   :  { %v503_v17 = vmul.f32 %v501_v39, %v485_v40 }
 0x46a   :  { %505 = vrot.lane.b32.xlu2 %v503_v17, %s6109_s21 }
 0x4c4   :  { %v506_v41 = vpop.permute.xlu2 %505 }
 0x4c5   :  { %5417 = vmatmul.msk.f32.vlgmr.msra.gmra.mxu2 %vm91_vm6, %v506_v41  ;;  %5419 = vmatmul.msk.f32.vlgmr.msrb.gmra.mxu3 %vm91_vm6, %v506_v41 }
 0x4c6   :  { %795 = vmatpush.msra.mxu2 %v6314_v9  ;;  %822 = vmatpush.msrb.mxu3 %v6360_v60 }
 0x4c8   :  { %796 = vmatpush.msra.mxu2 %v6319_v12  ;;  %823 = vmatpush.msrb.mxu3 %v6362_v61 }
 0x4ca   :  { %797 = vmatpush.msra.mxu2 %v6333_v36  ;;  %824 = vmatpush.msrb.mxu3 %v6365_v63 }
 0x4cc   :  { %798 = vmatpush.msra.mxu2 %v6331_v35  ;;  %825 = vmatpush.msrb.mxu3 %v6368_v0 }
 0x4cd   :  { %5421 = vmatmul.msk.f32.vlgmr.msrb.gmra.mxu2 %vm91_vm6, %v506_v41  ;;  %5422 = vmatmul.msk.f32.vlgmr.msra.gmra.mxu3 %vm91_vm6, %v506_v41 }
 0x4ce   :  { %981 = vmatpush.msrb.mxu2 %v6314_v9  ;;  %1008 = vmatpush.msra.mxu3 %v6360_v60 }
 0x4d0   :  { %982 = vmatpush.msrb.mxu2 %v6319_v12  ;;  %1009 = vmatpush.msra.mxu3 %v6362_v61 }
 0x4d2   :  { %983 = vmatpush.msrb.mxu2 %v6333_v36  ;;  %1010 = vmatpush.msra.mxu3 %v6365_v63 }
 0x4d4   :  { %984 = vmatpush.msrb.mxu2 %v6331_v35  ;;  %1011 = vmatpush.msra.mxu3 %v6368_v0 }
 0x548   :  { %v526_v42 = vpop.f32.mrf.mxu2  ;;  %v569_v43 = vpop.f32.mrf.mxu3 }
 0x549   :  { %v573_v44 = vrot.slane %v569_v43, 6  ;;  %v530_v55 = vrot.slane %v526_v42, 6 }
 0x54b   :  { %574 = vrot.lane.b32.xlu1 %v573_v44, %s6109_s21  ;;  %v532_v56 = vadd.f32 %v530_v55, %v6390_v6 }
 0x54d   :  { %v5418_v34 = vmul.f32 -1.442695, %v532_v56 }
 0x550   :  { %v614_v45 = vpop.f32.mrf.mxu2  ;;  %v641_v54 = vpop.f32.mrf.mxu3 }
 0x551   :  { %v618_v47 = vrot.slane %v614_v45, 6  ;;  %v645_v31 = vrot.slane %v641_v54, 6 }
 0x553   :  { %619 = vrot.lane.b32.xlu0 %v618_v47, %s6105_s30 }
 0x5bd   :  { %v575_v24 = vpop.permute.xlu1 %574 }
 0x5be   :  { %v577_v26 = vadd.f32 %v575_v24, %v6390_v6 }
 0x5c0   :  { %v5420_v28 = vmul.f32 -1.442695, %v577_v26 }
 0x5c5   :  { %v620_v48 = vpop.permute.xlu0 %619 }
 0x5c6   :  { %v622_v49 = vadd.f32 %v620_v48, %v6390_v6 }
 0x5c8   :  { %5747 = vtanh.f32 %v622_v49  ;;  %v670_v49 = vrot.slane %v6399_v11, 6  ;;  %v6111_v11 = vmov 0  }
 0x5c9   :  { %5749 = vpow2.f32 %v5418_v34  ;;  %5667 = vset.pattern.permute.xlu0 %v6111_v11  ;;  %5665 = vset.pattern.permute.xlu2 %v6111_v11 }
 0x5ce   :  { %v5748_v52 = vpop.eup %5747 }
 0x5cf   :  { %674 = vrot.lane.b32.xlu2 %v5748_v52, %s6105_s30  ;;  %v5750_v59 = vpop.eup %5749 }
 0x5d0   :  { %v536_v62 = vadd.f32 1.0, %v5750_v59 }
 0x5d2   :  { %5751 = vrcp.f32 %v536_v62  ;;  %v548_v16 = vand.u32 2147483648, %v536_v62  ;;  %vm542_vm12 = vweird.f32 %v536_v62  ;;  %v546_v18 = vand.u32 2147483647, %v536_v62 }
 0x5d3   :  { %5753 = vpow2.f32 %v5420_v28 }
 0x5d4   :  { %v549_v20 = vor.u32 1.1754944e-38, %v548_v16  ;;  %vm547_vm14 = vcmp.eq.f32.partialorder %v546_v18, 8.507059e+37 }
 0x5d7   :  { %646 = vrot.lane.b32.xlu2 %v645_v31, %s6106_s10 }
 0x5d8   :  { %v5752_v3 = vpop.eup %5751 }
 0x5d9   :  { %v538_v46 = vmul.f32 %v5752_v3, %v536_v62  ;;  %vm543_vm11 = vweird.f32 %v5752_v3  ;;  %v5754_v37 = vpop.eup %5753 }
 0x5da   :  { %vm544_vm13 = vmor %vm542_vm12, %vm543_vm11  ;;  %v581_v38 = vadd.f32 1.0, %v5754_v37 }
 0x5db   :  { %v539_v13 = vsub.f32 1.0, %v538_v46  ;;  %v6110_v46 = vmov 1  }
 0x5dc   :  { %5755 = vrcp.f32 %v581_v38  ;;  %v593_v43 = vand.u32 2147483648, %v581_v38  ;;  %vm587_vm0 = vweird.f32 %v581_v38  ;;  %v591_v44 = vand.u32 2147483647, %v581_v38  ;;  %5666 = vset.pattern.permute.xlu1 %v6110_v46 }
 0x5dd   :  { %v540_v14 = vmul.f32 %v5752_v3, %v539_v13 }
 0x5de   :  { %v594_v47 = vor.u32 1.1754944e-38, %v593_v43  ;;  %vm592_vm2 = vcmp.eq.f32.partialorder %v591_v44, 8.507059e+37 }
 0x5df   :  { %v541_v15 = vadd.f32 %v5752_v3, %v540_v14  ;;  %44 = vperm.xlu2 %5665, %v6153_v2  }
 0x5e1   :  { %v545_v19 = vsel %vm544_vm13, %v5752_v3, %v541_v15 }
 0x5e2   :  { %v550_v22 = vsel %vm547_vm14, %v549_v20, %v545_v19  ;;  %v5756_v39 = vpop.eup %5755 }
 0x5e3   :  { %v583_v40 = vmul.f32 %v5756_v39, %v581_v38  ;;  %vm588_vm15 = vweird.f32 %v5756_v39 }
 0x5e4   :  { %vm589_vm1 = vmor %vm587_vm0, %vm588_vm15 }
 0x5e5   :  { %v584_v17 = vsub.f32 1.0, %v583_v40 }
 0x5e7   :  { %v585_v41 = vmul.f32 %v5756_v39, %v584_v17  ;;  %5668 = vset.pattern.permute.xlu2 %v6110_v46 }
 0x5e8   :  { %57 = vperm.xlu2 %5668, %v6170_v7  }
 0x5e9   :  { %v586_v42 = vadd.f32 %v5756_v39, %v585_v41 }
 0x5eb   :  { %v590_v45 = vsel %vm589_vm1, %v5756_v39, %v586_v42 }
 0x5ec   :  { %v595_v48 = vsel %vm592_vm2, %v594_v47, %v590_v45 }
 0x5ed   :  { %v672_v52 = vmul.f32 %v670_v49, %v595_v48 }
 0x629   :  { %v675_v21 = vpop.permute.xlu2 %674 }
 0x62a   :  { %v677_v23 = vmul.f32 %v675_v21, %v550_v22 }
 0x62c   :  { %679 = vrot.lane.b32.xlu0 %v677_v23, %s6109_s21 }
 0x631   :  { %v647_v56 = vpop.permute.xlu2 %646 }
 0x632   :  { %v649_v34 = vadd.f32 %v647_v56, %v6390_v6 }
 0x634   :  { %v5423_v59 = vmul.f32 -1.442695, %v649_v34 }
 0x639   :  { %v45_v7 = vpop.permute.xlu2 %44 }
 0x63a   :  { %vm49_vm8 = vcmp.eq.s32.totalorder %v6215_v25, %v45_v7 }
 0x69e   :  { %v680_v54 = vpop.permute.xlu0 %679 }
 0x69f   :  { %v6434_v31 = vadd.f32 %v680_v54, %v672_v52 }
 0x6a1   :  { %5757 = vtanh.f32 %v6434_v31 }
 0x6a2   :  { %5759 = vpow2.f32 %v5423_v59 }
 0x6a7   :  { %v5758_v55 = vpop.eup %5757 }
 0x6a8   :  { %685 = vrot.lane.b32.xlu1 %v5758_v55, %s6105_s30  ;;  %v5760_v62 = vpop.eup %5759 }
 0x6a9   :  { %v653_v3 = vadd.f32 1.0, %v5760_v62 }
 0x6ab   :  { %5761 = vrcp.f32 %v653_v3  ;;  %v665_v19 = vand.u32 2147483648, %v653_v3  ;;  %vm659_vm4 = vweird.f32 %v653_v3  ;;  %v663_v20 = vand.u32 2147483647, %v653_v3 }
 0x6ad   :  { %vm664_vm7 = vcmp.eq.f32.partialorder %v663_v20, 8.507059e+37 }
 0x6b0   :  { %54 = vperm.xlu1 %5666, %v6173_v8   ;;  %v666_v8 = vor.u32 1.1754944e-38, %v665_v19 }
 0x6b1   :  { %v5762_v13 = vpop.eup %5761 }
 0x6b2   :  { %v655_v14 = vmul.f32 %v5762_v13, %v653_v3  ;;  %vm660_vm3 = vweird.f32 %v5762_v13 }
 0x6b3   :  { %vm661_vm5 = vmor %vm659_vm4, %vm660_vm3 }
 0x6b4   :  { %v656_v15 = vsub.f32 1.0, %v655_v14 }
 0x6b6   :  { %v657_v16 = vmul.f32 %v5762_v13, %v656_v15 }
 0x6b8   :  { %v658_v18 = vadd.f32 %v5762_v13, %v657_v16 }
 0x6ba   :  { %v662_v21 = vsel %vm661_vm5, %v5762_v13, %v658_v18 }
 0x6bb   :  { %v667_v22 = vsel %vm664_vm7, %v666_v8, %v662_v21 }
 0x71a   :  { %v686_v23 = vpop.permute.xlu1 %685 }
 0x71b   :  { %v688_v24 = vmul.f32 %v686_v23, %v667_v22 }
 0x71d   :  { %v690_v2 = vrot.slane %v688_v24, 2 }
 0x71f   :  { %691 = vrot.lane.b32.xlu0 %v690_v2, %s6109_s21 }
 0x722   :  { %v55_v26 = vpop.permute.xlu1 %54 }
 0x723   :  { %vm59_vm9 = vcmp.eq.s32.totalorder %v6215_v25, %v55_v26 }
 0x724   :  { %vm61_vm10 = vmor %vm49_vm8, %vm59_vm9 }
 0x725   :  { %5406 = vmatmul.msk.f32.vlgmr.msra.gmra.mxu0 %vm61_vm10, %v6104_v27 }
 0x726   :  { %893 = vmatpush.msra.mxu0 %v6231_v30 }
 0x727   :  { %47 = vperm.xlu0 %5667, %v6148_v1  }
 0x728   :  { %894 = vmatpush.msra.mxu0 %v6226_v29 }
 0x72a   :  { %895 = vmatpush.msra.mxu0 %v6245_v32 }
 0x72c   :  { %896 = vmatpush.msra.mxu0 %v6252_v33 }
 0x72f   :  { %5699 = vset.pattern.permute.xlu0 %v6103_v10  ;;  %v58_v10 = vpop.permute.xlu2 %57 }
 0x730   :  { %vm60_vm11 = vcmp.eq.s32.totalorder %v6215_v25, %v58_v10 }
 0x791   :  { %v692_v1 = vpop.permute.xlu0 %691 }
 0x792   :  { %5426 = vmatmul.msk.f32.vlgmr.msrb.gmra.mxu1 %vm91_vm6, %v692_v1  ;;  %5428 = vmatmul.msk.f32.vlgmr.msra.gmra.mxu2 %vm91_vm6, %v692_v1 }
 0x793   :  { %5429 = vmatmul.msk.f32.vlgmr.msrb.gmra.mxu3 %vm91_vm6, %v692_v1  ;;  %1119 = vmatpush.msrb.mxu1 %v6273_v51 }
 0x794   :  { %1163 = vmatpush.msra.mxu2 %v6314_v9  ;;  %1189 = vmatpush.msrb.mxu3 %v6360_v60 }
 0x795   :  { %1120 = vmatpush.msrb.mxu1 %v6271_v50 }
 0x796   :  { %1164 = vmatpush.msra.mxu2 %v6319_v12  ;;  %1190 = vmatpush.msrb.mxu3 %v6362_v61 }
 0x797   :  { %1121 = vmatpush.msrb.mxu1 %v6284_v58 }
 0x798   :  { %1165 = vmatpush.msra.mxu2 %v6333_v36  ;;  %1191 = vmatpush.msrb.mxu3 %v6365_v63 }
 0x799   :  { %1122 = vmatpush.msrb.mxu1 %v6282_v57  ;;  %v48_v28 = vpop.permute.xlu0 %47 }
 0x79a   :  { %1166 = vmatpush.msra.mxu2 %v6331_v35  ;;  %1192 = vmatpush.msrb.mxu3 %v6368_v0  ;;  %vm50_vm12 = vcmp.eq.s32.totalorder %v6215_v25, %v48_v28 }
 0x79b   :  { %vm62_vm13 = vmor %vm50_vm12, %vm60_vm11 }
 0x79c   :  { %5407 = vmatmul.msk.f32.gmra.mxu0 %vm62_vm13, %v6104_v27 }
 0x7a4   :  { %5424 = vmatmul.msk.f32.vlgmr.msrb.gmra.mxu0 %vm91_vm6, %v692_v1  ;;  %v856_v1 = vrot.slane %v6434_v31, 6 }
 0x7a5   :  { %1079 = vmatpush.msrb.mxu0 %v6231_v30 }
 0x7a7   :  { %1080 = vmatpush.msrb.mxu0 %v6226_v29 }
 0x7a9   :  { %1081 = vmatpush.msrb.mxu0 %v6245_v32  ;;  %v6480_v32 = vpop.f32.mrf.mxu0 }
 0x7ab   :  { %1082 = vmatpush.msrb.mxu0 %v6252_v33 }
 0x80f   :  { %v755_v39 = vpop.f32.mrf.mxu1 }
 0x810   :  { %v759_v40 = vrot.slane %v755_v39, 4 }
 0x815   :  { %v800_v37 = vpop.f32.mrf.mxu2 }
 0x816   :  { %v804_v38 = vrot.slane %v800_v37, 4  ;;  %v827_v29 = vpop.f32.mrf.mxu3 }
 0x817   :  { %v831_v30 = vrot.slane %v827_v29, 4 }
 0x818   :  { %805 = vrot.lane.b32.xlu1 %v804_v38, %s6105_s30 }
 0x819   :  { %v6482_v33 = vpop.f32.mrf.mxu0 }
 0x820   :  { %760 = vrot.lane.b32.xlu1 %v759_v40, %s6109_s21 }
 0x821   :  { %v712_v41 = vpop.f32.mrf.mxu0 }
 0x822   :  { %v716_v42 = vrot.slane %v712_v41, 4 }
 0x824   :  { %v718_v43 = vadd.f32 %v716_v42, %v6390_v6 }
 0x826   :  { %v5425_v44 = vmul.f32 -1.442695, %v718_v43 }
 0x88a   :  { %v806_v25 = vpop.permute.xlu1 %805 }
 0x88b   :  { %v808_v27 = vadd.f32 %v806_v25, %v6390_v6 }
 0x88d   :  { %5763 = vtanh.f32 %v808_v27 }
 0x88e   :  { %5765 = vpow2.f32 %v5425_v44 }
 0x892   :  { %v761_v13 = vpop.permute.xlu1 %760 }
 0x893   :  { %v5764_v17 = vpop.eup %5763  ;;  %v763_v14 = vadd.f32 %v761_v13, %v6390_v6 }
 0x894   :  { %860 = vrot.lane.b32.xlu2 %v5764_v17, %s6105_s30  ;;  %v5766_v45 = vpop.eup %5765 }
 0x895   :  { %v722_v47 = vadd.f32 1.0, %v5766_v45  ;;  %v5427_v15 = vmul.f32 -1.442695, %v763_v14 }
 0x897   :  { %5767 = vrcp.f32 %v722_v47  ;;  %v734_v56 = vand.u32 2147483648, %v722_v47  ;;  %vm728_vm15 = vweird.f32 %v722_v47  ;;  %v732_v34 = vand.u32 2147483647, %v722_v47 }
 0x898   :  { %5769 = vpow2.f32 %v5427_v15 }
 0x899   :  { %v735_v62 = vor.u32 1.1754944e-38, %v734_v56  ;;  %vm733_vm1 = vcmp.eq.f32.partialorder %v732_v34, 8.507059e+37  ;;  %v6510_v56 = vld [vmem:[%s8042_s2 + $0x128] sm:$0xff] }
 0x89a   :  { %v6519_v34 = vld [vmem:[%s8042_s2 + $0xc8] sm:$0xff] }
 0x89c   :  { %832 = vrot.lane.b32.xlu2 %v831_v30, %s6106_s10 }
 0x89d   :  { %v5768_v48 = vpop.eup %5767 }
 0x89e   :  { %v724_v49 = vmul.f32 %v5768_v48, %v722_v47  ;;  %vm729_vm14 = vweird.f32 %v5768_v48  ;;  %v5770_v16 = vpop.eup %5769 }
 0x89f   :  { %vm730_vm0 = vmor %vm728_vm15, %vm729_vm14  ;;  %v767_v18 = vadd.f32 1.0, %v5770_v16 }
 0x8a0   :  { %v725_v52 = vsub.f32 1.0, %v724_v49 }
 0x8a1   :  { %5771 = vrcp.f32 %v767_v18  ;;  %v779_v23 = vand.u32 2147483648, %v767_v18  ;;  %vm773_vm3 = vweird.f32 %v767_v18  ;;  %v777_v24 = vand.u32 2147483647, %v767_v18 }
 0x8a2   :  { %v726_v54 = vmul.f32 %v5768_v48, %v725_v52 }
 0x8a3   :  { %v780_v7 = vor.u32 1.1754944e-38, %v779_v23  ;;  %vm778_vm5 = vcmp.eq.f32.partialorder %v777_v24, 8.507059e+37 }
 0x8a4   :  { %v727_v55 = vadd.f32 %v5768_v48, %v726_v54 }
 0x8a6   :  { %v731_v59 = vsel %vm730_vm0, %v5768_v48, %v727_v55 }
 0x8a7   :  { %v736_v3 = vsel %vm733_vm1, %v735_v62, %v731_v59  ;;  %v5772_v19 = vpop.eup %5771  ;;  %v6528_v59 = vld [vmem:[%s8042_s2 + $0x68] sm:$0xff] }
 0x8a8   :  { %v769_v20 = vmul.f32 %v5772_v19, %v767_v18  ;;  %vm774_vm2 = vweird.f32 %v5772_v19  ;;  %v6537_v62 = vld [vmem:[%s8042_s2 + $0x8] sm:$0xff] }
 0x8a9   :  { %vm775_vm4 = vmor %vm773_vm3, %vm774_vm2 }
 0x8aa   :  { %v770_v21 = vsub.f32 1.0, %v769_v20 }
 0x8ac   :  { %v771_v8 = vmul.f32 %v5772_v19, %v770_v21 }
 0x8ae   :  { %v772_v22 = vadd.f32 %v5772_v19, %v771_v8 }
 0x8b0   :  { %v776_v2 = vsel %vm775_vm4, %v5772_v19, %v772_v22 }
 0x8b1   :  { %v781_v26 = vsel %vm778_vm5, %v780_v7, %v776_v2 }
 0x8b2   :  { %v858_v10 = vmul.f32 %v856_v1, %v781_v26 }
 0x8ee   :  { %v861_v46 = vpop.permute.xlu2 %860 }
 0x8ef   :  { %v863_v11 = vmul.f32 %v861_v46, %v736_v3 }
 0x8f1   :  { %865 = vrot.lane.b32.xlu0 %v863_v11, %s6109_s21 }
 0x8f6   :  { %v833_v39 = vpop.permute.xlu2 %832 }
 0x8f7   :  { %v835_v40 = vadd.f32 %v833_v39, %v6390_v6 }
 0x8f9   :  { %v5430_v25 = vmul.f32 -1.442695, %v835_v40 }
 0x963   :  { %v866_v28 = vpop.permute.xlu0 %865 }
 0x964   :  { %v6488_v37 = vadd.f32 %v866_v28, %v858_v10 }
 0x966   :  { %5773 = vtanh.f32 %v6488_v37 }
 0x967   :  { %5775 = vpow2.f32 %v5430_v25 }
 0x96c   :  { %v5774_v38 = vpop.eup %5773 }
 0x96d   :  { %871 = vrot.lane.b32.xlu1 %v5774_v38, %s6105_s30  ;;  %v5776_v27 = vpop.eup %5775 }
 0x96e   :  { %v839_v17 = vadd.f32 1.0, %v5776_v27 }
 0x970   :  { %5777 = vrcp.f32 %v839_v17  ;;  %v851_v43 = vand.u32 2147483648, %v839_v17  ;;  %vm845_vm8 = vweird.f32 %v839_v17  ;;  %v849_v44 = vand.u32 2147483647, %v839_v17 }
 0x972   :  { %v852_v47 = vor.u32 1.1754944e-38, %v851_v43  ;;  %vm850_vm10 = vcmp.eq.f32.partialorder %v849_v44, 8.507059e+37 }
 0x976   :  { %v5778_v29 = vpop.eup %5777 }
 0x977   :  { %v841_v30 = vmul.f32 %v5778_v29, %v839_v17  ;;  %vm846_vm7 = vweird.f32 %v5778_v29 }
 0x978   :  { %vm847_vm9 = vmor %vm845_vm8, %vm846_vm7 }
 0x979   :  { %v842_v31 = vsub.f32 1.0, %v841_v30 }
 0x97b   :  { %v843_v41 = vmul.f32 %v5778_v29, %v842_v31 }
 0x97d   :  { %v844_v42 = vadd.f32 %v5778_v29, %v843_v41 }
 0x97f   :  { %v848_v45 = vsel %vm847_vm9, %v5778_v29, %v844_v42 }
 0x980   :  { %v853_v48 = vsel %vm850_vm10, %v852_v47, %v848_v45 }
 0x9df   :  { %v872_v49 = vpop.permute.xlu1 %871 }
 0x9e0   :  { %v874_v52 = vmul.f32 %v872_v49, %v853_v48 }
 0x9e2   :  { %v876_v54 = vrot.slane %v874_v52, 4 }
 0x9e4   :  { %877 = vrot.lane.b32.xlu0 %v876_v54, %s6109_s21 }
 0xa56   :  { %v6494_v55 = vpop.permute.xlu0 %877 }
 0xa57   :  { %5431 = vmatmul.msk.f32.vlgmr.msra.gmra.mxu0 %vm91_vm6, %v6494_v55  ;;  %5433 = vmatmul.msk.f32.vlgmr.msra.gmra.mxu1 %vm91_vm6, %v6494_v55 }
 0xa58   :  { %5435 = vmatmul.msk.f32.vlgmr.msrb.gmra.mxu2 %vm91_vm6, %v6494_v55  ;;  %5436 = vmatmul.msk.f32.vlgmr.msra.gmra.mxu3 %vm91_vm6, %v6494_v55 }
 0xa59   :  { %1301 = vmatpush.msra.mxu1 %v6273_v51  ;;  %1346 = vmatpush.msrb.mxu2 %v6314_v9 }
 0xa5a   :  { %1373 = vmatpush.msra.mxu3 %v6360_v60  ;;  %1258 = vmatpush.msra.mxu0 %v6510_v56 }
 0xa5b   :  { %1302 = vmatpush.msra.mxu1 %v6271_v50  ;;  %1347 = vmatpush.msrb.mxu2 %v6319_v12 }
 0xa5c   :  { %1374 = vmatpush.msra.mxu3 %v6362_v61  ;;  %1259 = vmatpush.msra.mxu0 %v6519_v34 }
 0xa5d   :  { %1303 = vmatpush.msra.mxu1 %v6284_v58  ;;  %1348 = vmatpush.msrb.mxu2 %v6333_v36 }
 0xa5e   :  { %1375 = vmatpush.msra.mxu3 %v6365_v63  ;;  %1260 = vmatpush.msra.mxu0 %v6528_v59 }
 0xa5f   :  { %1304 = vmatpush.msra.mxu1 %v6282_v57  ;;  %1349 = vmatpush.msrb.mxu2 %v6331_v35 }
 0xa60   :  { %1376 = vmatpush.msra.mxu3 %v6368_v0  ;;  %1261 = vmatpush.msra.mxu0 %v6537_v62 }
 0xad4   :  { %v941_v3 = vpop.f32.mrf.mxu1  ;;  %v898_v20 = vpop.f32.mrf.mxu0 }
 0xad5   :  { %v945_v46 = vrot.slane %v941_v3, 2  ;;  %v902_v21 = vrot.slane %v898_v20, 2 }
 0xad7   :  { %946 = vrot.lane.b32.xlu0 %v945_v46, %s6109_s21  ;;  %v904_v8 = vadd.f32 %v902_v21, %v6390_v6 }
 0xad9   :  { %v5432_v22 = vmul.f32 -1.442695, %v904_v8 }
 0xadb   :  { %v986_v11 = vpop.f32.mrf.mxu2  ;;  %v1013_v18 = vpop.f32.mrf.mxu3 }
 0xadc   :  { %v990_v13 = vrot.slane %v986_v11, 2  ;;  %v1017_v19 = vrot.slane %v1013_v18, 2  ;;  %v1042_v11 = vrot.slane %v6488_v37, 6 }
 0xade   :  { %991 = vrot.lane.b32.xlu2 %v990_v13, %s6105_s30 }
 0xb38   :  { %v992_v14 = vpop.permute.xlu2 %991 }
 0xb39   :  { %v994_v15 = vadd.f32 %v992_v14, %v6390_v6 }
 0xb3b   :  { %5779 = vtanh.f32 %v994_v15 }
 0xb3c   :  { %5781 = vpow2.f32 %v5432_v22 }
 0xb41   :  { %v5780_v16 = vpop.eup %5779 }
 0xb42   :  { %1046 = vrot.lane.b32.xlu1 %v5780_v16, %s6105_s30  ;;  %v5782_v23 = vpop.eup %5781 }
 0xb43   :  { %v908_v24 = vadd.f32 1.0, %v5782_v23 }
 0xb45   :  { %5783 = vrcp.f32 %v908_v24  ;;  %v920_v28 = vand.u32 2147483648, %v908_v24  ;;  %vm914_vm12 = vweird.f32 %v908_v24  ;;  %v918_v38 = vand.u32 2147483647, %v908_v24 }
 0xb47   :  { %v921_v40 = vor.u32 1.1754944e-38, %v920_v28  ;;  %vm919_vm14 = vcmp.eq.f32.partialorder %v918_v38, 8.507059e+37 }
 0xb49   :  { %v947_v29 = vpop.permute.xlu0 %946 }
 0xb4a   :  { %1018 = vrot.lane.b32.xlu1 %v1017_v19, %s6106_s10  ;;  %v949_v30 = vadd.f32 %v947_v29, %v6390_v6 }
 0xb4b   :  { %v5784_v2 = vpop.eup %5783 }
 0xb4c   :  { %v910_v7 = vmul.f32 %v5784_v2, %v908_v24  ;;  %vm915_vm11 = vweird.f32 %v5784_v2  ;;  %v5434_v31 = vmul.f32 -1.442695, %v949_v30 }
 0xb4d   :  { %vm916_vm13 = vmor %vm914_vm12, %vm915_vm11 }
 0xb4e   :  { %v911_v26 = vsub.f32 1.0, %v910_v7  ;;  %5785 = vpow2.f32 %v5434_v31 }
 0xb50   :  { %v912_v1 = vmul.f32 %v5784_v2, %v911_v26 }
 0xb52   :  { %v913_v10 = vadd.f32 %v5784_v2, %v912_v1 }
 0xb54   :  { %v917_v39 = vsel %vm916_vm13, %v5784_v2, %v913_v10  ;;  %v5786_v41 = vpop.eup %5785 }
 0xb55   :  { %v922_v27 = vsel %vm919_vm14, %v921_v40, %v917_v39  ;;  %v953_v42 = vadd.f32 1.0, %v5786_v41 }
 0xb57   :  { %5787 = vrcp.f32 %v953_v42  ;;  %v965_v49 = vand.u32 2147483648, %v953_v42  ;;  %vm959_vm0 = vweird.f32 %v953_v42  ;;  %v963_v52 = vand.u32 2147483647, %v953_v42 }
 0xb59   :  { %v966_v3 = vor.u32 1.1754944e-38, %v965_v49  ;;  %vm964_vm2 = vcmp.eq.f32.partialorder %v963_v52, 8.507059e+37 }
 0xb5d   :  { %v5788_v43 = vpop.eup %5787 }
 0xb5e   :  { %v955_v44 = vmul.f32 %v5788_v43, %v953_v42  ;;  %vm960_vm15 = vweird.f32 %v5788_v43 }
 0xb5f   :  { %vm961_vm1 = vmor %vm959_vm0, %vm960_vm15 }
 0xb60   :  { %v956_v45 = vsub.f32 1.0, %v955_v44 }
 0xb62   :  { %v957_v47 = vmul.f32 %v5788_v43, %v956_v45 }
 0xb64   :  { %v958_v48 = vadd.f32 %v5788_v43, %v957_v47 }
 0xb66   :  { %v962_v54 = vsel %vm961_vm1, %v5788_v43, %v958_v48 }
 0xb67   :  { %v967_v46 = vsel %vm964_vm2, %v966_v3, %v962_v54 }
 0xb68   :  { %v1044_v13 = vmul.f32 %v1042_v11, %v967_v46 }
 0xbb4   :  { %v1047_v25 = vpop.permute.xlu1 %1046 }
 0xbb5   :  { %v1049_v17 = vmul.f32 %v1047_v25, %v922_v27 }
 0xbb7   :  { %1051 = vrot.lane.b32.xlu2 %v1049_v17, %s6109_s21  ;;  %v6585_v17 = vadd.f32 %v6387_v5, %v6381_v4 }
 0xbbc   :  { %v1019_v18 = vpop.permute.xlu1 %1018 }
 0xbbd   :  { %v1021_v19 = vadd.f32 %v1019_v18, %v6390_v6 }
 0xbbf   :  { %v5437_v20 = vmul.f32 -1.442695, %v1021_v19 }
 0xc11   :  { %v1052_v14 = vpop.permute.xlu2 %1051 }
 0xc12   :  { %v6549_v15 = vadd.f32 %v1052_v14, %v1044_v13 }
 0xc14   :  { %5789 = vtanh.f32 %v6549_v15 }
 0xc15   :  { %5791 = vpow2.f32 %v5437_v20 }
 0xc1a   :  { %v5790_v16 = vpop.eup %5789 }
 0xc1b   :  { %1057 = vrot.lane.b32.xlu0 %v5790_v16, %s6105_s30  ;;  %v5792_v21 = vpop.eup %5791 }
 0xc1c   :  { %v1025_v8 = vadd.f32 1.0, %v5792_v21 }
 0xc1e   :  { %5793 = vrcp.f32 %v1025_v8  ;;  %v1037_v7 = vand.u32 2147483648, %v1025_v8  ;;  %vm1031_vm4 = vweird.f32 %v1025_v8  ;;  %v1035_v26 = vand.u32 2147483647, %v1025_v8 }
 0xc20   :  { %v1038_v10 = vor.u32 1.1754944e-38, %v1037_v7  ;;  %vm1036_vm7 = vcmp.eq.f32.partialorder %v1035_v26, 8.507059e+37 }
 0xc24   :  { %v5794_v22 = vpop.eup %5793 }
 0xc25   :  { %v1027_v23 = vmul.f32 %v5794_v22, %v1025_v8  ;;  %vm1032_vm3 = vweird.f32 %v5794_v22 }
 0xc26   :  { %vm1033_vm5 = vmor %vm1031_vm4, %vm1032_vm3 }
 0xc27   :  { %v1028_v37 = vsub.f32 1.0, %v1027_v23 }
 0xc29   :  { %v1029_v24 = vmul.f32 %v5794_v22, %v1028_v37 }
 0xc2b   :  { %v1030_v2 = vadd.f32 %v5794_v22, %v1029_v24 }
 0xc2d   :  { %v1034_v1 = vsel %vm1033_vm5, %v5794_v22, %v1030_v2 }
 0xc2e   :  { %v1039_v28 = vsel %vm1036_vm7, %v1038_v10, %v1034_v1 }
 0xc8d   :  { %v1058_v6 = vpop.permute.xlu0 %1057 }
 0xc8e   :  { %v1060_v38 = vmul.f32 %v1058_v6, %v1039_v28  ;;  %v1222_v6 = vrot.slane %v6549_v15, 6 }
 0xc90   :  { %v1062_v39 = vrot.slane %v1060_v38, 6 }
 0xc92   :  { %1063 = vrot.lane.b32.xlu2 %v1062_v39, %s6109_s21 }
 0xcec   :  { %v6555_v40 = vpop.permute.xlu2 %1063 }
 0xced   :  { %5438 = vmatmul.msk.f32.vlgmr.msrb.gmra.mxu0 %vm91_vm6, %v6555_v40  ;;  %5440 = vmatmul.msk.f32.vlgmr.msrb.gmra.mxu1 %vm91_vm6, %v6555_v40 }
 0xcee   :  { %5442 = vmatmul.msk.f32.vlgmr.msra.gmra.mxu2 %vm91_vm6, %v6555_v40  ;;  %5443 = vmatmul.msk.f32.vlgmr.msrb.gmra.mxu3 %vm91_vm6, %v6555_v40 }
 0xcef   :  { %1487 = vmatpush.msrb.mxu1 %v6273_v51  ;;  %1532 = vmatpush.msra.mxu2 %v6314_v9 }
 0xcf0   :  { %1559 = vmatpush.msrb.mxu3 %v6360_v60  ;;  %1444 = vmatpush.msrb.mxu0 %v6510_v56 }
 0xcf1   :  { %1488 = vmatpush.msrb.mxu1 %v6271_v50  ;;  %1533 = vmatpush.msra.mxu2 %v6319_v12 }
 0xcf2   :  { %1560 = vmatpush.msrb.mxu3 %v6362_v61  ;;  %1445 = vmatpush.msrb.mxu0 %v6519_v34 }
 0xcf3   :  { %1489 = vmatpush.msrb.mxu1 %v6284_v58  ;;  %1534 = vmatpush.msra.mxu2 %v6333_v36 }
 0xcf4   :  { %1561 = vmatpush.msrb.mxu3 %v6365_v63  ;;  %1446 = vmatpush.msrb.mxu0 %v6528_v59 }
 0xcf5   :  { %1490 = vmatpush.msrb.mxu1 %v6282_v57  ;;  %1535 = vmatpush.msra.mxu2 %v6331_v35 }
 0xcf6   :  { %1562 = vmatpush.msrb.mxu3 %v6368_v0  ;;  %1447 = vmatpush.msrb.mxu0 %v6537_v62 }
 0xd6a   :  { %v1124_v25 = vpop.f32.mrf.mxu1  ;;  %v1084_v42 = vpop.f32.mrf.mxu0 }
 0xd6b   :  { %1128 = vrot.lane.b32.xlu2 %v1124_v25, %s6109_s21  ;;  %v1087_v43 = vadd.f32 %v1084_v42, %v6585_v17 }
 0xd6d   :  { %v5439_v44 = vmul.f32 -1.442695, %v1087_v43 }
 0xd71   :  { %v1168_v27 = vpop.f32.mrf.mxu2  ;;  %v1194_v41 = vpop.f32.mrf.mxu3 }
 0xd72   :  { %1172 = vrot.lane.b32.xlu1 %v1168_v27, %s6105_s30 }
 0xdc5   :  { %v1129_v18 = vpop.permute.xlu2 %1128 }
 0xdc6   :  { %v1131_v19 = vadd.f32 %v1129_v18, %v6585_v17 }
 0xdc8   :  { %v5441_v20 = vmul.f32 -1.442695, %v1131_v19 }
 0xde4   :  { %v1173_v29 = vpop.permute.xlu1 %1172 }
 0xde5   :  { %v1175_v30 = vadd.f32 %v1173_v29, %v6585_v17 }
 0xde7   :  { %5795 = vtanh.f32 %v1175_v30 }
 0xde8   :  { %5797 = vpow2.f32 %v5439_v44 }
 0xded   :  { %v5796_v31 = vpop.eup %5795 }
 0xdee   :  { %1226 = vrot.lane.b32.xlu0 %v5796_v31, %s6105_s30  ;;  %v5798_v45 = vpop.eup %5797 }
 0xdef   :  { %v1091_v47 = vadd.f32 1.0, %v5798_v45 }
 0xdf1   :  { %5799 = vrcp.f32 %v1091_v47  ;;  %v1103_v54 = vand.u32 2147483648, %v1091_v47  ;;  %vm1097_vm9 = vweird.f32 %v1091_v47  ;;  %v1101_v3 = vand.u32 2147483647, %v1091_v47 }
 0xdf2   :  { %5801 = vpow2.f32 %v5441_v20 }
 0xdf3   :  { %v1104_v11 = vor.u32 1.1754944e-38, %v1103_v54  ;;  %vm1102_vm11 = vcmp.eq.f32.partialorder %v1101_v3, 8.507059e+37 }
 0xdf6   :  { %1198 = vrot.lane.b32.xlu0 %v1194_v41, %s6106_s10 }
 0xdf7   :  { %v5800_v4 = vpop.eup %5799 }
 0xdf8   :  { %v1093_v5 = vmul.f32 %v5800_v4, %v1091_v47  ;;  %vm1098_vm8 = vweird.f32 %v5800_v4  ;;  %v5802_v21 = vpop.eup %5801 }
 0xdf9   :  { %vm1099_vm10 = vmor %vm1097_vm9, %vm1098_vm8  ;;  %v1135_v8 = vadd.f32 1.0, %v5802_v21 }
 0xdfa   :  { %v1094_v48 = vsub.f32 1.0, %v1093_v5 }
 0xdfb   :  { %5803 = vrcp.f32 %v1135_v8  ;;  %v1147_v7 = vand.u32 2147483648, %v1135_v8  ;;  %vm1141_vm13 = vweird.f32 %v1135_v8  ;;  %v1145_v26 = vand.u32 2147483647, %v1135_v8 }
 0xdfc   :  { %v1095_v49 = vmul.f32 %v5800_v4, %v1094_v48 }
 0xdfd   :  { %v1148_v10 = vor.u32 1.1754944e-38, %v1147_v7  ;;  %vm1146_vm15 = vcmp.eq.f32.partialorder %v1145_v26, 8.507059e+37 }
 0xdfe   :  { %v1096_v52 = vadd.f32 %v5800_v4, %v1095_v49 }
 0xe00   :  { %v1100_v46 = vsel %vm1099_vm10, %v5800_v4, %v1096_v52 }
 0xe01   :  { %v1105_v14 = vsel %vm1102_vm11, %v1104_v11, %v1100_v46  ;;  %v5804_v22 = vpop.eup %5803 }
 0xe02   :  { %v1137_v23 = vmul.f32 %v5804_v22, %v1135_v8  ;;  %vm1142_vm12 = vweird.f32 %v5804_v22 }
 0xe03   :  { %vm1143_vm14 = vmor %vm1141_vm13, %vm1142_vm12 }
 0xe04   :  { %v1138_v37 = vsub.f32 1.0, %v1137_v23 }
 0xe06   :  { %v1139_v24 = vmul.f32 %v5804_v22, %v1138_v37 }
 0xe08   :  { %v1140_v2 = vadd.f32 %v5804_v22, %v1139_v24 }
 0xe0a   :  { %v1144_v1 = vsel %vm1143_vm14, %v5804_v22, %v1140_v2 }
 0xe0b   :  { %v1149_v28 = vsel %vm1146_vm15, %v1148_v10, %v1144_v1 }
 0xe0c   :  { %v1224_v38 = vmul.f32 %v1222_v6, %v1149_v28 }
 0xe60   :  { %v1227_v13 = vpop.permute.xlu0 %1226 }
 0xe61   :  { %v1229_v16 = vmul.f32 %v1227_v13, %v1105_v14 }
 0xe63   :  { %1231 = vrot.lane.b32.xlu1 %v1229_v16, %s6109_s21 }
 0xe68   :  { %v1199_v29 = vpop.permute.xlu0 %1198 }
 0xe69   :  { %v1201_v30 = vadd.f32 %v1199_v29, %v6585_v17 }
 0xe6b   :  { %v5444_v31 = vmul.f32 -1.442695, %v1201_v30 }
 0xed5   :  { %v1232_v39 = vpop.permute.xlu1 %1231 }
 0xed6   :  { %v6594_v25 = vadd.f32 %v1232_v39, %v1224_v38 }
 0xed8   :  { %5805 = vtanh.f32 %v6594_v25 }
 0xed9   :  { %5807 = vpow2.f32 %v5444_v31 }
 0xede   :  { %v5806_v27 = vpop.eup %5805 }
 0xedf   :  { %1237 = vrot.lane.b32.xlu2 %v5806_v27, %s6105_s30  ;;  %v5808_v41 = vpop.eup %5807 }
 0xee0   :  { %v1205_v42 = vadd.f32 1.0, %v5808_v41  ;;  %v1407_v41 = vrot.slane %v6594_v25, 6 }
 0xee2   :  { %5809 = vrcp.f32 %v1205_v42  ;;  %v1217_v4 = vand.u32 2147483648, %v1205_v42  ;;  %vm1211_vm1 = vweird.f32 %v1205_v42  ;;  %v1215_v5 = vand.u32 2147483647, %v1205_v42 }
 0xee4   :  { %v1218_v49 = vor.u32 1.1754944e-38, %v1217_v4  ;;  %vm1216_vm3 = vcmp.eq.f32.partialorder %v1215_v5, 8.507059e+37 }
 0xee8   :  { %v5810_v43 = vpop.eup %5809 }
 0xee9   :  { %v1207_v44 = vmul.f32 %v5810_v43, %v1205_v42  ;;  %vm1212_vm0 = vweird.f32 %v5810_v43 }
 0xeea   :  { %vm1213_vm2 = vmor %vm1211_vm1, %vm1212_vm0 }
 0xeeb   :  { %v1208_v15 = vsub.f32 1.0, %v1207_v44 }
 0xeed   :  { %v1209_v45 = vmul.f32 %v5810_v43, %v1208_v15 }
 0xeef   :  { %v1210_v47 = vadd.f32 %v5810_v43, %v1209_v45 }
 0xef1   :  { %v1214_v48 = vsel %vm1213_vm2, %v5810_v43, %v1210_v47 }
 0xef2   :  { %v1219_v52 = vsel %vm1216_vm3, %v1218_v49, %v1214_v48 }
 0xf39   :  { %v1238_v54 = vpop.permute.xlu2 %1237 }
 0xf3a   :  { %v1240_v3 = vmul.f32 %v1238_v54, %v1219_v52 }
 0xf3c   :  { %1242 = vrot.lane.b32.xlu1 %v1240_v3, %s6109_s21 }
 0xfae   :  { %v6600_v46 = vpop.permute.xlu1 %1242 }
 0xfaf   :  { %5445 = vmatmul.msk.f32.vlgmr.msra.gmra.mxu0 %vm91_vm6, %v6600_v46  ;;  %5447 = vmatmul.msk.f32.vlgmr.msra.gmra.mxu1 %vm91_vm6, %v6600_v46 }
 0xfb0   :  { %5449 = vmatmul.msk.f32.vlgmr.msrb.gmra.mxu2 %vm91_vm6, %v6600_v46  ;;  %5450 = vmatmul.msk.f32.vlgmr.msra.gmra.mxu3 %vm91_vm6, %v6600_v46 }
 0xfb1   :  { %1673 = vmatpush.msra.mxu1 %v6273_v51  ;;  %1718 = vmatpush.msrb.mxu2 %v6314_v9 }
 0xfb2   :  { %1745 = vmatpush.msra.mxu3 %v6360_v60  ;;  %1630 = vmatpush.msra.mxu0 %v6510_v56 }
 0xfb3   :  { %1674 = vmatpush.msra.mxu1 %v6271_v50  ;;  %1719 = vmatpush.msrb.mxu2 %v6319_v12 }
 0xfb4   :  { %1746 = vmatpush.msra.mxu3 %v6362_v61  ;;  %1631 = vmatpush.msra.mxu0 %v6519_v34 }
 0xfb5   :  { %1675 = vmatpush.msra.mxu1 %v6284_v58  ;;  %1720 = vmatpush.msrb.mxu2 %v6333_v36 }
 0xfb6   :  { %1747 = vmatpush.msra.mxu3 %v6365_v63  ;;  %1632 = vmatpush.msra.mxu0 %v6528_v59 }
 0xfb7   :  { %1676 = vmatpush.msra.mxu1 %v6282_v57  ;;  %1721 = vmatpush.msrb.mxu2 %v6331_v35 }
 0xfb8   :  { %1748 = vmatpush.msra.mxu3 %v6368_v0  ;;  %1633 = vmatpush.msra.mxu0 %v6537_v62 }
0x102c   :  { %v1306_v50 = vpop.f32.mrf.mxu1  ;;  %v1263_v61 = vpop.f32.mrf.mxu0 }
0x102d   :  { %v1310_v51 = vrot.slane %v1306_v50, 6  ;;  %v1267_v63 = vrot.slane %v1263_v61, 6 }
0x102f   :  { %1311 = vrot.lane.b32.xlu1 %v1310_v51, %s6109_s21  ;;  %v1269_v0 = vadd.f32 %v1267_v63, %v6585_v17 }
0x1031   :  { %v5446_v56 = vmul.f32 -1.442695, %v1269_v0 }
0x1033   :  { %v1351_v9 = vpop.f32.mrf.mxu2  ;;  %v1378_v57 = vpop.f32.mrf.mxu3 }
0x1034   :  { %v1355_v58 = vrot.slane %v1351_v9, 6  ;;  %v1382_v35 = vrot.slane %v1378_v57, 6 }
0x1036   :  { %1356 = vrot.lane.b32.xlu0 %v1355_v58, %s6105_s30 }
0x10a1   :  { %v1312_v37 = vpop.permute.xlu1 %1311 }
0x10a2   :  { %v1314_v24 = vadd.f32 %v1312_v37, %v6585_v17 }
0x10a4   :  { %v5448_v2 = vmul.f32 -1.442695, %v1314_v24 }
0x10a8   :  { %v1357_v12 = vpop.permute.xlu0 %1356 }
0x10a9   :  { %v1359_v36 = vadd.f32 %v1357_v12, %v6585_v17 }
0x10ab   :  { %5811 = vtanh.f32 %v1359_v36 }
0x10ac   :  { %5813 = vpow2.f32 %v5446_v56 }
0x10b1   :  { %v5812_v60 = vpop.eup %5811 }
0x10b2   :  { %1411 = vrot.lane.b32.xlu2 %v5812_v60, %s6105_s30  ;;  %v5814_v34 = vpop.eup %5813 }
0x10b3   :  { %v1273_v59 = vadd.f32 1.0, %v5814_v34 }
0x10b5   :  { %5815 = vrcp.f32 %v1273_v59  ;;  %v1285_v18 = vand.u32 2147483648, %v1273_v59  ;;  %vm1279_vm5 = vweird.f32 %v1273_v59  ;;  %v1283_v19 = vand.u32 2147483647, %v1273_v59 }
0x10b6   :  { %5817 = vpow2.f32 %v5448_v2 }
0x10b7   :  { %v1286_v21 = vor.u32 1.1754944e-38, %v1285_v18  ;;  %vm1284_vm8 = vcmp.eq.f32.partialorder %v1283_v19, 8.507059e+37 }
0x10ba   :  { %1383 = vrot.lane.b32.xlu2 %v1382_v35, %s6106_s10 }
0x10bb   :  { %v5816_v62 = vpop.eup %5815 }
0x10bc   :  { %v1275_v11 = vmul.f32 %v5816_v62, %v1273_v59  ;;  %vm1280_vm4 = vweird.f32 %v5816_v62  ;;  %v5818_v7 = vpop.eup %5817 }
0x10bd   :  { %vm1281_vm7 = vmor %vm1279_vm5, %vm1280_vm4  ;;  %v1318_v26 = vadd.f32 1.0, %v5818_v7 }
0x10be   :  { %v1276_v13 = vsub.f32 1.0, %v1275_v11 }
0x10bf   :  { %5819 = vrcp.f32 %v1318_v26  ;;  %v1330_v39 = vand.u32 2147483648, %v1318_v26  ;;  %vm1324_vm10 = vweird.f32 %v1318_v26  ;;  %v1328_v27 = vand.u32 2147483647, %v1318_v26 }
0x10c0   :  { %v1277_v14 = vmul.f32 %v5816_v62, %v1276_v13 }
0x10c1   :  { %v1331_v30 = vor.u32 1.1754944e-38, %v1330_v39  ;;  %vm1329_vm12 = vcmp.eq.f32.partialorder %v1328_v27, 8.507059e+37 }
0x10c2   :  { %v1278_v16 = vadd.f32 %v5816_v62, %v1277_v14 }
0x10c4   :  { %v1282_v20 = vsel %vm1281_vm7, %v5816_v62, %v1278_v16 }
0x10c5   :  { %v1287_v22 = vsel %vm1284_vm8, %v1286_v21, %v1282_v20  ;;  %v5820_v1 = vpop.eup %5819 }
0x10c6   :  { %v1320_v10 = vmul.f32 %v5820_v1, %v1318_v26  ;;  %vm1325_vm9 = vweird.f32 %v5820_v1 }
0x10c7   :  { %vm1326_vm11 = vmor %vm1324_vm10, %vm1325_vm9 }
0x10c8   :  { %v1321_v28 = vsub.f32 1.0, %v1320_v10 }
0x10ca   :  { %v1322_v6 = vmul.f32 %v5820_v1, %v1321_v28 }
0x10cc   :  { %v1323_v38 = vadd.f32 %v5820_v1, %v1322_v6 }
0x10ce   :  { %v1327_v29 = vsel %vm1326_vm11, %v5820_v1, %v1323_v38 }
0x10cf   :  { %v1332_v31 = vsel %vm1329_vm12, %v1331_v30, %v1327_v29 }
0x10d0   :  { %v1409_v42 = vmul.f32 %v1407_v41, %v1332_v31 }
0x110c   :  { %v1412_v8 = vpop.permute.xlu2 %1411 }
0x110d   :  { %v1414_v23 = vmul.f32 %v1412_v8, %v1287_v22 }
0x110f   :  { %1416 = vrot.lane.b32.xlu0 %v1414_v23, %s6109_s21 }
0x1114   :  { %v1384_v45 = vpop.permute.xlu2 %1383 }
0x1115   :  { %v1386_v47 = vadd.f32 %v1384_v45, %v6585_v17 }
0x1117   :  { %v5451_v4 = vmul.f32 -1.442695, %v1386_v47 }
0x1181   :  { %v1417_v43 = vpop.permute.xlu0 %1416 }
0x1182   :  { %v6635_v44 = vadd.f32 %v1417_v43, %v1409_v42 }
0x1184   :  { %5821 = vtanh.f32 %v6635_v44 }
0x1185   :  { %5823 = vpow2.f32 %v5451_v4 }
0x118a   :  { %v5822_v15 = vpop.eup %5821 }
0x118b   :  { %1422 = vrot.lane.b32.xlu1 %v5822_v15, %s6105_s30  ;;  %v5824_v5 = vpop.eup %5823 }
0x118c   :  { %v1390_v48 = vadd.f32 1.0, %v5824_v5 }
0x118e   :  { %5825 = vrcp.f32 %v1390_v48  ;;  %v1402_v50 = vand.u32 2147483648, %v1390_v48  ;;  %vm1396_vm14 = vweird.f32 %v1390_v48  ;;  %v1400_v51 = vand.u32 2147483647, %v1390_v48 }
0x1190   :  { %v1403_v58 = vor.u32 1.1754944e-38, %v1402_v50  ;;  %vm1401_vm0 = vcmp.eq.f32.partialorder %v1400_v51, 8.507059e+37 }
0x1194   :  { %v5826_v49 = vpop.eup %5825 }
0x1195   :  { %v1392_v52 = vmul.f32 %v5826_v49, %v1390_v48  ;;  %vm1397_vm13 = vweird.f32 %v5826_v49 }
0x1196   :  { %vm1398_vm15 = vmor %vm1396_vm14, %vm1397_vm13 }
0x1197   :  { %v1393_v25 = vsub.f32 1.0, %v1392_v52 }
0x1199   :  { %v1394_v54 = vmul.f32 %v5826_v49, %v1393_v25 }
0x119b   :  { %v1395_v3 = vadd.f32 %v5826_v49, %v1394_v54 }
0x119d   :  { %v1399_v9 = vsel %vm1398_vm15, %v5826_v49, %v1395_v3  ;;  %v1593_v49 = vrot.slane %v6635_v44, 6 }
0x119e   :  { %v1404_v12 = vsel %vm1401_vm0, %v1403_v58, %v1399_v9 }
0x11fd   :  { %v1423_v36 = vpop.permute.xlu1 %1422 }
0x11fe   :  { %v1425_v60 = vmul.f32 %v1423_v36, %v1404_v12 }
0x1200   :  { %v1427_v57 = vrot.slane %v1425_v60, 2 }
0x1202   :  { %1428 = vrot.lane.b32.xlu0 %v1427_v57, %s6109_s21 }
0x1274   :  { %v6641_v35 = vpop.permute.xlu0 %1428 }
0x1275   :  { %5452 = vmatmul.msk.f32.vlgmr.msrb.gmra.mxu0 %vm91_vm6, %v6641_v35  ;;  %5454 = vmatmul.msk.f32.vlgmr.msrb.gmra.mxu1 %vm91_vm6, %v6641_v35 }
0x1276   :  { %5456 = vmatmul.msk.f32.vlgmr.msra.gmra.mxu2 %vm91_vm6, %v6641_v35  ;;  %5457 = vmatmul.msk.f32.vlgmr.msrb.gmra.mxu3 %vm91_vm6, %v6641_v35 }
0x12f2   :  { %v1492_v61 = vpop.f32.mrf.mxu1  ;;  %v1449_v14 = vpop.f32.mrf.mxu0 }
0x12f3   :  { %v1496_v63 = vrot.slane %v1492_v61, 4  ;;  %v1453_v16 = vrot.slane %v1449_v14, 4  ;;  %v253_v14 = vld [vmem:[%s8042_s2 + $0x130] sm:$0xff] }
0x12f4   :  { %1811 = vmatpush.msrb.mxu0 %v253_v14  ;;  %1831 = vmatpush.msrb.mxu1 %v253_v14 }
0x12f5   :  { %1497 = vrot.lane.b32.xlu0 %v1496_v63, %s6109_s21  ;;  %v1455_v18 = vadd.f32 %v1453_v16, %v6585_v17  ;;  %v252_v16 = vld [vmem:[%s8042_s2 + $0xd0] sm:$0xff]  ;;  %1851 = vmatpush.msra.mxu2 %v253_v14 }
0x12f6   :  { %1871 = vmatpush.msrb.mxu3 %v253_v14  ;;  %1812 = vmatpush.msrb.mxu0 %v252_v16 }
0x12f7   :  { %v5453_v19 = vmul.f32 -1.442695, %v1455_v18  ;;  %v251_v18 = vld [vmem:[%s8042_s2 + $0x70] sm:$0xff]  ;;  %1832 = vmatpush.msrb.mxu1 %v252_v16  ;;  %1852 = vmatpush.msra.mxu2 %v252_v16 }
0x12f8   :  { %1872 = vmatpush.msrb.mxu3 %v252_v16  ;;  %1813 = vmatpush.msrb.mxu0 %v251_v18 }
0x12f9   :  { %v1537_v0 = vpop.f32.mrf.mxu2  ;;  %v1564_v11 = vpop.f32.mrf.mxu3  ;;  %1833 = vmatpush.msrb.mxu1 %v251_v18  ;;  %1853 = vmatpush.msra.mxu2 %v251_v18 }
0x12fa   :  { %v1541_v56 = vrot.slane %v1537_v0, 4  ;;  %v1568_v13 = vrot.slane %v1564_v11, 4  ;;  %1873 = vmatpush.msrb.mxu3 %v251_v18 }
0x12fc   :  { %1542 = vrot.lane.b32.xlu2 %v1541_v56, %s6105_s30 }
0x1356   :  { %v1543_v34 = vpop.permute.xlu2 %1542 }
0x1357   :  { %v1545_v59 = vadd.f32 %v1543_v34, %v6585_v17 }
0x1359   :  { %5827 = vtanh.f32 %v1545_v59 }
0x135a   :  { %5829 = vpow2.f32 %v5453_v19  ;;  %v250_v19 = vld [vmem:[%s8042_s2 + $0x10] sm:$0xff] }
0x135b   :  { %1814 = vmatpush.msrb.mxu0 %v250_v19  ;;  %1834 = vmatpush.msrb.mxu1 %v250_v19 }
0x135c   :  { %1854 = vmatpush.msra.mxu2 %v250_v19  ;;  %1874 = vmatpush.msrb.mxu3 %v250_v19 }
0x135f   :  { %v5828_v62 = vpop.eup %5827 }
0x1360   :  { %1597 = vrot.lane.b32.xlu1 %v5828_v62, %s6105_s30  ;;  %v5830_v20 = vpop.eup %5829 }
0x1361   :  { %v1459_v21 = vadd.f32 1.0, %v5830_v20 }
0x1363   :  { %5831 = vrcp.f32 %v1459_v21  ;;  %v1471_v2 = vand.u32 2147483648, %v1459_v21  ;;  %vm1465_vm2 = vweird.f32 %v1459_v21  ;;  %v1469_v7 = vand.u32 2147483647, %v1459_v21 }
0x1365   :  { %v1472_v1 = vor.u32 1.1754944e-38, %v1471_v2  ;;  %vm1470_vm4 = vcmp.eq.f32.partialorder %v1469_v7, 8.507059e+37 }
0x1367   :  { %v1498_v38 = vpop.permute.xlu0 %1497 }
0x1368   :  { %1569 = vrot.lane.b32.xlu1 %v1568_v13, %s6106_s10  ;;  %v1500_v39 = vadd.f32 %v1498_v38, %v6585_v17 }
0x1369   :  { %v5832_v8 = vpop.eup %5831 }
0x136a   :  { %v1461_v22 = vmul.f32 %v5832_v8, %v1459_v21  ;;  %vm1466_vm1 = vweird.f32 %v5832_v8  ;;  %v5455_v27 = vmul.f32 -1.442695, %v1500_v39 }
0x136b   :  { %vm1467_vm3 = vmor %vm1465_vm2, %vm1466_vm1 }
0x136c   :  { %v1462_v23 = vsub.f32 1.0, %v1461_v22  ;;  %5833 = vpow2.f32 %v5455_v27 }
0x136e   :  { %v1463_v37 = vmul.f32 %v5832_v8, %v1462_v23 }
0x1370   :  { %v1464_v24 = vadd.f32 %v5832_v8, %v1463_v37 }
0x1372   :  { %v1468_v26 = vsel %vm1467_vm3, %v5832_v8, %v1464_v24  ;;  %v5834_v29 = vpop.eup %5833 }
0x1373   :  { %v1473_v28 = vsel %vm1470_vm4, %v1472_v1, %v1468_v26  ;;  %v1504_v30 = vadd.f32 1.0, %v5834_v29 }
0x1375   :  { %5835 = vrcp.f32 %v1504_v30  ;;  %v1516_v45 = vand.u32 2147483648, %v1504_v30  ;;  %vm1510_vm7 = vweird.f32 %v1504_v30  ;;  %v1514_v47 = vand.u32 2147483647, %v1504_v30 }
0x1377   :  { %v1517_v5 = vor.u32 1.1754944e-38, %v1516_v45  ;;  %vm1515_vm9 = vcmp.eq.f32.partialorder %v1514_v47, 8.507059e+37 }
0x137b   :  { %v5836_v31 = vpop.eup %5835 }
0x137c   :  { %v1506_v41 = vmul.f32 %v5836_v31, %v1504_v30  ;;  %vm1511_vm5 = vweird.f32 %v5836_v31 }
0x137d   :  { %vm1512_vm8 = vmor %vm1510_vm7, %vm1511_vm5 }
0x137e   :  { %v1507_v42 = vsub.f32 1.0, %v1506_v41 }
0x1380   :  { %v1508_v43 = vmul.f32 %v5836_v31, %v1507_v42 }
0x1382   :  { %v1509_v15 = vadd.f32 %v5836_v31, %v1508_v43 }
0x1384   :  { %v1513_v4 = vsel %vm1512_vm8, %v5836_v31, %v1509_v15 }
0x1385   :  { %v1518_v48 = vsel %vm1515_vm9, %v1517_v5, %v1513_v4 }
0x1386   :  { %v1595_v52 = vmul.f32 %v1593_v49, %v1518_v48 }
0x13d2   :  { %v1598_v10 = vpop.permute.xlu1 %1597 }
0x13d3   :  { %v1600_v6 = vmul.f32 %v1598_v10, %v1473_v28 }
0x13d5   :  { %1602 = vrot.lane.b32.xlu2 %v1600_v6, %s6109_s21 }
0x13da   :  { %v1570_v50 = vpop.permute.xlu1 %1569 }
0x13db   :  { %v1572_v51 = vadd.f32 %v1570_v50, %v6585_v17  ;;  %v6712_v50 = vld [vmem:[%s8042_s2 + $0x18] sm:$0xff] }
0x13dd   :  { %v5458_v9 = vmul.f32 -1.442695, %v1572_v51 }
0x142f   :  { %v1603_v25 = vpop.permute.xlu2 %1602 }
0x1430   :  { %v6660_v54 = vadd.f32 %v1603_v25, %v1595_v52  ;;  %v6702_v25 = vld [vmem:[%s8042_s2 + $0xd8] sm:$0xff] }
0x1432   :  { %5837 = vtanh.f32 %v6660_v54 }
0x1433   :  { %5839 = vpow2.f32 %v5458_v9  ;;  %v6721_v9 = vld [vmem:[%s8042_s2 + $0x78] sm:$0xff] }
0x1438   :  { %v5838_v3 = vpop.eup %5837 }
0x1439   :  { %1608 = vrot.lane.b32.xlu0 %v5838_v3, %s6105_s30  ;;  %v5840_v58 = vpop.eup %5839  ;;  %v6707_v3 = vld [vmem:[%s8042_s2 + $0x138] sm:$0xff] }
0x143a   :  { %v1576_v12 = vadd.f32 1.0, %v5840_v58  ;;  %v6716_v51 = vpack.i.bf16 %v6702_v25, %v6707_v3  ;;  %v5674_v58 = vpack.i.bf16 %v6712_v50, %v6721_v9 }
0x143c   :  { %5841 = vrcp.f32 %v1576_v12  ;;  %v1588_v63 = vand.u32 2147483648, %v1576_v12  ;;  %vm1582_vm11 = vweird.f32 %v1576_v12  ;;  %v1586_v0 = vand.u32 2147483647, %v1576_v12 }
0x143e   :  { %v1589_v34 = vor.u32 1.1754944e-38, %v1588_v63  ;;  %vm1587_vm13 = vcmp.eq.f32.partialorder %v1586_v0, 8.507059e+37 }
0x1442   :  { %v5842_v36 = vpop.eup %5841 }
0x1443   :  { %v1578_v60 = vmul.f32 %v5842_v36, %v1576_v12  ;;  %vm1583_vm10 = vweird.f32 %v5842_v36 }
0x1444   :  { %vm1584_vm12 = vmor %vm1582_vm11, %vm1583_vm10 }
0x1445   :  { %v1579_v44 = vsub.f32 1.0, %v1578_v60 }
0x1447   :  { %v1580_v57 = vmul.f32 %v5842_v36, %v1579_v44 }
0x1449   :  { %v1581_v61 = vadd.f32 %v5842_v36, %v1580_v57 }
0x144b   :  { %v1585_v56 = vsel %vm1584_vm12, %v5842_v36, %v1581_v61 }
0x144c   :  { %v1590_v59 = vsel %vm1587_vm13, %v1589_v34, %v1585_v56  ;;  %v1779_v56 = vrot.slane %v6660_v54, 6 }
0x14ab   :  { %v1609_v62 = vpop.permute.xlu0 %1608 }
0x14ac   :  { %v1611_v11 = vmul.f32 %v1609_v62, %v1590_v59 }
0x14ae   :  { %v1613_v13 = vrot.slane %v1611_v11, 4 }
0x14b0   :  { %1614 = vrot.lane.b32.xlu2 %v1613_v13, %s6109_s21 }
0x150a   :  { %v1615_v20 = vpop.permute.xlu2 %1614 }
0x150b   :  { %5459 = vmatmul.msk.f32.vlgmr.msra.gmra.mxu0 %vm91_vm6, %v1615_v20  ;;  %5461 = vmatmul.msk.f32.vlgmr.msra.gmra.mxu1 %vm91_vm6, %v1615_v20 }
0x150c   :  { %5463 = vmatmul.msk.f32.vlgmr.msrb.gmra.mxu2 %vm91_vm6, %v1615_v20  ;;  %5464 = vmatmul.msk.f32.vlgmr.msra.gmra.mxu3 %vm91_vm6, %v1615_v20 }
0x150d   :  { %1891 = vmatpush.msra.mxu0 %v253_v14  ;;  %1917 = vmatpush.msra.mxu1 %v6707_v3 }
0x150f   :  { %1892 = vmatpush.msra.mxu0 %v252_v16  ;;  %1918 = vmatpush.msra.mxu1 %v6702_v25 }
0x1511   :  { %1893 = vmatpush.msra.mxu0 %v251_v18  ;;  %1919 = vmatpush.msra.mxu1 %v6721_v9 }
0x1513   :  { %5466 = vmatmul.msk.f32.vlgmr.msrb.gmra.mxu0 %vm91_vm6, %v6494_v55  ;;  %5467 = vmatmul.msk.f32.vlgmr.msrb.gmra.mxu1 %vm91_vm6, %v6555_v40 }
0x1514   :  { %5468 = vmatmul.msk.f32.vlgmr.msra.gmra.mxu2 %vm91_vm6, %v6600_v46  ;;  %5469 = vmatmul.msk.f32.vlgmr.msrb.gmra.mxu3 %vm91_vm6, %v6641_v35 }
0x1515   :  { %1894 = vmatpush.msra.mxu0 %v250_v19  ;;  %1920 = vmatpush.msra.mxu1 %v6712_v50 }
0x1517   :  { %2136 = vmatpush.msrb.mxu1 %v6707_v3 }
0x1519   :  { %2137 = vmatpush.msrb.mxu1 %v6702_v25 }
0x151b   :  { %5470 = vmatmul.msk.f32.vlgmr.msra.gmra.mxu0 %vm91_vm6, %v1615_v20  ;;  %2138 = vmatpush.msrb.mxu1 %v6721_v9 }
0x151d   :  { %2139 = vmatpush.msrb.mxu1 %v6712_v50 }
0x1588   :  { %v1678_v21 = vpop.f32.mrf.mxu1  ;;  %v1635_v24 = vpop.f32.mrf.mxu0 }
0x1589   :  { %v1682_v8 = vrot.slane %v1678_v21, 2  ;;  %v1639_v2 = vrot.slane %v1635_v24, 2 }
0x158b   :  { %1683 = vrot.lane.b32.xlu2 %v1682_v8, %s6109_s21  ;;  %v1641_v7 = vadd.f32 %v1639_v2, %v6585_v17 }
0x158d   :  { %v5460_v26 = vmul.f32 -1.442695, %v1641_v7 }
0x158f   :  { %v1723_v22 = vpop.f32.mrf.mxu2  ;;  %v1750_v46 = vpop.f32.mrf.mxu3 }
0x1590   :  { %v1727_v23 = vrot.slane %v1723_v22, 2  ;;  %v1754_v35 = vrot.slane %v1750_v46, 2 }
0x1592   :  { %1728 = vrot.lane.b32.xlu1 %v1727_v23, %s6105_s30 }
0x15e5   :  { %v1684_v45 = vpop.permute.xlu2 %1683 }
0x15e6   :  { %v1686_v47 = vadd.f32 %v1684_v45, %v6585_v17 }
0x15e8   :  { %v5462_v4 = vmul.f32 -1.442695, %v1686_v47 }
0x1604   :  { %v1729_v55 = vpop.permute.xlu1 %1728 }
0x1605   :  { %v1731_v40 = vadd.f32 %v1729_v55, %v6585_v17 }
0x1607   :  { %5843 = vtanh.f32 %v1731_v40 }
0x1608   :  { %5845 = vpow2.f32 %v5460_v26 }
0x160d   :  { %v5844_v37 = vpop.eup %5843 }
0x160e   :  { %1783 = vrot.lane.b32.xlu0 %v5844_v37, %s6105_s30  ;;  %v5846_v1 = vpop.eup %5845 }
0x160f   :  { %v1645_v10 = vadd.f32 1.0, %v5846_v1 }
0x1611   :  { %5847 = vrcp.f32 %v1645_v10  ;;  %v1657_v29 = vand.u32 2147483648, %v1645_v10  ;;  %vm1651_vm15 = vweird.f32 %v1645_v10  ;;  %v1655_v30 = vand.u32 2147483647, %v1645_v10 }
0x1612   :  { %5849 = vpow2.f32 %v5462_v4  ;;  %v6817_v4 = vpop.f32.mrf.mxu2 }
0x1613   :  { %v1658_v41 = vor.u32 1.1754944e-38, %v1657_v29  ;;  %vm1656_vm1 = vcmp.eq.f32.partialorder %v1655_v30, 8.507059e+37 }
0x1616   :  { %1755 = vrot.lane.b32.xlu0 %v1754_v35, %s6106_s10 }
0x1617   :  { %v5848_v28 = vpop.eup %5847 }
0x1618   :  { %v1647_v6 = vmul.f32 %v5848_v28, %v1645_v10  ;;  %vm1652_vm14 = vweird.f32 %v5848_v28  ;;  %v5850_v5 = vpop.eup %5849 }
0x1619   :  { %vm1653_vm0 = vmor %vm1651_vm15, %vm1652_vm14  ;;  %v1690_v48 = vadd.f32 1.0, %v5850_v5  ;;  %v6819_v5 = vpop.f32.mrf.mxu3 }
0x161a   :  { %v1648_v38 = vsub.f32 1.0, %v1647_v6 }
0x161b   :  { %5851 = vrcp.f32 %v1690_v48  ;;  %v1702_v44 = vand.u32 2147483648, %v1690_v48  ;;  %vm1696_vm3 = vweird.f32 %v1690_v48  ;;  %v1700_v57 = vand.u32 2147483647, %v1690_v48 }
0x161c   :  { %v1649_v39 = vmul.f32 %v5848_v28, %v1648_v38 }
0x161d   :  { %v1703_v63 = vor.u32 1.1754944e-38, %v1702_v44  ;;  %vm1701_vm5 = vcmp.eq.f32.partialorder %v1700_v57, 8.507059e+37 }
0x161e   :  { %v1650_v27 = vadd.f32 %v5848_v28, %v1649_v39  ;;  %5675 = vrot.lane.b32.xlu0 %v5674_v58, %s6105_s30 }
0x1620   :  { %v1654_v31 = vsel %vm1653_vm0, %v5848_v28, %v1650_v27 }
0x1621   :  { %v1659_v43 = vsel %vm1656_vm1, %v1658_v41, %v1654_v31  ;;  %v5852_v49 = vpop.eup %5851 }
0x1622   :  { %v1692_v52 = vmul.f32 %v5852_v49, %v1690_v48  ;;  %vm1697_vm2 = vweird.f32 %v5852_v49 }
0x1623   :  { %vm1698_vm4 = vmor %vm1696_vm3, %vm1697_vm2 }
0x1624   :  { %v1693_v12 = vsub.f32 1.0, %v1692_v52  ;;  %v6826_v52 = vld [vmem:[%s8041_s4 + $0x4] ss:$0 sm:$0xff] }
0x1626   :  { %v1694_v36 = vmul.f32 %v5852_v49, %v1693_v12  ;;  %5685 = vrot.lane.b32.xlu0 %v5674_v58, %s6106_s10 }
0x1628   :  { %v1695_v60 = vadd.f32 %v5852_v49, %v1694_v36 }
0x162a   :  { %v1699_v61 = vsel %vm1698_vm4, %v5852_v49, %v1695_v60 }
0x162b   :  { %v1704_v0 = vsel %vm1701_vm5, %v1703_v63, %v1699_v61  ;;  %v6836_v61 = vpop.f32.mrf.mxu1 }
0x162c   :  { %v1781_v34 = vmul.f32 %v1779_v56, %v1704_v0 }
0x1680   :  { %v1784_v42 = vpop.permute.xlu0 %1783 }
0x1681   :  { %v1786_v15 = vmul.f32 %v1784_v42, %v1659_v43 }
0x1683   :  { %1788 = vrot.lane.b32.xlu1 %v1786_v15, %s6109_s21 }
0x1688   :  { %v1756_v13 = vpop.permute.xlu0 %1755 }
0x1689   :  { %v1758_v14 = vadd.f32 %v1756_v13, %v6585_v17 }
0x168b   :  { %5670 = vrot.lane.b32.xlu1 %v6716_v51, %s6105_s30  ;;  %v5465_v16 = vmul.f32 -1.442695, %v1758_v14 }
0x1690   :  { %v5676_v17 = vpop.permute.xlu0 %5675 }
0x1691   :  { %v6751_v2 = vunpack.i.l.bf16 %v5676_v17  ;;  %v6753_v1 = vunpack.i.h.bf16 %v5676_v17 }
0x1693   :  { %5680 = vrot.lane.b32.xlu1 %v6716_v51, %s6106_s10 }
0x1698   :  { %v5686_v27 = vpop.permute.xlu0 %5685 }
0x1699   :  { %v6765_v29 = vunpack.i.l.bf16 %v5686_v27  ;;  %v6768_v30 = vunpack.i.h.bf16 %v5686_v27 }
0x169b   :  { %5695 = vrot.lane.b32.xlu1 %v5674_v58, %s6109_s21 }
0x16f5   :  { %v1789_v59 = vpop.permute.xlu1 %1788 }
0x16f6   :  { %v6741_v62 = vadd.f32 %v1789_v59, %v1781_v34 }
0x16f8   :  { %5853 = vtanh.f32 %v6741_v62 }
0x16f9   :  { %5855 = vpow2.f32 %v5465_v16 }
0x16fd   :  { %v5671_v40 = vpop.permute.xlu1 %5670 }
0x16fe   :  { %v5854_v11 = vpop.eup %5853  ;;  %v6746_v37 = vunpack.i.h.bf16 %v5671_v40  ;;  %v6748_v46 = vunpack.i.l.bf16 %v5671_v40 }
0x16ff   :  { %1794 = vrot.lane.b32.xlu2 %v5854_v11, %s6105_s30  ;;  %v5856_v18 = vpop.eup %5855 }
0x1700   :  { %v1762_v19 = vadd.f32 1.0, %v5856_v18  ;;  %2029 = vmatpush.msra.mxu3 %v6748_v46 }
0x1702   :  { %5857 = vrcp.f32 %v1762_v19  ;;  %v1774_v23 = vand.u32 2147483648, %v1762_v19  ;;  %vm1768_vm8 = vweird.f32 %v1762_v19  ;;  %v1772_v55 = vand.u32 2147483647, %v1762_v19  ;;  %2030 = vmatpush.msra.mxu3 %v6746_v37 }
0x1704   :  { %v1775_v24 = vor.u32 1.1754944e-38, %v1774_v23  ;;  %vm1773_vm10 = vcmp.eq.f32.partialorder %v1772_v55, 8.507059e+37  ;;  %2031 = vmatpush.msra.mxu3 %v6751_v2 }
0x1705   :  { %v5681_v6 = vpop.permute.xlu1 %5680 }
0x1706   :  { %v6757_v38 = vunpack.i.h.bf16 %v5681_v6  ;;  %v6759_v39 = vunpack.i.l.bf16 %v5681_v6  ;;  %2032 = vmatpush.msra.mxu3 %v6753_v1 }
0x1708   :  { %v5858_v54 = vpop.eup %5857  ;;  %2220 = vmatpush.msrb.mxu3 %v6748_v46  ;;  %1973 = vmatpush.msrb.mxu2 %v6759_v39 }
0x1709   :  { %v1764_v20 = vmul.f32 %v5858_v54, %v1762_v19  ;;  %vm1769_vm7 = vweird.f32 %v5858_v54 }
0x170a   :  { %vm1770_vm9 = vmor %vm1768_vm8, %vm1769_vm7  ;;  %2221 = vmatpush.msrb.mxu3 %v6746_v37  ;;  %1974 = vmatpush.msrb.mxu2 %v6757_v38  ;;  %vm2830_vm8 = vcmask 253952  }
0x170b   :  { %v1765_v21 = vsub.f32 1.0, %v1764_v20 }
0x170c   :  { %2222 = vmatpush.msrb.mxu3 %v6751_v2  ;;  %1975 = vmatpush.msrb.mxu2 %v6765_v29 }
0x170d   :  { %v1766_v8 = vmul.f32 %v5858_v54, %v1765_v21  ;;  %v5696_v42 = vpop.permute.xlu1 %5695 }
0x170e   :  { %2223 = vmatpush.msrb.mxu3 %v6753_v1  ;;  %1976 = vmatpush.msrb.mxu2 %v6768_v30  ;;  %v6801_v45 = vunpack.i.l.bf16 %v5696_v42  ;;  %v6803_v47 = vunpack.i.h.bf16 %v5696_v42 }
0x170f   :  { %v1767_v22 = vadd.f32 %v5858_v54, %v1766_v8 }
0x1710   :  { %2176 = vmatpush.msra.mxu2 %v6759_v39 }
0x1711   :  { %v1771_v35 = vsel %vm1770_vm9, %v5858_v54, %v1767_v22  ;;  %vm2832_vm9 = vcmask 254977  }
0x1712   :  { %v1776_v7 = vsel %vm1773_vm10, %v1775_v24, %v1771_v35  ;;  %2177 = vmatpush.msra.mxu2 %v6757_v38 }
0x1714   :  { %2178 = vmatpush.msra.mxu2 %v6765_v29 }
0x1716   :  { %2179 = vmatpush.msra.mxu2 %v6768_v30 }
0x1759   :  { %v1795_v26 = vpop.permute.xlu2 %1794 }
0x175a   :  { %v1797_v10 = vmul.f32 %v1795_v26, %v1776_v7 }
0x175c   :  { %v1900_v28 = vrot.slane %v1797_v10, 6 }
0x175e   :  { %1901 = vrot.lane.b32.xlu2 %v1900_v28, %s6109_s21 }
0x1766   :  { %5690 = vrot.lane.b32.xlu2 %v6716_v51, %s6109_s21  ;;  %v1816_v51 = vpop.f32.mrf.mxu0 }
0x1767   :  { %v6829_v58 = vadd.f32 %v6826_v52, %v1816_v51 }
0x176e   :  { %v6832_v44 = vpop.f32.mrf.mxu0 }
0x17b8   :  { %v1902_v31 = vpop.permute.xlu2 %1901 }
0x17b9   :  { %5471 = vmatmul.msk.f32.vlgmr.msra.gmra.mxu1 %vm91_vm6, %v1902_v31  ;;  %5473 = vmatmul.msk.f32.vlgmr.msrb.gmra.mxu2 %vm91_vm6, %v1902_v31 }
0x17ba   :  { %5475 = vmatmul.msk.f32.vlgmr.msra.gmra.mxu3 %vm91_vm6, %v1902_v31  ;;  %2352 = vmatpush.msrb.mxu2 %v6759_v39 }
0x17bb   :  { %2396 = vmatpush.msra.mxu3 %v6748_v46  ;;  %2312 = vmatpush.msra.mxu1 %v6707_v3 }
0x17bc   :  { %2353 = vmatpush.msrb.mxu2 %v6757_v38 }
0x17bd   :  { %2397 = vmatpush.msra.mxu3 %v6746_v37  ;;  %2313 = vmatpush.msra.mxu1 %v6702_v25 }
0x17be   :  { %2354 = vmatpush.msrb.mxu2 %v6765_v29 }
0x17bf   :  { %2398 = vmatpush.msra.mxu3 %v6751_v2  ;;  %2314 = vmatpush.msra.mxu1 %v6721_v9 }
0x17c0   :  { %v5691_v41 = vpop.permute.xlu2 %5690  ;;  %2355 = vmatpush.msrb.mxu2 %v6768_v30 }
0x17c1   :  { %2399 = vmatpush.msra.mxu3 %v6753_v1  ;;  %v6795_v43 = vunpack.i.h.bf16 %v5691_v41  ;;  %v6797_v15 = vunpack.i.l.bf16 %v5691_v41  ;;  %2315 = vmatpush.msra.mxu1 %v6712_v50 }
0x17c3   :  { %2067 = vmatpush.msrb.mxu0 %v6797_v15 }
0x17c5   :  { %2068 = vmatpush.msrb.mxu0 %v6795_v43 }
0x17c7   :  { %2069 = vmatpush.msrb.mxu0 %v6801_v45 }
0x17c9   :  { %2070 = vmatpush.msrb.mxu0 %v6803_v47 }
0x17ca   :  { %5476 = vmatmul.msk.f32.vlgmr.msrb.gmra.mxu0 %vm91_vm6, %v1902_v31 }
0x17cb   :  { %2246 = vmatpush.msra.mxu0 %v6797_v15 }
0x17cd   :  { %2247 = vmatpush.msra.mxu0 %v6795_v43 }
0x17cf   :  { %2248 = vmatpush.msra.mxu0 %v6801_v45 }
0x17d1   :  { %2249 = vmatpush.msra.mxu0 %v6803_v47 }
0x17d3   :  { %2422 = vmatpush.msrb.mxu0 %v6797_v15 }
0x17d5   :  { %2423 = vmatpush.msrb.mxu0 %v6795_v43 }
0x17d7   :  { %2424 = vmatpush.msrb.mxu0 %v6801_v45 }
0x17d9   :  { %2425 = vmatpush.msrb.mxu0 %v6803_v47 }
0x1836   :  { %v1922_v63 = vpop.f32.mrf.mxu1 }
0x1837   :  { %v1925_v0 = vadd.f32 %v1922_v63, %v6829_v58 }
0x1839   :  { %v5472_v56 = vmul.f32 -1.442695, %v1925_v0 }
0x183c   :  { %v1978_v48 = vpop.f32.mrf.mxu2 }
0x183d   :  { %v2034_v49 = vpop.f32.mrf.mxu3  ;;  %1982 = vrot.lane.b32.xlu1 %v1978_v48, %s6109_s21 }
0x183e   :  { %2038 = vrot.lane.b32.xlu0 %v2034_v49, %s6105_s30  ;;  %v2100_v49 = vrot.slane %v6741_v62, 6 }
0x1847   :  { %v2072_v57 = vpop.f32.mrf.mxu0 }
0x18af   :  { %v1983_v55 = vpop.permute.xlu1 %1982 }
0x18b0   :  { %v2039_v12 = vpop.permute.xlu0 %2038  ;;  %v1985_v40 = vadd.f32 %v1983_v55, %v6829_v58  ;;  %v1837_v55 = vadd.f32 %v6826_v52, %v6836_v61 }
0x18b1   :  { %v2041_v36 = vadd.f32 %v2039_v12, %v6829_v58 }
0x18b2   :  { %v5474_v17 = vmul.f32 -1.442695, %v1985_v40 }
0x18b3   :  { %5859 = vtanh.f32 %v2041_v36 }
0x18b4   :  { %5861 = vpow2.f32 %v5472_v56 }
0x18b9   :  { %v5860_v60 = vpop.eup %5859 }
0x18ba   :  { %2104 = vrot.lane.b32.xlu2 %v5860_v60, %s6105_s30  ;;  %v5862_v34 = vpop.eup %5861 }
0x18bb   :  { %v1929_v59 = vadd.f32 1.0, %v5862_v34 }
0x18bd   :  { %5863 = vrcp.f32 %v1929_v59  ;;  %v1941_v19 = vand.u32 2147483648, %v1929_v59  ;;  %vm1935_vm12 = vweird.f32 %v1929_v59  ;;  %v1939_v54 = vand.u32 2147483647, %v1929_v59 }
0x18be   :  { %5865 = vpow2.f32 %v5474_v17 }
0x18bf   :  { %v1942_v21 = vor.u32 1.1754944e-38, %v1941_v19  ;;  %vm1940_vm14 = vcmp.eq.f32.partialorder %v1939_v54, 8.507059e+37 }
0x18c2   :  { %2076 = vrot.lane.b32.xlu2 %v2072_v57, %s6106_s10 }
0x18c3   :  { %v5864_v11 = vpop.eup %5863 }
0x18c4   :  { %v1931_v13 = vmul.f32 %v5864_v11, %v1929_v59  ;;  %vm1936_vm11 = vweird.f32 %v5864_v11  ;;  %v5866_v35 = vpop.eup %5865 }
0x18c5   :  { %vm1937_vm13 = vmor %vm1935_vm12, %vm1936_vm11  ;;  %v1989_v24 = vadd.f32 1.0, %v5866_v35 }
0x18c6   :  { %v1932_v14 = vsub.f32 1.0, %v1931_v13 }
0x18c7   :  { %5867 = vrcp.f32 %v1989_v24  ;;  %v2001_v27 = vand.u32 2147483648, %v1989_v24  ;;  %vm1995_vm0 = vweird.f32 %v1989_v24  ;;  %v1999_v31 = vand.u32 2147483647, %v1989_v24 }
0x18c8   :  { %v1933_v16 = vmul.f32 %v5864_v11, %v1932_v14 }
0x18c9   :  { %v2002_v42 = vor.u32 1.1754944e-38, %v2001_v27  ;;  %vm2000_vm2 = vcmp.eq.f32.partialorder %v1999_v31, 8.507059e+37 }
0x18ca   :  { %v1934_v18 = vadd.f32 %v5864_v11, %v1933_v16 }
0x18cc   :  { %v1938_v20 = vsel %vm1937_vm13, %v5864_v11, %v1934_v18 }
0x18cd   :  { %v1943_v8 = vsel %vm1940_vm14, %v1942_v21, %v1938_v20  ;;  %v5868_v7 = vpop.eup %5867 }
0x18ce   :  { %v1991_v26 = vmul.f32 %v5868_v7, %v1989_v24  ;;  %vm1996_vm15 = vweird.f32 %v5868_v7 }
0x18cf   :  { %vm1997_vm1 = vmor %vm1995_vm0, %vm1996_vm15 }
0x18d0   :  { %v1992_v10 = vsub.f32 1.0, %v1991_v26 }
0x18d2   :  { %v1993_v28 = vmul.f32 %v5868_v7, %v1992_v10 }
0x18d4   :  { %v1994_v6 = vadd.f32 %v5868_v7, %v1993_v28 }
0x18d6   :  { %v1998_v41 = vsel %vm1997_vm1, %v5868_v7, %v1994_v6 }
0x18d7   :  { %v2003_v48 = vsel %vm2000_vm2, %v2002_v42, %v1998_v41 }
0x18d8   :  { %v2102_v51 = vmul.f32 %v2100_v49, %v2003_v48 }
0x1914   :  { %v2105_v22 = vpop.permute.xlu2 %2104 }
0x1915   :  { %v2107_v23 = vmul.f32 %v2105_v22, %v1943_v8 }
0x1917   :  { %2109 = vrot.lane.b32.xlu0 %v2107_v23, %s6109_s21 }
0x191c   :  { %v2077_v57 = vpop.permute.xlu2 %2076 }
0x191d   :  { %v2079_v63 = vadd.f32 %v2077_v57, %v6829_v58 }
0x191f   :  { %v5477_v0 = vmul.f32 -1.442695, %v2079_v63 }
0x1989   :  { %v2110_v12 = vpop.permute.xlu0 %2109 }
0x198a   :  { %v6842_v36 = vadd.f32 %v2110_v12, %v2102_v51 }
0x198c   :  { %5869 = vtanh.f32 %v6842_v36 }
0x198d   :  { %5871 = vpow2.f32 %v5477_v0 }
0x1992   :  { %v5870_v60 = vpop.eup %5869 }
0x1993   :  { %2115 = vrot.lane.b32.xlu1 %v5870_v60, %s6105_s30  ;;  %v5872_v56 = vpop.eup %5871 }
0x1994   :  { %v2083_v34 = vadd.f32 1.0, %v5872_v56 }
0x1996   :  { %5873 = vrcp.f32 %v2083_v34  ;;  %v2095_v16 = vand.u32 2147483648, %v2083_v34  ;;  %vm2089_vm4 = vweird.f32 %v2083_v34  ;;  %v2093_v18 = vand.u32 2147483647, %v2083_v34 }
0x1998   :  { %v2096_v54 = vor.u32 1.1754944e-38, %v2095_v16  ;;  %vm2094_vm7 = vcmp.eq.f32.partialorder %v2093_v18, 8.507059e+37 }
0x199c   :  { %v5874_v59 = vpop.eup %5873 }
0x199d   :  { %v2085_v11 = vmul.f32 %v5874_v59, %v2083_v34  ;;  %vm2090_vm3 = vweird.f32 %v5874_v59 }
0x199e   :  { %vm2091_vm5 = vmor %vm2089_vm4, %vm2090_vm3 }
0x199f   :  { %v2086_v62 = vsub.f32 1.0, %v2085_v11 }
0x19a1   :  { %v2087_v13 = vmul.f32 %v5874_v59, %v2086_v62 }
0x19a3   :  { %v2088_v14 = vadd.f32 %v5874_v59, %v2087_v13 }
0x19a5   :  { %v2092_v19 = vsel %vm2091_vm5, %v5874_v59, %v2088_v14 }
0x19a6   :  { %v2097_v58 = vsel %vm2094_vm7, %v2096_v54, %v2092_v19 }
0x1a05   :  { %v2116_v20 = vpop.permute.xlu1 %2115 }
0x1a06   :  { %v2118_v21 = vmul.f32 %v2116_v20, %v2097_v58 }
0x1a08   :  { %2120 = vrot.lane.b32.xlu0 %v2118_v21, %s6109_s21 }
0x1a7a   :  { %v2121_v8 = vpop.permute.xlu0 %2120 }
0x1a7b   :  { %2831 = vst.msk [vmem:[#allocation2 + $0x6] sm:$0x1] %vm2830_vm8, %v2121_v8  ;;  %5478 = vmatmul.msk.f32.vlgmr.msrb.gmra.mxu1 %vm91_vm6, %v2121_v8  ;;  %5480 = vmatmul.msk.f32.vlgmr.msra.gmra.mxu2 %vm91_vm6, %v2121_v8 }
0x1a7c   :  { %5482 = vmatmul.msk.f32.vlgmr.msrb.gmra.mxu3 %vm91_vm6, %v2121_v8  ;;  %5483 = vmatmul.msk.f32.vlgmr.msra.gmra.mxu0 %vm91_vm6, %v2121_v8  ;;  %2833 = vst.msk [vmem:[#allocation2 + $0x12] sm:$0x2] %vm2832_vm9, %v2121_v8 }
0x1a7d   :  { %2528 = vmatpush.msra.mxu2 %v6759_v39  ;;  %2572 = vmatpush.msrb.mxu3 %v6748_v46 }
0x1a7e   :  { %2598 = vmatpush.msra.mxu0 %v6797_v15  ;;  %2488 = vmatpush.msrb.mxu1 %v6707_v3 }
0x1a7f   :  { %2529 = vmatpush.msra.mxu2 %v6757_v38  ;;  %2573 = vmatpush.msrb.mxu3 %v6746_v37 }
0x1a80   :  { %2599 = vmatpush.msra.mxu0 %v6795_v43  ;;  %2489 = vmatpush.msrb.mxu1 %v6702_v25 }
0x1a81   :  { %2530 = vmatpush.msra.mxu2 %v6765_v29  ;;  %2574 = vmatpush.msrb.mxu3 %v6751_v2 }
0x1a82   :  { %2600 = vmatpush.msra.mxu0 %v6801_v45  ;;  %2490 = vmatpush.msrb.mxu1 %v6721_v9 }
0x1a83   :  { %2531 = vmatpush.msra.mxu2 %v6768_v30  ;;  %2575 = vmatpush.msrb.mxu3 %v6753_v1 }
0x1a84   :  { %2601 = vmatpush.msra.mxu0 %v6803_v47  ;;  %2491 = vmatpush.msrb.mxu1 %v6712_v50 }
0x1af8   :  { %v2141_v7 = vpop.f32.mrf.mxu1 }
0x1af9   :  { %v2251_v24 = vpop.f32.mrf.mxu0  ;;  %v2144_v26 = vadd.f32 %v2141_v7, %v1837_v55 }
0x1afb   :  { %v5479_v10 = vmul.f32 -1.442695, %v2144_v26 }
0x1afe   :  { %v2181_v22 = vpop.f32.mrf.mxu2 }
0x1aff   :  { %v2225_v23 = vpop.f32.mrf.mxu3  ;;  %2185 = vrot.lane.b32.xlu0 %v2181_v22, %s6109_s21 }
0x1b00   :  { %2229 = vrot.lane.b32.xlu2 %v2225_v23, %s6105_s30 }
0x1b5a   :  { %v2230_v40 = vpop.permute.xlu2 %2229 }
0x1b5b   :  { %v2232_v17 = vadd.f32 %v2230_v40, %v1837_v55 }
0x1b5d   :  { %5875 = vtanh.f32 %v2232_v17 }
0x1b5e   :  { %5877 = vpow2.f32 %v5479_v10 }
0x1b63   :  { %v5876_v35 = vpop.eup %5875 }
0x1b64   :  { %2280 = vrot.lane.b32.xlu1 %v5876_v35, %s6105_s30  ;;  %v5878_v28 = vpop.eup %5877 }
0x1b65   :  { %v2148_v6 = vadd.f32 1.0, %v5878_v28 }
0x1b67   :  { %5879 = vrcp.f32 %v2148_v6  ;;  %v2160_v48 = vand.u32 2147483648, %v2148_v6  ;;  %vm2154_vm11 = vweird.f32 %v2148_v6  ;;  %v2158_v49 = vand.u32 2147483647, %v2148_v6 }
0x1b69   :  { %v2161_v12 = vor.u32 1.1754944e-38, %v2160_v48  ;;  %vm2159_vm13 = vcmp.eq.f32.partialorder %v2158_v49, 8.507059e+37 }
0x1b6c   :  { %2255 = vrot.lane.b32.xlu1 %v2251_v24, %s6106_s10 }
0x1b6d   :  { %v5880_v27 = vpop.eup %5879 }
0x1b6e   :  { %v2150_v31 = vmul.f32 %v5880_v27, %v2148_v6  ;;  %vm2155_vm10 = vweird.f32 %v5880_v27 }
0x1b6f   :  { %vm2156_vm12 = vmor %vm2154_vm11, %vm2155_vm10 }
0x1b70   :  { %v2151_v41 = vsub.f32 1.0, %v2150_v31 }
0x1b71   :  { %v2186_v0 = vpop.permute.xlu0 %2185 }
0x1b72   :  { %v2152_v61 = vmul.f32 %v5880_v27, %v2151_v41  ;;  %v2188_v56 = vadd.f32 %v2186_v0, %v1837_v55 }
0x1b74   :  { %v2153_v42 = vadd.f32 %v5880_v27, %v2152_v61  ;;  %v5481_v34 = vmul.f32 -1.442695, %v2188_v56 }
0x1b76   :  { %v2157_v51 = vsel %vm2156_vm12, %v5880_v27, %v2153_v42  ;;  %5881 = vpow2.f32 %v5481_v34 }
0x1b77   :  { %v2162_v57 = vsel %vm2159_vm13, %v2161_v12, %v2157_v51 }
0x1b7c   :  { %v5882_v59 = vpop.eup %5881 }
0x1b7d   :  { %v2192_v11 = vadd.f32 1.0, %v5882_v59 }
0x1b7f   :  { %5883 = vrcp.f32 %v2192_v11  ;;  %v2204_v19 = vand.u32 2147483648, %v2192_v11  ;;  %vm2198_vm15 = vweird.f32 %v2192_v11  ;;  %v2202_v54 = vand.u32 2147483647, %v2192_v11 }
0x1b81   :  { %v2205_v58 = vor.u32 1.1754944e-38, %v2204_v19  ;;  %vm2203_vm1 = vcmp.eq.f32.partialorder %v2202_v54, 8.507059e+37 }
0x1b85   :  { %v5884_v62 = vpop.eup %5883 }
0x1b86   :  { %v2194_v13 = vmul.f32 %v5884_v62, %v2192_v11  ;;  %vm2199_vm14 = vweird.f32 %v5884_v62 }
0x1b87   :  { %vm2200_vm0 = vmor %vm2198_vm15, %vm2199_vm14 }
0x1b88   :  { %v2195_v14 = vsub.f32 1.0, %v2194_v13 }
0x1b8a   :  { %v2196_v16 = vmul.f32 %v5884_v62, %v2195_v14 }
0x1b8c   :  { %v2197_v18 = vadd.f32 %v5884_v62, %v2196_v16 }
0x1b8e   :  { %v2201_v20 = vsel %vm2200_vm0, %v5884_v62, %v2197_v18 }
0x1b8f   :  { %v2206_v21 = vsel %vm2203_vm1, %v2205_v58, %v2201_v20 }
0x1b90   :  { %v2278_v8 = vmul.f32 %v2206_v21, %v6842_v36 }
0x1bd6   :  { %v2281_v60 = vpop.permute.xlu1 %2280 }
0x1bd7   :  { %v2283_v63 = vmul.f32 %v2281_v60, %v2162_v57 }
0x1bd9   :  { %2285 = vrot.lane.b32.xlu2 %v2283_v63, %s6109_s21 }
0x1bde   :  { %v2256_v17 = vpop.permute.xlu1 %2255 }
0x1bdf   :  { %v2258_v35 = vadd.f32 %v2256_v17, %v1837_v55 }
0x1be1   :  { %v5484_v24 = vmul.f32 -1.442695, %v2258_v35 }
0x1c33   :  { %v2286_v22 = vpop.permute.xlu2 %2285 }
0x1c34   :  { %v6878_v23 = vadd.f32 %v2286_v22, %v2278_v8 }
0x1c36   :  { %5885 = vtanh.f32 %v6878_v23 }
0x1c37   :  { %5887 = vpow2.f32 %v5484_v24 }
0x1c3c   :  { %v5886_v40 = vpop.eup %5885 }
0x1c3d   :  { %2291 = vrot.lane.b32.xlu0 %v5886_v40, %s6105_s30  ;;  %v5888_v7 = vpop.eup %5887 }
0x1c3e   :  { %v2262_v26 = vadd.f32 1.0, %v5888_v7 }
0x1c40   :  { %5889 = vrcp.f32 %v2262_v26  ;;  %v2274_v31 = vand.u32 2147483648, %v2262_v26  ;;  %vm2268_vm3 = vweird.f32 %v2262_v26  ;;  %v2272_v41 = vand.u32 2147483647, %v2262_v26 }
0x1c42   :  { %v2275_v42 = vor.u32 1.1754944e-38, %v2274_v31  ;;  %vm2273_vm5 = vcmp.eq.f32.partialorder %v2272_v41, 8.507059e+37 }
0x1c46   :  { %v5890_v10 = vpop.eup %5889 }
0x1c47   :  { %v2264_v28 = vmul.f32 %v5890_v10, %v2262_v26  ;;  %vm2269_vm2 = vweird.f32 %v5890_v10 }
0x1c48   :  { %vm2270_vm4 = vmor %vm2268_vm3, %vm2269_vm2 }
0x1c49   :  { %v2265_v6 = vsub.f32 1.0, %v2264_v28 }
0x1c4b   :  { %v2266_v27 = vmul.f32 %v5890_v10, %v2265_v6 }
0x1c4d   :  { %v2267_v36 = vadd.f32 %v5890_v10, %v2266_v27 }
0x1c4f   :  { %v2271_v61 = vsel %vm2270_vm4, %v5890_v10, %v2267_v36 }
0x1c50   :  { %v2276_v48 = vsel %vm2273_vm5, %v2275_v42, %v2271_v61 }
0x1caf   :  { %v2292_v55 = vpop.permute.xlu0 %2291 }
0x1cb0   :  { %v2294_v49 = vmul.f32 %v2292_v55, %v2276_v48 }
0x1cb2   :  { %2296 = vrot.lane.b32.xlu2 %v2294_v49, %s6109_s21 }
0x1d0c   :  { %v2297_v51 = vpop.permute.xlu2 %2296 }
0x1d0d   :  { %2835 = vst.msk [vmem:[#allocation2 + $0x7] sm:$0x1] %vm2830_vm8, %v2297_v51  ;;  %5485 = vmatmul.msk.f32.vlgmr.msra.gmra.mxu1 %vm91_vm6, %v2297_v51  ;;  %5487 = vmatmul.msk.f32.vlgmr.msrb.gmra.mxu2 %vm91_vm6, %v2297_v51 }
0x1d0e   :  { %5489 = vmatmul.msk.f32.vlgmr.msra.gmra.mxu3 %vm91_vm6, %v2297_v51  ;;  %5490 = vmatmul.msk.f32.vlgmr.msrb.gmra.mxu0 %vm91_vm6, %v2297_v51  ;;  %2836 = vst.msk [vmem:[#allocation2 + $0x13] sm:$0x2] %vm2832_vm9, %v2297_v51 }
0x1d0f   :  { %2704 = vmatpush.msrb.mxu2 %v6759_v39  ;;  %2748 = vmatpush.msra.mxu3 %v6748_v46 }
0x1d10   :  { %2774 = vmatpush.msrb.mxu0 %v6797_v15  ;;  %2664 = vmatpush.msra.mxu1 %v6707_v3 }
0x1d11   :  { %2705 = vmatpush.msrb.mxu2 %v6757_v38  ;;  %2749 = vmatpush.msra.mxu3 %v6746_v37 }
0x1d12   :  { %2775 = vmatpush.msrb.mxu0 %v6795_v43  ;;  %2665 = vmatpush.msra.mxu1 %v6702_v25  ;;  %v1857_v25 = vadd.f32 %v6826_v52, %v6817_v4 }
0x1d13   :  { %2706 = vmatpush.msrb.mxu2 %v6765_v29  ;;  %2750 = vmatpush.msra.mxu3 %v6751_v2 }
0x1d14   :  { %2776 = vmatpush.msrb.mxu0 %v6801_v45  ;;  %2666 = vmatpush.msra.mxu1 %v6721_v9 }
0x1d15   :  { %2707 = vmatpush.msrb.mxu2 %v6768_v30  ;;  %2751 = vmatpush.msra.mxu3 %v6753_v1 }
0x1d16   :  { %2777 = vmatpush.msrb.mxu0 %v6803_v47  ;;  %2667 = vmatpush.msra.mxu1 %v6712_v50 }
0x1d8a   :  { %v2317_v38 = vpop.f32.mrf.mxu1 }
0x1d8b   :  { %v2427_v1 = vpop.f32.mrf.mxu0  ;;  %v2320_v50 = vadd.f32 %v2317_v38, %v1857_v25 }
0x1d8d   :  { %v5486_v39 = vmul.f32 -1.442695, %v2320_v50 }
0x1d90   :  { %v2357_v3 = vpop.f32.mrf.mxu2 }
0x1d91   :  { %v2401_v37 = vpop.f32.mrf.mxu3  ;;  %2361 = vrot.lane.b32.xlu2 %v2357_v3, %s6109_s21 }
0x1d92   :  { %2405 = vrot.lane.b32.xlu1 %v2401_v37, %s6105_s30 }
0x1deb   :  { %v2362_v59 = vpop.permute.xlu2 %2361 }
0x1dec   :  { %v2364_v11 = vadd.f32 %v2362_v59, %v1857_v25 }
0x1dee   :  { %v5488_v62 = vmul.f32 -1.442695, %v2364_v11 }
0x1e04   :  { %v2406_v46 = vpop.permute.xlu1 %2405 }
0x1e05   :  { %v2408_v2 = vadd.f32 %v2406_v46, %v1857_v25 }
0x1e07   :  { %5891 = vtanh.f32 %v2408_v2 }
0x1e08   :  { %5893 = vpow2.f32 %v5486_v39 }
0x1e0d   :  { %v5892_v9 = vpop.eup %5891 }
0x1e0e   :  { %2456 = vrot.lane.b32.xlu0 %v5892_v9, %s6105_s30  ;;  %v5894_v29 = vpop.eup %5893  ;;  %v1877_v9 = vadd.f32 %v6826_v52, %v6819_v5 }
0x1e0f   :  { %v2324_v30 = vadd.f32 1.0, %v5894_v29 }
0x1e11   :  { %5895 = vrcp.f32 %v2324_v30  ;;  %v2336_v12 = vand.u32 2147483648, %v2324_v30  ;;  %vm2330_vm10 = vweird.f32 %v2324_v30  ;;  %v2334_v60 = vand.u32 2147483647, %v2324_v30 }
0x1e12   :  { %5897 = vpow2.f32 %v5488_v62 }
0x1e13   :  { %v2337_v63 = vor.u32 1.1754944e-38, %v2336_v12  ;;  %vm2335_vm12 = vcmp.eq.f32.partialorder %v2334_v60, 8.507059e+37 }
0x1e16   :  { %2431 = vrot.lane.b32.xlu0 %v2427_v1, %s6106_s10 }
0x1e17   :  { %v5896_v43 = vpop.eup %5895 }
0x1e18   :  { %v2326_v15 = vmul.f32 %v5896_v43, %v2324_v30  ;;  %vm2331_vm7 = vweird.f32 %v5896_v43  ;;  %v5898_v13 = vpop.eup %5897 }
0x1e19   :  { %vm2332_vm11 = vmor %vm2330_vm10, %vm2331_vm7  ;;  %v2368_v14 = vadd.f32 1.0, %v5898_v13 }
0x1e1a   :  { %v2327_v45 = vsub.f32 1.0, %v2326_v15 }
0x1e1b   :  { %5899 = vrcp.f32 %v2368_v14  ;;  %v2380_v58 = vand.u32 2147483648, %v2368_v14  ;;  %vm2374_vm14 = vweird.f32 %v2368_v14  ;;  %v2378_v21 = vand.u32 2147483647, %v2368_v14 }
0x1e1c   :  { %v2328_v47 = vmul.f32 %v5896_v43, %v2327_v45 }
0x1e1d   :  { %v2381_v22 = vor.u32 1.1754944e-38, %v2380_v58  ;;  %vm2379_vm0 = vcmp.eq.f32.partialorder %v2378_v21, 8.507059e+37 }
0x1e1e   :  { %v2329_v4 = vadd.f32 %v5896_v43, %v2328_v47 }
0x1e20   :  { %v2333_v57 = vsel %vm2332_vm11, %v5896_v43, %v2329_v4 }
0x1e21   :  { %v2338_v56 = vsel %vm2335_vm12, %v2337_v63, %v2333_v57  ;;  %v5900_v16 = vpop.eup %5899 }
0x1e22   :  { %v2370_v18 = vmul.f32 %v5900_v16, %v2368_v14  ;;  %vm2375_vm13 = vweird.f32 %v5900_v16 }
0x1e23   :  { %vm2376_vm15 = vmor %vm2374_vm14, %vm2375_vm13 }
0x1e24   :  { %v2371_v19 = vsub.f32 1.0, %v2370_v18 }
0x1e26   :  { %v2372_v54 = vmul.f32 %v5900_v16, %v2371_v19 }
0x1e28   :  { %v2373_v20 = vadd.f32 %v5900_v16, %v2372_v54 }
0x1e2a   :  { %v2377_v8 = vsel %vm2376_vm15, %v5900_v16, %v2373_v20 }
0x1e2b   :  { %v2382_v40 = vsel %vm2379_vm0, %v2381_v22, %v2377_v8 }
0x1e2c   :  { %v2454_v17 = vmul.f32 %v2382_v40, %v6878_v23 }
0x1e80   :  { %v2457_v0 = vpop.permute.xlu0 %2456 }
0x1e81   :  { %v2459_v34 = vmul.f32 %v2457_v0, %v2338_v56 }
0x1e83   :  { %2461 = vrot.lane.b32.xlu1 %v2459_v34, %s6109_s21 }
0x1e88   :  { %v2432_v26 = vpop.permute.xlu0 %2431 }
0x1e89   :  { %v2434_v10 = vadd.f32 %v2432_v26, %v1857_v25 }
0x1e8b   :  { %v5491_v28 = vmul.f32 -1.442695, %v2434_v10 }
0x1ef5   :  { %v2462_v35 = vpop.permute.xlu1 %2461 }
0x1ef6   :  { %v6913_v24 = vadd.f32 %v2462_v35, %v2454_v17 }
0x1ef8   :  { %5901 = vtanh.f32 %v6913_v24 }
0x1ef9   :  { %5903 = vpow2.f32 %v5491_v28 }
0x1efe   :  { %v5902_v7 = vpop.eup %5901 }
0x1eff   :  { %2467 = vrot.lane.b32.xlu2 %v5902_v7, %s6105_s30  ;;  %v5904_v6 = vpop.eup %5903 }
0x1f00   :  { %v2438_v27 = vadd.f32 1.0, %v5904_v6 }
0x1f02   :  { %5905 = vrcp.f32 %v2438_v27  ;;  %v2450_v42 = vand.u32 2147483648, %v2438_v27  ;;  %vm2444_vm2 = vweird.f32 %v2438_v27  ;;  %v2448_v48 = vand.u32 2147483647, %v2438_v27 }
0x1f04   :  { %v2451_v49 = vor.u32 1.1754944e-38, %v2450_v42  ;;  %vm2449_vm4 = vcmp.eq.f32.partialorder %v2448_v48, 8.507059e+37 }
0x1f08   :  { %v5906_v36 = vpop.eup %5905 }
0x1f09   :  { %v2440_v31 = vmul.f32 %v5906_v36, %v2438_v27  ;;  %vm2445_vm1 = vweird.f32 %v5906_v36 }
0x1f0a   :  { %vm2446_vm3 = vmor %vm2444_vm2, %vm2445_vm1 }
0x1f0b   :  { %v2441_v41 = vsub.f32 1.0, %v2440_v31 }
0x1f0d   :  { %v2442_v61 = vmul.f32 %v5906_v36, %v2441_v41 }
0x1f0f   :  { %v2443_v23 = vadd.f32 %v5906_v36, %v2442_v61 }
0x1f11   :  { %v2447_v55 = vsel %vm2446_vm3, %v5906_v36, %v2443_v23 }
0x1f12   :  { %v2452_v51 = vsel %vm2449_vm4, %v2451_v49, %v2447_v55 }
0x1f59   :  { %v2468_v3 = vpop.permute.xlu2 %2467 }
0x1f5a   :  { %v2470_v37 = vmul.f32 %v2468_v3, %v2452_v51 }
0x1f5c   :  { %2472 = vrot.lane.b32.xlu1 %v2470_v37, %s6109_s21 }
0x1fce   :  { %v2473_v25 = vpop.permute.xlu1 %2472 }
0x1fcf   :  { %2838 = vst.msk [vmem:[#allocation2 + $0x8] sm:$0x1] %vm2830_vm8, %v2473_v25  ;;  %5492 = vmatmul.msk.f32.vlgmr.msrb.gmra.mxu1 %vm91_vm6, %v2473_v25  ;;  %5494 = vmatmul.msk.f32.vlgmr.msra.gmra.mxu2 %vm91_vm6, %v2473_v25 }
0x1fd0   :  { %5496 = vmatmul.msk.f32.vlgmr.msrb.gmra.mxu3 %vm91_vm6, %v2473_v25  ;;  %5497 = vmatmul.msk.f32.vlgmr.msra.gmra.mxu0 %vm91_vm6, %v2473_v25  ;;  %2839 = vst.msk [vmem:[#allocation2 + $0x14] sm:$0x2] %vm2832_vm9, %v2473_v25 }
0x204c   :  { %v2493_v29 = vpop.f32.mrf.mxu1 }
0x204d   :  { %v2603_v39 = vpop.f32.mrf.mxu0  ;;  %v2496_v30 = vadd.f32 %v2493_v29, %v1877_v9 }
0x204f   :  { %v5493_v43 = vmul.f32 -1.442695, %v2496_v30 }
0x2052   :  { %v2533_v46 = vpop.f32.mrf.mxu2 }
0x2053   :  { %v2577_v2 = vpop.f32.mrf.mxu3  ;;  %2537 = vrot.lane.b32.xlu1 %v2533_v46, %s6109_s21 }
0x2054   :  { %2581 = vrot.lane.b32.xlu0 %v2577_v2, %s6105_s30 }
0x20c5   :  { %v2538_v62 = vpop.permute.xlu1 %2537 }
0x20c6   :  { %v2582_v1 = vpop.permute.xlu0 %2581  ;;  %v2540_v13 = vadd.f32 %v2538_v62, %v1877_v9 }
0x20c7   :  { %v2584_v38 = vadd.f32 %v2582_v1, %v1877_v9 }
0x20c8   :  { %v5495_v14 = vmul.f32 -1.442695, %v2540_v13 }
0x20c9   :  { %5907 = vtanh.f32 %v2584_v38 }
0x20ca   :  { %5909 = vpow2.f32 %v5493_v43  ;;  %v6955_v43 = vld [vmem:[%s8041_s4] ss:$0 sm:$0xff] }
0x20cf   :  { %v5908_v50 = vpop.eup %5907 }
0x20d0   :  { %2632 = vrot.lane.b32.xlu2 %v5908_v50, %s6105_s30  ;;  %v5910_v15 = vpop.eup %5909  ;;  %v6948_v50 = vadd.f32 %v6826_v52, %v6832_v44 }
0x20d1   :  { %v2500_v45 = vadd.f32 1.0, %v5910_v15  ;;  %v86_v15 = vadd.f32 %v6955_v43, %v6480_v32 }
0x20d3   :  { %5911 = vrcp.f32 %v2500_v45  ;;  %v2512_v57 = vand.u32 2147483648, %v2500_v45  ;;  %vm2506_vm7 = vweird.f32 %v2500_v45  ;;  %v2510_v63 = vand.u32 2147483647, %v2500_v45 }
0x20d4   :  { %5913 = vpow2.f32 %v5495_v14 }
0x20d5   :  { %v2513_v56 = vor.u32 1.1754944e-38, %v2512_v57  ;;  %vm2511_vm11 = vcmp.eq.f32.partialorder %v2510_v63, 8.507059e+37 }
0x20d8   :  { %2607 = vrot.lane.b32.xlu2 %v2603_v39, %s6106_s10 }
0x20d9   :  { %v5912_v47 = vpop.eup %5911 }
0x20da   :  { %v2502_v4 = vmul.f32 %v5912_v47, %v2500_v45  ;;  %vm2507_vm5 = vweird.f32 %v5912_v47  ;;  %v5914_v16 = vpop.eup %5913  ;;  %v92_v45 = vsel %vm91_vm6, %v86_v15, 0.0 }
0x20db   :  { %vm2508_vm10 = vmor %vm2506_vm7, %vm2507_vm5  ;;  %v2544_v18 = vadd.f32 1.0, %v5914_v16 }
0x20dc   :  { %v2503_v12 = vsub.f32 1.0, %v2502_v4 }
0x20dd   :  { %5915 = vrcp.f32 %v2544_v18  ;;  %v2556_v8 = vand.u32 2147483648, %v2544_v18  ;;  %vm2550_vm13 = vweird.f32 %v2544_v18  ;;  %v2554_v22 = vand.u32 2147483647, %v2544_v18 }
0x20de   :  { %v2504_v5 = vmul.f32 %v5912_v47, %v2503_v12 }
0x20df   :  { %v2557_v17 = vor.u32 1.1754944e-38, %v2556_v8  ;;  %vm2555_vm15 = vcmp.eq.f32.partialorder %v2554_v22, 8.507059e+37 }
0x20e0   :  { %v2505_v60 = vadd.f32 %v5912_v47, %v2504_v5 }
0x20e2   :  { %v2509_v0 = vsel %vm2508_vm10, %v5912_v47, %v2505_v60 }
0x20e3   :  { %v2514_v59 = vsel %vm2511_vm11, %v2513_v56, %v2509_v0  ;;  %v5916_v19 = vpop.eup %5915 }
0x20e4   :  { %v2546_v54 = vmul.f32 %v5916_v19, %v2544_v18  ;;  %vm2551_vm12 = vweird.f32 %v5916_v19 }
0x20e5   :  { %vm2552_vm14 = vmor %vm2550_vm13, %vm2551_vm12 }
0x20e6   :  { %v2547_v20 = vsub.f32 1.0, %v2546_v54 }
0x20e8   :  { %v2548_v58 = vmul.f32 %v5916_v19, %v2547_v20 }
0x20ea   :  { %v2549_v21 = vadd.f32 %v5916_v19, %v2548_v58 }
0x20ec   :  { %v2553_v40 = vsel %vm2552_vm14, %v5916_v19, %v2549_v21 }
0x20ed   :  { %v2558_v35 = vsel %vm2555_vm15, %v2557_v17, %v2553_v40 }
0x20ee   :  { %v2630_v7 = vmul.f32 %v2558_v35, %v6913_v24 }
0x212a   :  { %v2633_v34 = vpop.permute.xlu2 %2632 }
0x212b   :  { %v2635_v11 = vmul.f32 %v2633_v34, %v2514_v59 }
0x212d   :  { %2637 = vrot.lane.b32.xlu0 %v2635_v11, %s6109_s21 }
0x2132   :  { %v2608_v6 = vpop.permute.xlu2 %2607 }
0x2133   :  { %v2610_v27 = vadd.f32 %v2608_v6, %v1877_v9 }
0x2135   :  { %v5498_v36 = vmul.f32 -1.442695, %v2610_v27 }
0x219f   :  { %v2638_v26 = vpop.permute.xlu0 %2637 }
0x21a0   :  { %v6932_v10 = vadd.f32 %v2638_v26, %v2630_v7 }
0x21a2   :  { %5917 = vtanh.f32 %v6932_v10 }
0x21a3   :  { %5919 = vpow2.f32 %v5498_v36 }
0x21a8   :  { %v5918_v28 = vpop.eup %5917 }
0x21a9   :  { %2643 = vrot.lane.b32.xlu1 %v5918_v28, %s6105_s30  ;;  %v5920_v31 = vpop.eup %5919 }
0x21aa   :  { %v2614_v41 = vadd.f32 1.0, %v5920_v31 }
0x21ac   :  { %5921 = vrcp.f32 %v2614_v41  ;;  %v2626_v55 = vand.u32 2147483648, %v2614_v41  ;;  %vm2620_vm1 = vweird.f32 %v2614_v41  ;;  %v2624_v49 = vand.u32 2147483647, %v2614_v41 }
0x21ae   :  { %v2627_v3 = vor.u32 1.1754944e-38, %v2626_v55  ;;  %vm2625_vm3 = vcmp.eq.f32.partialorder %v2624_v49, 8.507059e+37 }
0x21b2   :  { %v5922_v61 = vpop.eup %5921 }
0x21b3   :  { %v2616_v23 = vmul.f32 %v5922_v61, %v2614_v41  ;;  %vm2621_vm0 = vweird.f32 %v5922_v61 }
0x21b4   :  { %vm2622_vm2 = vmor %vm2620_vm1, %vm2621_vm0 }
0x21b5   :  { %v2617_v42 = vsub.f32 1.0, %v2616_v23 }
0x21b7   :  { %v2618_v48 = vmul.f32 %v5922_v61, %v2617_v42 }
0x21b9   :  { %v2619_v24 = vadd.f32 %v5922_v61, %v2618_v48 }
0x21bb   :  { %v2623_v51 = vsel %vm2622_vm2, %v5922_v61, %v2619_v24 }
0x21bc   :  { %v2628_v37 = vsel %vm2625_vm3, %v2627_v3, %v2623_v51  ;;  %v6975_v3 = vld [vmem:[%s8042_s2 + $0x140] sm:$0xff] }
0x21bd   :  { %2900 = vmatpush.msrb.mxu1 %v6975_v3 }
0x221b   :  { %v2644_v25 = vpop.permute.xlu1 %2643 }
0x221c   :  { %v2646_v46 = vmul.f32 %v2644_v25, %v2628_v37  ;;  %v6986_v25 = vld [vmem:[%s8042_s2 + $0x80] sm:$0xff] }
0x221e   :  { %2648 = vrot.lane.b32.xlu0 %v2646_v46, %s6109_s21 }
0x2290   :  { %v2649_v2 = vpop.permute.xlu0 %2648 }
0x2291   :  { %2841 = vst.msk [vmem:[#allocation2 + $0x9] sm:$0x1] %vm2830_vm8, %v2649_v2  ;;  %5499 = vmatmul.msk.f32.vlgmr.msra.gmra.mxu1 %vm91_vm6, %v2649_v2  ;;  %5501 = vmatmul.msk.f32.vlgmr.msrb.gmra.mxu2 %vm91_vm6, %v2649_v2 }
0x2292   :  { %5503 = vmatmul.msk.f32.vlgmr.msra.gmra.mxu3 %vm91_vm6, %v2649_v2  ;;  %5504 = vmatmul.msk.f32.vlgmr.msrb.gmra.mxu0 %vm91_vm6, %v2649_v2  ;;  %2842 = vst.msk [vmem:[#allocation2 + $0x15] sm:$0x2] %vm2832_vm9, %v2649_v2  ;;  %v6993_v2 = vld [vmem:[%s8042_s2 + $0x20] sm:$0xff] }
0x230e   :  { %v2669_v52 = vpop.f32.mrf.mxu1 }
0x230f   :  { %v2779_v38 = vpop.f32.mrf.mxu0  ;;  %v2672_v44 = vadd.f32 %v2669_v52, %v6948_v50 }
0x2311   :  { %v5500_v47 = vmul.f32 -1.442695, %v2672_v44 }
0x2314   :  { %v2709_v9 = vpop.f32.mrf.mxu2 }
0x2315   :  { %v2753_v1 = vpop.f32.mrf.mxu3  ;;  %2713 = vrot.lane.b32.xlu0 %v2709_v9, %s6109_s21 }
0x2316   :  { %2757 = vrot.lane.b32.xlu2 %v2753_v1, %s6105_s30 }
0x231d   :  { %2783 = vrot.lane.b32.xlu0 %v2779_v38, %s6106_s10 }
0x2370   :  { %v2758_v39 = vpop.permute.xlu2 %2757 }
0x2371   :  { %v2760_v29 = vadd.f32 %v2758_v39, %v6948_v50 }
0x2373   :  { %5923 = vtanh.f32 %v2760_v29 }
0x2374   :  { %5925 = vpow2.f32 %v5500_v47 }
0x2379   :  { %v5924_v30 = vpop.eup %5923 }
0x237a   :  { %2808 = vrot.lane.b32.xlu1 %v5924_v30, %s6105_s30  ;;  %v5926_v4 = vpop.eup %5925 }
0x237b   :  { %v2676_v12 = vadd.f32 1.0, %v5926_v4 }
0x237d   :  { %5927 = vrcp.f32 %v2676_v12  ;;  %v2688_v56 = vand.u32 2147483648, %v2676_v12  ;;  %vm2682_vm5 = vweird.f32 %v2676_v12  ;;  %v2686_v32 = vand.u32 2147483647, %v2676_v12 }
0x237f   :  { %v2689_v59 = vor.u32 1.1754944e-38, %v2688_v56  ;;  %vm2687_vm10 = vcmp.eq.f32.partialorder %v2686_v32, 8.507059e+37  ;;  %v7007_v32 = vld [vmem:[%s8041_s4 + $0x2] ss:$0 sm:$0xff] }
0x2383   :  { %v5928_v5 = vpop.eup %5927 }
0x2384   :  { %v2678_v60 = vmul.f32 %v5928_v5, %v2676_v12  ;;  %vm2683_vm4 = vweird.f32 %v5928_v5 }
0x2385   :  { %vm2684_vm7 = vmor %vm2682_vm5, %vm2683_vm4  ;;  %vm2823_vm5 = vcmask 259072  }
0x2386   :  { %v2679_v57 = vsub.f32 1.0, %v2678_v60 }
0x2387   :  { %v2714_v14 = vpop.permute.xlu0 %2713 }
0x2388   :  { %v2680_v63 = vmul.f32 %v5928_v5, %v2679_v57  ;;  %v2716_v16 = vadd.f32 %v2714_v14, %v6948_v50 }
0x238a   :  { %v2681_v0 = vadd.f32 %v5928_v5, %v2680_v63  ;;  %v5502_v19 = vmul.f32 -1.442695, %v2716_v16  ;;  %v7001_v63 = vld [vmem:[%s8041_s4 + $0x1] ss:$0 sm:$0xff] }
0x238c   :  { %v2685_v34 = vsel %vm2684_vm7, %v5928_v5, %v2681_v0  ;;  %5929 = vpow2.f32 %v5502_v19 }
0x238d   :  { %v2690_v62 = vsel %vm2687_vm10, %v2689_v59, %v2685_v34  ;;  %vm2825_vm10 = vcmask 261126  }
0x238f   :  { %v2784_v48 = vpop.permute.xlu0 %2783 }
0x2390   :  { %v2786_v24 = vadd.f32 %v2784_v48, %v6948_v50 }
0x2392   :  { %v5930_v8 = vpop.eup %5929  ;;  %v5505_v55 = vmul.f32 -1.442695, %v2786_v24 }
0x2393   :  { %v2720_v22 = vadd.f32 1.0, %v5930_v8 }
0x2395   :  { %5931 = vrcp.f32 %v2720_v22  ;;  %v2732_v28 = vand.u32 2147483648, %v2720_v22  ;;  %vm2726_vm12 = vweird.f32 %v2720_v22  ;;  %v2730_v6 = vand.u32 2147483647, %v2720_v22 }
0x2397   :  { %v2733_v36 = vor.u32 1.1754944e-38, %v2732_v28  ;;  %vm2731_vm14 = vcmp.eq.f32.partialorder %v2730_v6, 8.507059e+37 }
0x239b   :  { %v5932_v40 = vpop.eup %5931 }
0x239c   :  { %v2722_v17 = vmul.f32 %v5932_v40, %v2720_v22  ;;  %vm2727_vm11 = vweird.f32 %v5932_v40 }
0x239d   :  { %vm2728_vm13 = vmor %vm2726_vm12, %vm2727_vm11  ;;  %vm2953_vm11 = vcmask 102400   ;;  %vm2984_vm12 = vcmask 1044480  }
0x239e   :  { %v2723_v35 = vsub.f32 1.0, %v2722_v17 }
0x23a0   :  { %v2724_v7 = vmul.f32 %v5932_v40, %v2723_v35 }
0x23a2   :  { %v2725_v26 = vadd.f32 %v5932_v40, %v2724_v7 }
0x23a4   :  { %93 = vadd.xlane.f32.xlu1 %v92_v45  ;;  %v2729_v27 = vsel %vm2728_vm13, %v5932_v40, %v2725_v26  ;;  %vm3173_vm13 = vcmask 258048  }
0x23a5   :  { %v2734_v31 = vsel %vm2731_vm14, %v2733_v36, %v2729_v27 }
0x23a6   :  { %v2806_v41 = vmul.f32 %v2734_v31, %v6932_v10  ;;  %v6980_v10 = vld [vmem:[%s8042_s2 + $0xe0] sm:$0xff] }
0x23a7   :  { %2901 = vmatpush.msrb.mxu1 %v6980_v10 }
0x23a9   :  { %2902 = vmatpush.msrb.mxu1 %v6986_v25 }
0x23ab   :  { %2903 = vmatpush.msrb.mxu1 %v6993_v2 }
0x23ec   :  { %v2809_v11 = vpop.permute.xlu1 %2808 }
0x23ed   :  { %v2811_v13 = vmul.f32 %v2809_v11, %v2690_v62 }
0x23ef   :  { %2813 = vrot.lane.b32.xlu2 %v2811_v13, %s6109_s21 }
0x2417   :  { %v94_v18 = vpop.xlane.xlu1 %93 }
0x2418   :  { %v105_v54 = vmul.f32 %v6279_v53, %v94_v18  ;;  %v7026_v18 = vld [vmem:[%s8041_s4 + $0x5] ss:$0 sm:$0xff] }
0x241a   :  { %v6964_v20 = vsub.f32 %v86_v15, %v105_v54 }
0x241c   :  { %v109_v58 = vmul.f32 %v6964_v20, %v6964_v20 }
0x241e   :  { %v111_v21 = vsel %vm91_vm6, %v109_v58, 0.0 }
0x241f   :  { %112 = vadd.xlane.f32.xlu0 %v111_v21 }
0x2449   :  { %v2814_v61 = vpop.permute.xlu2 %2813 }
0x244a   :  { %v2816_v23 = vadd.f32 %v2814_v61, %v2806_v41 }
0x244c   :  { %5933 = vtanh.f32 %v2816_v23 }
0x244d   :  { %5935 = vpow2.f32 %v5505_v55 }
0x2452   :  { %v5934_v42 = vpop.eup %5933 }
0x2453   :  { %2819 = vrot.lane.b32.xlu2 %v5934_v42, %s6105_s30  ;;  %v5936_v49 = vpop.eup %5935 }
0x2454   :  { %v2790_v51 = vadd.f32 1.0, %v5936_v49 }
0x2456   :  { %5937 = vrcp.f32 %v2790_v51  ;;  %v2802_v4 = vand.u32 2147483648, %v2790_v51  ;;  %vm2796_vm3 = vweird.f32 %v2790_v51  ;;  %v2800_v5 = vand.u32 2147483647, %v2790_v51 }
0x2458   :  { %v2803_v56 = vor.u32 1.1754944e-38, %v2802_v4  ;;  %vm2801_vm7 = vcmp.eq.f32.partialorder %v2800_v5, 8.507059e+37 }
0x245c   :  { %v5938_v1 = vpop.eup %5937 }
0x245d   :  { %v2792_v38 = vmul.f32 %v5938_v1, %v2790_v51  ;;  %vm2797_vm1 = vweird.f32 %v5938_v1 }
0x245e   :  { %vm2798_vm4 = vmor %vm2796_vm3, %vm2797_vm1 }
0x245f   :  { %v2793_v29 = vsub.f32 1.0, %v2792_v38 }
0x2461   :  { %v2794_v45 = vmul.f32 %v5938_v1, %v2793_v29 }
0x2463   :  { %v2795_v47 = vadd.f32 %v5938_v1, %v2794_v45 }
0x2465   :  { %v2799_v57 = vsel %vm2798_vm4, %v5938_v1, %v2795_v47 }
0x2466   :  { %v2804_v59 = vsel %vm2801_vm7, %v2803_v56, %v2799_v57 }
0x2492   :  { %v113_v37 = vpop.xlane.xlu0 %112 }
0x2493   :  { %v117_v46 = vmul.f32 %v113_v37, %v6279_v53 }
0x2495   :  { %v119_v9 = vadd.f32 1e-12, %v117_v46 }
0x2497   :  { %5939 = vrsqrt.f32 %v119_v9  ;;  %vm127_vm0 = vweird.f32 %v119_v9 }
0x249d   :  { %v5940_v50 = vpop.eup %5939 }
0x249e   :  { %v122_v39 = vmul.f32 %v5940_v50, %v119_v9  ;;  %vm128_vm15 = vweird.f32 %v5940_v50 }
0x249f   :  { %vm129_vm2 = vmor %vm127_vm0, %vm128_vm15 }
0x24a0   :  { %v123_v30 = vmul.f32 %v5940_v50, %v122_v39 }
0x24a2   :  { %v124_v15 = vmul.f32 0.5, %v123_v30 }
0x24a4   :  { %v125_v52 = vsub.f32 1.5, %v124_v15 }
0x24a6   :  { %v126_v44 = vmul.f32 %v5940_v50, %v125_v52 }
0x24a8   :  { %v130_v12 = vsel %vm129_vm2, %v5940_v50, %v126_v44 }
0x24a9   :  { %v141_v60 = vmul.f32 %v130_v12, %v6964_v20  ;;  %v89_v12 = vadd.f32 %v6955_v43, %v6482_v33  ;;  %v7074_v33 = vld [vmem:[%s8042_s2 + $0x88] sm:$0xff] }
0x24ab   :  { %v144_v0 = vmul.f32 %v7001_v63, %v141_v60  ;;  %v95_v5 = vsel %vm91_vm6, %v89_v12, 0.0 }
0x24ad   :  { %v147_v34 = vadd.f32 %v7007_v32, %v144_v0  ;;  %v2820_v11 = vpop.permute.xlu2 %2819 }
0x24ae   :  { %v2822_v62 = vmul.f32 %v2820_v11, %v2804_v59 }
0x24af   :  { %2824 = vst.msk [vmem:[#allocation2] sm:$0x3f] %vm2823_vm5, %v147_v34 }
0x24b0   :  { %2826 = vst.msk [vmem:[#allocation2 + $0x5] sm:$0xc0] %vm2825_vm10, %v147_v34  ;;  %2844 = vrot.lane.b32.xlu2 %v2822_v62, %s6109_s21  ;;  %s6112_s21 = smov 80  }
0x24b6   :  { %v7013_v13 = vld [vmem:[#allocation2] sm:$0xff] }
0x24b7   :  { %5506 = vmatmul.msk.f32.vlgmr.msrb.gmra.mxu1 %vm91_vm6, %v7013_v13 }
0x250a   :  { %v2845_v14 = vpop.permute.xlu2 %2844 }
0x250b   :  { %2847 = vst.msk [vmem:[#allocation2 + $0xa] sm:$0x1] %vm2830_vm8, %v2845_v14  ;;  %vm2917_vm8 = vcmask 130048  }
0x250c   :  { %2848 = vst.msk [vmem:[#allocation2 + $0x16] sm:$0x2] %vm2832_vm9, %v2845_v14  ;;  %vm2949_vm9 = vcmask 105472  }
0x2512   :  { %v7019_v16 = vld [vmem:[#allocation2 + $0x8] sm:$0x1f] }
0x2513   :  { %5507 = vmatmul.msk.f32.gmra.mxu1 %vm91_vm6, %v7019_v16 }
0x2534   :  { %v2905_v19 = vpop.f32.mrf.mxu1 }
0x2535   :  { %v7029_v54 = vadd.f32 %v7026_v18, %v2905_v19 }
0x2537   :  { %3014 = vrot.lane.b32.xlu1 %v7029_v54, %s6112_s21 }
0x2590   :  { %v2908_v20 = vpop.f32.mrf.mxu1 }
0x2591   :  { %v2909_v58 = vadd.f32 %v7026_v18, %v2908_v20 }
0x2593   :  { %2915 = vrot.lane.b32.xlu2 %v2909_v58, %s6106_s10 }
0x259b   :  { %2913 = vrot.lane.b32.xlu2 %v7029_v54, %s6106_s10 }
0x25a3   :  { %3016 = vrot.lane.b32.xlu2 %v2909_v58, %s6112_s21 }
0x25a9   :  { %v3015_v40 = vpop.permute.xlu1 %3014 }
0x25ab   :  { %3010 = vrot.lane.b32.xlu2 %v7029_v54, %s6113_s22 }
0x25b3   :  { %3012 = vrot.lane.b32.xlu2 %v2909_v58, %s6113_s22 }
0x25ed   :  { %v2916_v21 = vpop.permute.xlu2 %2915 }
0x25ee   :  { %5508 = vmatpush.xpose.msk.msra.mxu2 %vm2917_vm8, %v2916_v21  ;;  %v7088_v21 = vld [vmem:[%s8042_s2 + $0x148] sm:$0xff] }
0x25f5   :  { %v2914_v8 = vpop.permute.xlu2 %2913 }
0x25f6   :  { %5509 = vmatpush.xpose.msk.msra.mxu2 %vm2917_vm8, %v2914_v8  ;;  %v7094_v8 = vld [vmem:[%s8042_s2 + $0xe8] sm:$0xff] }
0x25f9   :  { %5510 = vmatmul.msk.f32.vlgmr.msra.gmra.mxu2 %vm2917_vm8, %v7029_v54 }
0x25fa   :  { %3127 = vmatpush.msrb.mxu2 %v7088_v21 }
0x25fc   :  { %3128 = vmatpush.msrb.mxu2 %v7094_v8 }
0x25fd   :  { %v3017_v22 = vpop.permute.xlu2 %3016 }
0x25fe   :  { %5515 = vmatpush.xpose.msk.msra.mxu0 %vm2917_vm8, %v3017_v22  ;;  %3432 = vmatpush.msra.mxu2 %v6975_v3  ;;  %v7108_v3 = vld [vmem:[%s8041_s4 + $0x6] ss:$0 sm:$0xff] }
0x2600   :  { %3433 = vmatpush.msra.mxu2 %v6980_v10 }
0x2601   :  { %5511 = vmatmul.msk.f32.gmra.mxu2 %vm2917_vm8, %v2909_v58 }
0x2602   :  { %5516 = vmatpush.xpose.msk.msra.mxu0 %vm2917_vm8, %v3015_v40  ;;  %3434 = vmatpush.msra.mxu2 %v6986_v25 }
0x2604   :  { %3435 = vmatpush.msra.mxu2 %v6993_v2 }
0x2605   :  { %v3011_v17 = vpop.permute.xlu2 %3010 }
0x2606   :  { %5517 = vmatmul.msk.f32.vlgmr.msra.gmra.mxu0 %vm2917_vm8, %v3011_v17 }
0x260d   :  { %v3013_v35 = vpop.permute.xlu2 %3012 }
0x260e   :  { %5518 = vmatmul.msk.f32.gmra.mxu0 %vm2917_vm8, %v3013_v35 }
0x267c   :  { %v2943_v7 = vpop.f32.mrf.mxu2 }
0x267d   :  { %v2950_v26 = vsel %vm2949_vm9, %v2943_v7, -inf }
0x267e   :  { %2951 = vmax.xlane.f32.xlu0 %v2950_v26 }
0x2683   :  { %v3043_v28 = vpop.f32.mrf.mxu0 }
0x2684   :  { %v3049_v6 = vsel %vm2949_vm9, %v3043_v28, -inf  ;;  %v2946_v31 = vpop.f32.mrf.mxu2 }
0x2685   :  { %3050 = vmax.xlane.f32.xlu2 %v3049_v6  ;;  %v2954_v41 = vsel %vm2953_vm11, %v2946_v31, -inf }
0x268b   :  { %v3046_v27 = vpop.f32.mrf.mxu0 }
0x268c   :  { %v3052_v36 = vsel %vm2953_vm11, %v3046_v27, -inf }
0x268d   :  { %3053 = vmax.xlane.f32.xlu1 %v3052_v36 }
0x2692   :  { %2975 = vrot.lane.b32.xlu0 %v2909_v58, %s6105_s30 }
0x26a6   :  { %3073 = vrot.lane.b32.xlu1 %v2909_v58, %s6114_s23  ;;  %v7082_v58 = vld [vmem:[%s8042_s2 + $0x28] sm:$0xff] }
0x26bc   :  { %2955 = vmax.xlane.f32.xlu0 %v2954_v41 }
0x26d0   :  { %2973 = vrot.lane.b32.xlu0 %v7029_v54, %s6105_s30 }
0x26f1   :  { %v2952_v61 = vpop.xlane.xlu0 %2951 }
0x26f2   :  { %v2957_v48 = vsub.f32 %v2943_v7, %v2952_v61 }
0x26f4   :  { %v2959_v55 = vmul.f32 1.442695, %v2957_v48 }
0x26f8   :  { %v3051_v23 = vpop.xlane.xlu2 %3050 }
0x26f9   :  { %v3055_v42 = vsub.f32 %v3043_v28, %v3051_v23 }
0x26fb   :  { %v3057_v24 = vmul.f32 1.442695, %v3055_v42 }
0x26fd   :  { %5941 = vpow2.f32 %v3057_v24 }
0x26fe   :  { %5943 = vpow2.f32 %v2959_v55 }
0x2700   :  { %v3054_v1 = vpop.xlane.xlu1 %3053 }
0x2701   :  { %v3056_v29 = vsub.f32 %v3046_v27, %v3054_v1 }
0x2703   :  { %v5942_v49 = vpop.eup %5941  ;;  %v3059_v15 = vmul.f32 1.442695, %v3056_v29 }
0x2704   :  { %v2976_v51 = vpop.permute.xlu0 %2975  ;;  %v3061_v37 = vsel %vm2949_vm9, %v5942_v49, 0.0  ;;  %v5944_v46 = vpop.eup %5943 }
0x2705   :  { %5512 = vmatpush.msk.msrb.mxu3 %vm2984_vm12, %v2976_v51  ;;  %3062 = vadd.xlane.f32.xlu0 %v3061_v37  ;;  %v2963_v9 = vsel %vm2949_vm9, %v5944_v46, 0.0 }
0x270d   :  { %2964 = vadd.xlane.f32.xlu0 %v2963_v9 }
0x2718   :  { %v3074_v38 = vpop.permute.xlu1 %3073 }
0x2719   :  { %5519 = vmatpush.msk.msra.mxu1 %vm2984_vm12, %v3074_v38 }
0x2721   :  { %3071 = vrot.lane.b32.xlu0 %v7029_v54, %s6114_s23 }
0x272f   :  { %v2956_v50 = vpop.xlane.xlu0 %2955 }
0x2730   :  { %v2958_v39 = vsub.f32 %v2946_v31, %v2956_v50 }
0x2732   :  { %v2961_v30 = vmul.f32 1.442695, %v2958_v39 }
0x2734   :  { %5945 = vpow2.f32 %v2961_v30 }
0x2735   :  { %5947 = vpow2.f32 %v3059_v15 }
0x273a   :  { %v5946_v45 = vpop.eup %5945 }
0x273b   :  { %v2966_v52 = vsel %vm2953_vm11, %v5946_v45, 0.0  ;;  %v5948_v44 = vpop.eup %5947 }
0x273c   :  { %2967 = vadd.xlane.f32.xlu2 %v2966_v52  ;;  %v3064_v4 = vsel %vm2953_vm11, %v5948_v44, 0.0 }
0x2742   :  { %v2974_v47 = vpop.permute.xlu0 %2973 }
0x2743   :  { %3002 = vmatpush.msrb.mxu3 %v2974_v47 }
0x2744   :  { %3065 = vadd.xlane.f32.xlu2 %v3064_v4 }
0x2745   :  { %3156 = vmatpush.msra.mxu3 %v7074_v33 }
0x2747   :  { %3157 = vmatpush.msra.mxu3 %v7082_v58 }
0x274b   :  { %96 = vadd.xlane.f32.xlu0 %v95_v5 }
0x2778   :  { %v3063_v60 = vpop.xlane.xlu0 %3062 }
0x2780   :  { %v2965_v57 = vpop.xlane.xlu0 %2964 }
0x2781   :  { %5949 = vrcp.f32 %v2965_v57 }
0x2782   :  { %5951 = vrcp.f32 %v3063_v60 }
0x2787   :  { %v5950_v0 = vpop.eup %5949 }
0x2788   :  { %v2971_v56 = vmul.f32 %v5950_v0, %v5944_v46  ;;  %v5952_v34 = vpop.eup %5951 }
0x2789   :  { %v3069_v59 = vmul.f32 %v5952_v34, %v5942_v49  ;;  %v7154_v34 = vld [vmem:[%s8042_s2 + $0x90] sm:$0xff] }
0x278a   :  { %5513 = vmatmul.msk.f32.vlgmr.msrb.gmra.mxu3 %vm2949_vm9, %v2971_v56 }
0x2793   :  { %v3072_v11 = vpop.permute.xlu0 %3071 }
0x2794   :  { %3099 = vmatpush.msra.mxu1 %v3072_v11 }
0x2795   :  { %5520 = vmatmul.msk.f32.vlgmr.msra.gmra.mxu1 %vm2949_vm9, %v3069_v59  ;;  %v7159_v59 = vld [vmem:[%s8042_s2 + $0x30] sm:$0xff] }
0x27af   :  { %v2968_v43 = vpop.xlane.xlu2 %2967 }
0x27b0   :  { %5953 = vrcp.f32 %v2968_v43 }
0x27b6   :  { %v5954_v62 = vpop.eup %5953 }
0x27b7   :  { %v3066_v14 = vpop.xlane.xlu2 %3065  ;;  %v2972_v19 = vmul.f32 %v5954_v62, %v5946_v45 }
0x27b8   :  { %5955 = vrcp.f32 %v3066_v14 }
0x27b9   :  { %5514 = vmatmul.msk.f32.gmra.mxu3 %vm2949_vm9, %v2972_v19 }
0x27be   :  { %v5956_v54 = vpop.eup %5955  ;;  %v97_v6 = vpop.xlane.xlu0 %96 }
0x27bf   :  { %v3070_v20 = vmul.f32 %v5956_v54, %v5948_v44  ;;  %v106_v41 = vmul.f32 %v6279_v53, %v97_v6 }
0x27c1   :  { %5521 = vmatmul.msk.f32.gmra.mxu1 %vm2949_vm9, %v3070_v20  ;;  %v108_v42 = vsub.f32 %v89_v12, %v106_v41 }
0x27c3   :  { %v110_v24 = vmul.f32 %v108_v42, %v108_v42 }
0x280d   :  { %v3004_v22 = vpop.f32.mrf.mxu3 }
0x280e   :  { %5524 = vmatmul.msk.f32.vlgmr.msra.gmra.mxu3 %vm2917_vm8, %v3004_v22 }
0x2812   :  { %v3101_v40 = vpop.f32.mrf.mxu1 }
0x2813   :  { %5522 = vmatmul.msk.f32.vlgmr.msrb.gmra.mxu2 %vm2917_vm8, %v3101_v40 }
0x283c   :  { %v3007_v17 = vpop.f32.mrf.mxu3 }
0x283d   :  { %5525 = vmatmul.msk.f32.gmra.mxu3 %vm2917_vm8, %v3007_v17  ;;  %v7167_v17 = vld [vmem:[%s8041_s4 + $0x7] ss:$0 sm:$0xff] }
0x283e   :  { %v3104_v35 = vpop.f32.mrf.mxu1 }
0x283f   :  { %5523 = vmatmul.msk.f32.gmra.mxu2 %vm2917_vm8, %v3104_v35 }
0x2891   :  { %v3159_v10 = vpop.f32.mrf.mxu3 }
0x2896   :  { %v3130_v25 = vpop.f32.mrf.mxu2 }
0x2897   :  { %v3160_v2 = vadd.f32 %v3159_v10, %v3130_v25  ;;  %v7172_v25 = vld [vmem:[%s8041_s4 + $0x8] ss:$0 sm:$0xff] }
0x2899   :  { %v3166_v7 = vadd.f32 %v7108_v3, %v3160_v2 }
0x289b   :  { %v3168_v26 = vadd.f32 %v3166_v7, %v7013_v13  ;;  %v114_v13 = vsel %vm91_vm6, %v110_v24, 0.0 }
0x289d   :  { %v3170_v28 = vsel %vm91_vm6, %v3168_v26, 0.0 }
0x289e   :  { %3171 = vadd.xlane.f32.xlu2 %v3170_v28 }
0x28c0   :  { %v3162_v27 = vpop.f32.mrf.mxu3 }
0x28c2   :  { %v3133_v36 = vpop.f32.mrf.mxu2 }
0x28c3   :  { %v3163_v31 = vadd.f32 %v3162_v27, %v3133_v36 }
0x28c5   :  { %v3167_v61 = vadd.f32 %v7108_v3, %v3163_v31 }
0x28c7   :  { %v3169_v23 = vadd.f32 %v3167_v61, %v7019_v16 }
0x28c9   :  { %v3174_v48 = vsel %vm3173_vm13, %v3169_v23, 0.0 }
0x28ca   :  { %3175 = vadd.xlane.f32.xlu2 %v3174_v48 }
0x28d2   :  { %115 = vadd.xlane.f32.xlu2 %v114_v13 }
0x2911   :  { %v3172_v55 = vpop.xlane.xlu2 %3171 }
0x2912   :  { %v3177_v49 = vmul.f32 %v3172_v55, %v6279_v53 }
0x2914   :  { %v3179_v51 = vsub.f32 %v3168_v26, %v3177_v49 }
0x2916   :  { %v3181_v37 = vmul.f32 %v3179_v51, %v3179_v51 }
0x2918   :  { %v3183_v46 = vsel %vm91_vm6, %v3181_v37, 0.0 }
0x2919   :  { %3184 = vadd.xlane.f32.xlu1 %v3183_v46  ;;  %v7209_v46 = vld [vmem:[%s8041_s4 + $0x9] ss:$0 sm:$0xff] }
0x293d   :  { %v3176_v9 = vpop.xlane.xlu2 %3175 }
0x293e   :  { %v3178_v1 = vmul.f32 %v3176_v9, %v6279_v53 }
0x2940   :  { %v7121_v16 = vsub.f32 %v3169_v23, %v3178_v1  ;;  %v7220_v1 = vld [vmem:[%s8043_s3 + $0x30] sm:$0xff] }
0x2942   :  { %v3182_v38 = vmul.f32 %v7121_v16, %v7121_v16 }
0x2944   :  { %v3186_v50 = vsel %vm3173_vm13, %v3182_v38, 0.0  ;;  %v7227_v38 = vld [vmem:[%s8043_s3 + $0x28] sm:$0xff] }
0x2945   :  { %3187 = vadd.xlane.f32.xlu2 %v3186_v50  ;;  %v116_v39 = vpop.xlane.xlu2 %115 }
0x2946   :  { %v118_v29 = vmul.f32 %v116_v39, %v6279_v53  ;;  %v7233_v39 = vld [vmem:[%s8043_s3 + $0x20] sm:$0xff] }
0x2948   :  { %v120_v30 = vadd.f32 1e-12, %v118_v29 }
0x294a   :  { %5957 = vrsqrt.f32 %v120_v30  ;;  %vm137_vm15 = vweird.f32 %v120_v30 }
0x2950   :  { %v5958_v15 = vpop.eup %5957 }
0x2951   :  { %v132_v45 = vmul.f32 %v5958_v15, %v120_v30  ;;  %vm138_vm14 = vweird.f32 %v5958_v15  ;;  %v7239_v30 = vld [vmem:[%s8043_s3 + $0x18] sm:$0xff] }
0x2952   :  { %vm139_vm0 = vmor %vm137_vm15, %vm138_vm14 }
0x2953   :  { %v133_v52 = vmul.f32 %v5958_v15, %v132_v45  ;;  %v7245_v45 = vld [vmem:[%s8043_s3 + $0x10] sm:$0xff] }
0x2955   :  { %v134_v44 = vmul.f32 0.5, %v133_v52 }
0x2957   :  { %v135_v47 = vsub.f32 1.5, %v134_v44  ;;  %v7251_v44 = vld [vmem:[%s8043_s3 + $0x8] sm:$0xff] }
0x2959   :  { %v136_v4 = vmul.f32 %v5958_v15, %v135_v47  ;;  %v7257_v47 = vld [vmem:[%s8043_s3] sm:$0xff] }
0x295b   :  { %v140_v12 = vsel %vm139_vm0, %v5958_v15, %v136_v4 }
0x295c   :  { %v142_v5 = vmul.f32 %v140_v12, %v108_v42 }
0x295e   :  { %v145_v60 = vmul.f32 %v7001_v63, %v142_v5  ;;  %v7142_v63 = vld [vmem:[%s8042_s2 + $0x150] sm:$0xff] }
0x295f   :  { %3240 = vmatpush.msrb.mxu0 %v7142_v63 }
0x2960   :  { %v148_v57 = vadd.f32 %v7007_v32, %v145_v60  ;;  %v7148_v32 = vld [vmem:[%s8042_s2 + $0xf0] sm:$0xff] }
0x2961   :  { %3241 = vmatpush.msrb.mxu0 %v7148_v32 }
0x2962   :  { %2827 = vst.msk [vmem:[#allocation2 + $0xd] sm:$0x3f] %vm2823_vm5, %v148_v57 }
0x2963   :  { %2828 = vst.msk [vmem:[#allocation2 + $0x12] sm:$0xc0] %vm2825_vm10, %v148_v57  ;;  %3242 = vmatpush.msrb.mxu0 %v7154_v34 }
0x2965   :  { %3243 = vmatpush.msrb.mxu0 %v7159_v59 }
0x2969   :  { %v7131_v0 = vld [vmem:[#allocation2 + $0xd] sm:$0xff] }
0x296a   :  { %5530 = vmatmul.msk.f32.vlgmr.msra.gmra.mxu2 %vm91_vm6, %v7131_v0  ;;  %v7135_v56 = vld [vmem:[#allocation2 + $0x15] sm:$0x1f] }
0x2972   :  { %5531 = vmatmul.msk.f32.gmra.mxu2 %vm91_vm6, %v7135_v56 }
0x298c   :  { %v3185_v11 = vpop.xlane.xlu1 %3184 }
0x298d   :  { %v3189_v43 = vmul.f32 %v3185_v11, %v6279_v53 }
0x298f   :  { %v3191_v62 = vadd.f32 1e-12, %v3189_v43 }
0x2991   :  { %5959 = vrsqrt.f32 %v3191_v62  ;;  %vm3199_vm2 = vweird.f32 %v3191_v62 }
0x2997   :  { %v5960_v14 = vpop.eup %5959 }
0x2998   :  { %v3194_v19 = vmul.f32 %v5960_v14, %v3191_v62  ;;  %vm3200_vm1 = vweird.f32 %v5960_v14 }
0x2999   :  { %vm3201_vm3 = vmor %vm3199_vm2, %vm3200_vm1  ;;  %vm3332_vm2 = vcmask 523264  }
0x299a   :  { %v3195_v54 = vmul.f32 %v5960_v14, %v3194_v19 }
0x299c   :  { %v3196_v20 = vmul.f32 0.5, %v3195_v54 }
0x299e   :  { %v3197_v22 = vsub.f32 1.5, %v3196_v20 }
0x29a0   :  { %v3198_v40 = vmul.f32 %v5960_v14, %v3197_v22 }
0x29a2   :  { %v3202_v35 = vsel %vm3201_vm3, %v5960_v14, %v3198_v40 }
0x29a3   :  { %v3213_v10 = vmul.f32 %v3202_v35, %v3179_v51 }
0x29a5   :  { %v3216_v2 = vmul.f32 %v7167_v17, %v3213_v10 }
0x29a7   :  { %v7176_v7 = vadd.f32 %v7172_v25, %v3216_v2 }
0x29a9   :  { %5526 = vmatmul.msk.f32.vlgmr.msrb.gmra.mxu0 %vm91_vm6, %v7176_v7 }
0x29b8   :  { %v3188_v26 = vpop.xlane.xlu2 %3187 }
0x29b9   :  { %v3190_v28 = vmul.f32 %v3188_v26, %v6279_v53 }
0x29bb   :  { %v3192_v6 = vadd.f32 1e-12, %v3190_v28 }
0x29bd   :  { %5961 = vrsqrt.f32 %v3192_v6  ;;  %vm3209_vm5 = vweird.f32 %v3192_v6 }
0x29c3   :  { %v5962_v27 = vpop.eup %5961 }
0x29c4   :  { %v3204_v36 = vmul.f32 %v5962_v27, %v3192_v6  ;;  %vm3210_vm4 = vweird.f32 %v5962_v27 }
0x29c5   :  { %vm3211_vm7 = vmor %vm3209_vm5, %vm3210_vm4 }
0x29c6   :  { %v3205_v31 = vmul.f32 %v5962_v27, %v3204_v36 }
0x29c8   :  { %v3206_v41 = vmul.f32 0.5, %v3205_v31 }
0x29ca   :  { %v3207_v61 = vsub.f32 1.5, %v3206_v41 }
0x29cc   :  { %v3208_v23 = vmul.f32 %v5962_v27, %v3207_v61 }
0x29ce   :  { %v3212_v42 = vsel %vm3211_vm7, %v5962_v27, %v3208_v23 }
0x29cf   :  { %v3214_v48 = vmul.f32 %v3212_v42, %v7121_v16 }
0x29d1   :  { %v3217_v24 = vmul.f32 %v7167_v17, %v3214_v48 }
0x29d3   :  { %v7184_v13 = vadd.f32 %v7172_v25, %v3217_v24 }
0x29d5   :  { %5527 = vmatmul.msk.f32.gmra.mxu0 %vm91_vm6, %v7184_v13 }
0x29ed   :  { %v3437_v55 = vpop.f32.mrf.mxu2 }
0x29ee   :  { %v7189_v49 = vadd.f32 %v7026_v18, %v3437_v55 }
0x29f0   :  { %3538 = vrot.lane.b32.xlu1 %v7189_v49, %s6113_s22  ;;  %3542 = vrot.lane.b32.xlu0 %v7189_v49, %s6112_s21 }
0x29f5   :  { %v3440_v51 = vpop.f32.mrf.mxu2 }
0x29f6   :  { %v7196_v37 = vadd.f32 %v7026_v18, %v3440_v51  ;;  %v7214_v18 = vld [vmem:[%s8043_s3 + $0x38] sm:$0xff] }
0x29f7   :  { %3347 = vmatpush.msrb.mxu1 %v7214_v18 }
0x29f8   :  { %3544 = vrot.lane.b32.xlu2 %v7196_v37, %s6112_s21  ;;  %3540 = vrot.lane.b32.xlu0 %v7196_v37, %s6113_s22 }
0x29f9   :  { %3348 = vmatpush.msrb.mxu1 %v7220_v1 }
0x29fb   :  { %3349 = vmatpush.msrb.mxu1 %v7227_v38 }
0x29fd   :  { %3350 = vmatpush.msrb.mxu1 %v7233_v39 }
0x29ff   :  { %3351 = vmatpush.msrb.mxu1 %v7239_v30 }
0x2a00   :  { %3447 = vrot.lane.b32.xlu2 %v7196_v37, %s6106_s10 }
0x2a01   :  { %3352 = vmatpush.msrb.mxu1 %v7245_v45 }
0x2a03   :  { %3353 = vmatpush.msrb.mxu1 %v7251_v44 }
0x2a05   :  { %3354 = vmatpush.msrb.mxu1 %v7257_v47 }
0x2a08   :  { %3445 = vrot.lane.b32.xlu2 %v7189_v49, %s6106_s10 }
0x2a26   :  { %v3245_v9 = vpop.f32.mrf.mxu0 }
0x2a27   :  { %v3246_v16 = vadd.f32 %v7209_v46, %v3245_v9 }
0x2a29   :  { %v3253_v50 = vmul.f32 0.70710677, %v3246_v16 }
0x2a2b   :  { %v3255_v29 = vand.u32 2147483647, %v3253_v50  ;;  %vm3321_vm1 = vcmp.ge.f32.partialorder %v3253_v50, 0.0 }
0x2a2d   :  { %v3257_v15 = vmul.f32 0.3275911, %v3255_v29  ;;  %v3309_v54 = vsub.f32 0.0, %v3255_v29 }
0x2a2f   :  { %v3259_v52 = vadd.f32 1.0, %v3257_v15  ;;  %v3311_v40 = vmul.f32 %v3309_v54, %v3255_v29 }
0x2a31   :  { %5963 = vrcp.f32 %v3259_v52  ;;  %v3272_v60 = vand.u32 2147483648, %v3259_v52  ;;  %v3270_v11 = vand.u32 2147483647, %v3259_v52  ;;  %vm3266_vm14 = vweird.f32 %v3259_v52 }
0x2a32   :  { %v3313_v2 = vmul.f32 1.442695, %v3311_v40 }
0x2a33   :  { %v3273_v62 = vor.u32 1.1754944e-38, %v3272_v60  ;;  %vm3271_vm0 = vcmp.eq.f32.partialorder %v3270_v11, 8.507059e+37 }
0x2a34   :  { %5965 = vpow2.f32 %v3313_v2 }
0x2a37   :  { %v5964_v4 = vpop.eup %5963 }
0x2a38   :  { %v3262_v12 = vmul.f32 %v5964_v4, %v3259_v52  ;;  %vm3267_vm10 = vweird.f32 %v5964_v4  ;;  %v3251_v52 = vmul.f32 0.5, %v3246_v16 }
0x2a39   :  { %vm3268_vm15 = vmor %vm3266_vm14, %vm3267_vm10 }
0x2a3a   :  { %v3263_v5 = vsub.f32 1.0, %v3262_v12  ;;  %v5966_v61 = vpop.eup %5965 }
0x2a3c   :  { %v3264_v57 = vmul.f32 %v5964_v4, %v3263_v5 }
0x2a3e   :  { %v3265_v43 = vadd.f32 %v5964_v4, %v3264_v57 }
0x2a40   :  { %v3269_v14 = vsel %vm3268_vm15, %v5964_v4, %v3265_v43 }
0x2a41   :  { %v3274_v19 = vsel %vm3271_vm0, %v3273_v62, %v3269_v14 }
0x2a42   :  { %v3291_v20 = vmul.f32 1.0614054, %v3274_v19 }
0x2a44   :  { %v3293_v22 = vadd.f32 -1.4531521, %v3291_v20 }
0x2a46   :  { %v3295_v35 = vmul.f32 %v3293_v22, %v3274_v19 }
0x2a48   :  { %v3297_v10 = vadd.f32 1.4214138, %v3295_v35 }
0x2a4a   :  { %v3299_v26 = vmul.f32 %v3297_v10, %v3274_v19 }
0x2a4c   :  { %v3301_v28 = vadd.f32 -0.28449672, %v3299_v26 }
0x2a4e   :  { %v3303_v6 = vmul.f32 %v3301_v28, %v3274_v19 }
0x2a50   :  { %v3305_v27 = vadd.f32 0.2548296, %v3303_v6 }
0x2a52   :  { %v3307_v36 = vmul.f32 %v3305_v27, %v3274_v19  ;;  %v3248_v31 = vpop.f32.mrf.mxu0  ;;  %v3545_v41 = vpop.permute.xlu2 %3544 }
0x2a53   :  { %v7261_v23 = vadd.f32 %v7209_v46, %v3248_v31  ;;  %5539 = vmatpush.xpose.msk.msra.mxu1 %vm2917_vm8, %v3545_v41 }
0x2a54   :  { %v3317_v42 = vmul.f32 %v5966_v61, %v3307_v36 }
0x2a55   :  { %v3254_v48 = vmul.f32 0.70710677, %v7261_v23  ;;  %v3252_v61 = vmul.f32 0.5, %v7261_v23 }
0x2a56   :  { %v3319_v24 = vsub.f32 1.0, %v3317_v42 }
0x2a57   :  { %v3256_v55 = vand.u32 2147483647, %v3254_v48  ;;  %vm3322_vm10 = vcmp.ge.f32.partialorder %v3254_v48, 0.0 }
0x2a58   :  { %v3323_v51 = vsub.f32 0.0, %v3319_v24 }
0x2a59   :  { %v3258_v9 = vmul.f32 0.3275911, %v3256_v55 }
0x2a5a   :  { %v3325_v29 = vsel %vm3321_vm1, %v3319_v24, %v3323_v51  ;;  %v3448_v15 = vpop.permute.xlu2 %3447 }
0x2a5b   :  { %v3327_v4 = vadd.f32 1.0, %v3325_v29  ;;  %v3260_v12 = vadd.f32 1.0, %v3258_v9  ;;  %5532 = vmatpush.xpose.msk.msrb.mxu3 %vm2917_vm8, %v3448_v15 }
0x2a5d   :  { %v3329_v5 = vmul.f32 %v3327_v4, %v3251_v52  ;;  %5967 = vrcp.f32 %v3260_v12  ;;  %v3287_v50 = vand.u32 2147483648, %v3260_v12  ;;  %v3285_v14 = vand.u32 2147483647, %v3260_v12 }
0x2a5e   :  { %vm3281_vm4 = vweird.f32 %v3260_v12 }
0x2a5f   :  { %5528 = vmatmul.msk.f32.vlgmr.msrb.gmra.mxu1 %vm3332_vm2, %v3329_v5  ;;  %vm3286_vm7 = vcmp.eq.f32.partialorder %v3285_v14, 8.507059e+37 }
0x2a62   :  { %v3543_v60 = vpop.permute.xlu0 %3542  ;;  %v3446_v11 = vpop.permute.xlu2 %3445 }
0x2a63   :  { %v5968_v57 = vpop.eup %5967  ;;  %5540 = vmatpush.xpose.msk.msra.mxu1 %vm2917_vm8, %v3543_v60  ;;  %5533 = vmatpush.xpose.msk.msrb.mxu3 %vm2917_vm8, %v3446_v11 }
0x2a64   :  { %v3277_v43 = vmul.f32 %v5968_v57, %v3260_v12  ;;  %vm3282_vm3 = vweird.f32 %v5968_v57 }
0x2a65   :  { %vm3283_vm5 = vmor %vm3281_vm4, %vm3282_vm3 }
0x2a66   :  { %v3278_v16 = vsub.f32 1.0, %v3277_v43  ;;  %5534 = vmatmul.msk.f32.vlgmr.msrb.gmra.mxu3 %vm2917_vm8, %v7189_v49 }
0x2a67   :  { %3763 = vmatpush.msrb.mxu1 %v7142_v63  ;;  %3655 = vmatpush.msra.mxu3 %v7088_v21  ;;  %v3288_v21 = vor.u32 1.1754944e-38, %v3287_v50 }
0x2a68   :  { %v3279_v62 = vmul.f32 %v5968_v57, %v3278_v16 }
0x2a69   :  { %3764 = vmatpush.msrb.mxu1 %v7148_v32  ;;  %3656 = vmatpush.msra.mxu3 %v7094_v8  ;;  %v3310_v32 = vsub.f32 0.0, %v3256_v55 }
0x2a6a   :  { %v3280_v19 = vadd.f32 %v5968_v57, %v3279_v62  ;;  %v3541_v51 = vpop.permute.xlu0 %3540 }
0x2a6b   :  { %3765 = vmatpush.msrb.mxu1 %v7154_v34  ;;  %v3312_v40 = vmul.f32 %v3310_v32, %v3256_v55  ;;  %v3539_v55 = vpop.permute.xlu1 %3538 }
0x2a6c   :  { %v3284_v63 = vsel %vm3283_vm5, %v5968_v57, %v3280_v19 }
0x2a6d   :  { %3766 = vmatpush.msrb.mxu1 %v7159_v59  ;;  %v3289_v54 = vsel %vm3286_vm7, %v3288_v21, %v3284_v63  ;;  %v3315_v10 = vmul.f32 1.442695, %v3312_v40 }
0x2a6e   :  { %v3292_v20 = vmul.f32 1.0614054, %v3289_v54  ;;  %5535 = vmatmul.msk.f32.gmra.mxu3 %vm2917_vm8, %v7196_v37 }
0x2a6f   :  { %5969 = vpow2.f32 %v3315_v10 }
0x2a70   :  { %v3294_v22 = vadd.f32 -1.4531521, %v3292_v20 }
0x2a72   :  { %v3296_v35 = vmul.f32 %v3294_v22, %v3289_v54 }
0x2a74   :  { %v3298_v8 = vadd.f32 1.4214138, %v3296_v35 }
0x2a75   :  { %v5970_v6 = vpop.eup %5969 }
0x2a76   :  { %v3300_v34 = vmul.f32 %v3298_v8, %v3289_v54  ;;  %v7301_v8 = vld [vmem:[%s8041_s4 + $0xa] ss:$0 sm:$0xff] }
0x2a78   :  { %v3302_v2 = vadd.f32 -0.28449672, %v3300_v34 }
0x2a7a   :  { %v3304_v26 = vmul.f32 %v3302_v2, %v3289_v54 }
0x2a7c   :  { %v3306_v59 = vadd.f32 0.2548296, %v3304_v26 }
0x2a7e   :  { %v3308_v28 = vmul.f32 %v3306_v59, %v3289_v54 }
0x2a80   :  { %v3318_v27 = vmul.f32 %v5970_v6, %v3308_v28 }
0x2a82   :  { %v3320_v36 = vsub.f32 1.0, %v3318_v27 }
0x2a84   :  { %v3324_v31 = vsub.f32 0.0, %v3320_v36 }
0x2a86   :  { %v3326_v41 = vsel %vm3322_vm10, %v3320_v36, %v3324_v31 }
0x2a87   :  { %v3328_v42 = vadd.f32 1.0, %v3326_v41 }
0x2a89   :  { %v3330_v24 = vmul.f32 %v3328_v42, %v3252_v61 }
0x2a8b   :  { %5529 = vmatmul.msk.f32.gmra.mxu1 %vm3332_vm2, %v3330_v24 }
0x2a93   :  { %5541 = vmatmul.msk.f32.vlgmr.msra.gmra.mxu1 %vm2917_vm8, %v3539_v55 }
0x2a9b   :  { %5542 = vmatmul.msk.f32.gmra.mxu1 %vm2917_vm8, %v3541_v51 }
0x2adc   :  { %v3356_v15 = vpop.f32.mrf.mxu1 }
0x2add   :  { %v3357_v59 = vadd.f32 %v7301_v8, %v3356_v15 }
0x2adf   :  { %v3362_v6 = vadd.f32 %v3357_v59, %v7176_v7 }
0x2ae9   :  { %v3474_v9 = vpop.f32.mrf.mxu3 }
0x2aea   :  { %v3480_v29 = vsel %vm2949_vm9, %v3474_v9, -inf }
0x2aeb   :  { %3481 = vmax.xlane.f32.xlu1 %v3480_v29 }
0x2af1   :  { %v3477_v4 = vpop.f32.mrf.mxu3 }
0x2af2   :  { %v3483_v60 = vsel %vm2953_vm11, %v3477_v4, -inf }
0x2b04   :  { %3599 = vrot.lane.b32.xlu1 %v7189_v49, %s6114_s23 }
0x2b08   :  { %v3359_v48 = vpop.f32.mrf.mxu1 }
0x2b09   :  { %v3360_v27 = vadd.f32 %v7301_v8, %v3359_v48 }
0x2b0b   :  { %v7318_v36 = vadd.f32 %v3360_v27, %v7184_v13 }
0x2b0c   :  { %3502 = vrot.lane.b32.xlu1 %v7189_v49, %s6105_s30 }
0x2b0d   :  { %v3367_v7 = vsel %vm3173_vm13, %v7318_v36, 0.0 }
0x2b10   :  { %v3571_v23 = vpop.f32.mrf.mxu1 }
0x2b11   :  { %v3577_v52 = vsel %vm2949_vm9, %v3571_v23, -inf }
0x2b12   :  { %3578 = vmax.xlane.f32.xlu2 %v3577_v52 }
0x2b18   :  { %v3574_v12 = vpop.f32.mrf.mxu1 }
0x2b19   :  { %v3580_v5 = vsel %vm2953_vm11, %v3574_v12, -inf }
0x2b1a   :  { %3581 = vmax.xlane.f32.xlu0 %v3580_v5  ;;  %3484 = vmax.xlane.f32.xlu2 %v3483_v60 }
0x2b32   :  { %3601 = vrot.lane.b32.xlu2 %v7196_v37, %s6114_s23 }
0x2b5e   :  { %v3482_v57 = vpop.xlane.xlu1 %3481 }
0x2b5f   :  { %v3486_v11 = vsub.f32 %v3474_v9, %v3482_v57 }
0x2b61   :  { %v3488_v43 = vmul.f32 1.442695, %v3486_v11 }
0x2b63   :  { %5971 = vpow2.f32 %v3488_v43 }
0x2b69   :  { %v7293_v49 = vpop.eup %5971 }
0x2b6a   :  { %v3492_v16 = vsel %vm2949_vm9, %v7293_v49, 0.0 }
0x2b6b   :  { %3493 = vadd.xlane.f32.xlu0 %v3492_v16 }
0x2b76   :  { %v3600_v10 = vpop.permute.xlu1 %3599 }
0x2b85   :  { %v3579_v50 = vpop.xlane.xlu2 %3578 }
0x2b86   :  { %v3583_v62 = vsub.f32 %v3571_v23, %v3579_v50 }
0x2b88   :  { %v3585_v14 = vmul.f32 1.442695, %v3583_v62 }
0x2b8a   :  { %5973 = vpow2.f32 %v3585_v14 }
0x2b8d   :  { %v3582_v19 = vpop.xlane.xlu0 %3581  ;;  %v3485_v21 = vpop.xlane.xlu2 %3484 }
0x2b8e   :  { %v3584_v63 = vsub.f32 %v3574_v12, %v3582_v19  ;;  %v3487_v32 = vsub.f32 %v3477_v4, %v3485_v21 }
0x2b90   :  { %v5974_v54 = vpop.eup %5973  ;;  %v3587_v20 = vmul.f32 1.442695, %v3584_v63  ;;  %v3490_v22 = vmul.f32 1.442695, %v3487_v32 }
0x2b91   :  { %v3589_v40 = vsel %vm2949_vm9, %v5974_v54, 0.0 }
0x2b92   :  { %5975 = vpow2.f32 %v3587_v20  ;;  %3590 = vadd.xlane.f32.xlu0 %v3589_v40 }
0x2b93   :  { %5977 = vpow2.f32 %v3490_v22  ;;  %v7364_v22 = vld [vmem:[%s8042_s2 + $0xf8] sm:$0xff] }
0x2b95   :  { %v3602_v35 = vpop.permute.xlu2 %3601 }
0x2b96   :  { %5543 = vmatpush.msk.msrb.mxu2 %vm2984_vm12, %v3602_v35  ;;  %v7371_v35 = vld [vmem:[%s8042_s2 + $0x98] sm:$0xff] }
0x2b98   :  { %v5976_v34 = vpop.eup %5975  ;;  %3627 = vmatpush.msrb.mxu2 %v3600_v10 }
0x2b99   :  { %v5978_v2 = vpop.eup %5977  ;;  %v3592_v26 = vsel %vm2953_vm11, %v5976_v34, 0.0 }
0x2b9a   :  { %3868 = vmatpush.msra.mxu2 %v7214_v18  ;;  %3593 = vadd.xlane.f32.xlu0 %v3592_v26  ;;  %v3495_v28 = vsel %vm2953_vm11, %v5978_v2, 0.0  ;;  %v3364_v18 = vsel %vm91_vm6, %v3362_v6, 0.0 }
0x2b9b   :  { %3496 = vadd.xlane.f32.xlu2 %v3495_v28 }
0x2b9c   :  { %3869 = vmatpush.msra.mxu2 %v7220_v1 }
0x2b9e   :  { %3870 = vmatpush.msra.mxu2 %v7227_v38 }
0x2ba0   :  { %3871 = vmatpush.msra.mxu2 %v7233_v39 }
0x2ba2   :  { %3872 = vmatpush.msra.mxu2 %v7239_v30 }
0x2ba3   :  { %3365 = vadd.xlane.f32.xlu2 %v3364_v18 }
0x2ba4   :  { %3873 = vmatpush.msra.mxu2 %v7245_v45 }
0x2ba6   :  { %3874 = vmatpush.msra.mxu2 %v7251_v44 }
0x2ba8   :  { %3875 = vmatpush.msra.mxu2 %v7257_v47 }
0x2bab   :  { %3368 = vadd.xlane.f32.xlu2 %v3367_v7 }
0x2bae   :  { %3504 = vrot.lane.b32.xlu0 %v7196_v37, %s6105_s30  ;;  %v3503_v37 = vpop.permute.xlu1 %3502 }
0x2bde   :  { %v3494_v1 = vpop.xlane.xlu0 %3493 }
0x2c05   :  { %v3591_v38 = vpop.xlane.xlu0 %3590 }
0x2c06   :  { %5979 = vrcp.f32 %v3591_v38 }
0x2c0c   :  { %v5980_v39 = vpop.eup %5979 }
0x2c0d   :  { %v3597_v30 = vmul.f32 %v5980_v39, %v5974_v54  ;;  %v3594_v45 = vpop.xlane.xlu0 %3593 }
0x2c0e   :  { %5981 = vrcp.f32 %v3594_v45  ;;  %v3497_v47 = vpop.xlane.xlu2 %3496  ;;  %v7392_v45 = vld [vmem:[%s8041_s4 + $0xb] ss:$0 sm:$0xff] }
0x2c0f   :  { %5544 = vmatmul.msk.f32.vlgmr.msrb.gmra.mxu2 %vm2949_vm9, %v3597_v30  ;;  %5983 = vrcp.f32 %v3494_v1 }
0x2c10   :  { %5985 = vrcp.f32 %v3497_v47 }
0x2c14   :  { %v5982_v13 = vpop.eup %5981 }
0x2c15   :  { %v3598_v44 = vmul.f32 %v5982_v13, %v5976_v34  ;;  %v5984_v31 = vpop.eup %5983 }
0x2c16   :  { %v3500_v61 = vmul.f32 %v5984_v31, %v7293_v49  ;;  %v5986_v42 = vpop.eup %5985  ;;  %v3366_v52 = vpop.xlane.xlu2 %3365 }
0x2c17   :  { %5545 = vmatmul.msk.f32.gmra.mxu2 %vm2949_vm9, %v3598_v44  ;;  %v3501_v24 = vmul.f32 %v5986_v42, %v5978_v2  ;;  %v3370_v57 = vmul.f32 %v3366_v52, %v6279_v53  ;;  %v7381_v2 = vld [vmem:[%s8042_s2 + $0x38] sm:$0xff]  ;;  %v7397_v44 = vld [vmem:[%s8041_s4 + $0xc] ss:$0 sm:$0xff] }
0x2c19   :  { %v3372_v49 = vsub.f32 %v3362_v6, %v3370_v57 }
0x2c1b   :  { %v3374_v50 = vmul.f32 %v3372_v49, %v3372_v49 }
0x2c1e   :  { %v3369_v62 = vpop.xlane.xlu2 %3368 }
0x2c1f   :  { %v3371_v21 = vmul.f32 %v3369_v62, %v6279_v53 }
0x2c20   :  { %v3505_v41 = vpop.permute.xlu0 %3504 }
0x2c21   :  { %5536 = vmatpush.msk.msra.mxu0 %vm2984_vm12, %v3505_v41  ;;  %v7357_v32 = vsub.f32 %v7318_v36, %v3371_v21 }
0x2c23   :  { %3530 = vmatpush.msra.mxu0 %v3503_v37  ;;  %v3375_v34 = vmul.f32 %v7357_v32, %v7357_v32 }
0x2c24   :  { %5537 = vmatmul.msk.f32.vlgmr.msra.gmra.mxu0 %vm2949_vm9, %v3500_v61 }
0x2c25   :  { %3684 = vmatpush.msrb.mxu0 %v7074_v33  ;;  %v3379_v28 = vsel %vm3173_vm13, %v3375_v34, 0.0 }
0x2c27   :  { %3685 = vmatpush.msrb.mxu0 %v7082_v58 }
0x2c2c   :  { %5538 = vmatmul.msk.f32.gmra.mxu0 %vm2949_vm9, %v3501_v24 }
0x2c92   :  { %v3629_v55 = vpop.f32.mrf.mxu2 }
0x2c93   :  { %5546 = vmatmul.msk.f32.vlgmr.msra.gmra.mxu3 %vm2917_vm8, %v3629_v55 }
0x2c9a   :  { %v3632_v51 = vpop.f32.mrf.mxu2 }
0x2c9b   :  { %5547 = vmatmul.msk.f32.gmra.mxu3 %vm2917_vm8, %v3632_v51 }
0x2ca1   :  { %v3532_v9 = vpop.f32.mrf.mxu0 }
0x2ca2   :  { %5548 = vmatmul.msk.f32.vlgmr.msrb.gmra.mxu0 %vm2917_vm8, %v3532_v9 }
0x2ca9   :  { %v3535_v29 = vpop.f32.mrf.mxu0 }
0x2caa   :  { %5549 = vmatmul.msk.f32.gmra.mxu0 %vm2917_vm8, %v3535_v29 }
0x2d16   :  { %v3658_v15 = vpop.f32.mrf.mxu3 }
0x2d1e   :  { %v3661_v12 = vpop.f32.mrf.mxu3 }
0x2d1f   :  { %v3687_v33 = vpop.f32.mrf.mxu0 }
0x2d20   :  { %v3688_v48 = vadd.f32 %v3687_v33, %v3658_v15 }
0x2d22   :  { %v3693_v58 = vadd.f32 %v7108_v3, %v3688_v48 }
0x2d24   :  { %v3695_v23 = vadd.f32 %v3693_v58, %v7131_v0  ;;  %v3376_v0 = vsel %vm91_vm6, %v3374_v50, 0.0 }
0x2d26   :  { %v3697_v4 = vsel %vm91_vm6, %v3695_v23, 0.0 }
0x2d27   :  { %v3690_v5 = vpop.f32.mrf.mxu0  ;;  %3698 = vadd.xlane.f32.xlu1 %v3697_v4 }
0x2d28   :  { %v3691_v60 = vadd.f32 %v3690_v5, %v3661_v12 }
0x2d2a   :  { %v3694_v11 = vadd.f32 %v7108_v3, %v3691_v60 }
0x2d2c   :  { %v3696_v43 = vadd.f32 %v3694_v11, %v7135_v56  ;;  %v7354_v56 = vld [vmem:[%s8042_s2 + $0x158] sm:$0xff] }
0x2d2d   :  { %3981 = vmatpush.msrb.mxu3 %v7354_v56 }
0x2d2e   :  { %v3700_v16 = vsel %vm3173_vm13, %v3696_v43, 0.0 }
0x2d2f   :  { %3701 = vadd.xlane.f32.xlu0 %v3700_v16  ;;  %3982 = vmatpush.msrb.mxu3 %v7364_v22 }
0x2d31   :  { %3983 = vmatpush.msrb.mxu3 %v7371_v35 }
0x2d33   :  { %3984 = vmatpush.msrb.mxu3 %v7381_v2 }
0x2d37   :  { %3377 = vadd.xlane.f32.xlu0 %v3376_v0 }
0x2d9a   :  { %v3699_v14 = vpop.xlane.xlu1 %3698 }
0x2d9b   :  { %v3703_v19 = vmul.f32 %v3699_v14, %v6279_v53 }
0x2d9d   :  { %v7347_v63 = vsub.f32 %v3695_v23, %v3703_v19 }
0x2d9f   :  { %v3707_v3 = vmul.f32 %v7347_v63, %v7347_v63 }
0x2da1   :  { %v3709_v54 = vsel %vm91_vm6, %v3707_v3, 0.0 }
0x2da2   :  { %v3702_v20 = vpop.xlane.xlu0 %3701  ;;  %3710 = vadd.xlane.f32.xlu1 %v3709_v54 }
0x2da3   :  { %v3704_v40 = vmul.f32 %v3702_v20, %v6279_v53 }
0x2da5   :  { %v7373_v10 = vsub.f32 %v3696_v43, %v3704_v40 }
0x2da7   :  { %v3708_v26 = vmul.f32 %v7373_v10, %v7373_v10 }
0x2da9   :  { %v3712_v59 = vsel %vm3173_vm13, %v3708_v26, 0.0 }
0x2daa   :  { %3713 = vadd.xlane.f32.xlu2 %v3712_v59  ;;  %v3378_v6 = vpop.xlane.xlu0 %3377  ;;  %3380 = vadd.xlane.f32.xlu1 %v3379_v28 }
0x2dab   :  { %v3382_v27 = vmul.f32 %v3378_v6, %v6279_v53 }
0x2dad   :  { %v3384_v18 = vadd.f32 1e-12, %v3382_v27 }
0x2daf   :  { %5987 = vrsqrt.f32 %v3384_v18  ;;  %vm3392_vm15 = vweird.f32 %v3384_v18 }
0x2db5   :  { %v5988_v36 = vpop.eup %5987 }
0x2db6   :  { %v3387_v7 = vmul.f32 %v5988_v36, %v3384_v18  ;;  %vm3393_vm14 = vweird.f32 %v5988_v36 }
0x2db7   :  { %vm3394_vm0 = vmor %vm3392_vm15, %vm3393_vm14 }
0x2db8   :  { %v3388_v1 = vmul.f32 %v5988_v36, %v3387_v7 }
0x2dba   :  { %v3389_v38 = vmul.f32 0.5, %v3388_v1 }
0x2dbc   :  { %v3390_v39 = vsub.f32 1.5, %v3389_v38 }
0x2dbe   :  { %v3391_v30 = vmul.f32 %v5988_v36, %v3390_v39 }
0x2dc0   :  { %v3395_v13 = vsel %vm3394_vm0, %v5988_v36, %v3391_v30 }
0x2dc1   :  { %v3406_v47 = vmul.f32 %v3395_v13, %v3372_v49 }
0x2dc3   :  { %v3409_v31 = vmul.f32 %v7392_v45, %v3406_v47 }
0x2dc5   :  { %v7401_v41 = vadd.f32 %v7397_v44, %v3409_v31 }
0x2dc7   :  { %5562 = vmatmul.msk.f32.vlgmr.msrb.gmra.mxu3 %vm91_vm6, %v7401_v41 }
0x2e15   :  { %v3711_v37 = vpop.xlane.xlu1 %3710 }
0x2e16   :  { %v3715_v61 = vmul.f32 %v3711_v37, %v6279_v53 }
0x2e18   :  { %v3717_v42 = vadd.f32 1e-12, %v3715_v61 }
0x2e1a   :  { %5989 = vrsqrt.f32 %v3717_v42  ;;  %vm3725_vm3 = vweird.f32 %v3717_v42 }
0x2e1d   :  { %v3381_v24 = vpop.xlane.xlu1 %3380  ;;  %v3714_v55 = vpop.xlane.xlu2 %3713 }
0x2e1e   :  { %v3383_v51 = vmul.f32 %v3381_v24, %v6279_v53  ;;  %v3716_v9 = vmul.f32 %v3714_v55, %v6279_v53 }
0x2e20   :  { %v5990_v29 = vpop.eup %5989  ;;  %v3385_v15 = vadd.f32 1e-12, %v3383_v51  ;;  %v3718_v33 = vadd.f32 1e-12, %v3716_v9 }
0x2e21   :  { %v3720_v48 = vmul.f32 %v5990_v29, %v3717_v42  ;;  %vm3726_vm1 = vweird.f32 %v5990_v29 }
0x2e22   :  { %5991 = vrsqrt.f32 %v3385_v15  ;;  %vm3727_vm4 = vmor %vm3725_vm3, %vm3726_vm1  ;;  %vm3402_vm10 = vweird.f32 %v3385_v15  ;;  %vm3735_vm15 = vweird.f32 %v3718_v33 }
0x2e23   :  { %v3721_v58 = vmul.f32 %v5990_v29, %v3720_v48  ;;  %5993 = vrsqrt.f32 %v3718_v33 }
0x2e25   :  { %v3722_v23 = vmul.f32 0.5, %v3721_v58 }
0x2e27   :  { %v3723_v52 = vsub.f32 1.5, %v3722_v23 }
0x2e28   :  { %v5992_v4 = vpop.eup %5991 }
0x2e29   :  { %v5994_v12 = vpop.eup %5993  ;;  %v3724_v5 = vmul.f32 %v5990_v29, %v3723_v52  ;;  %v3397_v60 = vmul.f32 %v5992_v4, %v3385_v15  ;;  %vm3403_vm5 = vweird.f32 %v5992_v4 }
0x2e2a   :  { %v3730_v57 = vmul.f32 %v5994_v12, %v3718_v33  ;;  %vm3736_vm7 = vweird.f32 %v5994_v12  ;;  %vm3404_vm14 = vmor %vm3402_vm10, %vm3403_vm5 }
0x2e2b   :  { %v3728_v11 = vsel %vm3727_vm4, %v5990_v29, %v3724_v5  ;;  %v3398_v43 = vmul.f32 %v5992_v4, %v3397_v60  ;;  %vm3737_vm0 = vmor %vm3735_vm15, %vm3736_vm7 }
0x2e2c   :  { %v3739_v49 = vmul.f32 %v3728_v11, %v7347_v63  ;;  %v3731_v16 = vmul.f32 %v5994_v12, %v3730_v57 }
0x2e2d   :  { %v3399_v50 = vmul.f32 0.5, %v3398_v43 }
0x2e2e   :  { %v3741_v0 = vmul.f32 %v7167_v17, %v3739_v49  ;;  %v3732_v62 = vmul.f32 0.5, %v3731_v16 }
0x2e2f   :  { %v3400_v14 = vsub.f32 1.5, %v3399_v50 }
0x2e30   :  { %v3733_v19 = vsub.f32 1.5, %v3732_v62  ;;  %v7411_v21 = vadd.f32 %v7172_v25, %v3741_v0 }
0x2e31   :  { %v3401_v3 = vmul.f32 %v5992_v4, %v3400_v14 }
0x2e32   :  { %v3734_v54 = vmul.f32 %v5994_v12, %v3733_v19  ;;  %5550 = vmatmul.msk.f32.vlgmr.msrb.gmra.mxu1 %vm91_vm6, %v7411_v21 }
0x2e33   :  { %v3405_v63 = vsel %vm3404_vm14, %v5992_v4, %v3401_v3 }
0x2e34   :  { %v3407_v20 = vmul.f32 %v3405_v63, %v7357_v32  ;;  %v3738_v40 = vsel %vm3737_vm0, %v5994_v12, %v3734_v54  ;;  %v7432_v32 = vld [vmem:[%s8041_s4 + $0xd] ss:$0 sm:$0xff] }
0x2e35   :  { %v3740_v34 = vmul.f32 %v3738_v40, %v7373_v10 }
0x2e36   :  { %v3410_v26 = vmul.f32 %v7392_v45, %v3407_v20 }
0x2e37   :  { %v3742_v59 = vmul.f32 %v7167_v17, %v3740_v34 }
0x2e38   :  { %v7420_v28 = vadd.f32 %v7397_v44, %v3410_v26 }
0x2e39   :  { %v7423_v6 = vadd.f32 %v7172_v25, %v3742_v59 }
0x2e3a   :  { %5563 = vmatmul.msk.f32.gmra.mxu3 %vm91_vm6, %v7420_v28 }
0x2e3b   :  { %5551 = vmatmul.msk.f32.gmra.mxu1 %vm91_vm6, %v7423_v6 }
0x2e4a   :  { %v3986_v10 = vpop.f32.mrf.mxu3 }
0x2e4b   :  { %v7435_v17 = vadd.f32 %v7432_v32, %v3986_v10 }
0x2e4d   :  { %4091 = vrot.lane.b32.xlu0 %v7435_v17, %s6112_s21  ;;  %4087 = vrot.lane.b32.xlu1 %v7435_v17, %s6113_s22 }
0x2eaf   :  { %v3768_v25 = vpop.f32.mrf.mxu1 }
0x2eb0   :  { %v7442_v27 = vadd.f32 %v7209_v46, %v3768_v25 }
0x2eb2   :  { %v7445_v18 = vmul.f32 0.70710677, %v7442_v27 }
0x2eb4   :  { %v3778_v36 = vand.u32 2147483647, %v7445_v18  ;;  %vm3844_vm0 = vcmp.ge.f32.partialorder %v7445_v18, 0.0 }
0x2eb6   :  { %v3780_v7 = vmul.f32 0.3275911, %v3778_v36  ;;  %v3832_v23 = vsub.f32 0.0, %v3778_v36 }
0x2eb8   :  { %v3782_v1 = vadd.f32 1.0, %v3780_v7  ;;  %v3771_v38 = vpop.f32.mrf.mxu1  ;;  %v3834_v57 = vmul.f32 %v3832_v23, %v3778_v36 }
0x2eb9   :  { %v7449_v39 = vadd.f32 %v7209_v46, %v3771_v38 }
0x2eba   :  { %5995 = vrcp.f32 %v3782_v1  ;;  %v3795_v55 = vand.u32 2147483648, %v3782_v1  ;;  %v3793_v9 = vand.u32 2147483647, %v3782_v1  ;;  %vm3789_vm3 = vweird.f32 %v3782_v1 }
0x2ebb   :  { %v7452_v30 = vmul.f32 0.70710677, %v7449_v39  ;;  %v3836_v62 = vmul.f32 1.442695, %v3834_v57 }
0x2ebc   :  { %v3796_v15 = vor.u32 1.1754944e-38, %v3795_v55  ;;  %vm3794_vm5 = vcmp.eq.f32.partialorder %v3793_v9, 8.507059e+37 }
0x2ebd   :  { %v3779_v13 = vand.u32 2147483647, %v7452_v30  ;;  %v3989_v47 = vpop.f32.mrf.mxu3 }
0x2ebe   :  { %v7456_v31 = vadd.f32 %v7432_v32, %v3989_v47 }
0x2ebf   :  { %v3781_v37 = vmul.f32 0.3275911, %v3779_v13  ;;  %v3833_v54 = vsub.f32 0.0, %v3779_v13 }
0x2ec0   :  { %v5996_v61 = vpop.eup %5995  ;;  %3996 = vrot.lane.b32.xlu0 %v7456_v31, %s6106_s10  ;;  %4093 = vrot.lane.b32.xlu2 %v7456_v31, %s6112_s21 }
0x2ec1   :  { %v3785_v46 = vmul.f32 %v5996_v61, %v3782_v1  ;;  %v3783_v42 = vadd.f32 1.0, %v3781_v37  ;;  %vm3790_vm1 = vweird.f32 %v5996_v61  ;;  %v3835_v26 = vmul.f32 %v3833_v54, %v3779_v13 }
0x2ec2   :  { %vm3791_vm4 = vmor %vm3789_vm3, %vm3790_vm1  ;;  %vm3845_vm1 = vcmp.ge.f32.partialorder %v7452_v30, 0.0 }
0x2ec3   :  { %v3786_v24 = vsub.f32 1.0, %v3785_v46  ;;  %5997 = vrcp.f32 %v3783_v42  ;;  %v3810_v60 = vand.u32 2147483648, %v3783_v42  ;;  %v3808_v43 = vand.u32 2147483647, %v3783_v42 }
0x2ec4   :  { %vm3804_vm10 = vweird.f32 %v3783_v42  ;;  %5999 = vpow2.f32 %v3836_v62  ;;  %v3838_v7 = vmul.f32 1.442695, %v3835_v26 }
0x2ec5   :  { %v3787_v51 = vmul.f32 %v5996_v61, %v3786_v24  ;;  %v3811_v0 = vor.u32 1.1754944e-38, %v3810_v60  ;;  %vm3809_vm15 = vcmp.eq.f32.partialorder %v3808_v43, 8.507059e+37 }
0x2ec6   :  { %6001 = vpow2.f32 %v3838_v7 }
0x2ec7   :  { %v3788_v29 = vadd.f32 %v5996_v61, %v3787_v51  ;;  %v3774_v51 = vmul.f32 0.5, %v7442_v27  ;;  %v4092_v27 = vpop.permute.xlu0 %4091 }
0x2ec8   :  { %3994 = vrot.lane.b32.xlu0 %v7435_v17, %s6106_s10  ;;  %4089 = vrot.lane.b32.xlu2 %v7456_v31, %s6113_s22 }
0x2ec9   :  { %v5998_v33 = vpop.eup %5997  ;;  %v3792_v48 = vsel %vm3791_vm4, %v5996_v61, %v3788_v29 }
0x2eca   :  { %v3797_v58 = vsel %vm3794_vm5, %v3796_v15, %v3792_v48  ;;  %v3800_v52 = vmul.f32 %v5998_v33, %v3783_v42  ;;  %vm3805_vm7 = vweird.f32 %v5998_v33  ;;  %v6000_v1 = vpop.eup %5999 }
0x2ecb   :  { %v3814_v4 = vmul.f32 1.0614054, %v3797_v58  ;;  %vm3806_vm14 = vmor %vm3804_vm10, %vm3805_vm7 }
0x2ecc   :  { %v3801_v12 = vsub.f32 1.0, %v3800_v52  ;;  %v6002_v29 = vpop.eup %6001  ;;  %v3775_v52 = vmul.f32 0.5, %v7449_v39 }
0x2ecd   :  { %v3816_v5 = vadd.f32 -1.4531521, %v3814_v4 }
0x2ece   :  { %v3802_v11 = vmul.f32 %v5998_v33, %v3801_v12 }
0x2ecf   :  { %v3818_v49 = vmul.f32 %v3816_v5, %v3797_v58  ;;  %v4088_v5 = vpop.permute.xlu1 %4087 }
0x2ed0   :  { %v3803_v16 = vadd.f32 %v5998_v33, %v3802_v11 }
0x2ed1   :  { %v3820_v50 = vadd.f32 1.4214138, %v3818_v49 }
0x2ed2   :  { %v3807_v14 = vsel %vm3806_vm14, %v5998_v33, %v3803_v16 }
0x2ed3   :  { %v3822_v19 = vmul.f32 %v3820_v50, %v3797_v58  ;;  %v3812_v3 = vsel %vm3809_vm15, %v3811_v0, %v3807_v14 }
0x2ed4   :  { %v3815_v63 = vmul.f32 1.0614054, %v3812_v3 }
0x2ed5   :  { %v3824_v20 = vadd.f32 -0.28449672, %v3822_v19 }
0x2ed6   :  { %v3817_v40 = vadd.f32 -1.4531521, %v3815_v63 }
0x2ed7   :  { %v3826_v34 = vmul.f32 %v3824_v20, %v3797_v58 }
0x2ed8   :  { %v3819_v59 = vmul.f32 %v3817_v40, %v3812_v3 }
0x2ed9   :  { %v3828_v10 = vadd.f32 0.2548296, %v3826_v34 }
0x2eda   :  { %v3821_v25 = vadd.f32 1.4214138, %v3819_v59 }
0x2edb   :  { %v3830_v36 = vmul.f32 %v3828_v10, %v3797_v58 }
0x2edc   :  { %v3823_v38 = vmul.f32 %v3821_v25, %v3812_v3 }
0x2edd   :  { %v3840_v47 = vmul.f32 %v6000_v1, %v3830_v36 }
0x2ede   :  { %v3825_v37 = vadd.f32 -0.28449672, %v3823_v38 }
0x2edf   :  { %v3842_v61 = vsub.f32 1.0, %v3840_v47 }
0x2ee0   :  { %v3827_v46 = vmul.f32 %v3825_v37, %v3812_v3 }
0x2ee1   :  { %v3846_v42 = vsub.f32 0.0, %v3842_v61 }
0x2ee2   :  { %v3829_v24 = vadd.f32 0.2548296, %v3827_v46 }
0x2ee3   :  { %v3848_v55 = vsel %vm3844_vm0, %v3842_v61, %v3846_v42 }
0x2ee4   :  { %v3850_v13 = vadd.f32 1.0, %v3848_v55  ;;  %v3831_v9 = vmul.f32 %v3829_v24, %v3812_v3 }
0x2ee6   :  { %v3852_v15 = vmul.f32 %v3850_v13, %v3774_v51  ;;  %v3841_v33 = vmul.f32 %v6002_v29, %v3831_v9 }
0x2ee8   :  { %v3843_v48 = vsub.f32 1.0, %v3841_v33  ;;  %5552 = vmatmul.msk.f32.vlgmr.msra.gmra.mxu2 %vm3332_vm2, %v3852_v15 }
0x2eea   :  { %v3847_v58 = vsub.f32 0.0, %v3843_v48 }
0x2eec   :  { %v3849_v23 = vsel %vm3845_vm1, %v3843_v48, %v3847_v58 }
0x2eed   :  { %v3851_v4 = vadd.f32 1.0, %v3849_v23 }
0x2eef   :  { %v3853_v18 = vmul.f32 %v3851_v4, %v3775_v52 }
0x2ef1   :  { %5553 = vmatmul.msk.f32.gmra.mxu2 %vm3332_vm2, %v3853_v18 }
0x2f1a   :  { %v4094_v12 = vpop.permute.xlu2 %4093 }
0x2f1b   :  { %5571 = vmatpush.xpose.msk.msrb.mxu2 %vm2917_vm8, %v4094_v12 }
0x2f1f   :  { %5572 = vmatpush.xpose.msk.msrb.mxu2 %vm2917_vm8, %v4092_v27 }
0x2f22   :  { %5573 = vmatmul.msk.f32.vlgmr.msrb.gmra.mxu2 %vm2917_vm8, %v4088_v5  ;;  %v4090_v60 = vpop.permute.xlu2 %4089 }
0x2f2a   :  { %5574 = vmatmul.msk.f32.gmra.mxu2 %vm2917_vm8, %v4090_v60 }
0x2f32   :  { %v3997_v30 = vpop.permute.xlu0 %3996 }
0x2f33   :  { %5564 = vmatpush.xpose.msk.msra.mxu0 %vm2917_vm8, %v3997_v30  ;;  %v7521_v30 = vld [vmem:[%s8042_s2 + $0x100] sm:$0xff] }
0x2f3a   :  { %v3995_v39 = vpop.permute.xlu0 %3994 }
0x2f3b   :  { %5565 = vmatpush.xpose.msk.msra.mxu0 %vm2917_vm8, %v3995_v39  ;;  %v7526_v39 = vld [vmem:[%s8042_s2 + $0xa0] sm:$0xff] }
0x2f3e   :  { %5566 = vmatmul.msk.f32.vlgmr.msra.gmra.mxu0 %vm2917_vm8, %v7435_v17 }
0x2f46   :  { %5567 = vmatmul.msk.f32.gmra.mxu0 %vm2917_vm8, %v7456_v31 }
0x2f6b   :  { %v3877_v57 = vpop.f32.mrf.mxu2 }
0x2f6c   :  { %v3878_v24 = vadd.f32 %v7301_v8, %v3877_v57  ;;  %v7533_v57 = vld [vmem:[%s8042_s2 + $0x40] sm:$0xff] }
0x2f6e   :  { %v7498_v51 = vadd.f32 %v3878_v24, %v7411_v21  ;;  %v7511_v21 = vld [vmem:[%s8042_s2 + $0x160] sm:$0xff] }
0x2f6f   :  { %4204 = vmatpush.msrb.mxu0 %v7511_v21 }
0x2f70   :  { %v3885_v13 = vsel %vm91_vm6, %v7498_v51, 0.0 }
0x2f71   :  { %4205 = vmatpush.msrb.mxu0 %v7521_v30 }
0x2f73   :  { %4507 = vmatpush.msra.mxu0 %v7354_v56 }
0x2f74   :  { %v7482_v11 = vpop.f32.mrf.mxu2 }
0x2f75   :  { %4508 = vmatpush.msra.mxu0 %v7364_v22  ;;  %v7547_v22 = vld [vmem:[%s8041_s4 + $0xe] ss:$0 sm:$0xff] }
0x2f77   :  { %4509 = vmatpush.msra.mxu0 %v7371_v35 }
0x2f79   :  { %4510 = vmatpush.msra.mxu0 %v7381_v2 }
0x2fa5   :  { %v4120_v43 = vpop.f32.mrf.mxu2 }
0x2fa6   :  { %v4126_v49 = vsel %vm2949_vm9, %v4120_v43, -inf }
0x2fa7   :  { %4127 = vmax.xlane.f32.xlu1 %v4126_v49 }
0x2fad   :  { %v4123_v16 = vpop.f32.mrf.mxu2 }
0x2fae   :  { %v4129_v50 = vsel %vm2953_vm11, %v4123_v16, -inf }
0x2faf   :  { %4130 = vmax.xlane.f32.xlu0 %v4129_v50 }
0x2fbb   :  { %v4023_v0 = vpop.f32.mrf.mxu0 }
0x2fbc   :  { %v4029_v62 = vsel %vm2949_vm9, %v4023_v0, -inf }
0x2fbd   :  { %4030 = vmax.xlane.f32.xlu2 %v4029_v62 }
0x2fc3   :  { %v4026_v14 = vpop.f32.mrf.mxu0 }
0x2fc4   :  { %v4032_v19 = vsel %vm2953_vm11, %v4026_v14, -inf }
0x2fc5   :  { %4033 = vmax.xlane.f32.xlu1 %v4032_v19 }
0x2fde   :  { %4150 = vrot.lane.b32.xlu1 %v7456_v31, %s6114_s23 }
0x301a   :  { %v4128_v3 = vpop.xlane.xlu1 %4127 }
0x301b   :  { %v4132_v54 = vsub.f32 %v4120_v43, %v4128_v3 }
0x301d   :  { %v4134_v63 = vmul.f32 1.442695, %v4132_v54 }
0x301f   :  { %6003 = vpow2.f32 %v4134_v63 }
0x3022   :  { %v4131_v20 = vpop.xlane.xlu0 %4130 }
0x3023   :  { %v4133_v40 = vsub.f32 %v4123_v16, %v4131_v20 }
0x3025   :  { %v6004_v34 = vpop.eup %6003  ;;  %v4136_v26 = vmul.f32 1.442695, %v4133_v40 }
0x3026   :  { %v4138_v59 = vsel %vm2949_vm9, %v6004_v34, 0.0 }
0x3027   :  { %6005 = vpow2.f32 %v4136_v26  ;;  %4139 = vadd.xlane.f32.xlu2 %v4138_v59 }
0x302d   :  { %v6006_v10 = vpop.eup %6005 }
0x302e   :  { %v4141_v25 = vsel %vm2953_vm11, %v6006_v10, 0.0 }
0x302f   :  { %4142 = vadd.xlane.f32.xlu2 %v4141_v25 }
0x3030   :  { %v4031_v36 = vpop.xlane.xlu2 %4030 }
0x3031   :  { %v4035_v7 = vsub.f32 %v4023_v0, %v4031_v36 }
0x3033   :  { %v4037_v1 = vmul.f32 1.442695, %v4035_v7 }
0x3035   :  { %6007 = vpow2.f32 %v4037_v1 }
0x3038   :  { %v4034_v38 = vpop.xlane.xlu1 %4033 }
0x3039   :  { %v4036_v47 = vsub.f32 %v4026_v14, %v4034_v38  ;;  %v3881_v14 = vadd.f32 %v7301_v8, %v7482_v11 }
0x303b   :  { %v6008_v37 = vpop.eup %6007  ;;  %v4039_v61 = vmul.f32 1.442695, %v4036_v47  ;;  %v3884_v40 = vadd.f32 %v3881_v14, %v7423_v6 }
0x303c   :  { %v4041_v46 = vsel %vm2949_vm9, %v6008_v37, 0.0 }
0x303d   :  { %6009 = vpow2.f32 %v4039_v61  ;;  %4042 = vadd.xlane.f32.xlu0 %v4041_v46  ;;  %v3888_v8 = vsel %vm3173_vm13, %v3884_v40, 0.0 }
0x3043   :  { %v6010_v42 = vpop.eup %6009 }
0x3044   :  { %v4044_v55 = vsel %vm2953_vm11, %v6010_v42, 0.0 }
0x3045   :  { %4045 = vadd.xlane.f32.xlu1 %v4044_v55 }
0x3047   :  { %4053 = vrot.lane.b32.xlu2 %v7456_v31, %s6105_s30 }
0x304d   :  { %3886 = vadd.xlane.f32.xlu1 %v3885_v13 }
0x3050   :  { %v4151_v9 = vpop.permute.xlu1 %4150 }
0x3051   :  { %5575 = vmatpush.msk.msra.mxu3 %vm2984_vm12, %v4151_v9  ;;  %4148 = vrot.lane.b32.xlu0 %v7435_v17, %s6114_s23 }
0x3059   :  { %4051 = vrot.lane.b32.xlu0 %v7435_v17, %s6105_s30 }
0x309a   :  { %v4140_v29 = vpop.xlane.xlu2 %4139 }
0x309b   :  { %6011 = vrcp.f32 %v4140_v29 }
0x30a1   :  { %v6012_v48 = vpop.eup %6011 }
0x30a2   :  { %v4143_v15 = vpop.xlane.xlu2 %4142  ;;  %v4146_v58 = vmul.f32 %v6012_v48, %v6004_v34 }
0x30a3   :  { %6013 = vrcp.f32 %v4143_v15 }
0x30a9   :  { %v6014_v17 = vpop.eup %6013 }
0x30aa   :  { %v4054_v33 = vpop.permute.xlu2 %4053  ;;  %v4147_v27 = vmul.f32 %v6014_v17, %v6006_v10 }
0x30ab   :  { %5568 = vmatpush.msk.msra.mxu1 %vm2984_vm12, %v4054_v33 }
0x30b0   :  { %v4043_v31 = vpop.xlane.xlu0 %4042 }
0x30b1   :  { %6015 = vrcp.f32 %v4043_v31 }
0x30b7   :  { %v6016_v4 = vpop.eup %6015 }
0x30b8   :  { %v4046_v52 = vpop.xlane.xlu1 %4045  ;;  %v4049_v18 = vmul.f32 %v6016_v4, %v6008_v37 }
0x30b9   :  { %6017 = vrcp.f32 %v4046_v52 }
0x30bf   :  { %v6018_v5 = vpop.eup %6017 }
0x30c0   :  { %v4050_v60 = vmul.f32 %v6018_v5, %v6010_v42  ;;  %v3887_v19 = vpop.xlane.xlu1 %3886  ;;  %v7596_v5 = vld [vmem:[%s8042_s2 + $0x108] sm:$0xff] }
0x30c1   :  { %v3891_v34 = vmul.f32 %v3887_v19, %v6279_v53 }
0x30c3   :  { %v4149_v23 = vpop.permute.xlu0 %4148 }
0x30c4   :  { %4176 = vmatpush.msra.mxu3 %v4149_v23 }
0x30c5   :  { %5576 = vmatmul.msk.f32.vlgmr.msra.gmra.mxu3 %vm2949_vm9, %v4146_v58 }
0x30cb   :  { %v4052_v12 = vpop.permute.xlu0 %4051 }
0x30cc   :  { %4079 = vmatpush.msra.mxu1 %v4052_v12 }
0x30cd   :  { %5569 = vmatmul.msk.f32.vlgmr.msra.gmra.mxu1 %vm2949_vm9, %v4049_v18  ;;  %5577 = vmatmul.msk.f32.gmra.mxu3 %vm2949_vm9, %v4147_v27  ;;  %v7590_v27 = vld [vmem:[%s8042_s2 + $0x168] sm:$0xff] }
0x30ce   :  { %4233 = vmatpush.msrb.mxu1 %v7526_v39  ;;  %4316 = vmatpush.msra.mxu2 %v7590_v27 }
0x30d0   :  { %4234 = vmatpush.msrb.mxu1 %v7533_v57  ;;  %4317 = vmatpush.msra.mxu2 %v7596_v5 }
0x30d5   :  { %5570 = vmatmul.msk.f32.gmra.mxu1 %vm2949_vm9, %v4050_v60  ;;  %v7602_v60 = vld [vmem:[%s8042_s2 + $0xa8] sm:$0xff] }
0x30d6   :  { %4318 = vmatpush.msra.mxu2 %v7602_v60 }
0x3148   :  { %v4178_v43 = vpop.f32.mrf.mxu3 }
0x3149   :  { %5578 = vmatmul.msk.f32.vlgmr.msrb.gmra.mxu0 %vm2917_vm8, %v4178_v43  ;;  %v7608_v43 = vld [vmem:[%s8042_s2 + $0x48] sm:$0xff] }
0x314a   :  { %v4081_v49 = vpop.f32.mrf.mxu1  ;;  %4319 = vmatpush.msra.mxu2 %v7608_v43 }
0x314b   :  { %5580 = vmatmul.msk.f32.vlgmr.msrb.gmra.mxu1 %vm2917_vm8, %v4081_v49 }
0x3150   :  { %v4181_v16 = vpop.f32.mrf.mxu3 }
0x3151   :  { %5579 = vmatmul.msk.f32.gmra.mxu0 %vm2917_vm8, %v4181_v16 }
0x3152   :  { %v4084_v50 = vpop.f32.mrf.mxu1 }
0x3153   :  { %5581 = vmatmul.msk.f32.gmra.mxu1 %vm2917_vm8, %v4084_v50 }
0x31c6   :  { %v4207_v56 = vpop.f32.mrf.mxu0 }
0x31c8   :  { %v4236_v35 = vpop.f32.mrf.mxu1 }
0x31c9   :  { %v4237_v2 = vadd.f32 %v4236_v35, %v4207_v56 }
0x31cb   :  { %v4243_v0 = vadd.f32 %v7547_v22, %v4237_v2 }
0x31cd   :  { %v4245_v62 = vadd.f32 %v4243_v0, %v7401_v41  ;;  %v3893_v41 = vsub.f32 %v7498_v51, %v3891_v34 }
0x31ce   :  { %v4210_v54 = vpop.f32.mrf.mxu0 }
0x31cf   :  { %v4247_v3 = vsel %vm91_vm6, %v4245_v62, 0.0  ;;  %v3895_v11 = vmul.f32 %v3893_v41, %v3893_v41 }
0x31d0   :  { %v4239_v63 = vpop.f32.mrf.mxu1  ;;  %4248 = vadd.xlane.f32.xlu2 %v4247_v3 }
0x31d1   :  { %v4240_v20 = vadd.f32 %v4239_v63, %v4210_v54  ;;  %v3897_v25 = vsel %vm91_vm6, %v3895_v11, 0.0 }
0x31d3   :  { %v4244_v26 = vadd.f32 %v7547_v22, %v4240_v20 }
0x31d5   :  { %v4246_v59 = vadd.f32 %v4244_v26, %v7420_v28 }
0x31d7   :  { %v4250_v10 = vsel %vm3173_vm13, %v4246_v59, 0.0 }
0x31d8   :  { %4251 = vadd.xlane.f32.xlu0 %v4250_v10  ;;  %3889 = vadd.xlane.f32.xlu2 %v3888_v8 }
0x31e0   :  { %3898 = vadd.xlane.f32.xlu2 %v3897_v25  ;;  %v7622_v25 = vld [vmem:[%s8041_s4 + $0x10] ss:$0 sm:$0xff] }
0x3243   :  { %v4249_v36 = vpop.xlane.xlu2 %4248 }
0x3244   :  { %v4253_v6 = vmul.f32 %v4249_v36, %v6279_v53 }
0x3246   :  { %v7563_v7 = vsub.f32 %v4245_v62, %v4253_v6 }
0x3248   :  { %v4257_v28 = vmul.f32 %v7563_v7, %v7563_v7 }
0x324a   :  { %v4259_v1 = vsel %vm91_vm6, %v4257_v28, 0.0 }
0x324b   :  { %v4252_v38 = vpop.xlane.xlu0 %4251  ;;  %4260 = vadd.xlane.f32.xlu1 %v4259_v1  ;;  %v3890_v47 = vpop.xlane.xlu2 %3889 }
0x324c   :  { %v4254_v37 = vmul.f32 %v4252_v38, %v6279_v53  ;;  %v3892_v61 = vmul.f32 %v3890_v47, %v6279_v53 }
0x324e   :  { %v7570_v46 = vsub.f32 %v4246_v59, %v4254_v37  ;;  %v7572_v42 = vsub.f32 %v3884_v40, %v3892_v61 }
0x3250   :  { %v4258_v24 = vmul.f32 %v7570_v46, %v7570_v46  ;;  %v3896_v55 = vmul.f32 %v7572_v42, %v7572_v42 }
0x3252   :  { %v4262_v51 = vsel %vm3173_vm13, %v4258_v24, 0.0  ;;  %v3900_v13 = vsel %vm3173_vm13, %v3896_v55, 0.0 }
0x3253   :  { %4263 = vadd.xlane.f32.xlu0 %v4262_v51  ;;  %3901 = vadd.xlane.f32.xlu1 %v3900_v13  ;;  %v3899_v9 = vpop.xlane.xlu2 %3898 }
0x3254   :  { %v3903_v29 = vmul.f32 %v3899_v9, %v6279_v53 }
0x3256   :  { %v3905_v15 = vadd.f32 1e-12, %v3903_v29 }
0x3258   :  { %6019 = vrsqrt.f32 %v3905_v15  ;;  %vm3913_vm4 = vweird.f32 %v3905_v15 }
0x325e   :  { %v6020_v33 = vpop.eup %6019 }
0x325f   :  { %v3908_v31 = vmul.f32 %v6020_v33, %v3905_v15  ;;  %vm3914_vm3 = vweird.f32 %v6020_v33 }
0x3260   :  { %vm3915_vm5 = vmor %vm3913_vm4, %vm3914_vm3 }
0x3261   :  { %v3909_v48 = vmul.f32 %v6020_v33, %v3908_v31 }
0x3263   :  { %v3910_v58 = vmul.f32 0.5, %v3909_v48 }
0x3265   :  { %v3911_v23 = vsub.f32 1.5, %v3910_v58 }
0x3267   :  { %v3912_v17 = vmul.f32 %v6020_v33, %v3911_v23 }
0x3269   :  { %v3916_v52 = vsel %vm3915_vm5, %v6020_v33, %v3912_v17 }
0x326a   :  { %v3927_v4 = vmul.f32 %v3916_v52, %v3893_v41  ;;  %v7617_v41 = vld [vmem:[%s8041_s4 + $0xf] ss:$0 sm:$0xff] }
0x326c   :  { %v3929_v18 = vmul.f32 %v7392_v45, %v3927_v4 }
0x326e   :  { %v7583_v12 = vadd.f32 %v7397_v44, %v3929_v18 }
0x3270   :  { %5586 = vmatmul.msk.f32.vlgmr.msra.gmra.mxu0 %vm91_vm6, %v7583_v12 }
0x32be   :  { %v4261_v49 = vpop.xlane.xlu1 %4260 }
0x32bf   :  { %v4265_v16 = vmul.f32 %v4261_v49, %v6279_v53 }
0x32c1   :  { %v4267_v50 = vadd.f32 1e-12, %v4265_v16 }
0x32c3   :  { %6021 = vrsqrt.f32 %v4267_v50  ;;  %vm4275_vm10 = vweird.f32 %v4267_v50 }
0x32c6   :  { %v4264_v56 = vpop.xlane.xlu0 %4263  ;;  %v3902_v35 = vpop.xlane.xlu1 %3901 }
0x32c7   :  { %v4266_v2 = vmul.f32 %v4264_v56, %v6279_v53  ;;  %v3904_v0 = vmul.f32 %v3902_v35, %v6279_v53  ;;  %v7686_v56 = vld [vmem:[%s8043_s3 + $0x70] sm:$0xff] }
0x32c9   :  { %v6022_v62 = vpop.eup %6021  ;;  %v4268_v14 = vadd.f32 1e-12, %v4266_v2  ;;  %v3906_v19 = vadd.f32 1e-12, %v3904_v0  ;;  %v7695_v2 = vld [vmem:[%s8043_s3 + $0x68] sm:$0xff] }
0x32ca   :  { %v4270_v3 = vmul.f32 %v6022_v62, %v4267_v50  ;;  %vm4276_vm7 = vweird.f32 %v6022_v62 }
0x32cb   :  { %6023 = vrsqrt.f32 %v4268_v14  ;;  %vm4277_vm14 = vmor %vm4275_vm10, %vm4276_vm7  ;;  %vm4285_vm1 = vweird.f32 %v4268_v14  ;;  %vm3923_vm4 = vweird.f32 %v3906_v19 }
0x32cc   :  { %v4271_v54 = vmul.f32 %v6022_v62, %v4270_v3  ;;  %6025 = vrsqrt.f32 %v3906_v19 }
0x32ce   :  { %v4272_v63 = vmul.f32 0.5, %v4271_v54  ;;  %v7707_v54 = vld [vmem:[%s8043_s3 + $0x58] sm:$0xff] }
0x32d0   :  { %v4273_v20 = vsub.f32 1.5, %v4272_v63 }
0x32d1   :  { %v6024_v40 = vpop.eup %6023 }
0x32d2   :  { %v6026_v34 = vpop.eup %6025  ;;  %v4274_v26 = vmul.f32 %v6022_v62, %v4273_v20  ;;  %v4280_v59 = vmul.f32 %v6024_v40, %v4268_v14  ;;  %vm4286_vm15 = vweird.f32 %v6024_v40  ;;  %v7701_v14 = vld [vmem:[%s8043_s3 + $0x60] sm:$0xff] }
0x32d3   :  { %v3918_v10 = vmul.f32 %v6026_v34, %v3906_v19  ;;  %vm3924_vm0 = vweird.f32 %v6026_v34  ;;  %vm4287_vm3 = vmor %vm4285_vm1, %vm4286_vm15 }
0x32d4   :  { %v4278_v8 = vsel %vm4277_vm14, %v6022_v62, %v4274_v26  ;;  %v4281_v11 = vmul.f32 %v6024_v40, %v4280_v59  ;;  %vm3925_vm5 = vmor %vm3923_vm4, %vm3924_vm0  ;;  %v7721_v59 = vld [vmem:[%s8043_s3 + $0x48] sm:$0xff] }
0x32d5   :  { %v4289_v36 = vmul.f32 %v4278_v8, %v7563_v7  ;;  %v3919_v6 = vmul.f32 %v6026_v34, %v3918_v10 }
0x32d6   :  { %v4282_v28 = vmul.f32 0.5, %v4281_v11  ;;  %v7727_v11 = vld [vmem:[%s8043_s3 + $0x40] sm:$0xff] }
0x32d7   :  { %v4292_v1 = vmul.f32 %v7617_v41, %v4289_v36  ;;  %v3920_v38 = vmul.f32 0.5, %v3919_v6 }
0x32d8   :  { %v4283_v47 = vsub.f32 1.5, %v4282_v28 }
0x32d9   :  { %v7627_v37 = vadd.f32 %v7622_v25, %v4292_v1  ;;  %v3921_v61 = vsub.f32 1.5, %v3920_v38 }
0x32da   :  { %v4284_v24 = vmul.f32 %v6024_v40, %v4283_v47 }
0x32db   :  { %v3922_v55 = vmul.f32 %v6026_v34, %v3921_v61  ;;  %5582 = vmatmul.msk.f32.vlgmr.msra.gmra.mxu2 %vm91_vm6, %v7627_v37 }
0x32dc   :  { %v4288_v7 = vsel %vm4287_vm3, %v6024_v40, %v4284_v24  ;;  %v7713_v40 = vld [vmem:[%s8043_s3 + $0x50] sm:$0xff] }
0x32dd   :  { %v4290_v51 = vmul.f32 %v4288_v7, %v7570_v46  ;;  %v3926_v13 = vsel %vm3925_vm5, %v6026_v34, %v3922_v55 }
0x32de   :  { %v3928_v9 = vmul.f32 %v3926_v13, %v7572_v42 }
0x32df   :  { %v4293_v29 = vmul.f32 %v7617_v41, %v4290_v51 }
0x32e0   :  { %v3930_v15 = vmul.f32 %v7392_v45, %v3928_v9  ;;  %v7653_v45 = vld [vmem:[%s8041_s4 + $0x11] ss:$0 sm:$0xff] }
0x32e1   :  { %v7636_v33 = vadd.f32 %v7622_v25, %v4293_v29 }
0x32e2   :  { %v7639_v31 = vadd.f32 %v7397_v44, %v3930_v15 }
0x32e3   :  { %5583 = vmatmul.msk.f32.gmra.mxu2 %vm91_vm6, %v7636_v33 }
0x32e4   :  { %5587 = vmatmul.msk.f32.gmra.mxu0 %vm91_vm6, %v7639_v31 }
0x32ed   :  { %v4512_v46 = vpop.f32.mrf.mxu0 }
0x32ee   :  { %v7646_v48 = vadd.f32 %v7432_v32, %v4512_v46 }
0x32f0   :  { %4520 = vrot.lane.b32.xlu2 %v7646_v48, %s6106_s10 }
0x335e   :  { %v4321_v44 = vpop.f32.mrf.mxu2 }
0x335f   :  { %v7656_v42 = vadd.f32 %v7653_v45, %v4321_v44 }
0x3361   :  { %v7659_v58 = vmul.f32 0.70710677, %v7656_v42  ;;  %v4515_v23 = vpop.f32.mrf.mxu0 }
0x3362   :  { %v7662_v17 = vadd.f32 %v7432_v32, %v4515_v23  ;;  %v7677_v32 = vld [vmem:[%s8043_s3 + $0x78] sm:$0xff] }
0x3363   :  { %v4331_v52 = vand.u32 2147483647, %v7659_v58  ;;  %4422 = vmatpush.msrb.mxu3 %v7677_v32  ;;  %vm4397_vm5 = vcmp.ge.f32.partialorder %v7659_v58, 0.0 }
0x3364   :  { %4619 = vrot.lane.b32.xlu1 %v7662_v17, %s6112_s21  ;;  %4522 = vrot.lane.b32.xlu0 %v7662_v17, %s6106_s10 }
0x3365   :  { %v4333_v4 = vmul.f32 0.3275911, %v4331_v52  ;;  %4615 = vrot.lane.b32.xlu2 %v7662_v17, %s6113_s22  ;;  %4423 = vmatpush.msrb.mxu3 %v7686_v56  ;;  %v4385_v1 = vsub.f32 0.0, %v4331_v52 }
0x3366   :  { %v4324_v18 = vpop.f32.mrf.mxu2 }
0x3367   :  { %v4335_v49 = vadd.f32 1.0, %v4333_v4  ;;  %v7672_v16 = vadd.f32 %v7653_v45, %v4324_v18  ;;  %4424 = vmatpush.msrb.mxu3 %v7695_v2  ;;  %v4387_v7 = vmul.f32 %v4385_v1, %v4331_v52 }
0x3369   :  { %6027 = vrcp.f32 %v4335_v49  ;;  %v7680_v50 = vmul.f32 0.70710677, %v7672_v16  ;;  %4425 = vmatpush.msrb.mxu3 %v7701_v14  ;;  %v4348_v20 = vand.u32 2147483648, %v4335_v49  ;;  %v4346_v26 = vand.u32 2147483647, %v4335_v49 }
0x336a   :  { %vm4342_vm10 = vweird.f32 %v4335_v49  ;;  %v4389_v44 = vmul.f32 1.442695, %v4387_v7  ;;  %v4327_v7 = vmul.f32 0.5, %v7656_v42 }
0x336b   :  { %v4332_v35 = vand.u32 2147483647, %v7680_v50  ;;  %4426 = vmatpush.msrb.mxu3 %v7707_v54  ;;  %v4349_v8 = vor.u32 1.1754944e-38, %v4348_v20  ;;  %vm4347_vm15 = vcmp.eq.f32.partialorder %v4346_v26, 8.507059e+37 }
0x336c   :  { %4617 = vrot.lane.b32.xlu0 %v7646_v48, %s6112_s21 }
0x336d   :  { %v4334_v0 = vmul.f32 0.3275911, %v4332_v35  ;;  %4427 = vmatpush.msrb.mxu3 %v7713_v40 }
0x336f   :  { %v6028_v62 = vpop.eup %6027  ;;  %v4336_v3 = vadd.f32 1.0, %v4334_v0  ;;  %4428 = vmatpush.msrb.mxu3 %v7721_v59 }
0x3370   :  { %v4338_v19 = vmul.f32 %v6028_v62, %v4335_v49  ;;  %vm4343_vm7 = vweird.f32 %v6028_v62  ;;  %v4386_v49 = vsub.f32 0.0, %v4332_v35 }
0x3371   :  { %6029 = vrcp.f32 %v4336_v3  ;;  %vm4344_vm14 = vmor %vm4342_vm10, %vm4343_vm7  ;;  %4429 = vmatpush.msrb.mxu3 %v7727_v11  ;;  %v4363_v55 = vand.u32 2147483648, %v4336_v3  ;;  %v4361_v13 = vand.u32 2147483647, %v4336_v3  ;;  %vm4357_vm1 = vweird.f32 %v4336_v3 }
0x3372   :  { %v4339_v63 = vsub.f32 1.0, %v4338_v19  ;;  %6031 = vpow2.f32 %v4389_v44  ;;  %vm4398_vm7 = vcmp.ge.f32.partialorder %v7680_v50, 0.0  ;;  %v4328_v44 = vmul.f32 0.5, %v7672_v16 }
0x3373   :  { %v4364_v46 = vor.u32 1.1754944e-38, %v4363_v55  ;;  %vm4362_vm4 = vcmp.eq.f32.partialorder %v4361_v13, 8.507059e+37 }
0x3374   :  { %v4340_v34 = vmul.f32 %v6028_v62, %v4339_v63  ;;  %4613 = vrot.lane.b32.xlu0 %v7646_v48, %s6113_s22  ;;  %v4388_v63 = vmul.f32 %v4386_v49, %v4332_v35 }
0x3376   :  { %v4341_v10 = vadd.f32 %v6028_v62, %v4340_v34 }
0x3377   :  { %v6030_v36 = vpop.eup %6029 }
0x3378   :  { %v4345_v6 = vsel %vm4344_vm14, %v6028_v62, %v4341_v10  ;;  %v4353_v38 = vmul.f32 %v6030_v36, %v4336_v3  ;;  %vm4358_vm0 = vweird.f32 %v6030_v36  ;;  %v4391_v3 = vmul.f32 1.442695, %v4388_v63 }
0x3379   :  { %v4350_v28 = vsel %vm4347_vm15, %v4349_v8, %v4345_v6  ;;  %vm4359_vm3 = vmor %vm4357_vm1, %vm4358_vm0  ;;  %v6032_v8 = vpop.eup %6031 }
0x337a   :  { %v4367_v47 = vmul.f32 1.0614054, %v4350_v28  ;;  %v4354_v61 = vsub.f32 1.0, %v4353_v38  ;;  %6033 = vpow2.f32 %v4391_v3 }
0x337c   :  { %v4369_v24 = vadd.f32 -1.4531521, %v4367_v47  ;;  %v4355_v51 = vmul.f32 %v6030_v36, %v4354_v61 }
0x337e   :  { %v4371_v9 = vmul.f32 %v4369_v24, %v4350_v28  ;;  %v4356_v29 = vadd.f32 %v6030_v36, %v4355_v51 }
0x3380   :  { %v4373_v15 = vadd.f32 1.4214138, %v4371_v9  ;;  %v4360_v23 = vsel %vm4359_vm3, %v6030_v36, %v4356_v29  ;;  %v6034_v13 = vpop.eup %6033 }
0x3381   :  { %v4365_v18 = vsel %vm4362_vm4, %v4364_v46, %v4360_v23 }
0x3382   :  { %v4375_v4 = vmul.f32 %v4373_v15, %v4350_v28  ;;  %v4368_v0 = vmul.f32 1.0614054, %v4365_v18 }
0x3384   :  { %v4377_v62 = vadd.f32 -0.28449672, %v4375_v4  ;;  %v4370_v19 = vadd.f32 -1.4531521, %v4368_v0 }
0x3386   :  { %v4379_v52 = vmul.f32 %v4377_v62, %v4350_v28  ;;  %v4372_v20 = vmul.f32 %v4370_v19, %v4365_v18 }
0x3388   :  { %v4381_v34 = vadd.f32 0.2548296, %v4379_v52  ;;  %v4374_v26 = vadd.f32 1.4214138, %v4372_v20 }
0x338a   :  { %v4383_v10 = vmul.f32 %v4381_v34, %v4350_v28  ;;  %v4376_v6 = vmul.f32 %v4374_v26, %v4365_v18 }
0x338c   :  { %v4393_v1 = vmul.f32 %v6032_v8, %v4383_v10  ;;  %v4378_v38 = vadd.f32 -0.28449672, %v4376_v6 }
0x338e   :  { %v4395_v36 = vsub.f32 1.0, %v4393_v1  ;;  %v4380_v47 = vmul.f32 %v4378_v38, %v4365_v18 }
0x3390   :  { %v4399_v61 = vsub.f32 0.0, %v4395_v36  ;;  %v4382_v24 = vadd.f32 0.2548296, %v4380_v47 }
0x3392   :  { %v4401_v55 = vsel %vm4397_vm5, %v4395_v36, %v4399_v61  ;;  %v4384_v51 = vmul.f32 %v4382_v24, %v4365_v18  ;;  %v4521_v18 = vpop.permute.xlu2 %4520 }
0x3393   :  { %v4403_v35 = vadd.f32 1.0, %v4401_v55 }
0x3394   :  { %v4394_v28 = vmul.f32 %v6034_v13, %v4384_v51 }
0x3395   :  { %v4405_v9 = vmul.f32 %v4403_v35, %v4327_v7 }
0x3396   :  { %v4396_v29 = vsub.f32 1.0, %v4394_v28 }
0x3397   :  { %5584 = vmatmul.msk.f32.vlgmr.msrb.gmra.mxu3 %vm3332_vm2, %v4405_v9 }
0x3398   :  { %v4400_v15 = vsub.f32 0.0, %v4396_v29 }
0x339a   :  { %v4402_v46 = vsel %vm4398_vm7, %v4396_v29, %v4400_v15 }
0x339b   :  { %v4404_v23 = vadd.f32 1.0, %v4402_v46 }
0x339d   :  { %v4406_v58 = vmul.f32 %v4404_v23, %v4328_v44 }
0x339f   :  { %5585 = vmatmul.msk.f32.gmra.mxu3 %vm3332_vm2, %v4406_v58 }
0x33d6   :  { %v4620_v4 = vpop.permute.xlu1 %4619  ;;  %v4523_v42 = vpop.permute.xlu0 %4522 }
0x33d7   :  { %5588 = vmatpush.xpose.msk.msra.mxu1 %vm2917_vm8, %v4523_v42  ;;  %5595 = vmatpush.xpose.msk.msra.mxu3 %vm2917_vm8, %v4620_v4 }
0x33db   :  { %5589 = vmatpush.xpose.msk.msra.mxu1 %vm2917_vm8, %v4521_v18 }
0x33de   :  { %v4618_v49 = vpop.permute.xlu0 %4617  ;;  %5590 = vmatmul.msk.f32.vlgmr.msra.gmra.mxu1 %vm2917_vm8, %v7646_v48 }
0x33df   :  { %4730 = vmatpush.msrb.mxu1 %v7511_v21  ;;  %5596 = vmatpush.xpose.msk.msra.mxu3 %vm2917_vm8, %v4618_v49  ;;  %v4616_v21 = vpop.permute.xlu2 %4615 }
0x33e1   :  { %4731 = vmatpush.msrb.mxu1 %v7521_v30 }
0x33e3   :  { %4838 = vmatpush.msrb.mxu3 %v7590_v27 }
0x33e5   :  { %4839 = vmatpush.msrb.mxu3 %v7596_v5 }
0x33e6   :  { %v4614_v16 = vpop.permute.xlu0 %4613  ;;  %5591 = vmatmul.msk.f32.gmra.mxu1 %vm2917_vm8, %v7662_v17 }
0x33e7   :  { %4840 = vmatpush.msrb.mxu3 %v7602_v60 }
0x33e8   :  { %5597 = vmatmul.msk.f32.vlgmr.msra.gmra.mxu3 %vm2917_vm8, %v4614_v16 }
0x33e9   :  { %4841 = vmatpush.msrb.mxu3 %v7608_v43 }
0x33f0   :  { %5598 = vmatmul.msk.f32.gmra.mxu3 %vm2917_vm8, %v4616_v21 }
0x341a   :  { %v7752_v50 = vpop.f32.mrf.mxu3 }
0x3422   :  { %v7755_v5 = vpop.f32.mrf.mxu3 }
0x345b   :  { %v4549_v30 = vpop.f32.mrf.mxu1 }
0x345c   :  { %v4555_v27 = vsel %vm2949_vm9, %v4549_v30, -inf }
0x345d   :  { %4556 = vmax.xlane.f32.xlu1 %v4555_v27 }
0x3463   :  { %v4552_v60 = vpop.f32.mrf.mxu1 }
0x3464   :  { %v4558_v0 = vsel %vm2953_vm11, %v4552_v60, -inf }
0x3465   :  { %4559 = vmax.xlane.f32.xlu0 %v4558_v0 }
0x346b   :  { %v4646_v62 = vpop.f32.mrf.mxu3 }
0x346c   :  { %v4652_v43 = vsel %vm2949_vm9, %v4646_v62, -inf }
0x346d   :  { %4653 = vmax.xlane.f32.xlu2 %v4652_v43 }
0x3473   :  { %v4649_v19 = vpop.f32.mrf.mxu3 }
0x3474   :  { %v4655_v52 = vsel %vm2953_vm11, %v4649_v19, -inf }
0x3475   :  { %4656 = vmax.xlane.f32.xlu1 %v4655_v52 }
0x3485   :  { %4579 = vrot.lane.b32.xlu2 %v7662_v17, %s6105_s30 }
0x34d0   :  { %v4557_v63 = vpop.xlane.xlu1 %4556 }
0x34d1   :  { %v4561_v20 = vsub.f32 %v4549_v30, %v4557_v63 }
0x34d3   :  { %v4563_v34 = vmul.f32 1.442695, %v4561_v20 }
0x34d5   :  { %6035 = vpow2.f32 %v4563_v34 }
0x34d8   :  { %v4560_v26 = vpop.xlane.xlu0 %4559 }
0x34d9   :  { %v4562_v10 = vsub.f32 %v4552_v60, %v4560_v26 }
0x34db   :  { %v6036_v3 = vpop.eup %6035  ;;  %v4565_v8 = vmul.f32 1.442695, %v4562_v10 }
0x34dc   :  { %v4567_v6 = vsel %vm2949_vm9, %v6036_v3, 0.0 }
0x34dd   :  { %6037 = vpow2.f32 %v4565_v8  ;;  %4568 = vadd.xlane.f32.xlu0 %v4567_v6 }
0x34e0   :  { %v4654_v1 = vpop.xlane.xlu2 %4653 }
0x34e1   :  { %v4658_v38 = vsub.f32 %v4646_v62, %v4654_v1 }
0x34e3   :  { %v4660_v36 = vmul.f32 1.442695, %v4658_v38  ;;  %v6038_v47 = vpop.eup %6037 }
0x34e4   :  { %v4570_v61 = vsel %vm2953_vm11, %v6038_v47, 0.0 }
0x34e5   :  { %6039 = vpow2.f32 %v4660_v36  ;;  %4571 = vadd.xlane.f32.xlu1 %v4570_v61 }
0x34e8   :  { %v4657_v24 = vpop.xlane.xlu1 %4656  ;;  %v4580_v55 = vpop.permute.xlu2 %4579 }
0x34e9   :  { %v4659_v7 = vsub.f32 %v4649_v19, %v4657_v24  ;;  %5592 = vmatpush.msk.msrb.mxu2 %vm2984_vm12, %v4580_v55 }
0x34eb   :  { %v6040_v35 = vpop.eup %6039  ;;  %v4662_v51 = vmul.f32 1.442695, %v4659_v7 }
0x34ec   :  { %v4664_v13 = vsel %vm2949_vm9, %v6040_v35, 0.0 }
0x34ed   :  { %6041 = vpow2.f32 %v4662_v51  ;;  %4665 = vadd.xlane.f32.xlu1 %v4664_v13 }
0x34f1   :  { %4577 = vrot.lane.b32.xlu0 %v7646_v48, %s6105_s30 }
0x34f3   :  { %v6042_v9 = vpop.eup %6041 }
0x34f4   :  { %v4667_v28 = vsel %vm2953_vm11, %v6042_v9, 0.0 }
0x34f5   :  { %4668 = vadd.xlane.f32.xlu2 %v4667_v28 }
0x34f9   :  { %4674 = vrot.lane.b32.xlu0 %v7646_v48, %s6114_s23 }
0x3506   :  { %4676 = vrot.lane.b32.xlu1 %v7662_v17, %s6114_s23 }
0x3550   :  { %v4569_v29 = vpop.xlane.xlu0 %4568 }
0x3551   :  { %6043 = vrcp.f32 %v4569_v29 }
0x3557   :  { %v6044_v46 = vpop.eup %6043 }
0x3558   :  { %v4572_v15 = vpop.xlane.xlu1 %4571  ;;  %v4575_v44 = vmul.f32 %v6044_v46, %v6036_v3 }
0x3559   :  { %6045 = vrcp.f32 %v4572_v15 }
0x355f   :  { %v6046_v58 = vpop.eup %6045 }
0x3560   :  { %v4576_v4 = vmul.f32 %v6046_v58, %v6038_v47  ;;  %v4666_v48 = vpop.xlane.xlu1 %4665 }
0x3561   :  { %6047 = vrcp.f32 %v4666_v48 }
0x3563   :  { %v4578_v23 = vpop.permute.xlu0 %4577 }
0x3564   :  { %4605 = vmatpush.msrb.mxu2 %v4578_v23 }
0x3565   :  { %5593 = vmatmul.msk.f32.vlgmr.msrb.gmra.mxu2 %vm2949_vm9, %v4575_v44 }
0x3566   :  { %4759 = vmatpush.msra.mxu2 %v7526_v39 }
0x3567   :  { %v6048_v42 = vpop.eup %6047 }
0x3568   :  { %4760 = vmatpush.msra.mxu2 %v7533_v57  ;;  %v4669_v17 = vpop.xlane.xlu2 %4668  ;;  %v4672_v49 = vmul.f32 %v6048_v42, %v6040_v35 }
0x3569   :  { %6049 = vrcp.f32 %v4669_v17 }
0x356b   :  { %v4675_v16 = vpop.permute.xlu0 %4674 }
0x356d   :  { %5594 = vmatmul.msk.f32.gmra.mxu2 %vm2949_vm9, %v4576_v4 }
0x356f   :  { %v6050_v39 = vpop.eup %6049 }
0x3570   :  { %v4673_v57 = vmul.f32 %v6050_v39, %v6042_v9 }
0x3578   :  { %v4677_v18 = vpop.permute.xlu1 %4676 }
0x3579   :  { %5599 = vmatpush.msk.msrb.mxu0 %vm2984_vm12, %v4677_v18 }
0x357b   :  { %4702 = vmatpush.msrb.mxu0 %v4675_v16 }
0x357c   :  { %5600 = vmatmul.msk.f32.vlgmr.msrb.gmra.mxu0 %vm2949_vm9, %v4672_v49 }
0x357d   :  { %4943 = vmatpush.msra.mxu0 %v7677_v32 }
0x357f   :  { %4944 = vmatpush.msra.mxu0 %v7686_v56 }
0x3581   :  { %4945 = vmatpush.msra.mxu0 %v7695_v2 }
0x3583   :  { %4946 = vmatpush.msra.mxu0 %v7701_v14 }
0x3584   :  { %5601 = vmatmul.msk.f32.gmra.mxu0 %vm2949_vm9, %v4673_v57 }
0x3585   :  { %4947 = vmatpush.msra.mxu0 %v7707_v54 }
0x3587   :  { %4948 = vmatpush.msra.mxu0 %v7713_v40  ;;  %v7795_v40 = vld [vmem:[%s8041_s4 + $0x12] ss:$0 sm:$0xff] }
0x3588   :  { %v4432_v27 = vadd.f32 %v7795_v40, %v7752_v50  ;;  %v4435_v20 = vadd.f32 %v7795_v40, %v7755_v5 }
0x3589   :  { %4949 = vmatpush.msra.mxu0 %v7721_v59 }
0x358a   :  { %v7803_v19 = vadd.f32 %v4432_v27, %v7627_v37  ;;  %v7813_v34 = vadd.f32 %v4435_v20, %v7636_v33 }
0x358b   :  { %4950 = vmatpush.msra.mxu0 %v7727_v11 }
0x358c   :  { %v4442_v37 = vsel %vm3173_vm13, %v7813_v34, 0.0 }
0x35e8   :  { %v4607_v21 = vpop.f32.mrf.mxu2 }
0x35e9   :  { %5604 = vmatmul.msk.f32.vlgmr.msra.gmra.mxu2 %vm2917_vm8, %v4607_v21 }
0x35f0   :  { %v4610_v32 = vpop.f32.mrf.mxu2 }
0x35f1   :  { %5605 = vmatmul.msk.f32.gmra.mxu2 %vm2917_vm8, %v4610_v32 }
0x35f9   :  { %v4704_v56 = vpop.f32.mrf.mxu0 }
0x35fa   :  { %5602 = vmatmul.msk.f32.vlgmr.msrb.gmra.mxu1 %vm2917_vm8, %v4704_v56 }
0x3601   :  { %v4707_v2 = vpop.f32.mrf.mxu0 }
0x3602   :  { %5603 = vmatmul.msk.f32.gmra.mxu1 %vm2917_vm8, %v4707_v2 }
0x366c   :  { %v4762_v14 = vpop.f32.mrf.mxu2 }
0x3674   :  { %v4765_v0 = vpop.f32.mrf.mxu2 }
0x3677   :  { %v4733_v54 = vpop.f32.mrf.mxu1 }
0x3678   :  { %v4763_v30 = vadd.f32 %v4762_v14, %v4733_v54 }
0x367a   :  { %v4768_v59 = vadd.f32 %v7547_v22, %v4763_v30 }
0x367c   :  { %v4770_v11 = vadd.f32 %v4768_v59, %v7583_v12  ;;  %v4439_v12 = vsel %vm91_vm6, %v7803_v19, 0.0 }
0x367e   :  { %v4772_v60 = vsel %vm91_vm6, %v4770_v11, 0.0 }
0x367f   :  { %4773 = vadd.xlane.f32.xlu0 %v4772_v60  ;;  %v4736_v62 = vpop.f32.mrf.mxu1 }
0x3680   :  { %v4766_v43 = vadd.f32 %v4765_v0, %v4736_v62 }
0x3682   :  { %v4769_v52 = vadd.f32 %v7547_v22, %v4766_v43 }
0x3684   :  { %v4771_v63 = vadd.f32 %v4769_v52, %v7639_v31 }
0x3686   :  { %v4775_v50 = vsel %vm3173_vm13, %v4771_v63, 0.0 }
0x3687   :  { %4440 = vadd.xlane.f32.xlu0 %v4439_v12  ;;  %4776 = vadd.xlane.f32.xlu1 %v4775_v50 }
0x368f   :  { %4443 = vadd.xlane.f32.xlu0 %v4442_v37 }
0x36f2   :  { %v4774_v22 = vpop.xlane.xlu0 %4773 }
0x36f3   :  { %v4778_v31 = vmul.f32 %v4774_v22, %v6279_v53 }
0x36f5   :  { %v4780_v26 = vsub.f32 %v4770_v11, %v4778_v31 }
0x36f7   :  { %v4782_v10 = vmul.f32 %v4780_v26, %v4780_v26 }
0x36f9   :  { %v4784_v5 = vsel %vm91_vm6, %v4782_v10, 0.0 }
0x36fa   :  { %4785 = vadd.xlane.f32.xlu2 %v4784_v5  ;;  %v4777_v3 = vpop.xlane.xlu1 %4776 }
0x36fb   :  { %v4779_v8 = vmul.f32 %v4777_v3, %v6279_v53 }
0x36fd   :  { %v4781_v6 = vsub.f32 %v4771_v63, %v4779_v8 }
0x36ff   :  { %v4783_v1 = vmul.f32 %v4781_v6, %v4781_v6 }
0x3701   :  { %v4787_v33 = vsel %vm3173_vm13, %v4783_v1, 0.0 }
0x3702   :  { %4788 = vadd.xlane.f32.xlu2 %v4787_v33 }
0x376d   :  { %v4786_v38 = vpop.xlane.xlu2 %4785 }
0x376e   :  { %v4790_v36 = vmul.f32 %v4786_v38, %v6279_v53 }
0x3770   :  { %v4792_v47 = vadd.f32 1e-12, %v4790_v36 }
0x3772   :  { %6051 = vrsqrt.f32 %v4792_v47  ;;  %vm4800_vm9 = vweird.f32 %v4792_v47 }
0x3775   :  { %v4789_v61 = vpop.xlane.xlu2 %4788 }
0x3776   :  { %v4791_v24 = vmul.f32 %v4789_v61, %v6279_v53 }
0x3778   :  { %v6052_v55 = vpop.eup %6051  ;;  %v4793_v7 = vadd.f32 1e-12, %v4791_v24 }
0x3779   :  { %v4795_v35 = vmul.f32 %v6052_v55, %v4792_v47  ;;  %vm4801_vm8 = vweird.f32 %v6052_v55 }
0x377a   :  { %6053 = vrsqrt.f32 %v4793_v7  ;;  %vm4802_vm11 = vmor %vm4800_vm9, %vm4801_vm8  ;;  %vm4810_vm10 = vweird.f32 %v4793_v7 }
0x377b   :  { %v4796_v51 = vmul.f32 %v6052_v55, %v4795_v35 }
0x377d   :  { %v4797_v13 = vmul.f32 0.5, %v4796_v51 }
0x377f   :  { %v4798_v9 = vsub.f32 1.5, %v4797_v13 }
0x3780   :  { %v6054_v28 = vpop.eup %6053 }
0x3781   :  { %v4799_v29 = vmul.f32 %v6052_v55, %v4798_v9  ;;  %v4805_v15 = vmul.f32 %v6054_v28, %v4793_v7  ;;  %vm4811_vm12 = vweird.f32 %v6054_v28 }
0x3782   :  { %vm4812_vm14 = vmor %vm4810_vm10, %vm4811_vm12 }
0x3783   :  { %v4803_v46 = vsel %vm4802_vm11, %v6052_v55, %v4799_v29  ;;  %v4806_v44 = vmul.f32 %v6054_v28, %v4805_v15 }
0x3784   :  { %v4814_v23 = vmul.f32 %v4803_v46, %v4780_v26 }
0x3785   :  { %v4807_v58 = vmul.f32 0.5, %v4806_v44 }
0x3786   :  { %v4816_v4 = vmul.f32 %v7617_v41, %v4814_v23 }
0x3787   :  { %v4808_v48 = vsub.f32 1.5, %v4807_v58 }
0x3788   :  { %v7825_v17 = vadd.f32 %v7622_v25, %v4816_v4 }
0x3789   :  { %v4809_v42 = vmul.f32 %v6054_v28, %v4808_v48 }
0x378a   :  { %5606 = vmatmul.msk.f32.vlgmr.msrb.gmra.mxu3 %vm91_vm6, %v7825_v17 }
0x378b   :  { %v4813_v18 = vsel %vm4812_vm14, %v6054_v28, %v4809_v42 }
0x378c   :  { %v4815_v49 = vmul.f32 %v4813_v18, %v4781_v6 }
0x378e   :  { %v4817_v16 = vmul.f32 %v7617_v41, %v4815_v49 }
0x3790   :  { %v7831_v39 = vadd.f32 %v7622_v25, %v4817_v16 }
0x3792   :  { %5607 = vmatmul.msk.f32.gmra.mxu3 %vm91_vm6, %v7831_v39 }
0x380d   :  { %v4843_v57 = vpop.f32.mrf.mxu3 }
0x380e   :  { %v7836_v21 = vadd.f32 %v7653_v45, %v4843_v57 }
0x3810   :  { %v7839_v32 = vmul.f32 0.70710677, %v7836_v21 }
0x3812   :  { %v4853_v56 = vand.u32 2147483647, %v7839_v32  ;;  %vm4919_vm9 = vcmp.ge.f32.partialorder %v7839_v32, 0.0 }
0x3814   :  { %v4855_v2 = vmul.f32 0.3275911, %v4853_v56  ;;  %v4907_v37 = vsub.f32 0.0, %v4853_v56 }
0x3815   :  { %v4846_v14 = vpop.f32.mrf.mxu3 }
0x3816   :  { %v4857_v54 = vadd.f32 1.0, %v4855_v2  ;;  %v7843_v41 = vadd.f32 %v7653_v45, %v4846_v14  ;;  %v4909_v3 = vmul.f32 %v4907_v37, %v4853_v56  ;;  %v4849_v2 = vmul.f32 0.5, %v7836_v21 }
0x3818   :  { %6055 = vrcp.f32 %v4857_v54  ;;  %v7846_v25 = vmul.f32 0.70710677, %v7843_v41  ;;  %v4870_v62 = vand.u32 2147483648, %v4857_v54  ;;  %v4868_v52 = vand.u32 2147483647, %v4857_v54 }
0x3819   :  { %vm4864_vm0 = vweird.f32 %v4857_v54  ;;  %v4911_v47 = vmul.f32 1.442695, %v4909_v3 }
0x381a   :  { %v4854_v30 = vand.u32 2147483647, %v7846_v25  ;;  %v4871_v45 = vor.u32 1.1754944e-38, %v4870_v62  ;;  %vm4869_vm3 = vcmp.eq.f32.partialorder %v4868_v52, 8.507059e+37  ;;  %vm4920_vm11 = vcmp.ge.f32.partialorder %v7846_v25, 0.0  ;;  %v4441_v52 = vpop.xlane.xlu0 %4440 }
0x381b   :  { %v4850_v62 = vmul.f32 0.5, %v7843_v41 }
0x381c   :  { %v4856_v59 = vmul.f32 0.3275911, %v4854_v30  ;;  %v4908_v7 = vsub.f32 0.0, %v4854_v30 }
0x381e   :  { %v6056_v11 = vpop.eup %6055  ;;  %v4858_v60 = vadd.f32 1.0, %v4856_v59  ;;  %v4910_v28 = vmul.f32 %v4908_v7, %v4854_v30 }
0x381f   :  { %v4860_v27 = vmul.f32 %v6056_v11, %v4857_v54  ;;  %vm4865_vm15 = vweird.f32 %v6056_v11 }
0x3820   :  { %6057 = vrcp.f32 %v4858_v60  ;;  %vm4866_vm1 = vmor %vm4864_vm0, %vm4865_vm15  ;;  %v4885_v5 = vand.u32 2147483648, %v4858_v60  ;;  %v4883_v6 = vand.u32 2147483647, %v4858_v60  ;;  %vm4879_vm5 = vweird.f32 %v4858_v60 }
0x3821   :  { %v4861_v0 = vsub.f32 1.0, %v4860_v27  ;;  %6059 = vpow2.f32 %v4911_v47  ;;  %v4913_v23 = vmul.f32 1.442695, %v4910_v28 }
0x3822   :  { %v4886_v36 = vor.u32 1.1754944e-38, %v4885_v5  ;;  %vm4884_vm8 = vcmp.eq.f32.partialorder %v4883_v6, 8.507059e+37 }
0x3823   :  { %v4862_v43 = vmul.f32 %v6056_v11, %v4861_v0  ;;  %6061 = vpow2.f32 %v4913_v23 }
0x3825   :  { %v4863_v63 = vadd.f32 %v6056_v11, %v4862_v43 }
0x3826   :  { %v6058_v20 = vpop.eup %6057 }
0x3827   :  { %v4867_v12 = vsel %vm4866_vm1, %v6056_v11, %v4863_v63  ;;  %v4875_v22 = vmul.f32 %v6058_v20, %v4858_v60  ;;  %vm4880_vm4 = vweird.f32 %v6058_v20  ;;  %v6060_v58 = vpop.eup %6059  ;;  %v4445_v63 = vmul.f32 %v4441_v52, %v6279_v53 }
0x3828   :  { %v4872_v50 = vsel %vm4869_vm3, %v4871_v45, %v4867_v12  ;;  %vm4881_vm7 = vmor %vm4879_vm5, %vm4880_vm4 }
0x3829   :  { %v4889_v31 = vmul.f32 1.0614054, %v4872_v50  ;;  %v4876_v26 = vsub.f32 1.0, %v4875_v22  ;;  %v6062_v30 = vpop.eup %6061  ;;  %v7859_v12 = vsub.f32 %v7803_v19, %v4445_v63 }
0x382b   :  { %v4891_v10 = vadd.f32 -1.4531521, %v4889_v31  ;;  %v4877_v8 = vmul.f32 %v6058_v20, %v4876_v26  ;;  %v4449_v37 = vmul.f32 %v7859_v12, %v7859_v12 }
0x382d   :  { %v4893_v1 = vmul.f32 %v4891_v10, %v4872_v50  ;;  %v4878_v33 = vadd.f32 %v6058_v20, %v4877_v8  ;;  %v4451_v10 = vsel %vm91_vm6, %v4449_v37, 0.0  ;;  %v5010_v8 = vld [vmem:[%s8042_s2 + $0x110] sm:$0xff] }
0x382f   :  { %v4895_v38 = vadd.f32 1.4214138, %v4893_v1  ;;  %v4882_v61 = vsel %vm4881_vm7, %v6058_v20, %v4878_v33  ;;  %v5009_v1 = vld [vmem:[%s8042_s2 + $0xb0] sm:$0xff] }
0x3830   :  { %v4887_v55 = vsel %vm4884_vm8, %v4886_v36, %v4882_v61 }
0x3831   :  { %v4897_v24 = vmul.f32 %v4895_v38, %v4872_v50  ;;  %v4890_v35 = vmul.f32 1.0614054, %v4887_v55  ;;  %v5008_v38 = vld [vmem:[%s8042_s2 + $0x50] sm:$0xff] }
0x3833   :  { %v4899_v51 = vadd.f32 -0.28449672, %v4897_v24  ;;  %v4892_v13 = vadd.f32 -1.4531521, %v4890_v35 }
0x3835   :  { %v4901_v9 = vmul.f32 %v4899_v51, %v4872_v50  ;;  %v4894_v29 = vmul.f32 %v4892_v13, %v4887_v55 }
0x3837   :  { %v4903_v15 = vadd.f32 0.2548296, %v4901_v9  ;;  %v4896_v46 = vadd.f32 1.4214138, %v4894_v29 }
0x3839   :  { %v4905_v44 = vmul.f32 %v4903_v15, %v4872_v50  ;;  %v4898_v4 = vmul.f32 %v4896_v46, %v4887_v55  ;;  %v4444_v50 = vpop.xlane.xlu0 %4443 }
0x383a   :  { %v4446_v22 = vmul.f32 %v4444_v50, %v6279_v53 }
0x383b   :  { %v4915_v48 = vmul.f32 %v6060_v58, %v4905_v44  ;;  %v4900_v42 = vadd.f32 -0.28449672, %v4898_v4 }
0x383d   :  { %v4917_v18 = vsub.f32 1.0, %v4915_v48  ;;  %v4902_v49 = vmul.f32 %v4900_v42, %v4887_v55  ;;  %v5719_v42 = vld [vmem:[%s8041_s4 + $0x13] ss:$0 sm:$0xff] }
0x383f   :  { %v4921_v16 = vsub.f32 0.0, %v4917_v18  ;;  %v4904_v57 = vadd.f32 0.2548296, %v4902_v49 }
0x3841   :  { %v4923_v56 = vsel %vm4919_vm9, %v4917_v18, %v4921_v16  ;;  %v4906_v54 = vmul.f32 %v4904_v57, %v4887_v55  ;;  %v5720_v16 = vld [vmem:[%s8041_s4 + $0x14] ss:$0 sm:$0xff] }
0x3842   :  { %v4925_v14 = vadd.f32 1.0, %v4923_v56 }
0x3843   :  { %v4916_v11 = vmul.f32 %v6062_v30, %v4906_v54 }
0x3844   :  { %v4927_v59 = vmul.f32 %v4925_v14, %v4849_v2 }
0x3845   :  { %v4918_v27 = vsub.f32 1.0, %v4916_v11 }
0x3846   :  { %5608 = vmatmul.msk.f32.vlgmr.msra.gmra.mxu0 %vm3332_vm2, %v4927_v59 }
0x3847   :  { %v4922_v60 = vsub.f32 0.0, %v4918_v27 }
0x3849   :  { %v4924_v0 = vsel %vm4920_vm11, %v4918_v27, %v4922_v60 }
0x384a   :  { %v4926_v43 = vadd.f32 1.0, %v4924_v0 }
0x384c   :  { %v4928_v32 = vmul.f32 %v4926_v43, %v4850_v62 }
0x384e   :  { %5609 = vmatmul.msk.f32.gmra.mxu0 %vm3332_vm2, %v4928_v32 }
0x38c3   :  { %v4952_v21 = vpop.f32.mrf.mxu0 }
0x38c4   :  { %v4953_v45 = vadd.f32 %v7795_v40, %v4952_v21 }
0x38c6   :  { %v4958_v20 = vadd.f32 %v4953_v45, %v7825_v17  ;;  %v7869_v17 = vsub.f32 %v7813_v34, %v4446_v22 }
0x38c8   :  { %v4960_v25 = vsel %vm91_vm6, %v4958_v20, 0.0  ;;  %v4450_v5 = vmul.f32 %v7869_v17, %v7869_v17 }
0x38c9   :  { %4961 = vadd.xlane.f32.xlu2 %v4960_v25 }
0x38ca   :  { %v4454_v3 = vsel %vm3173_vm13, %v4450_v5, 0.0 }
0x38cb   :  { %v4955_v41 = vpop.f32.mrf.mxu0 }
0x38cc   :  { %v4956_v31 = vadd.f32 %v7795_v40, %v4955_v41  ;;  %v5011_v40 = vld [vmem:[%s8042_s2 + $0x170] sm:$0xff] }
0x38cd   :  { %5039 = vmatpush.msra.mxu1 %v5011_v40  ;;  %5230 = vmatpush.msra.mxu3 %v5011_v40 }
0x38ce   :  { %v4959_v26 = vadd.f32 %v4956_v31, %v7831_v39 }
0x38cf   :  { %5040 = vmatpush.msra.mxu1 %v5010_v8  ;;  %5231 = vmatpush.msra.mxu3 %v5010_v8 }
0x38d0   :  { %v4963_v19 = vsel %vm3173_vm13, %v4959_v26, 0.0 }
0x38d1   :  { %4452 = vadd.xlane.f32.xlu2 %v4451_v10  ;;  %4964 = vadd.xlane.f32.xlu1 %v4963_v19 }
0x38d2   :  { %5041 = vmatpush.msra.mxu1 %v5009_v1  ;;  %5232 = vmatpush.msra.mxu3 %v5009_v1 }
0x38d4   :  { %5042 = vmatpush.msra.mxu1 %v5008_v38  ;;  %5233 = vmatpush.msra.mxu3 %v5008_v38 }
0x38d9   :  { %4455 = vadd.xlane.f32.xlu1 %v4454_v3 }
0x393c   :  { %v4962_v39 = vpop.xlane.xlu2 %4961 }
0x393d   :  { %v4966_v34 = vmul.f32 %v4962_v39, %v6279_v53 }
0x393f   :  { %v7882_v6 = vsub.f32 %v4958_v20, %v4966_v34 }
0x3941   :  { %v4970_v33 = vmul.f32 %v7882_v6, %v7882_v6 }
0x3943   :  { %v4972_v36 = vsel %vm91_vm6, %v4970_v33, 0.0 }
0x3944   :  { %4973 = vadd.xlane.f32.xlu0 %v4972_v36  ;;  %v4453_v47 = vpop.xlane.xlu2 %4452  ;;  %v4965_v61 = vpop.xlane.xlu1 %4964 }
0x3945   :  { %v4457_v24 = vmul.f32 %v4453_v47, %v6279_v53  ;;  %v4967_v55 = vmul.f32 %v4965_v61, %v6279_v53 }
0x3947   :  { %v4459_v7 = vadd.f32 1e-12, %v4457_v24  ;;  %v7895_v35 = vsub.f32 %v4959_v26, %v4967_v55 }
0x3949   :  { %6063 = vrsqrt.f32 %v4459_v7  ;;  %v4971_v51 = vmul.f32 %v7895_v35, %v7895_v35  ;;  %vm4467_vm12 = vweird.f32 %v4459_v7 }
0x394b   :  { %v4975_v13 = vsel %vm3173_vm13, %v4971_v51, 0.0 }
0x394c   :  { %4976 = vadd.xlane.f32.xlu2 %v4975_v13  ;;  %v4456_v9 = vpop.xlane.xlu1 %4455 }
0x394d   :  { %v4458_v28 = vmul.f32 %v4456_v9, %v6279_v53 }
0x394f   :  { %v6064_v29 = vpop.eup %6063  ;;  %v4460_v46 = vadd.f32 1e-12, %v4458_v28 }
0x3950   :  { %v4462_v15 = vmul.f32 %v6064_v29, %v4459_v7  ;;  %vm4468_vm2 = vweird.f32 %v6064_v29 }
0x3951   :  { %6065 = vrsqrt.f32 %v4460_v46  ;;  %vm4469_vm10 = vmor %vm4467_vm12, %vm4468_vm2  ;;  %vm4477_vm15 = vweird.f32 %v4460_v46 }
0x3952   :  { %v4463_v44 = vmul.f32 %v6064_v29, %v4462_v15 }
0x3954   :  { %v4464_v23 = vmul.f32 0.5, %v4463_v44 }
0x3956   :  { %v4465_v58 = vsub.f32 1.5, %v4464_v23 }
0x3957   :  { %v6066_v4 = vpop.eup %6065 }
0x3958   :  { %v4466_v48 = vmul.f32 %v6064_v29, %v4465_v58  ;;  %v4472_v18 = vmul.f32 %v6066_v4, %v4460_v46  ;;  %vm4478_vm14 = vweird.f32 %v6066_v4 }
0x3959   :  { %vm4479_vm0 = vmor %vm4477_vm15, %vm4478_vm14 }
0x395a   :  { %v4470_v49 = vsel %vm4469_vm10, %v6064_v29, %v4466_v48  ;;  %v4473_v56 = vmul.f32 %v6066_v4, %v4472_v18 }
0x395b   :  { %v4481_v57 = vmul.f32 %v4470_v49, %v7859_v12 }
0x395c   :  { %v4474_v14 = vmul.f32 0.5, %v4473_v56 }
0x395d   :  { %v4484_v2 = vmul.f32 %v5719_v42, %v4481_v57 }
0x395e   :  { %v4475_v30 = vsub.f32 1.5, %v4474_v14 }
0x395f   :  { %v4487_v54 = vadd.f32 %v5720_v16, %v4484_v2 }
0x3960   :  { %v4476_v59 = vmul.f32 %v6066_v4, %v4475_v30 }
0x3961   :  { %5610 = vmatmul.msk.f32.vlgmr.msra.gmra.mxu1 %vm91_vm6, %v4487_v54 }
0x3962   :  { %v4480_v11 = vsel %vm4479_vm0, %v6066_v4, %v4476_v59 }
0x3963   :  { %v4482_v27 = vmul.f32 %v4480_v11, %v7869_v17 }
0x3965   :  { %v4485_v60 = vmul.f32 %v5719_v42, %v4482_v27 }
0x3967   :  { %v4488_v0 = vadd.f32 %v5720_v16, %v4485_v60 }
0x3969   :  { %5611 = vmatmul.msk.f32.gmra.mxu1 %vm91_vm6, %v4488_v0 }
0x39b7   :  { %v4974_v62 = vpop.xlane.xlu0 %4973 }
0x39b8   :  { %v4978_v43 = vmul.f32 %v4974_v62, %v6279_v53 }
0x39ba   :  { %v4980_v32 = vadd.f32 1e-12, %v4978_v43 }
0x39bc   :  { %6067 = vrsqrt.f32 %v4980_v32  ;;  %vm4988_vm3 = vweird.f32 %v4980_v32 }
0x39bf   :  { %v4977_v52 = vpop.xlane.xlu2 %4976 }
0x39c0   :  { %v4979_v21 = vmul.f32 %v4977_v52, %v6279_v53 }
0x39c2   :  { %v6068_v63 = vpop.eup %6067  ;;  %v4981_v20 = vadd.f32 1e-12, %v4979_v21 }
0x39c3   :  { %v4983_v45 = vmul.f32 %v6068_v63, %v4980_v32  ;;  %vm4989_vm1 = vweird.f32 %v6068_v63 }
0x39c4   :  { %6069 = vrsqrt.f32 %v4981_v20  ;;  %vm4990_vm4 = vmor %vm4988_vm3, %vm4989_vm1  ;;  %vm4998_vm7 = vweird.f32 %v4981_v20 }
0x39c5   :  { %v4984_v12 = vmul.f32 %v6068_v63, %v4983_v45 }
0x39c7   :  { %v4985_v25 = vmul.f32 0.5, %v4984_v12 }
0x39c9   :  { %v4986_v50 = vsub.f32 1.5, %v4985_v25 }
0x39ca   :  { %v6070_v41 = vpop.eup %6069 }
0x39cb   :  { %v4987_v37 = vmul.f32 %v6068_v63, %v4986_v50  ;;  %v4993_v22 = vmul.f32 %v6070_v41, %v4981_v20  ;;  %vm4999_vm5 = vweird.f32 %v6070_v41 }
0x39cc   :  { %vm5000_vm8 = vmor %vm4998_vm7, %vm4999_vm5 }
0x39cd   :  { %v4991_v31 = vsel %vm4990_vm4, %v6068_v63, %v4987_v37  ;;  %v4994_v10 = vmul.f32 %v6070_v41, %v4993_v22 }
0x39ce   :  { %v5002_v26 = vmul.f32 %v4991_v31, %v7882_v6  ;;  %v7919_v6 = vld [vmem:[%s8041_s4 + $0x15] ss:$0 sm:$0xff] }
0x39cf   :  { %v4995_v19 = vmul.f32 0.5, %v4994_v10 }
0x39d0   :  { %v5004_v17 = vmul.f32 %v5719_v42, %v5002_v26 }
0x39d1   :  { %v4996_v3 = vsub.f32 1.5, %v4995_v19 }
0x39d2   :  { %v5006_v5 = vadd.f32 %v5720_v16, %v5004_v17 }
0x39d3   :  { %v4997_v40 = vmul.f32 %v6070_v41, %v4996_v3 }
0x39d4   :  { %5614 = vmatmul.msk.f32.vlgmr.msra.gmra.mxu3 %vm91_vm6, %v5006_v5 }
0x39d5   :  { %v5001_v39 = vsel %vm5000_vm8, %v6070_v41, %v4997_v40 }
0x39d6   :  { %v5003_v34 = vmul.f32 %v5001_v39, %v7895_v35 }
0x39d8   :  { %v5005_v8 = vmul.f32 %v5719_v42, %v5003_v34 }
0x39da   :  { %v5007_v1 = vadd.f32 %v5720_v16, %v5005_v8 }
0x39dc   :  { %5615 = vmatmul.msk.f32.gmra.mxu3 %vm91_vm6, %v5007_v1 }
0x39de   :  { %v5044_v33 = vpop.f32.mrf.mxu1 }
0x39df   :  { %v7923_v38 = vadd.f32 %v7919_v6, %v5044_v33 }
0x39e1   :  { %v7926_v36 = vmul.f32 0.70710677, %v7923_v38  ;;  %v5050_v8 = vmul.f32 0.5, %v7923_v38 }
0x39e3   :  { %v5054_v47 = vand.u32 2147483647, %v7926_v36  ;;  %vm5120_vm1 = vcmp.ge.f32.partialorder %v7926_v36, 0.0 }
0x39e5   :  { %v5056_v61 = vmul.f32 0.3275911, %v5054_v47  ;;  %v5108_v18 = vsub.f32 0.0, %v5054_v47 }
0x39e6   :  { %v5047_v55 = vpop.f32.mrf.mxu1 }
0x39e7   :  { %v5058_v24 = vadd.f32 1.0, %v5056_v61  ;;  %v7930_v7 = vadd.f32 %v7919_v6, %v5047_v55  ;;  %v5110_v54 = vmul.f32 %v5108_v18, %v5054_v47 }
0x39e9   :  { %6071 = vrcp.f32 %v5058_v24  ;;  %v7933_v35 = vmul.f32 0.70710677, %v7930_v7  ;;  %v5071_v46 = vand.u32 2147483648, %v5058_v24  ;;  %v5069_v23 = vand.u32 2147483647, %v5058_v24 }
0x39ea   :  { %vm5065_vm11 = vweird.f32 %v5058_v24  ;;  %v5112_v62 = vmul.f32 1.442695, %v5110_v54  ;;  %v5051_v36 = vmul.f32 0.5, %v7930_v7 }
0x39eb   :  { %v5055_v51 = vand.u32 2147483647, %v7933_v35  ;;  %v5072_v4 = vor.u32 1.1754944e-38, %v5071_v46  ;;  %vm5070_vm12 = vcmp.eq.f32.partialorder %v5069_v23, 8.507059e+37  ;;  %vm5121_vm3 = vcmp.ge.f32.partialorder %v7933_v35, 0.0 }
0x39ed   :  { %v5057_v13 = vmul.f32 0.3275911, %v5055_v51  ;;  %v5109_v32 = vsub.f32 0.0, %v5055_v51 }
0x39ef   :  { %v6072_v9 = vpop.eup %6071  ;;  %v5059_v29 = vadd.f32 1.0, %v5057_v13  ;;  %v5111_v12 = vmul.f32 %v5109_v32, %v5055_v51 }
0x39f0   :  { %v5061_v28 = vmul.f32 %v6072_v9, %v5058_v24  ;;  %vm5066_vm9 = vweird.f32 %v6072_v9 }
0x39f1   :  { %6073 = vrcp.f32 %v5059_v29  ;;  %vm5067_vm2 = vmor %vm5065_vm11, %vm5066_vm9  ;;  %v5086_v2 = vand.u32 2147483648, %v5059_v29  ;;  %v5084_v59 = vand.u32 2147483647, %v5059_v29  ;;  %vm5080_vm14 = vweird.f32 %v5059_v29 }
0x39f2   :  { %v5062_v15 = vsub.f32 1.0, %v5061_v28  ;;  %6075 = vpow2.f32 %v5112_v62  ;;  %v5114_v22 = vmul.f32 1.442695, %v5111_v12 }
0x39f3   :  { %v5087_v60 = vor.u32 1.1754944e-38, %v5086_v2  ;;  %vm5085_vm0 = vcmp.eq.f32.partialorder %v5084_v59, 8.507059e+37 }
0x39f4   :  { %v5063_v44 = vmul.f32 %v6072_v9, %v5062_v15  ;;  %6077 = vpow2.f32 %v5114_v22 }
0x39f6   :  { %v5064_v58 = vadd.f32 %v6072_v9, %v5063_v44 }
0x39f7   :  { %v6074_v48 = vpop.eup %6073 }
0x39f8   :  { %v5068_v42 = vsel %vm5067_vm2, %v6072_v9, %v5064_v58  ;;  %v5076_v49 = vmul.f32 %v6074_v48, %v5059_v29  ;;  %vm5081_vm10 = vweird.f32 %v6074_v48  ;;  %v6076_v26 = vpop.eup %6075 }
0x39f9   :  { %v5073_v16 = vsel %vm5070_vm12, %v5072_v4, %v5068_v42  ;;  %vm5082_vm15 = vmor %vm5080_vm14, %vm5081_vm10 }
0x39fa   :  { %v5090_v57 = vmul.f32 1.0614054, %v5073_v16  ;;  %v5077_v56 = vsub.f32 1.0, %v5076_v49  ;;  %v6078_v47 = vpop.eup %6077 }
0x39fc   :  { %v5092_v14 = vadd.f32 -1.4531521, %v5090_v57  ;;  %v5078_v30 = vmul.f32 %v6074_v48, %v5077_v56 }
0x39fe   :  { %v5094_v11 = vmul.f32 %v5092_v14, %v5073_v16  ;;  %v5079_v27 = vadd.f32 %v6074_v48, %v5078_v30 }
0x3a00   :  { %v5096_v0 = vadd.f32 1.4214138, %v5094_v11  ;;  %v5083_v43 = vsel %vm5082_vm15, %v6074_v48, %v5079_v27 }
0x3a01   :  { %v5088_v21 = vsel %vm5085_vm0, %v5087_v60, %v5083_v43 }
0x3a02   :  { %v5098_v52 = vmul.f32 %v5096_v0, %v5073_v16  ;;  %v5091_v63 = vmul.f32 1.0614054, %v5088_v21 }
0x3a04   :  { %v5100_v45 = vadd.f32 -0.28449672, %v5098_v52  ;;  %v5093_v20 = vadd.f32 -1.4531521, %v5091_v63 }
0x3a06   :  { %v5102_v25 = vmul.f32 %v5100_v45, %v5073_v16  ;;  %v5095_v50 = vmul.f32 %v5093_v20, %v5088_v21 }
0x3a08   :  { %v5104_v41 = vadd.f32 0.2548296, %v5102_v25  ;;  %v5097_v37 = vadd.f32 1.4214138, %v5095_v50 }
0x3a0a   :  { %v5106_v31 = vmul.f32 %v5104_v41, %v5073_v16  ;;  %v5099_v10 = vmul.f32 %v5097_v37, %v5088_v21 }
0x3a0c   :  { %v5116_v17 = vmul.f32 %v6076_v26, %v5106_v31  ;;  %v5101_v19 = vadd.f32 -0.28449672, %v5099_v10 }
0x3a0e   :  { %v5118_v5 = vsub.f32 1.0, %v5116_v17  ;;  %v5103_v3 = vmul.f32 %v5101_v19, %v5088_v21 }
0x3a10   :  { %v5122_v40 = vsub.f32 0.0, %v5118_v5  ;;  %v5105_v39 = vadd.f32 0.2548296, %v5103_v3 }
0x3a12   :  { %v5124_v34 = vsel %vm5120_vm1, %v5118_v5, %v5122_v40  ;;  %v5107_v33 = vmul.f32 %v5105_v39, %v5088_v21 }
0x3a13   :  { %v5126_v1 = vadd.f32 1.0, %v5124_v34 }
0x3a14   :  { %v5117_v24 = vmul.f32 %v6078_v47, %v5107_v33 }
0x3a15   :  { %v7938_v61 = vmul.f32 %v5126_v1, %v5050_v8 }
0x3a16   :  { %v5119_v51 = vsub.f32 1.0, %v5117_v24 }
0x3a17   :  { %v5130_v55 = vsel %vm91_vm6, %v7938_v61, 0.0 }
0x3a18   :  { %5131 = vadd.xlane.f32.xlu0 %v5130_v55  ;;  %v5123_v13 = vsub.f32 0.0, %v5119_v51 }
0x3a1a   :  { %v5125_v9 = vsel %vm5121_vm3, %v5119_v51, %v5123_v13 }
0x3a1b   :  { %v5127_v28 = vadd.f32 1.0, %v5125_v9 }
0x3a1d   :  { %v7944_v29 = vmul.f32 %v5127_v28, %v5051_v36 }
0x3a1f   :  { %v5133_v38 = vsel %vm3173_vm13, %v7944_v29, 0.0 }
0x3a20   :  { %5134 = vadd.xlane.f32.xlu2 %v5133_v38 }
0x3a57   :  { %v5235_v15 = vpop.f32.mrf.mxu3 }
0x3a58   :  { %v7949_v46 = vadd.f32 %v7919_v6, %v5235_v15 }
0x3a5a   :  { %v7952_v44 = vmul.f32 0.70710677, %v7949_v46  ;;  %v5241_v15 = vmul.f32 0.5, %v7949_v46 }
0x3a5c   :  { %v5245_v23 = vand.u32 2147483647, %v7952_v44  ;;  %vm5311_vm10 = vcmp.ge.f32.partialorder %v7952_v44, 0.0 }
0x3a5e   :  { %v5247_v35 = vmul.f32 0.3275911, %v5245_v23  ;;  %v5299_v27 = vsub.f32 0.0, %v5245_v23 }
0x3a5f   :  { %v5238_v4 = vpop.f32.mrf.mxu3 }
0x3a60   :  { %v5249_v58 = vadd.f32 1.0, %v5247_v35  ;;  %v7956_v7 = vadd.f32 %v7919_v6, %v5238_v4  ;;  %v5301_v21 = vmul.f32 %v5299_v27, %v5245_v23 }
0x3a62   :  { %6079 = vrcp.f32 %v5249_v58  ;;  %v7959_v48 = vmul.f32 0.70710677, %v7956_v7  ;;  %v5262_v2 = vand.u32 2147483648, %v5249_v58  ;;  %v5260_v54 = vand.u32 2147483647, %v5249_v58 }
0x3a63   :  { %vm5256_vm5 = vweird.f32 %v5249_v58  ;;  %v5303_v41 = vmul.f32 1.442695, %v5301_v21 }
0x3a64   :  { %v5246_v42 = vand.u32 2147483647, %v7959_v48  ;;  %v5263_v6 = vor.u32 1.1754944e-38, %v5262_v2  ;;  %vm5261_vm8 = vcmp.eq.f32.partialorder %v5260_v54, 8.507059e+37  ;;  %vm5312_vm14 = vcmp.ge.f32.partialorder %v7959_v48, 0.0 }
0x3a66   :  { %v5248_v18 = vmul.f32 0.3275911, %v5246_v42  ;;  %v5300_v22 = vsub.f32 0.0, %v5246_v42 }
0x3a68   :  { %v6080_v49 = vpop.eup %6079  ;;  %v5250_v57 = vadd.f32 1.0, %v5248_v18  ;;  %v5302_v5 = vmul.f32 %v5300_v22, %v5246_v42 }
0x3a69   :  { %v5252_v16 = vmul.f32 %v6080_v49, %v5249_v58  ;;  %vm5257_vm4 = vweird.f32 %v6080_v49 }
0x3a6a   :  { %6081 = vrcp.f32 %v5250_v57  ;;  %vm5258_vm7 = vmor %vm5256_vm5, %vm5257_vm4  ;;  %v5277_v32 = vand.u32 2147483648, %v5250_v57  ;;  %v5275_v45 = vand.u32 2147483647, %v5250_v57  ;;  %vm5271_vm11 = vweird.f32 %v5250_v57 }
0x3a6b   :  { %v5253_v56 = vsub.f32 1.0, %v5252_v16  ;;  %6083 = vpow2.f32 %v5303_v41  ;;  %v5305_v8 = vmul.f32 1.442695, %v5302_v5 }
0x3a6c   :  { %v5278_v25 = vor.u32 1.1754944e-38, %v5277_v32  ;;  %vm5276_vm12 = vcmp.eq.f32.partialorder %v5275_v45, 8.507059e+37 }
0x3a6d   :  { %v5254_v14 = vmul.f32 %v6080_v49, %v5253_v56  ;;  %6085 = vpow2.f32 %v5305_v8 }
0x3a6f   :  { %v5255_v30 = vadd.f32 %v6080_v49, %v5254_v14  ;;  %v5242_v14 = vmul.f32 0.5, %v7956_v7  ;;  %v5018_v7 = vld [vmem:[%s8042_s2 + $0x178] sm:$0xff] }
0x3a70   :  { %v6082_v59 = vpop.eup %6081  ;;  %5199 = vmatpush.msrb.mxu2 %v5018_v7  ;;  %5387 = vmatpush.msrb.mxu0 %v5018_v7 }
0x3a71   :  { %v5259_v11 = vsel %vm5258_vm7, %v6080_v49, %v5255_v30  ;;  %v5267_v60 = vmul.f32 %v6082_v59, %v5250_v57  ;;  %vm5272_vm9 = vweird.f32 %v6082_v59  ;;  %v6084_v33 = vpop.eup %6083 }
0x3a72   :  { %v5264_v0 = vsel %vm5261_vm8, %v5263_v6, %v5259_v11  ;;  %vm5273_vm2 = vmor %vm5271_vm11, %vm5272_vm9 }
0x3a73   :  { %v5281_v62 = vmul.f32 1.0614054, %v5264_v0  ;;  %v5268_v43 = vsub.f32 1.0, %v5267_v60  ;;  %v6086_v4 = vpop.eup %6085 }
0x3a75   :  { %v5283_v52 = vadd.f32 -1.4531521, %v5281_v62  ;;  %v5269_v63 = vmul.f32 %v6082_v59, %v5268_v43  ;;  %v5016_v43 = vld [vmem:[%s8042_s2 + $0xb8] sm:$0xff] }
0x3a77   :  { %v5285_v20 = vmul.f32 %v5283_v52, %v5264_v0  ;;  %v5270_v12 = vadd.f32 %v6082_v59, %v5269_v63  ;;  %v5015_v52 = vld [vmem:[%s8042_s2 + $0x58] sm:$0xff] }
0x3a79   :  { %v5287_v50 = vadd.f32 1.4214138, %v5285_v20  ;;  %v5274_v37 = vsel %vm5273_vm2, %v6082_v59, %v5270_v12 }
0x3a7a   :  { %v5279_v26 = vsel %vm5276_vm12, %v5278_v25, %v5274_v37 }
0x3a7b   :  { %v5289_v31 = vmul.f32 %v5287_v50, %v5264_v0  ;;  %v5282_v10 = vmul.f32 1.0614054, %v5279_v26 }
0x3a7d   :  { %v5291_v17 = vadd.f32 -0.28449672, %v5289_v31  ;;  %v5284_v19 = vadd.f32 -1.4531521, %v5282_v10 }
0x3a7f   :  { %v5293_v3 = vmul.f32 %v5291_v17, %v5264_v0  ;;  %v5286_v40 = vmul.f32 %v5284_v19, %v5279_v26 }
0x3a81   :  { %v5295_v39 = vadd.f32 0.2548296, %v5293_v3  ;;  %v5288_v34 = vadd.f32 1.4214138, %v5286_v40 }
0x3a83   :  { %v5297_v1 = vmul.f32 %v5295_v39, %v5264_v0  ;;  %v5290_v47 = vmul.f32 %v5288_v34, %v5279_v26  ;;  %v5017_v0 = vld [vmem:[%s8042_s2 + $0x118] sm:$0xff]  ;;  %v5722_v34 = vld [vmem:[%s8041_s4 + $0x16] ss:$0 sm:$0xff] }
0x3a84   :  { %5200 = vmatpush.msrb.mxu2 %v5017_v0  ;;  %5388 = vmatpush.msrb.mxu0 %v5017_v0 }
0x3a85   :  { %v5307_v24 = vmul.f32 %v6084_v33, %v5297_v1  ;;  %v5292_v55 = vadd.f32 -0.28449672, %v5290_v47  ;;  %v5723_v33 = vld [vmem:[%s8041_s4 + $0x17] ss:$0 sm:$0xff] }
0x3a86   :  { %5201 = vmatpush.msrb.mxu2 %v5016_v43  ;;  %5389 = vmatpush.msrb.mxu0 %v5016_v43 }
0x3a87   :  { %v5309_v51 = vsub.f32 1.0, %v5307_v24  ;;  %v5294_v13 = vmul.f32 %v5292_v55, %v5279_v26 }
0x3a88   :  { %5202 = vmatpush.msrb.mxu2 %v5015_v52  ;;  %5390 = vmatpush.msrb.mxu0 %v5015_v52 }
0x3a89   :  { %v5313_v9 = vsub.f32 0.0, %v5309_v51  ;;  %v5296_v36 = vadd.f32 0.2548296, %v5294_v13 }
0x3a8b   :  { %v5132_v28 = vpop.xlane.xlu0 %5131  ;;  %v5315_v38 = vsel %vm5311_vm10, %v5309_v51, %v5313_v9  ;;  %v5298_v58 = vmul.f32 %v5296_v36, %v5279_v26 }
0x3a8c   :  { %v5136_v23 = vmul.f32 %v5132_v28, %v6279_v53  ;;  %v5317_v35 = vadd.f32 1.0, %v5315_v38 }
0x3a8d   :  { %v5308_v18 = vmul.f32 %v6086_v4, %v5298_v58 }
0x3a8e   :  { %v5319_v42 = vmul.f32 %v5317_v35, %v5241_v15  ;;  %v7966_v49 = vsub.f32 %v7938_v61, %v5136_v23 }
0x3a8f   :  { %v5310_v57 = vsub.f32 1.0, %v5308_v18 }
0x3a90   :  { %v5321_v16 = vsel %vm91_vm6, %v5319_v42, 0.0  ;;  %v5140_v46 = vmul.f32 %v7966_v49, %v7966_v49 }
0x3a91   :  { %5322 = vadd.xlane.f32.xlu1 %v5321_v16  ;;  %v5314_v44 = vsub.f32 0.0, %v5310_v57 }
0x3a92   :  { %v5142_v61 = vsel %vm91_vm6, %v5140_v46, 0.0 }
0x3a93   :  { %v5135_v56 = vpop.xlane.xlu2 %5134  ;;  %v5316_v2 = vsel %vm5312_vm14, %v5310_v57, %v5314_v44 }
0x3a94   :  { %v5137_v54 = vmul.f32 %v5135_v56, %v6279_v53  ;;  %v5318_v30 = vadd.f32 1.0, %v5316_v2 }
0x3a96   :  { %v5320_v6 = vmul.f32 %v5318_v30, %v5242_v14  ;;  %v7976_v59 = vsub.f32 %v7944_v29, %v5137_v54 }
0x3a98   :  { %v5324_v11 = vsel %vm3173_vm13, %v5320_v6, 0.0  ;;  %v5141_v48 = vmul.f32 %v7976_v59, %v7976_v59 }
0x3a99   :  { %5143 = vadd.xlane.f32.xlu1 %v5142_v61  ;;  %5325 = vadd.xlane.f32.xlu0 %v5324_v11 }
0x3a9a   :  { %v5145_v27 = vsel %vm3173_vm13, %v5141_v48, 0.0 }
0x3aa1   :  { %5146 = vadd.xlane.f32.xlu0 %v5145_v27 }
0x3b04   :  { %v5323_v60 = vpop.xlane.xlu1 %5322 }
0x3b05   :  { %v5327_v29 = vmul.f32 %v5323_v60, %v6279_v53 }
0x3b07   :  { %v7989_v62 = vsub.f32 %v5319_v42, %v5327_v29 }
0x3b09   :  { %v5331_v32 = vmul.f32 %v7989_v62, %v7989_v62 }
0x3b0b   :  { %v5333_v21 = vsel %vm91_vm6, %v5331_v32, 0.0 }
0x3b0c   :  { %5334 = vadd.xlane.f32.xlu2 %v5333_v21  ;;  %v5144_v63 = vpop.xlane.xlu1 %5143  ;;  %v5326_v20 = vpop.xlane.xlu0 %5325 }
0x3b0d   :  { %v5148_v45 = vmul.f32 %v5144_v63, %v6279_v53  ;;  %v5328_v12 = vmul.f32 %v5326_v20, %v6279_v53 }
0x3b0f   :  { %v5150_v25 = vadd.f32 1e-12, %v5148_v45  ;;  %v8002_v50 = vsub.f32 %v5320_v6, %v5328_v12 }
0x3b11   :  { %6087 = vrsqrt.f32 %v5150_v25  ;;  %v5332_v41 = vmul.f32 %v8002_v50, %v8002_v50  ;;  %vm5158_vm0 = vweird.f32 %v5150_v25 }
0x3b13   :  { %v5336_v37 = vsel %vm3173_vm13, %v5332_v41, 0.0 }
0x3b14   :  { %5337 = vadd.xlane.f32.xlu1 %v5336_v37  ;;  %v5147_v22 = vpop.xlane.xlu0 %5146 }
0x3b15   :  { %v5149_v31 = vmul.f32 %v5147_v22, %v6279_v53 }
0x3b17   :  { %v6088_v26 = vpop.eup %6087  ;;  %v5151_v17 = vadd.f32 1e-12, %v5149_v31 }
0x3b18   :  { %v5153_v10 = vmul.f32 %v6088_v26, %v5150_v25  ;;  %vm5159_vm15 = vweird.f32 %v6088_v26 }
0x3b19   :  { %6089 = vrsqrt.f32 %v5151_v17  ;;  %vm5160_vm13 = vmor %vm5158_vm0, %vm5159_vm15  ;;  %vm5168_vm3 = vweird.f32 %v5151_v17 }
0x3b1a   :  { %v5154_v19 = vmul.f32 %v6088_v26, %v5153_v10 }
0x3b1c   :  { %v5155_v5 = vmul.f32 0.5, %v5154_v19 }
0x3b1e   :  { %v5156_v3 = vsub.f32 1.5, %v5155_v5 }
0x3b1f   :  { %v6090_v40 = vpop.eup %6089 }
0x3b20   :  { %v5157_v39 = vmul.f32 %v6088_v26, %v5156_v3  ;;  %v5163_v8 = vmul.f32 %v6090_v40, %v5151_v17  ;;  %vm5169_vm1 = vweird.f32 %v6090_v40 }
0x3b21   :  { %vm5170_vm4 = vmor %vm5168_vm3, %vm5169_vm1 }
0x3b22   :  { %v5161_v1 = vsel %vm5160_vm13, %v6088_v26, %v5157_v39  ;;  %v5164_v24 = vmul.f32 %v6090_v40, %v5163_v8 }
0x3b23   :  { %v5172_v47 = vmul.f32 %v5161_v1, %v7966_v49 }
0x3b24   :  { %v5165_v51 = vmul.f32 0.5, %v5164_v24 }
0x3b25   :  { %v5175_v55 = vmul.f32 %v5722_v34, %v5172_v47 }
0x3b26   :  { %v5166_v9 = vsub.f32 1.5, %v5165_v51 }
0x3b27   :  { %v5178_v13 = vadd.f32 %v5723_v33, %v5175_v55 }
0x3b28   :  { %v5167_v36 = vmul.f32 %v6090_v40, %v5166_v9 }
0x3b29   :  { %5612 = vmatmul.msk.f32.vlgmr.msrb.gmra.mxu2 %vm91_vm6, %v5178_v13 }
0x3b2a   :  { %v5171_v28 = vsel %vm5170_vm4, %v6090_v40, %v5167_v36 }
0x3b2b   :  { %v5173_v38 = vmul.f32 %v5171_v28, %v7976_v59 }
0x3b2d   :  { %v5176_v15 = vmul.f32 %v5722_v34, %v5173_v38 }
0x3b2f   :  { %v5179_v23 = vadd.f32 %v5723_v33, %v5176_v15 }
0x3b31   :  { %5613 = vmatmul.msk.f32.gmra.mxu2 %vm91_vm6, %v5179_v23 }
0x3b7f   :  { %v5335_v35 = vpop.xlane.xlu2 %5334 }
0x3b80   :  { %v5339_v58 = vmul.f32 %v5335_v35, %v6279_v53 }
0x3b82   :  { %v5341_v4 = vadd.f32 1e-12, %v5339_v58 }
0x3b84   :  { %6091 = vrsqrt.f32 %v5341_v4  ;;  %vm5349_vm7 = vweird.f32 %v5341_v4 }
0x3b87   :  { %v5338_v42 = vpop.xlane.xlu1 %5337 }
0x3b88   :  { %v5340_v18 = vmul.f32 %v5338_v42, %v6279_v53 }
0x3b8a   :  { %v6092_v49 = vpop.eup %6091  ;;  %v5342_v57 = vadd.f32 1e-12, %v5340_v18 }
0x3b8b   :  { %v5344_v16 = vmul.f32 %v6092_v49, %v5341_v4  ;;  %vm5350_vm5 = vweird.f32 %v6092_v49 }
0x3b8c   :  { %6093 = vrsqrt.f32 %v5342_v57  ;;  %vm5351_vm8 = vmor %vm5349_vm7, %vm5350_vm5  ;;  %vm5359_vm11 = vweird.f32 %v5342_v57 }
0x3b8d   :  { %v5345_v44 = vmul.f32 %v6092_v49, %v5344_v16 }
0x3b8f   :  { %v5346_v56 = vmul.f32 0.5, %v5345_v44 }
0x3b91   :  { %v5347_v46 = vsub.f32 1.5, %v5346_v56 }
0x3b92   :  { %v6094_v2 = vpop.eup %6093 }
0x3b93   :  { %v5348_v14 = vmul.f32 %v6092_v49, %v5347_v46  ;;  %v5354_v54 = vmul.f32 %v6094_v2, %v5342_v57  ;;  %vm5360_vm9 = vweird.f32 %v6094_v2 }
0x3b94   :  { %vm5361_vm2 = vmor %vm5359_vm11, %vm5360_vm9 }
0x3b95   :  { %v5352_v30 = vsel %vm5351_vm8, %v6092_v49, %v5348_v14  ;;  %v5355_v61 = vmul.f32 %v6094_v2, %v5354_v54 }
0x3b96   :  { %v5363_v6 = vmul.f32 %v5352_v30, %v7989_v62  ;;  %v5724_v62 = vld [vmem:[%s8041_s4 + $0x18] ss:$0 sm:$0xff] }
0x3b97   :  { %v5356_v11 = vmul.f32 0.5, %v5355_v61 }
0x3b98   :  { %v5365_v59 = vmul.f32 %v5722_v34, %v5363_v6 }
0x3b99   :  { %v5357_v48 = vsub.f32 1.5, %v5356_v11 }
0x3b9a   :  { %v5367_v53 = vadd.f32 %v5723_v33, %v5365_v59 }
0x3b9b   :  { %v5358_v27 = vmul.f32 %v6094_v2, %v5357_v48 }
0x3b9c   :  { %5616 = vmatmul.msk.f32.vlgmr.msrb.gmra.mxu0 %vm91_vm6, %v5367_v53 }
0x3b9d   :  { %v5362_v7 = vsel %vm5361_vm2, %v6094_v2, %v5358_v27 }
0x3b9e   :  { %v5364_v60 = vmul.f32 %v5362_v7, %v8002_v50 }
0x3ba0   :  { %v5366_v29 = vmul.f32 %v5722_v34, %v5364_v60 }
0x3ba2   :  { %v5368_v0 = vadd.f32 %v5723_v33, %v5366_v29 }
0x3ba4   :  { %5617 = vmatmul.msk.f32.gmra.mxu0 %vm91_vm6, %v5368_v0 }
0x3bac   :  { %v5204_v43 = vpop.f32.mrf.mxu2 }
0x3bad   :  { %v5205_v32 = vadd.f32 %v5724_v62, %v5204_v43 }
0x3baf   :  { %5210 = vst [vmem:[%s8044_s5] sm:$0xff] %v5205_v32 }
0x3bb4   :  { %v5207_v52 = vpop.f32.mrf.mxu2 }
0x3bb5   :  { %v5208_v21 = vadd.f32 %v5724_v62, %v5207_v52 }
0x3bb7   :  { %5211 = vst [vmem:[%s8044_s5 + $0x8] sm:$0x1f] %v5208_v21 }
0x3c19   :  { %v5392_v63 = vpop.f32.mrf.mxu0 }
0x3c1a   :  { %v5393_v45 = vadd.f32 %v5724_v62, %v5392_v63 }
0x3c1c   :  { %5398 = vst [vmem:[%s8044_s5 + $0xd] sm:$0xff] %v5393_v45 }
0x3c21   :  { %v5395_v20 = vpop.f32.mrf.mxu0 }
0x3c22   :  { %v5396_v12 = vadd.f32 %v5724_v62, %v5395_v20 }
0x3c24   :  { %5399 = vst [vmem:[%s8044_s5 + $0x15] sm:$0x1f] %v5396_v12 }

</bundles_post_ra>
